<compile_context>
chip_gen: v7x
topology: tpu7x:2x2x1
jax: 0.10.0
libtpu: 0.0.40
codegen_flags: <defaults>
</compile_context>

<pallas_src>
import functools

import jax
import jax.numpy as jnp
from jax import lax
from jax.experimental import pallas as pl
from jax.experimental.pallas import tpu as pltpu


def _cdiv(a, b):
    return (a + b - 1) // b


def _round_up(a, b):
    return _cdiv(a, b) * b


# ---------------------------------------------------------------------------
# Pallas kernel: per-point MLP + max-pool for a block of TM point clouds under
# one rigid transform (already folded into the per-cloud layer-1 params).
# Layout: the point axis N lives on the 128-lane dim throughout; features live
# on sublanes.  Layer 1 is VPU-only; layers 2/3 are MXU matmuls.
# ---------------------------------------------------------------------------
def _ptnet_kernel(pts_ref, w1p_ref, w2t_ref, b2t_ref, w3t_ref, b3t_ref, out_ref):
    pts = pts_ref[...]            # (TM, 3, N)   N on lanes (dense)
    w1p = w1p_ref[0]              # (TM, H1, 4)  [Wx | Wy | Wz | bias], transform-folded
    tm = pts.shape[0]

    # ---- layer 1: three broadcast FMAs on the VPU (no K=3 MXU contraction)
    h = (w1p[:, :, 0:1] * pts[:, 0:1, :] +
         w1p[:, :, 1:2] * pts[:, 1:2, :] +
         w1p[:, :, 2:3] * pts[:, 2:3, :] +
         w1p[:, :, 3:4])                                              # (TM, H1, N)
    h = jnp.maximum(h, 0.0)

    # ---- layer 2: shared weights, batched over clouds ('bqk,bkd->bqd' pattern)
    w2b = jnp.broadcast_to(w2t_ref[...], (tm,) + w2t_ref.shape)       # (TM, H2, H1)
    h2 = jnp.einsum('mkh,mhn->mkn', w2b, h,
                    preferred_element_type=jnp.float32)               # (TM, H2, N)
    h2 = jnp.maximum(h2 + b2t_ref[...][None], 0.0)

    # ---- layer 3 (output dim zero-padded to Kp=128 for a lane-dense store)
    w3b = jnp.broadcast_to(w3t_ref[...], (tm,) + w3t_ref.shape)       # (TM, Kp, H2)
    h3 = jnp.einsum('mkh,mhn->mkn', w3b, h2,
                    preferred_element_type=jnp.float32) + b3t_ref[...][None]

    # ---- symmetric function: max over the N points (lane axis) -> (TM, Kp)
    out_ref[0] = jnp.max(h3, axis=-1)


def _choose_tm(m, n, h1, h2, kp, vmem_budget=24 << 20, cap=128):
    """Clouds per grid step, derived from a rough per-cloud VMEM estimate."""
    lane = lambda d: _round_up(d, 128)
    per_cloud_words = (2 * 8 * lane(n)                 # pts block (3->8 sublanes, 2 buffers)
                       + 2 * h1 * lane(4)              # folded layer-1 params (2 buffers)
                       + (h1 + h2 + kp) * lane(n)      # h / h2 / h3 intermediates
                       + h2 * lane(h1) + kp * lane(h2))  # broadcast shared weights
    tm = max(8, (vmem_budget // (4 * per_cloud_words)) // 8 * 8)
    tm = min(tm, cap, _round_up(m, 8))
    if _round_up(m, 8) >= 16:        # keep >= 2 cloud blocks so both cores get work
        tm = min(tm, _round_up(_cdiv(m, 2), 8))
    return int(tm)


def ptnet_features(points, gmats, params):
    """points: (M, N, 3); gmats: (M, 4, 4) or (M, P, 4, 4) rigid transforms.
    Returns PointNet global features: (M, K) or (M, P, K)."""
    w1, b1, w2, b2, w3, b3 = params
    squeeze = gmats.ndim == 3
    if squeeze:
        gmats = gmats[:, None]
    M, N, _ = points.shape
    P = gmats.shape[1]
    H1 = w1.shape[1]
    H2 = w2.shape[1]
    K = w3.shape[1]
    Kp = _round_up(K, 128)

    pts_t = jnp.transpose(points.astype(jnp.float32), (0, 2, 1))      # (M, 3, N)

    # fold the rigid transform into layer 1:
    #   relu((p R^T + t) W1 + b1) == relu(sum_c p_c * (R^T W1)[c, :] + (t W1 + b1))
    R = gmats[:, :, :3, :3].astype(jnp.float32)                        # (M, P, 3, 3)
    t = gmats[:, :, :3, 3].astype(jnp.float32)                         # (M, P, 3)
    w1e_t = jnp.einsum('hj,mpjc->mphc', w1.T.astype(jnp.float32), R)   # (M, P, H1, 3)
    b1e = jnp.einsum('mpj,jh->mph', t, w1.astype(jnp.float32)) + b1    # (M, P, H1)
    w1p = jnp.concatenate([w1e_t, b1e[..., None]], axis=-1)            # (M, P, H1, 4)
    w1p = jnp.transpose(w1p, (1, 0, 2, 3))                             # (P, M, H1, 4)

    # shared layer-2/3 params in the features-on-sublanes layout; last layer is
    # zero-padded to Kp lanes (padded biases stay 0 -> padded features stay 0).
    w2t = w2.T.astype(jnp.float32)                                     # (H2, H1)
    b2t = b2.T.astype(jnp.float32)                                     # (H2, 1)
    w3t = jnp.zeros((Kp, H2), jnp.float32).at[:K, :].set(w3.T)
    b3t = jnp.zeros((Kp, 1), jnp.float32).at[:K, :].set(b3.T)

    TM = _choose_tm(M, N, H1, H2, Kp)
    G = _cdiv(M, TM)
    Mp = G * TM
    if Mp != M:   # pad the cloud axis with zeros; padded rows are sliced off after
        pts_t = jnp.pad(pts_t, ((0, Mp - M), (0, 0), (0, 0)))
        w1p = jnp.pad(w1p, ((0, 0), (0, Mp - M), (0, 0), (0, 0)))

    # TODO(synk): for large N (real PointNet sizes) add an "arbitrary" grid axis
    # over N with a VMEM running-max accumulator so TM is decoupled from N.
    # TODO(synk): constant-weight operands could use pipeline_mode=pl.Buffered(1);
    # left double-buffered (default) for lowering robustness.
    out = pl.pallas_call(
        _ptnet_kernel,
        out_shape=jax.ShapeDtypeStruct((P, Mp, Kp), jnp.float32),
        grid_spec=pltpu.PrefetchScalarGridSpec(
            num_scalar_prefetch=0,
            grid=(G, P),
            in_specs=[
                # points ignore the perturbation axis -> block stays resident across j
                pl.BlockSpec((TM, 3, N), lambda g, j: (g, 0, 0)),
                pl.BlockSpec((1, TM, H1, 4), lambda g, j: (j, g, 0, 0)),
                pl.BlockSpec((H2, H1), lambda g, j: (0, 0)),
                pl.BlockSpec((H2, 1), lambda g, j: (0, 0)),
                pl.BlockSpec((Kp, H2), lambda g, j: (0, 0)),
                pl.BlockSpec((Kp, 1), lambda g, j: (0, 0)),
            ],
            out_specs=pl.BlockSpec((1, TM, Kp), lambda g, j: (j, g, 0)),
        ),
        compiler_params=pltpu.CompilerParams(
            dimension_semantics=("parallel", "arbitrary"),
            vmem_limit_bytes=32 * 1024 * 1024),
    )(pts_t, w1p, w2t, b2t, w3t, b3t)

    feats = jnp.transpose(out[:, :M, :K], (1, 0, 2))                   # (M, P, K)
    return feats[:, 0] if squeeze else feats


# ---------------------------------------------------------------------------
# se(3) utilities (plain JAX glue; tiny 4x4 / 6-vector math)
# ---------------------------------------------------------------------------
def _sinc_coeffs(t):
    small = jnp.abs(t) < 1e-6
    ts = jnp.where(small, 1.0, t)
    s1 = jnp.where(small, 1.0 - t * t / 6.0, jnp.sin(ts) / ts)
    s2 = jnp.where(small, 0.5 - t * t / 24.0, (1.0 - jnp.cos(ts)) / (ts * ts))
    s3 = jnp.where(small, 1.0 / 6.0 - t * t / 120.0, (ts - jnp.sin(ts)) / (ts ** 3))
    return s1, s2, s3


def _skew(w):  # (..., 3) -> (..., 3, 3)
    wx, wy, wz = w[..., 0], w[..., 1], w[..., 2]
    O = jnp.zeros_like(wx)
    return jnp.stack([
        jnp.stack([O, -wz, wy], axis=-1),
        jnp.stack([wz, O, -wx], axis=-1),
        jnp.stack([-wy, wx, O], axis=-1),
    ], axis=-2)


def se3_exp(x):
    """x: (..., 6) twist [w, v] -> (..., 4, 4) SE(3) matrix (se3.Exp)."""
    lead = x.shape[:-1]
    x_ = x.reshape(-1, 6).astype(jnp.float32)
    w, v = x_[:, :3], x_[:, 3:]
    t = jnp.linalg.norm(w, axis=1)
    s1, s2, s3 = _sinc_coeffs(t)
    W = _skew(w)
    S = jnp.einsum('bij,bjk->bik', W, W)
    I = jnp.eye(3, dtype=jnp.float32)
    R = I + s1[:, None, None] * W + s2[:, None, None] * S
    V = I + s2[:, None, None] * W + s3[:, None, None] * S
    p = jnp.einsum('bij,bj->bi', V, v)
    g = jnp.zeros((x_.shape[0], 4, 4), jnp.float32)
    g = g.at[:, :3, :3].set(R)
    g = g.at[:, :3, 3].set(p)
    g = g.at[:, 3, 3].set(1.0)
    return g.reshape(*lead, 4, 4)


# ---------------------------------------------------------------------------
# ICLK: fully jitted (fused Jacobian featurization + on-device GN iterations)
# ---------------------------------------------------------------------------
def _iclk_compute(params, dt, p0, p1, g0, maxiter, xtol):
    B, N, _ = p0.shape
    K = params[4].shape[1]   # w3: (H2, K)

    # f0 (identity) + the 6 twist perturbations via a single 2-D-grid
    # featurization of p0 -- no 7x replication of the point cloud.
    d = -jax.vmap(jnp.diag)(dt)                               # (B, 6, 6)
    D = se3_exp(d)                                            # (B, 6, 4, 4)
    eye = jnp.broadcast_to(jnp.eye(4, dtype=jnp.float32), (B, 1, 4, 4))
    gm_all = jnp.concatenate([eye, D], axis=1)                # (B, 7, 4, 4)
    feats = ptnet_features(p0, gm_all, params)                # (B, 7, K)
    f0 = feats[:, 0]                                          # (B, K)
    f_pert = jnp.transpose(feats[:, 1:], (0, 2, 1))           # (B, K, 6)
    J = (f0[:, :, None] - f_pert) / dt[:, None, :]            # (B, K, 6)

    Jt = jnp.transpose(J, (0, 2, 1))                          # (B, 6, K)
    H = jnp.einsum('bik,bkj->bij', Jt, J)                     # (B, 6, 6)
    Hinv = jnp.linalg.inv(H)   # TODO(synk): reference uses plain inverse; a ridge/pinv fallback would be more robust.
    pinv = jnp.einsum('bij,bjk->bik', Hinv, Jt)               # (B, 6, K)

    g_series0 = jnp.zeros((maxiter + 1, B, 4, 4), jnp.float32).at[0].set(g0)
    r0 = jnp.zeros((B, K), jnp.float32)

    def cond_fn(carry):
        itr, conv, _, _, _, _ = carry
        return jnp.logical_and(itr < maxiter, jnp.logical_not(conv))

    def body_fn(carry):
        itr, conv, g, r, prev_r, gs = carry
        f = ptnet_features(p1, g, params)                     # ptnet(transform(g, p1))
        r_new = f - f0                                        # (B, K)
        dx = -jnp.einsum('bik,bk->bi', pinv, r_new)           # (B, 6)
        check = jnp.max(jnp.linalg.norm(dx, axis=1))
        conv_new = check < xtol
        g_upd = jnp.einsum('bij,bjk->bik', se3_exp(dx), g)    # dg @ g
        g_new = jnp.where(conv_new, g, g_upd)
        gs_new = jnp.where(conv_new, gs, gs.at[itr + 1].set(g_upd))
        return (itr + 1, conv_new, g_new, r_new, r, gs_new)

    carry0 = (jnp.int32(0), jnp.array(False), g0, r0, r0, g_series0)
    itr, conv, g, r, prev_r, gs = lax.while_loop(cond_fn, body_fn, carry0)

    # fill remaining g_series entries with the final estimate (g_series[itr:] = g)
    idx = jnp.arange(maxiter + 1)
    gs = jnp.where((idx >= itr)[:, None, None, None], g[None], gs)
    return r, g, itr, conv, gs, prev_r


@functools.partial(jax.jit, static_argnums=(5,))
def _iclk_jit(params, dt, p0, p1, g0, maxiter, xtol):
    return _iclk_compute(params, dt, p0, p1, g0, maxiter, xtol)


# ---------------------------------------------------------------------------
# PointLK
# ---------------------------------------------------------------------------
class PointLKPallas:
    # TODO(synk): the reference ptnet uses BatchNorm; in eval mode it is an affine
    # map folded into the weights -- omitted in this synthetic parameterization.
    def __init__(self, key, dim_k=32, hidden=(32, 64), delta=0.01):
        h1, h2 = hidden
        k1, k2, k3, k4, k5, k6 = jax.random.split(key, 6)
        self.w1 = (jax.random.normal(k1, (3, h1)) / jnp.sqrt(3.0)).astype(jnp.float32)
        self.b1 = (0.01 * jax.random.normal(k4, (1, h1))).astype(jnp.float32)
        self.w2 = (jax.random.normal(k2, (h1, h2)) / jnp.sqrt(float(h1))).astype(jnp.float32)
        self.b2 = (0.01 * jax.random.normal(k5, (1, h2))).astype(jnp.float32)
        self.w3 = (jax.random.normal(k3, (h2, dim_k)) / jnp.sqrt(float(h2))).astype(jnp.float32)
        self.b3 = (0.01 * jax.random.normal(k6, (1, dim_k))).astype(jnp.float32)
        self.dim_k = dim_k
        self.dt = jnp.full((1, 6), delta, jnp.float32)   # twist step (frozen)
        self.g = None
        self.g_series = None
        self.itr = 0
        self.last_err = None
        self.prev_r = None

    def _params(self):
        return (self.w1, self.b1, self.w2, self.b2, self.w3, self.b3)

    def ptnet(self, points, gmats=None):
        M = points.shape[0]
        if gmats is None:
            gmats = jnp.broadcast_to(jnp.eye(4, dtype=jnp.float32), (M, 4, 4))
        return ptnet_features(points, gmats, self._params())

    def forward(self, p0, p1, maxiter=10, xtol=1e-7):
        B = p0.shape[0]
        g0 = jnp.broadcast_to(jnp.eye(4, dtype=jnp.float32), (B, 4, 4))
        dt = jnp.tile(self.dt, (B, 1))
        r, g, itr, conv, gs, prev_r = _iclk_jit(
            self._params(), dt, p0.astype(jnp.float32), p1.astype(jnp.float32),
            g0, int(maxiter), float(xtol))
        itr_host = int(itr)          # single host sync, after the whole jitted loop
        self.g = g
        self.g_series = gs
        self.prev_r = prev_r
        self.itr = itr_host
        self.last_err = 0 if (bool(conv) and itr_host == 1) else None
        return r

    __call__ = forward

    def iclk(self, g0, p0, p1, maxiter, xtol):
        r, g, itr, conv, gs, prev_r = _iclk_jit(
            self._params(), jnp.tile(self.dt, (p0.shape[0], 1)),
            p0.astype(jnp.float32), p1.astype(jnp.float32), g0,
            int(maxiter), float(xtol))
        self.g_series = gs
        self.prev_r = prev_r
        return r, g, int(itr)


# ---------------------------------------------------------------------------
if __name__ == "__main__":
    key = jax.random.PRNGKey(0)
    k_pts, k_model = jax.random.split(key, 2)

    B, N, K = 2, 64, 32
    model = PointLKPallas(k_model, dim_k=K, hidden=(32, 64), delta=0.01)

    p0 = jax.random.normal(k_pts, (B, N, 3), jnp.float32)
    # p1 = small rigid transform of p0
    twist_gt = jnp.array([[0.02, -0.01, 0.03, 0.05, -0.02, 0.01],
                          [-0.03, 0.02, 0.01, -0.04, 0.03, 0.02]], jnp.float32)
    g_gt = se3_exp(twist_gt)
    p1 = jnp.einsum('bij,bnj->bni', g_gt[:, :3, :3], p0) + g_gt[:, None, :3, 3]

    r = model.forward(p0, p1, maxiter=3, xtol=1e-7)
    r = jax.block_until_ready(r)
    g = jax.block_until_ready(model.g)

    assert r.shape == (B, K)
    assert g.shape == (B, 4, 4)
    assert model.g_series.shape == (4, B, 4, 4)
    assert bool(jnp.all(jnp.isfinite(r))) and bool(jnp.all(jnp.isfinite(g)))
    print("KERNEL_OK")
</pallas_src>

<mosaic_0001>
module attributes {stable_mosaic.version = 11 : i64} {
  func.func @_ptnet_kernel(%arg0: i32, %arg1: i32, %arg2: memref<8x3x64xf32, #tpu.memory_space<vmem>>, %arg3: memref<1x8x32x4xf32, #tpu.memory_space<vmem>>, %arg4: memref<64x32xf32, #tpu.memory_space<vmem>>, %arg5: memref<64x1xf32, #tpu.memory_space<vmem>>, %arg6: memref<128x64xf32, #tpu.memory_space<vmem>>, %arg7: memref<128x1xf32, #tpu.memory_space<vmem>>, %arg8: memref<1x8x128xf32, #tpu.memory_space<vmem>>) attributes {dimension_semantics = [#tpu.dimension_semantics<parallel>, #tpu.dimension_semantics<arbitrary>], iteration_bounds = array<i64: 1, 7>, scalar_prefetch = 0 : i64, scratch_operands = 0 : i64, tpu.core_type = #tpu.core_type<tc>, window_params = [{transform_indices = @transform_0, window_bounds = array<i64: 8, 3, 64>}, {transform_indices = @transform_1, window_bounds = array<i64: 1, 8, 32, 4>}, {pipeline_mode = #tpu.pipeline_mode<synchronous>, transform_indices = @transform_2, window_bounds = array<i64: 64, 32>}, {pipeline_mode = #tpu.pipeline_mode<synchronous>, transform_indices = @transform_3, window_bounds = array<i64: 64, 1>}, {pipeline_mode = #tpu.pipeline_mode<synchronous>, transform_indices = @transform_4, window_bounds = array<i64: 128, 64>}, {pipeline_mode = #tpu.pipeline_mode<synchronous>, transform_indices = @transform_5, window_bounds = array<i64: 128, 1>}, {transform_indices = @transform_6, window_bounds = array<i64: 1, 8, 128>}]} {
    %c0 = arith.constant 0 : index
    %c0_0 = arith.constant 0 : index
    %c0_1 = arith.constant 0 : index
    %0 = vector.load %arg2[%c0, %c0_0, %c0_1] : memref<8x3x64xf32, #tpu.memory_space<vmem>>, vector<8x3x64xf32>
    %c0_2 = arith.constant 0 : index
    %c0_3 = arith.constant 0 : index
    %c0_4 = arith.constant 0 : index
    %c0_5 = arith.constant 0 : index
    %1 = vector.load %arg3[%c0_2, %c0_3, %c0_4, %c0_5] : memref<1x8x32x4xf32, #tpu.memory_space<vmem>>, vector<1x8x32x4xf32>
    %2 = vector.shape_cast %1 : vector<1x8x32x4xf32> to vector<8x32x4xf32>
    %3 = vector.extract_strided_slice %2 {offsets = [0, 0, 0], sizes = [8, 32, 1], strides = [1, 1, 1]} : vector<8x32x4xf32> to vector<8x32x1xf32>
    %4 = vector.extract_strided_slice %0 {offsets = [0, 0, 0], sizes = [8, 1, 64], strides = [1, 1, 1]} : vector<8x3x64xf32> to vector<8x1x64xf32>
    %5 = vector.broadcast %3 : vector<8x32x1xf32> to vector<8x32x64xf32>
    %6 = vector.broadcast %4 : vector<8x1x64xf32> to vector<8x32x64xf32>
    %7 = arith.mulf %5, %6 : vector<8x32x64xf32>
    %8 = vector.extract_strided_slice %2 {offsets = [0, 0, 1], sizes = [8, 32, 1], strides = [1, 1, 1]} : vector<8x32x4xf32> to vector<8x32x1xf32>
    %9 = vector.extract_strided_slice %0 {offsets = [0, 1, 0], sizes = [8, 1, 64], strides = [1, 1, 1]} : vector<8x3x64xf32> to vector<8x1x64xf32>
    %10 = vector.broadcast %8 : vector<8x32x1xf32> to vector<8x32x64xf32>
    %11 = vector.broadcast %9 : vector<8x1x64xf32> to vector<8x32x64xf32>
    %12 = arith.mulf %10, %11 : vector<8x32x64xf32>
    %13 = arith.addf %7, %12 : vector<8x32x64xf32>
    %14 = vector.extract_strided_slice %2 {offsets = [0, 0, 2], sizes = [8, 32, 1], strides = [1, 1, 1]} : vector<8x32x4xf32> to vector<8x32x1xf32>
    %15 = vector.extract_strided_slice %0 {offsets = [0, 2, 0], sizes = [8, 1, 64], strides = [1, 1, 1]} : vector<8x3x64xf32> to vector<8x1x64xf32>
    %16 = vector.broadcast %14 : vector<8x32x1xf32> to vector<8x32x64xf32>
    %17 = vector.broadcast %15 : vector<8x1x64xf32> to vector<8x32x64xf32>
    %18 = arith.mulf %16, %17 : vector<8x32x64xf32>
    %19 = arith.addf %13, %18 : vector<8x32x64xf32>
    %20 = vector.extract_strided_slice %2 {offsets = [0, 0, 3], sizes = [8, 32, 1], strides = [1, 1, 1]} : vector<8x32x4xf32> to vector<8x32x1xf32>
    %21 = vector.broadcast %20 : vector<8x32x1xf32> to vector<8x32x64xf32>
    %22 = arith.addf %19, %21 : vector<8x32x64xf32>
    %cst = arith.constant 0.000000e+00 : f32
    %23 = vector.broadcast %cst : f32 to vector<8x32x64xf32>
    %24 = arith.maximumf %22, %23 : vector<8x32x64xf32>
    %c0_6 = arith.constant 0 : index
    %c0_7 = arith.constant 0 : index
    %25 = vector.load %arg4[%c0_6, %c0_7] : memref<64x32xf32, #tpu.memory_space<vmem>>, vector<64x32xf32>
    %26 = vector.shape_cast %25 : vector<64x32xf32> to vector<1x64x32xf32>
    %27 = vector.broadcast %26 : vector<1x64x32xf32> to vector<8x64x32xf32>
    "tpu.trace_start"() <{level = 10 : i32, message = "mkh,mhn->mkn"}> : () -> ()
    %cst_8 = arith.constant dense<0.000000e+00> : vector<8x64x64xf32>
    %28 = tpu.matmul %27, %24, %cst_8 {dimension_numbers = #tpu.dot_dimension_numbers<[2], [1], [1], [2], [0, 0, 0, 1, 1, 2], [0], [0]>} : vector<8x64x32xf32>, vector<8x32x64xf32>, vector<8x64x64xf32> -> vector<8x64x64xf32>
    "tpu.trace_stop"() : () -> ()
    %c0_9 = arith.constant 0 : index
    %c0_10 = arith.constant 0 : index
    %29 = vector.load %arg5[%c0_9, %c0_10] : memref<64x1xf32, #tpu.memory_space<vmem>>, vector<64x1xf32>
    %30 = vector.shape_cast %29 : vector<64x1xf32> to vector<1x64x1xf32>
    %31 = vector.broadcast %30 : vector<1x64x1xf32> to vector<8x64x64xf32>
    %32 = arith.addf %28, %31 : vector<8x64x64xf32>
    %cst_11 = arith.constant 0.000000e+00 : f32
    %33 = vector.broadcast %cst_11 : f32 to vector<8x64x64xf32>
    %34 = arith.maximumf %32, %33 : vector<8x64x64xf32>
    %c0_12 = arith.constant 0 : index
    %c0_13 = arith.constant 0 : index
    %35 = vector.load %arg6[%c0_12, %c0_13] : memref<128x64xf32, #tpu.memory_space<vmem>>, vector<128x64xf32>
    %36 = vector.shape_cast %35 : vector<128x64xf32> to vector<1x128x64xf32>
    %37 = vector.broadcast %36 : vector<1x128x64xf32> to vector<8x128x64xf32>
    "tpu.trace_start"() <{level = 10 : i32, message = "mkh,mhn->mkn"}> : () -> ()
    %cst_14 = arith.constant dense<0.000000e+00> : vector<8x128x64xf32>
    %38 = tpu.matmul %37, %34, %cst_14 {dimension_numbers = #tpu.dot_dimension_numbers<[2], [1], [1], [2], [0, 0, 0, 1, 1, 2], [0], [0]>} : vector<8x128x64xf32>, vector<8x64x64xf32>, vector<8x128x64xf32> -> vector<8x128x64xf32>
    "tpu.trace_stop"() : () -> ()
    %c0_15 = arith.constant 0 : index
    %c0_16 = arith.constant 0 : index
    %39 = vector.load %arg7[%c0_15, %c0_16] : memref<128x1xf32, #tpu.memory_space<vmem>>, vector<128x1xf32>
    %40 = vector.shape_cast %39 : vector<128x1xf32> to vector<1x128x1xf32>
    %41 = vector.broadcast %40 : vector<1x128x1xf32> to vector<8x128x64xf32>
    %42 = arith.addf %38, %41 : vector<8x128x64xf32>
    %cst_17 = arith.constant dense<0xFF800000> : vector<8x128xf32>
    %43 = vector.multi_reduction <maximumf>, %42, %cst_17 [2] : vector<8x128x64xf32> to vector<8x128xf32>
    %c0_18 = arith.constant 0 : index
    %c0_19 = arith.constant 0 : index
    %c0_20 = arith.constant 0 : index
    %44 = vector.load %arg8[%c0_18, %c0_19, %c0_20] : memref<1x8x128xf32, #tpu.memory_space<vmem>>, vector<1x8x128xf32>
    %45 = vector.shape_cast %44 : vector<1x8x128xf32> to vector<8x128xf32>
    %46 = vector.shape_cast %43 : vector<8x128xf32> to vector<1x8x128xf32>
    tpu.vector_store %arg8[%c0_18, %c0_19, %c0_20], %46 {strides = array<i32>} : memref<1x8x128xf32, #tpu.memory_space<vmem>>, vector<1x8x128xf32>,
    return
  }
  func.func @transform_0(%arg0: i32, %arg1: i32) -> (i32, i32, i32) {
    %c0_i32 = arith.constant 0 : i32
    %c0_i32_0 = arith.constant 0 : i32
    %c0_i32_1 = arith.constant 0 : i32
    return %arg0, %c0_i32, %c0_i32_0 : i32, i32, i32
  }
  func.func @transform_1(%arg0: i32, %arg1: i32) -> (i32, i32, i32, i32) {
    %c0_i32 = arith.constant 0 : i32
    %c0_i32_0 = arith.constant 0 : i32
    %c0_i32_1 = arith.constant 0 : i32
    return %arg1, %arg0, %c0_i32, %c0_i32_0 : i32, i32, i32, i32
  }
  func.func @transform_2(%arg0: i32, %arg1: i32) -> (i32, i32) {
    %c0_i32 = arith.constant 0 : i32
    %c0_i32_0 = arith.constant 0 : i32
    %c0_i32_1 = arith.constant 0 : i32
    return %c0_i32, %c0_i32_0 : i32, i32
  }
  func.func @transform_3(%arg0: i32, %arg1: i32) -> (i32, i32) {
    %c0_i32 = arith.constant 0 : i32
    %c0_i32_0 = arith.constant 0 : i32
    %c0_i32_1 = arith.constant 0 : i32
    return %c0_i32, %c0_i32_0 : i32, i32
  }
  func.func @transform_4(%arg0: i32, %arg1: i32) -> (i32, i32) {
    %c0_i32 = arith.constant 0 : i32
    %c0_i32_0 = arith.constant 0 : i32
    %c0_i32_1 = arith.constant 0 : i32
    return %c0_i32, %c0_i32_0 : i32, i32
  }
  func.func @transform_5(%arg0: i32, %arg1: i32) -> (i32, i32) {
    %c0_i32 = arith.constant 0 : i32
    %c0_i32_0 = arith.constant 0 : i32
    %c0_i32_1 = arith.constant 0 : i32
    return %c0_i32, %c0_i32_0 : i32, i32
  }
  func.func @transform_6(%arg0: i32, %arg1: i32) -> (i32, i32, i32) {
    %c0_i32 = arith.constant 0 : i32
    %c0_i32_0 = arith.constant 0 : i32
    return %arg1, %arg0, %c0_i32 : i32, i32, i32
  }
}

module attributes {stable_mosaic.version = 11 : i64} {
  func.func @_ptnet_kernel(%arg0: i32, %arg1: i32, %arg2: memref<8x3x64xf32, #tpu.memory_space<vmem>>, %arg3: memref<1x8x32x4xf32, #tpu.memory_space<vmem>>, %arg4: memref<64x32xf32, #tpu.memory_space<vmem>>, %arg5: memref<64x1xf32, #tpu.memory_space<vmem>>, %arg6: memref<128x64xf32, #tpu.memory_space<vmem>>, %arg7: memref<128x1xf32, #tpu.memory_space<vmem>>, %arg8: memref<1x8x128xf32, #tpu.memory_space<vmem>>) attributes {dimension_semantics = [#tpu.dimension_semantics<parallel>, #tpu.dimension_semantics<arbitrary>], iteration_bounds = array<i64: 1, 1>, scalar_prefetch = 0 : i64, scratch_operands = 0 : i64, tpu.core_type = #tpu.core_type<tc>, window_params = [{transform_indices = @transform_0, window_bounds = array<i64: 8, 3, 64>}, {transform_indices = @transform_1, window_bounds = array<i64: 1, 8, 32, 4>}, {pipeline_mode = #tpu.pipeline_mode<synchronous>, transform_indices = @transform_2, window_bounds = array<i64: 64, 32>}, {pipeline_mode = #tpu.pipeline_mode<synchronous>, transform_indices = @transform_3, window_bounds = array<i64: 64, 1>}, {pipeline_mode = #tpu.pipeline_mode<synchronous>, transform_indices = @transform_4, window_bounds = array<i64: 128, 64>}, {pipeline_mode = #tpu.pipeline_mode<synchronous>, transform_indices = @transform_5, window_bounds = array<i64: 128, 1>}, {transform_indices = @transform_6, window_bounds = array<i64: 1, 8, 128>}]} {
    %c0 = arith.constant 0 : index
    %c0_0 = arith.constant 0 : index
    %c0_1 = arith.constant 0 : index
    %0 = vector.load %arg2[%c0, %c0_0, %c0_1] : memref<8x3x64xf32, #tpu.memory_space<vmem>>, vector<8x3x64xf32>
    %c0_2 = arith.constant 0 : index
    %c0_3 = arith.constant 0 : index
    %c0_4 = arith.constant 0 : index
    %c0_5 = arith.constant 0 : index
    %1 = vector.load %arg3[%c0_2, %c0_3, %c0_4, %c0_5] : memref<1x8x32x4xf32, #tpu.memory_space<vmem>>, vector<1x8x32x4xf32>
    %2 = vector.shape_cast %1 : vector<1x8x32x4xf32> to vector<8x32x4xf32>
    %3 = vector.extract_strided_slice %2 {offsets = [0, 0, 0], sizes = [8, 32, 1], strides = [1, 1, 1]} : vector<8x32x4xf32> to vector<8x32x1xf32>
    %4 = vector.extract_strided_slice %0 {offsets = [0, 0, 0], sizes = [8, 1, 64], strides = [1, 1, 1]} : vector<8x3x64xf32> to vector<8x1x64xf32>
    %5 = vector.broadcast %3 : vector<8x32x1xf32> to vector<8x32x64xf32>
    %6 = vector.broadcast %4 : vector<8x1x64xf32> to vector<8x32x64xf32>
    %7 = arith.mulf %5, %6 : vector<8x32x64xf32>
    %8 = vector.extract_strided_slice %2 {offsets = [0, 0, 1], sizes = [8, 32, 1], strides = [1, 1, 1]} : vector<8x32x4xf32> to vector<8x32x1xf32>
    %9 = vector.extract_strided_slice %0 {offsets = [0, 1, 0], sizes = [8, 1, 64], strides = [1, 1, 1]} : vector<8x3x64xf32> to vector<8x1x64xf32>
    %10 = vector.broadcast %8 : vector<8x32x1xf32> to vector<8x32x64xf32>
    %11 = vector.broadcast %9 : vector<8x1x64xf32> to vector<8x32x64xf32>
    %12 = arith.mulf %10, %11 : vector<8x32x64xf32>
    %13 = arith.addf %7, %12 : vector<8x32x64xf32>
    %14 = vector.extract_strided_slice %2 {offsets = [0, 0, 2], sizes = [8, 32, 1], strides = [1, 1, 1]} : vector<8x32x4xf32> to vector<8x32x1xf32>
    %15 = vector.extract_strided_slice %0 {offsets = [0, 2, 0], sizes = [8, 1, 64], strides = [1, 1, 1]} : vector<8x3x64xf32> to vector<8x1x64xf32>
    %16 = vector.broadcast %14 : vector<8x32x1xf32> to vector<8x32x64xf32>
    %17 = vector.broadcast %15 : vector<8x1x64xf32> to vector<8x32x64xf32>
    %18 = arith.mulf %16, %17 : vector<8x32x64xf32>
    %19 = arith.addf %13, %18 : vector<8x32x64xf32>
    %20 = vector.extract_strided_slice %2 {offsets = [0, 0, 3], sizes = [8, 32, 1], strides = [1, 1, 1]} : vector<8x32x4xf32> to vector<8x32x1xf32>
    %21 = vector.broadcast %20 : vector<8x32x1xf32> to vector<8x32x64xf32>
    %22 = arith.addf %19, %21 : vector<8x32x64xf32>
    %cst = arith.constant 0.000000e+00 : f32
    %23 = vector.broadcast %cst : f32 to vector<8x32x64xf32>
    %24 = arith.maximumf %22, %23 : vector<8x32x64xf32>
    %c0_6 = arith.constant 0 : index
    %c0_7 = arith.constant 0 : index
    %25 = vector.load %arg4[%c0_6, %c0_7] : memref<64x32xf32, #tpu.memory_space<vmem>>, vector<64x32xf32>
    %26 = vector.shape_cast %25 : vector<64x32xf32> to vector<1x64x32xf32>
    %27 = vector.broadcast %26 : vector<1x64x32xf32> to vector<8x64x32xf32>
    "tpu.trace_start"() <{level = 10 : i32, message = "mkh,mhn->mkn"}> : () -> ()
    %cst_8 = arith.constant dense<0.000000e+00> : vector<8x64x64xf32>
    %28 = tpu.matmul %27, %24, %cst_8 {dimension_numbers = #tpu.dot_dimension_numbers<[2], [1], [1], [2], [0, 0, 0, 1, 1, 2], [0], [0]>} : vector<8x64x32xf32>, vector<8x32x64xf32>, vector<8x64x64xf32> -> vector<8x64x64xf32>
    "tpu.trace_stop"() : () -> ()
    %c0_9 = arith.constant 0 : index
    %c0_10 = arith.constant 0 : index
    %29 = vector.load %arg5[%c0_9, %c0_10] : memref<64x1xf32, #tpu.memory_space<vmem>>, vector<64x1xf32>
    %30 = vector.shape_cast %29 : vector<64x1xf32> to vector<1x64x1xf32>
    %31 = vector.broadcast %30 : vector<1x64x1xf32> to vector<8x64x64xf32>
    %32 = arith.addf %28, %31 : vector<8x64x64xf32>
    %cst_11 = arith.constant 0.000000e+00 : f32
    %33 = vector.broadcast %cst_11 : f32 to vector<8x64x64xf32>
    %34 = arith.maximumf %32, %33 : vector<8x64x64xf32>
    %c0_12 = arith.constant 0 : index
    %c0_13 = arith.constant 0 : index
    %35 = vector.load %arg6[%c0_12, %c0_13] : memref<128x64xf32, #tpu.memory_space<vmem>>, vector<128x64xf32>
    %36 = vector.shape_cast %35 : vector<128x64xf32> to vector<1x128x64xf32>
    %37 = vector.broadcast %36 : vector<1x128x64xf32> to vector<8x128x64xf32>
    "tpu.trace_start"() <{level = 10 : i32, message = "mkh,mhn->mkn"}> : () -> ()
    %cst_14 = arith.constant dense<0.000000e+00> : vector<8x128x64xf32>
    %38 = tpu.matmul %37, %34, %cst_14 {dimension_numbers = #tpu.dot_dimension_numbers<[2], [1], [1], [2], [0, 0, 0, 1, 1, 2], [0], [0]>} : vector<8x128x64xf32>, vector<8x64x64xf32>, vector<8x128x64xf32> -> vector<8x128x64xf32>
    "tpu.trace_stop"() : () -> ()
    %c0_15 = arith.constant 0 : index
    %c0_16 = arith.constant 0 : index
    %39 = vector.load %arg7[%c0_15, %c0_16] : memref<128x1xf32, #tpu.memory_space<vmem>>, vector<128x1xf32>
    %40 = vector.shape_cast %39 : vector<128x1xf32> to vector<1x128x1xf32>
    %41 = vector.broadcast %40 : vector<1x128x1xf32> to vector<8x128x64xf32>
    %42 = arith.addf %38, %41 : vector<8x128x64xf32>
    %cst_17 = arith.constant dense<0xFF800000> : vector<8x128xf32>
    %43 = vector.multi_reduction <maximumf>, %42, %cst_17 [2] : vector<8x128x64xf32> to vector<8x128xf32>
    %c0_18 = arith.constant 0 : index
    %c0_19 = arith.constant 0 : index
    %c0_20 = arith.constant 0 : index
    %44 = vector.load %arg8[%c0_18, %c0_19, %c0_20] : memref<1x8x128xf32, #tpu.memory_space<vmem>>, vector<1x8x128xf32>
    %45 = vector.shape_cast %44 : vector<1x8x128xf32> to vector<8x128xf32>
    %46 = vector.shape_cast %43 : vector<8x128xf32> to vector<1x8x128xf32>
    tpu.vector_store %arg8[%c0_18, %c0_19, %c0_20], %46 {strides = array<i32>} : memref<1x8x128xf32, #tpu.memory_space<vmem>>, vector<1x8x128xf32>,
    return
  }
  func.func @transform_0(%arg0: i32, %arg1: i32) -> (i32, i32, i32) {
    %c0_i32 = arith.constant 0 : i32
    %c0_i32_0 = arith.constant 0 : i32
    %c0_i32_1 = arith.constant 0 : i32
    return %arg0, %c0_i32, %c0_i32_0 : i32, i32, i32
  }
  func.func @transform_1(%arg0: i32, %arg1: i32) -> (i32, i32, i32, i32) {
    %c0_i32 = arith.constant 0 : i32
    %c0_i32_0 = arith.constant 0 : i32
    %c0_i32_1 = arith.constant 0 : i32
    return %arg1, %arg0, %c0_i32, %c0_i32_0 : i32, i32, i32, i32
  }
  func.func @transform_2(%arg0: i32, %arg1: i32) -> (i32, i32) {
    %c0_i32 = arith.constant 0 : i32
    %c0_i32_0 = arith.constant 0 : i32
    %c0_i32_1 = arith.constant 0 : i32
    return %c0_i32, %c0_i32_0 : i32, i32
  }
  func.func @transform_3(%arg0: i32, %arg1: i32) -> (i32, i32) {
    %c0_i32 = arith.constant 0 : i32
    %c0_i32_0 = arith.constant 0 : i32
    %c0_i32_1 = arith.constant 0 : i32
    return %c0_i32, %c0_i32_0 : i32, i32
  }
  func.func @transform_4(%arg0: i32, %arg1: i32) -> (i32, i32) {
    %c0_i32 = arith.constant 0 : i32
    %c0_i32_0 = arith.constant 0 : i32
    %c0_i32_1 = arith.constant 0 : i32
    return %c0_i32, %c0_i32_0 : i32, i32
  }
  func.func @transform_5(%arg0: i32, %arg1: i32) -> (i32, i32) {
    %c0_i32 = arith.constant 0 : i32
    %c0_i32_0 = arith.constant 0 : i32
    %c0_i32_1 = arith.constant 0 : i32
    return %c0_i32, %c0_i32_0 : i32, i32
  }
  func.func @transform_6(%arg0: i32, %arg1: i32) -> (i32, i32, i32) {
    %c0_i32 = arith.constant 0 : i32
    %c0_i32_0 = arith.constant 0 : i32
    return %arg1, %arg0, %c0_i32 : i32, i32, i32
  }
}

</mosaic_0001>

<bundles_post_ra>
// kernel: custom-call.11
= control target key start
LH: loop header
LB: loop body
LE: loop exit
PB: predicated region body
PF: predicated region fallthrough
CT: control target
= control target key end

     0   :  { %5 = vsyncpa [#allocation4], 0  ;;  %s889_s0 = inlined_call_operand.vmem [shape: f32[2,6,6], index: 0, kind: input, shape index: {}]   ;;  %s890_s1 = inlined_call_operand.vmem [shape: f32[2,6,6], index: 1, kind: output, shape index: {0}]   ;;  %s891_s2 = inlined_call_operand.hbm [shape: s32[2,6], index: 2, kind: output, shape index: {1}]   ;;  %s892_s3 = inlined_call_operand.vmem [shape: s32[2,6], index: 3, kind: output, shape index: {2}]  }
   0x1   :  { %7 = vsyncpa [#allocation4 + $0x1], 0  ;;  %s707_s12 = smov 0   ;;  %s709_s13 = smov 0  }
   0x2   :  { %s711_s14 = smov 0   ;;  %s713_s15 = smov 0  }
   0x3 LB: > { %s728_s16 = sadd.s32 4294967295, %s679_s15   ;;  %s542_s17 = sadd.s32 4294967294, %s679_s15   ;;  %s679_s15 = sphi %s713_s15, %s900_s15   ;;  %s675_s14 = sphi %s711_s14, %s899_s14   ;;  %s671_s13 = sphi %s709_s13, %s898_s13   ;;  %s667_s12 = sphi %s707_s12, %s897_s12  }
   0x4   : > { %s732_s18 = sadd.s32 1, %s679_s15   ;;  %s17_s19 = sshrl.u32 %s679_s15, 3 }
   0x5   : > { %s18_s20 = sshrl.u32 %s732_s18, 3  ;;  %s22_s21 = sadd.s32 1, %s675_s14 }
   0x6   : > { %s19_s22 = ssub.s32 %s17_s19, %s18_s20  ;;  %p32_p0 = scmp.ne.s32.totalorder %s675_s14, %s671_s13 }
   0x7   : > { %p20_p1 = scmp.eq.s32.totalorder %s19_s22, 0  ;;  %p33_p2 = scmp.eq.s32.totalorder %s728_s16, 1 }
   0x8   : > { %p38_p3 = scmp.ne.s32.totalorder %s671_s13, %s667_s12  ;;  %p39_p4 = scmp.eq.s32.totalorder %s542_s17, 1 }
   0x9   : > { %s743_s23 = scalar_select %p20_p1, %s675_s14, %s22_s21  }
   0xa   : > { %p745_p5 = por %p33_p2, %p32_p0  ;;  %p749_p6 = por %p39_p4, %p38_p3 }
   0xb   : > { %p544_p7 = scmp.ge.s32.totalorder %s679_s15, 2 }
   0xc   : > { %s85_s26 = sand.u32 (!%p544_p7), 1, %s679_s15   ;;  %s546_s27 = sshll.u32 (!%p544_p7), %s679_s15, 3 }
   0xd   : > { %83 = sbr.rel (%p544_p7) target bundleno = 20 (0x14), region = 16  ;;  %s545_s28 = sshll.u32 (!%p544_p7), %s85_s26, 3 }
   0xe   : > { %s89_s4 = scalar_lea.vmem (!%p544_p7), %s889_s0, %s546_s27  ;;  %s87_s5 = scalar_lea.vmem (!%p544_p7), [#allocation0], %s545_s28 }
   0xf   : > { %v117_v0 = vld [vmem:[%s89_s4] sm:$0xff] (!%p544_p7) }
  0x10   : > { %118 = vst [vmem:[%s87_s5] sm:$0xff] (!%p544_p7), %v117_v0 }
  0x14 PF: > { %p547_p8 = scmp.ge.s32.totalorder %s679_s15, 1  ;;  %p123_p9 = scmp.lt.s32.totalorder %s679_s15, 3 }
  0x16   : > { %p124_p10 = pnand %p547_p8, %p123_p9 }
  0x18   : > { %127 = sbr.rel (%p124_p10) target bundleno = 441 (0x1b9), region = 54 }
  0x1f   : > { %s130_s6 = sand.u32 1, %s728_s16   ;;  %s145_s7 = sand.u32 1, %s671_s13   ;;  %v163_v1 = vlaneseq  ;;  %v685_v4 = vmov 0  }
  0x20   : > { %s548_s8 = sshll.u32 %s130_s6, 3  ;;  %s767_s9 = sshll.u32 %s145_s7, 1 }
  0x21   : > { %v770_v2 = vshrl.u32 %v163_v1, 7  ;;  %s132_s10 = scalar_lea.vmem [#allocation0], %s548_s8  ;;  %s772_s11 = scalar_lea.vmem [#allocation1], %s548_s8 }
  0x22   : > { %v156_v3 = vld [vmem:[%s132_s10] sm:$0xff]  ;;  %s158_s17 = sand.u32 7, %s728_s16   ;;  %s147_s20 = scalar_lea.vmem [#allocation3], %s767_s9 }
  0x23   : > { %157 = vst [vmem:[%s772_s11] sm:$0xff] %v156_v3  ;;  %167 = vst [vmem:[#allocation7] sm:$0xff] %v770_v2  ;;  %s777_s19 = scalar_lea.vmem [#allocation2], %s158_s17  ;;  %s153_s21 = scalar_lea.vmem [#allocation6], %s767_s9 }
  0x24   : > { %162 = vst [vmem:[%s777_s19] sm:$0x1] %v685_v4  ;;  %s782_s22 = scalar_lea.vmem [#allocation5], %s158_s17  ;;  %s784_s26 = smov 0  }
  0x25 LB: >> { %vm183_vm0 = vcmp.lt.s32.totalorder %v770_v2, 6  ;;  %v792_v7 = vstv %s683_s26  ;;  %s224_s27 = ssub.s32 128, %s683_s26  ;;  %v230_v37 = vand.u32 127, %v163_v1  ;;  %s236_s28 = scalar_lea.vmem %s772_s11, %s683_s26 [#allocation1]  ;;  %s683_s26 = sphi %s784_s26, %s173_s26  }
  0x26   : >> { %vm182_vm1 = vcmp.ge.s32.totalorder %v770_v2, %v792_v7  ;;  %s242_s30 = scalar_lea.vmem [#allocation7], %s683_s26  ;;  %vm262_vm15 = vcmp.gt.s32.totalorder %v770_v2, %v792_v7  ;;  %s173_s26 = sadd.s32 1, %s683_s26  }
  0x27   : >> { %vm184_vm3 = vmand %vm182_vm1, %vm183_vm0  ;;  %vm254_vm12 = vcmp.gt.s32.totalorder %v230_v37, %v792_v7  ;;  %vm231_vm13 = vcmp.eq.s32.totalorder %v230_v37, %v792_v7  ;;  %p170_p11 = scmp.ge.s32.totalorder %s173_s26, 6  }
  0x28   : >> { %vm266_vm1 = vmand %vm262_vm15, %vm231_vm13  ;;  %s893_s6 = sshrl.u32 (%p170_p11), %s728_s16, 3  ;;  %s556_s8 = sshll.u32 (%p170_p11), %s728_s16, 3 }
  0x29   : > { %s557_s10 = sshll.u32 (%p170_p11), %s893_s6, 5  ;;  %s686_s6 = smov (%p170_p11), [#allocation3]  }
  0x2a   : >> { %v178_v5 = vld [vmem:[%s772_s11] sm:$0xff]  ;;  %v238_v40 = vld [vmem:[%s236_s28] ss:$0 sm:$0xff]  ;;  %s617_s17 = sshll.u32 (%p170_p11), %s686_s6, 4  ;;  %s618_s17 = int_to_ptr.vmem [resolvable:$false] %s617_s17 }
  0x2b   : >> { %v179_v6 = vand.u32 2147483647, %v178_v5  ;;  %v233_v39 = vld [vmem:[%s777_s19] ss:$0 sm:$0xff] }
  0x2c   : >> { %v244_v41 = vld [vmem:[%s242_s30] ss:$0 sm:$0xff] }
  0x2d   : >> { %vm552_vm2 = vcmp.gt.f32.partialorder %v179_v6, -inf }
  0x2e   : >> { %vm186_vm4 = vmand %vm184_vm3, %vm552_vm2 }
  0x2f   : >> { %v187_v8 = vsel %vm186_vm4, %v770_v2, %v792_v7  ;;  %v188_v9 = vsel %vm186_vm4, %v179_v6, -inf }
  0x30   : >> { %v189_v10 = vrot.slane %v188_v9, 1  ;;  %v190_v11 = vrot.slane %v187_v8, 1 }
  0x32   : >> { %vm191_vm5 = vcmp.ge.f32.partialorder %v189_v10, %v188_v9  ;;  %v194_v12 = vrot.slane %v189_v10, 1  ;;  %v195_v13 = vrot.slane %v190_v11, 1 }
  0x33   : >> { %v192_v14 = vsel %vm191_vm5, %v189_v10, %v188_v9  ;;  %v193_v15 = vsel %vm191_vm5, %v190_v11, %v187_v8 }
  0x34   : >> { %vm196_vm6 = vcmp.ge.f32.partialorder %v194_v12, %v192_v14  ;;  %v199_v16 = vrot.slane %v194_v12, 1  ;;  %v200_v17 = vrot.slane %v195_v13, 1 }
  0x35   : >> { %v197_v18 = vsel %vm196_vm6, %v194_v12, %v192_v14  ;;  %v198_v19 = vsel %vm196_vm6, %v195_v13, %v193_v15 }
  0x36   : >> { %vm201_vm7 = vcmp.ge.f32.partialorder %v199_v16, %v197_v18  ;;  %v204_v20 = vrot.slane %v199_v16, 1  ;;  %v205_v21 = vrot.slane %v200_v17, 1 }
  0x37   : >> { %v202_v22 = vsel %vm201_vm7, %v199_v16, %v197_v18  ;;  %v203_v23 = vsel %vm201_vm7, %v200_v17, %v198_v19 }
  0x38   : >> { %vm206_vm8 = vcmp.ge.f32.partialorder %v204_v20, %v202_v22  ;;  %v209_v24 = vrot.slane %v204_v20, 1  ;;  %v210_v25 = vrot.slane %v205_v21, 1 }
  0x39   : >> { %v207_v26 = vsel %vm206_vm8, %v204_v20, %v202_v22  ;;  %v208_v27 = vsel %vm206_vm8, %v205_v21, %v203_v23 }
  0x3a   : >> { %vm211_vm9 = vcmp.ge.f32.partialorder %v209_v24, %v207_v26  ;;  %v214_v28 = vrot.slane %v209_v24, 1  ;;  %v215_v29 = vrot.slane %v210_v25, 1 }
  0x3b   : >> { %v212_v30 = vsel %vm211_vm9, %v209_v24, %v207_v26  ;;  %v213_v31 = vsel %vm211_vm9, %v210_v25, %v208_v27 }
  0x3c   : >> { %vm216_vm10 = vcmp.ge.f32.partialorder %v214_v28, %v212_v30  ;;  %v219_v32 = vrot.slane %v214_v28, 1  ;;  %v220_v33 = vrot.slane %v215_v29, 1 }
  0x3d   : >> { %v217_v34 = vsel %vm216_vm10, %v214_v28, %v212_v30  ;;  %v218_v35 = vsel %vm216_vm10, %v215_v29, %v213_v31 }
  0x3e   : >> { %vm221_vm11 = vcmp.ge.f32.partialorder %v219_v32, %v217_v34 }
  0x3f   : >> { %v223_v36 = vsel %vm221_vm11, %v220_v33, %v218_v35 }
  0x40   : >> { %225 = vrot.lane.b32.xlu0 %v223_v36, %s224_s27 }
  0xb2   : >> { %v226_v38 = vpop.permute.xlu0 %225 }
  0xb3   : >> { %561 = vpush %v226_v38 }
  0xe4   : >> { %s562_s29 = spop %561 }
  0xe5   : >> { %v232_v42 = vstv %s562_s29  ;;  %s237_s4 = scalar_lea.vmem %s772_s11, %s562_s29 [#allocation1]  ;;  %s243_s5 = scalar_lea.vmem [#allocation7], %s562_s29 }
  0xe6   : >> { %v239_v43 = vld [vmem:[%s237_s4] ss:$0 sm:$0xff]  ;;  %v234_v45 = vsel %vm231_vm13, %v232_v42, %v233_v39  ;;  %s836_s29 = scalar_lea.hbm (%p170_p11), %s891_s2, %s557_s10 }
  0xe7   : >> { %v245_v44 = vld [vmem:[%s243_s5] ss:$0 sm:$0xff]  ;;  %240 = vst [vmem:[%s237_s4] sm:$0x1] %v238_v40  ;;  %vm248_vm14 = vcmp.ne.f32.partialorder %v239_v43, 0.0  ;;  %235 = vst [vmem:[%s777_s19] sm:$0x1] %v234_v45  ;;  %v255_v52 = vsel %vm254_vm12, %v239_v43, 0.0  ;;  %s348_s19 = scalar_lea.vmem (%p170_p11), %s890_s1, %s556_s8 }
  0xe8   : >> { %246 = vst [vmem:[%s243_s5] sm:$0x1] %v244_v41  ;;  %241 = vst [vmem:[%s236_s28] sm:$0x1] %v239_v43  ;;  %s339_s4 = scalar_lea.sflag (%p170_p11), [#allocation4], %s145_s7 }
  0xe9   : >> { %247 = vst [vmem:[%s242_s30] sm:$0x1] %v245_v44  ;;  %vm249_vm0 = vmand %vm231_vm13, %vm248_vm14  ;;  %s391_s30 = sshll.u32 (%p170_p11), %s147_s20, 4  ;;  %s392_s30 = int_to_ptr.vmem [resolvable:$true] %s391_s30 }
  0xea   : >> { %v250_v46 = vsel %vm249_vm0, %v239_v43, 1.0  ;;  %s613_s5 = scalar_lea.vmem (%p170_p11), %s392_s30, 32  ;;  %p620_p1 = scmp.lt.s32.totalorder (%p170_p11), %s392_s30, %s618_s17 }
  0xeb   : >> { %v263_v47 = vsel %vm262_vm15, %v250_v46, 1.0  ;;  %p614_p12 = scmp.ne.s32.totalorder (%p170_p11), %s392_s30, %s613_s5 }
  0xec   : >> { %611 = vrcp.f32 %v263_v47 }
  0xed   : > { %p615_p13 = pnand (%p170_p11), %p614_p12, %p745_p5 }
  0xee   : > { %v325_v57 = vld [vmem:[#allocation2] sm:$0x3] (%p170_p11) }
  0xef   : >> { %v259_v49 = vld [vmem:[%s772_s11] sm:$0xff]  ;;  %327 = vst [vmem:[%s147_s20] sm:$0x3] (%p170_p11), %v325_v57  ;;  %p616_p0 = pneg (%p170_p11), %p615_p13 }
  0xf0   : > { %v273_v56 = vld [vmem:[#allocation7] sm:$0xff] (%p170_p11) }
  0xf6   : >> { %v612_v48 = vpop.eup %611 }
  0xf7   : >> { %v265_v50 = vmul.f32 %v612_v48, %v259_v49 }
  0xf9   : >> { %v267_v51 = vsel %vm266_vm1, %v265_v50, 0.0 }
  0xfa   : >> { %268 = vadd.xlane.f32.xlu0 %v267_v51 }
 0x127   : > { %289 = vxpose.xlu0.b32.start.end [1/1] (short) (narrow) (%p170_p11), %v273_v56, 8 }
 0x186   : > { %172 = sbr.rel (!%p170_p11) target bundleno = 37 (0x25), region = 210 }
 0x187   : >> { %v269_v53 = vpop.xlane.xlu0 %268 }
 0x188   : >> { %v270_v54 = vmul.f32 %v269_v53, %v255_v52 }
 0x18a   : >> { %v271_v55 = vsub.f32 %v265_v50, %v270_v54 }
 0x18c   : >> { %272 = vst [vmem:[%s772_s11] sm:$0xff] %v271_v55 }
 0x193   : > { %v376_v58 = vld [vmem:[%s772_s11] sm:$0xff]  ;;  %s619_s11 = scalar_lea.vmem %s618_s17, 64 }
 0x194   : > { %377 = vst [vmem:[%s348_s19] sm:$0xff] %v376_v58  ;;  %p621_p2 = scmp.lt.s32.totalorder %s619_s11, %s613_s5 }
 0x196   : > { %p622_p3 = por %p621_p2, %p620_p1 }
 0x198   : > { %p623_p4 = pnand %p622_p3, %p616_p0 }
 0x19a   : > { %626 = shalt.err (!%p623_p4)
}
 0x19b   : > { %s627_s7 = scalar_lea.hbm %s836_s29, 32  ;;  %s631_s6 = scalar_lea.hbm %s891_s2, 32 }
 0x19c   : > { %p628_p8 = scmp.ne.s32.totalorder %s836_s29, %s627_s7  ;;  %p632_p11 = scmp.lt.u32.totalorder %s836_s29, %s891_s2 }
 0x19d   : > { %p633_p12 = scmp.lt.u32.totalorder %s631_s6, %s627_s7  ;;  %p635_p0 = scmp.lt.u32.totalorder %s627_s7, %s836_s29 }
 0x19e   : > { %p629_p9 = pnand %p628_p8, %p745_p5 }
 0x19f   : > { %p634_p13 = por %p633_p12, %p632_p11 }
 0x1a0   : > { %p630_p10 = pneg %p629_p9 }
 0x1a1   : > { %p636_p1 = por %p635_p0, %p634_p13 }
 0x1a3   : > { %p637_p2 = pnand %p636_p1, %p630_p10 }
 0x1a5   : > { %640 = shalt.err (!%p637_p2)
}
 0x1a6   : > { %563 = dma.vmem_to_hbm [thread:$0]  (%p745_p5), %s392_s30, 32, %s836_s29, %s339_s4  }
 0x1a7   : > { %v305_v59 = vpop.trf.xlu0  ;;  %s896_s19 = sshrl.u32 (%p745_p5), %s728_s16, 3 }
 0x1a8   : > { %321 = vst [vmem:[%s782_s22] sm:$0x1] %v305_v59  ;;  %s558_s27 = sshll.u32 (%p745_p5), %s896_s19, 1 }
 0x1a9   : > { %s400_s17 = scalar_lea.vmem (%p745_p5), %s892_s3, %s558_s27 }
 0x1aa   : > { %397 = sbr.rel (!%p745_p5) target bundleno = 441 (0x1b9), region = 104 }
 0x1af   : > { %v331_v60 = vld [vmem:[#allocation5] sm:$0x3] }
 0x1b0   : > { %333 = vst [vmem:[%s153_s21] sm:$0x3] %v331_v60 }
 0x1b7   : > { %v416_v61 = vld [vmem:[%s153_s21] sm:$0x3] }
 0x1b8   : > { %417 = vst [vmem:[%s400_s17] sm:$0x3] %v416_v61 }
 0x1b9 PF: > { %s444_s22 = sand.u32 1, %s667_s12   ;;  %p566_p5 = pnand %p544_p7, %p749_p6 }
 0x1ba   : > { %s445_s24 = scalar_lea.sflag [#allocation4], %s444_s22 }
 0x1bb   : > { %662 = dma.done.wait (!%p566_p5), %s445_s24, 32  }
 0x1bc   : > { %664 = vsyncadd (!%p566_p5), %s445_s24, 4294967264  ;;  %p10_p3 = scmp.ge.s32.totalorder %s732_s18, 4   ;;  %s897_s12 = smov %s671_s13 }
 0x1bd   : > { %s898_s13 = smov %s675_s14  ;;  %s899_s14 = smov %s743_s23 }
 0x1be   : > { %s900_s15 = smov %s732_s18  ;;  %12 = sbr.rel (!%p10_p3) target bundleno = 3 (0x3), region = 221 }
 0x1c5   :  { %457 = vsyncpa [#allocation4], 1 }
 0x1c6   :  { %459 = vsyncpa [#allocation4 + $0x1], 1 }

// kernel: custom-call.13
= control target key start
LH: loop header
LB: loop body
LE: loop exit
PB: predicated region body
PF: predicated region fallthrough
CT: control target
= control target key end

     0   :  { %s365_s6 = smov 0   ;;  %s367_s7 = smov 0   ;;  %s405_s0 = inlined_call_operand.vmem [shape: f32[2,1,6,6], index: 0, kind: input, shape index: {}]   ;;  %s406_s1 = inlined_call_operand.vmem [shape: f32[2,1,6,6], index: 1, kind: output, shape index: {}]  }
   0x1   :  { %s369_s8 = smov 0  }
   0x2 LB: > { %s291_s9 = sadd.s32 4294967295, %s352_s8   ;;  %s33_s10 = sadd.s32 1, %s348_s7  ;;  %s352_s8 = sphi %s369_s8, %s7_s8   ;;  %s348_s7 = sphi %s367_s7, %s408_s7   ;;  %s344_s6 = sphi %s365_s6, %s407_s6  }
   0x3   : > { %p35_p0 = scmp.ge.s32.totalorder %s33_s10, 2  ;;  %p293_p1 = scmp.ge.s32.totalorder %s352_s8, 2 }
   0x4   : > { %s49_s11 = sand.u32 (!%p293_p1), 1, %s352_s8   ;;  %s295_s12 = sshll.u32 (!%p293_p1), %s348_s7, 3 }
   0x5   : > { %s410_s10 = smov (%p35_p0, %s33_s10), 0  ;;  %47 = sbr.rel (%p293_p1) target bundleno = 12 (0xc), region = 16 }
   0x6   : > { %s294_s13 = sshll.u32 (!%p293_p1), %s49_s11, 3  ;;  %s56_s16 = scalar_lea.vmem (!%p293_p1), %s405_s0, %s295_s12 }
   0x7   : > { %v84_v0 = vld [vmem:[%s56_s16] sm:$0xff] (!%p293_p1)  ;;  %s51_s17 = scalar_lea.vmem (!%p293_p1), [#allocation0], %s294_s13 }
   0x8   : > { %85 = vst [vmem:[%s51_s17] sm:$0xff] (!%p293_p1), %v84_v0 }
   0xc PF: > { %p296_p2 = scmp.ge.s32.totalorder %s352_s8, 1  ;;  %p90_p3 = scmp.lt.s32.totalorder %s352_s8, 3 }
   0xe   : > { %p91_p4 = pnand %p296_p2, %p90_p3 }
  0x10   : > { %94 = sbr.rel (%p91_p4) target bundleno = 923 (0x39b), region = 54 }
  0x17   : > { %s97_s18 = sand.u32 1, %s291_s9   ;;  %v108_v1 = vlaneseq  ;;  %v354_v10 = vmov -1.0   ;;  %s300_s21 = sshll.u32 %s344_s6, 3 }
  0x18   : > { %s297_s19 = sshll.u32 %s97_s18, 3  ;;  %s199_s24 = scalar_lea.vmem %s406_s1, %s300_s21 }
  0x19   : > { %v109_v2 = vand.u32 127, %v108_v1  ;;  %v112_v3 = vshrl.u32 %v108_v1, 7  ;;  %s99_s20 = scalar_lea.vmem [#allocation0], %s297_s19 }
  0x1a   : > { %v115_v4 = vld [vmem:[%s99_s20] sm:$0xff] }
  0x1b   : > { %vm110_vm0 = vcmp.lt.s32.totalorder %v109_v2, 6  ;;  %vm114_vm1 = vcmp.eq.s32.totalorder %v112_v3, %v109_v2  ;;  %vm119_vm2 = vcmp.ge.s32.totalorder %v112_v3, %v109_v2  ;;  %vm133_vm4 = vcmp.eq.s32.totalorder %v109_v2, 0 }
  0x1c   : > { %v116_v5 = vsel %vm114_vm1, %v115_v4, 0.0  ;;  %vm120_vm3 = vmand %vm119_vm2, %vm110_vm0  ;;  %vm130_vm5 = vcmp.eq.s32.totalorder %v109_v2, %v112_v3  ;;  %v134_v11 = vsel %vm133_vm4, 1.0, %v354_v10  ;;  %vm141_vm6 = vcmp.eq.s32.totalorder %v109_v2, 1 }
  0x1d   : > { %v121_v6 = vsel %vm120_vm3, %v115_v4, 0.0  ;;  %117 = vadd.xlane.f32.xlu0 %v116_v5  ;;  %v135_v12 = vsel %vm130_vm5, %v134_v11, 0.0  ;;  %vm151_vm7 = vcmp.eq.s32.totalorder %v109_v2, 2  ;;  %vm161_vm8 = vcmp.eq.s32.totalorder %v109_v2, 3 }
  0x1e   : > { %vm171_vm9 = vcmp.eq.s32.totalorder %v109_v2, 4  ;;  %vm181_vm10 = vcmp.eq.s32.totalorder %v109_v2, 5 }
  0xaa   : > { %v118_v7 = vpop.xlane.xlu0 %117 }
  0xab   : > { %328 = vrcp.f32 %v118_v7  ;;  %vm188_vm11 = vweird.f32 %v118_v7 }
  0xb5   : > { %v329_v8 = vpop.eup %328 }
  0xb6   : > { %v123_v9 = vmul.f32 %v329_v8, %v121_v6 }
  0xb8   : > { %124 = vst [vmem:[#allocation2] sm:$0xff] %v123_v9 }
  0xbf   : > { %v137_v13 = vld [vmem:[#allocation2 + $0x1] ss:$0 sm:$0xff]  ;;  %v147_v16 = vld [vmem:[#allocation2 + $0x2] ss:$0 sm:$0xff]  ;;  %v157_v21 = vld [vmem:[#allocation2 + $0x3] ss:$0 sm:$0xff] }
  0xc0   : > { %v138_v14 = vxor.u32 2147483648, %v137_v13  ;;  %v148_v18 = vxor.u32 2147483648, %v147_v16  ;;  %v158_v23 = vxor.u32 2147483648, %v157_v21  ;;  %v167_v26 = vld [vmem:[#allocation2 + $0x4] ss:$0 sm:$0xff] }
  0xc1   : > { %v168_v28 = vxor.u32 2147483648, %v167_v26  ;;  %v177_v31 = vld [vmem:[#allocation2 + $0x5] ss:$0 sm:$0xff] }
  0xc2   : > { %v142_v15 = vmul.f32 %v138_v14, %v135_v12  ;;  %v178_v33 = vxor.u32 2147483648, %v177_v31 }
  0xc4   : > { %143 = vadd.xlane.f32.xlu0 %v142_v15 }
 0x151   : > { %v144_v17 = vpop.xlane.xlu0 %143 }
 0x152   : > { %v145_v19 = vsel %vm141_vm6, %v144_v17, %v135_v12 }
 0x153   : > { %v152_v20 = vmul.f32 %v148_v18, %v145_v19 }
 0x155   : > { %153 = vadd.xlane.f32.xlu1 %v152_v20 }
 0x1e2   : > { %v154_v22 = vpop.xlane.xlu1 %153 }
 0x1e3   : > { %v155_v24 = vsel %vm151_vm7, %v154_v22, %v145_v19 }
 0x1e4   : > { %v162_v25 = vmul.f32 %v158_v23, %v155_v24 }
 0x1e6   : > { %163 = vadd.xlane.f32.xlu1 %v162_v25 }
 0x273   : > { %v164_v27 = vpop.xlane.xlu1 %163 }
 0x274   : > { %v165_v29 = vsel %vm161_vm8, %v164_v27, %v155_v24 }
 0x275   : > { %v172_v30 = vmul.f32 %v168_v28, %v165_v29 }
 0x277   : > { %173 = vadd.xlane.f32.xlu0 %v172_v30 }
 0x304   : > { %v174_v32 = vpop.xlane.xlu0 %173 }
 0x305   : > { %v175_v34 = vsel %vm171_vm9, %v174_v32, %v165_v29 }
 0x306   : > { %v182_v35 = vmul.f32 %v178_v33, %v175_v34 }
 0x308   : > { %183 = vadd.xlane.f32.xlu1 %v182_v35 }
 0x395   : > { %v184_v36 = vpop.xlane.xlu1 %183 }
 0x396   : > { %v185_v37 = vsel %vm181_vm10, %v184_v36, %v175_v34 }
 0x397   : > { %v187_v38 = vmul.f32 %v329_v8, %v185_v37 }
 0x399   : > { %v189_v39 = vsel %vm188_vm11, %v185_v37, %v187_v38 }
 0x39a   : > { %228 = vst [vmem:[%s199_s24] sm:$0xff] %v189_v39 }
 0x39b PF: > { %s7_s8 = sadd.s32 1, %s352_s8   ;;  %s407_s6 = smov %s348_s7 }
 0x39c   : > { %p4_p5 = scmp.ge.s32.totalorder %s7_s8, 4   ;;  %s408_s7 = smov %s410_s10 }
 0x39e   :  { %6 = sbr.rel (!%p4_p5) target bundleno = 2 (0x2), region = 123 }

// kernel: custom-call.12
= control target key start
LH: loop header
LB: loop body
LE: loop exit
PB: predicated region body
PF: predicated region fallthrough
CT: control target
= control target key end

     0   :  { %s364_s6 = smov 0   ;;  %s366_s7 = smov 0   ;;  %s404_s0 = inlined_call_operand.vmem [shape: f32[2,1,6,6], index: 0, kind: input, shape index: {}]   ;;  %s405_s1 = inlined_call_operand.vmem [shape: f32[2,1,6,6], index: 1, kind: output, shape index: {}]  }
   0x1   :  { %s368_s8 = smov 0  }
   0x2 LB: > { %s290_s9 = sadd.s32 4294967295, %s351_s8   ;;  %s33_s10 = sadd.s32 1, %s347_s7  ;;  %s351_s8 = sphi %s368_s8, %s7_s8   ;;  %s347_s7 = sphi %s366_s7, %s407_s7   ;;  %s343_s6 = sphi %s364_s6, %s406_s6  }
   0x3   : > { %p35_p0 = scmp.ge.s32.totalorder %s33_s10, 2  ;;  %p292_p1 = scmp.ge.s32.totalorder %s351_s8, 2 }
   0x4   : > { %s49_s11 = sand.u32 (!%p292_p1), 1, %s351_s8   ;;  %s294_s12 = sshll.u32 (!%p292_p1), %s347_s7, 3 }
   0x5   : > { %s409_s10 = smov (%p35_p0, %s33_s10), 0  ;;  %47 = sbr.rel (%p292_p1) target bundleno = 12 (0xc), region = 16 }
   0x6   : > { %s293_s13 = sshll.u32 (!%p292_p1), %s49_s11, 3  ;;  %s56_s16 = scalar_lea.vmem (!%p292_p1), %s404_s0, %s294_s12 }
   0x7   : > { %v84_v0 = vld [vmem:[%s56_s16] sm:$0xff] (!%p292_p1)  ;;  %s51_s17 = scalar_lea.vmem (!%p292_p1), [#allocation0], %s293_s13 }
   0x8   : > { %85 = vst [vmem:[%s51_s17] sm:$0xff] (!%p292_p1), %v84_v0 }
   0xc PF: > { %p295_p2 = scmp.ge.s32.totalorder %s351_s8, 1  ;;  %p90_p3 = scmp.lt.s32.totalorder %s351_s8, 3 }
   0xe   : > { %p91_p4 = pnand %p295_p2, %p90_p3 }
  0x10   : > { %94 = sbr.rel (%p91_p4) target bundleno = 923 (0x39b), region = 54 }
  0x17   : > { %s97_s18 = sand.u32 1, %s290_s9   ;;  %v108_v1 = vlaneseq  ;;  %v353_v10 = vmov -1.0   ;;  %s299_s21 = sshll.u32 %s343_s6, 3 }
  0x18   : > { %s296_s19 = sshll.u32 %s97_s18, 3  ;;  %s198_s24 = scalar_lea.vmem %s405_s1, %s299_s21 }
  0x19   : > { %v109_v2 = vand.u32 127, %v108_v1  ;;  %v112_v3 = vshrl.u32 %v108_v1, 7  ;;  %s99_s20 = scalar_lea.vmem [#allocation0], %s296_s19 }
  0x1a   : > { %v115_v4 = vld [vmem:[%s99_s20] sm:$0xff] }
  0x1b   : > { %vm110_vm0 = vcmp.lt.s32.totalorder %v109_v2, 6  ;;  %vm114_vm1 = vcmp.eq.s32.totalorder %v112_v3, %v109_v2  ;;  %vm119_vm2 = vcmp.le.s32.totalorder %v112_v3, %v109_v2  ;;  %vm133_vm4 = vcmp.eq.s32.totalorder %v109_v2, 5 }
  0x1c   : > { %v116_v5 = vsel %vm114_vm1, %v115_v4, 0.0  ;;  %vm120_vm3 = vmand %vm119_vm2, %vm110_vm0  ;;  %vm130_vm5 = vcmp.eq.s32.totalorder %v109_v2, %v112_v3  ;;  %v134_v11 = vsel %vm133_vm4, 1.0, %v353_v10  ;;  %vm141_vm6 = vcmp.eq.s32.totalorder %v109_v2, 4 }
  0x1d   : > { %v121_v6 = vsel %vm120_vm3, %v115_v4, 0.0  ;;  %117 = vadd.xlane.f32.xlu0 %v116_v5  ;;  %v135_v12 = vsel %vm130_vm5, %v134_v11, 0.0  ;;  %vm151_vm7 = vcmp.eq.s32.totalorder %v109_v2, 3  ;;  %vm161_vm8 = vcmp.eq.s32.totalorder %v109_v2, 2 }
  0x1e   : > { %vm171_vm9 = vcmp.eq.s32.totalorder %v109_v2, 1  ;;  %vm180_vm10 = vcmp.eq.s32.totalorder %v109_v2, 0 }
  0xaa   : > { %v118_v7 = vpop.xlane.xlu0 %117 }
  0xab   : > { %327 = vrcp.f32 %v118_v7  ;;  %vm187_vm11 = vweird.f32 %v118_v7 }
  0xb5   : > { %v328_v8 = vpop.eup %327 }
  0xb6   : > { %v123_v9 = vmul.f32 %v328_v8, %v121_v6 }
  0xb8   : > { %124 = vst [vmem:[#allocation2] sm:$0xff] %v123_v9 }
  0xbf   : > { %v137_v13 = vld [vmem:[#allocation2 + $0x4] ss:$0 sm:$0xff]  ;;  %v147_v16 = vld [vmem:[#allocation2 + $0x3] ss:$0 sm:$0xff]  ;;  %v157_v21 = vld [vmem:[#allocation2 + $0x2] ss:$0 sm:$0xff] }
  0xc0   : > { %v138_v14 = vxor.u32 2147483648, %v137_v13  ;;  %v148_v18 = vxor.u32 2147483648, %v147_v16  ;;  %v158_v23 = vxor.u32 2147483648, %v157_v21  ;;  %v167_v26 = vld [vmem:[#allocation2 + $0x1] ss:$0 sm:$0xff] }
  0xc1   : > { %v168_v28 = vxor.u32 2147483648, %v167_v26  ;;  %v176_v31 = vld [vmem:[#allocation2] ss:$0 sm:$0xff] }
  0xc2   : > { %v142_v15 = vmul.f32 %v138_v14, %v135_v12  ;;  %v177_v33 = vxor.u32 2147483648, %v176_v31 }
  0xc4   : > { %143 = vadd.xlane.f32.xlu0 %v142_v15 }
 0x151   : > { %v144_v17 = vpop.xlane.xlu0 %143 }
 0x152   : > { %v145_v19 = vsel %vm141_vm6, %v144_v17, %v135_v12 }
 0x153   : > { %v152_v20 = vmul.f32 %v148_v18, %v145_v19 }
 0x155   : > { %153 = vadd.xlane.f32.xlu1 %v152_v20 }
 0x1e2   : > { %v154_v22 = vpop.xlane.xlu1 %153 }
 0x1e3   : > { %v155_v24 = vsel %vm151_vm7, %v154_v22, %v145_v19 }
 0x1e4   : > { %v162_v25 = vmul.f32 %v158_v23, %v155_v24 }
 0x1e6   : > { %163 = vadd.xlane.f32.xlu1 %v162_v25 }
 0x273   : > { %v164_v27 = vpop.xlane.xlu1 %163 }
 0x274   : > { %v165_v29 = vsel %vm161_vm8, %v164_v27, %v155_v24 }
 0x275   : > { %v172_v30 = vmul.f32 %v168_v28, %v165_v29 }
 0x277   : > { %173 = vadd.xlane.f32.xlu0 %v172_v30 }
 0x304   : > { %v174_v32 = vpop.xlane.xlu0 %173 }
 0x305   : > { %v175_v34 = vsel %vm171_vm9, %v174_v32, %v165_v29 }
 0x306   : > { %v181_v35 = vmul.f32 %v177_v33, %v175_v34 }
 0x308   : > { %182 = vadd.xlane.f32.xlu1 %v181_v35 }
 0x395   : > { %v183_v36 = vpop.xlane.xlu1 %182 }
 0x396   : > { %v184_v37 = vsel %vm180_vm10, %v183_v36, %v175_v34 }
 0x397   : > { %v186_v38 = vmul.f32 %v328_v8, %v184_v37 }
 0x399   : > { %v188_v39 = vsel %vm187_vm11, %v184_v37, %v186_v38 }
 0x39a   : > { %227 = vst [vmem:[%s198_s24] sm:$0xff] %v188_v39 }
 0x39b PF: > { %s7_s8 = sadd.s32 1, %s351_s8   ;;  %s406_s6 = smov %s347_s7 }
 0x39c   : > { %p4_p5 = scmp.ge.s32.totalorder %s7_s8, 4   ;;  %s407_s7 = smov %s409_s10 }
 0x39e   :  { %6 = sbr.rel (!%p4_p5) target bundleno = 2 (0x2), region = 122 }

// kernel: _iclk_jit.1
= control target key start
LH: loop header
LB: loop body
LE: loop exit
PB: predicated region body
PF: predicated region fallthrough
CT: control target
= control target key end

     0   :  { %s6104_s21 = smov 0   ;;  %s6106_s22 = smov 0   ;;  %s7975_s0 = inlined_call_operand.vmem [shape: f32[8,3,64], index: 0, kind: input, shape index: {}]   ;;  %s7976_s1 = inlined_call_operand.vmem [shape: f32[7,8,32,4], index: 1, kind: input, shape index: {}]   ;;  %s7977_s2 = inlined_call_operand.vmem [shape: f32[64,32], index: 2, kind: input, shape index: {}]   ;;  %s7978_s3 = inlined_call_operand.vmem [shape: f32[64,1], index: 3, kind: input, shape index: {}]   ;;  %s7979_s4 = inlined_call_operand.vmem [shape: f32[128,64], index: 4, kind: input, shape index: {}]   ;;  %s7980_s5 = inlined_call_operand.vmem [shape: f32[128,1], index: 5, kind: input, shape index: {}]   ;;  %s7981_s6 = inlined_call_operand.vmem [shape: f32[7,8,128], index: 6, kind: output, shape index: {}]  }
   0x1   :  { %s6108_s23 = smov 0  }
   0x2 LB: > { %s25_s24 = sadd.s32 1, %s6059_s22  ;;  %p4814_p0 = scmp.ge.s32.totalorder %s6063_s23, 1  ;;  %s6063_s23 = sphi %s6108_s23, %s16_s23   ;;  %s6059_s22 = sphi %s6106_s22, %s8070_s22   ;;  %s6055_s21 = sphi %s6104_s21, %s8069_s21  }
   0x3   : > { %p26_p1 = scmp.ge.s32.totalorder %s25_s24, 7  ;;  %p245_p2 = scmp.lt.s32.totalorder %s6063_s23, 8 }
   0x5   : > { %s8072_s24 = smov (%p26_p1, %s25_s24), 0  ;;  %p246_p3 = pnand %p4814_p0, %p245_p2 }
   0x7   : > { %249 = sbr.rel (%p246_p3) target bundleno = 1133 (0x46d), region = 44 }
   0xe   : > { %p294_p4 = scmp.lt.s32.totalorder %s6055_s21, 6  ;;  %v7982_v0 = vmov 0   ;;  %v7986_v33 = vmov 1   ;;  %v7988_v34 = vmov 3   ;;  %v7984_v35 = vmov 2   ;;  %v6308_v38 = vld [vmem:[%s7977_s2] sm:$0xff] }
   0xf   : > { %6002 = vset.pattern.permute.xlu1 %v7982_v0  ;;  %6001 = vset.pattern.permute.xlu0 %v7982_v0  ;;  %vm1271_vm0 = vcmask 261120   ;;  %vm2312_vm1 = vcmask 523264   ;;  %vm4044_vm2 = vcmask 130112   ;;  %vm4051_vm3 = vcmask 195712  }
  0x10   : > { %s8074_s21 = smov (!%p294_p4, %s6055_s21), 6  ;;  %5309 = vmatprep.mubr.msk.f32.mxu0 %vm1271_vm0, %v6308_v38  ;;  %5329 = vmatprep.mubr.msk.f32.mxu1 %vm1271_vm0, %v6308_v38  ;;  %vm4058_vm4 = vcmask 261312   ;;  %vm4065_vm5 = vcmask 326912   ;;  %vm4072_vm6 = vcmask 392512   ;;  %vm4079_vm7 = vcmask 458112  }
  0x11   : > { %s5012_s25 = sshll.u32 %s8074_s21, 8  ;;  %vm4086_vm8 = vcmask 523712   ;;  %vm4093_vm9 = vcmask 589312   ;;  %vm4100_vm10 = vcmask 654912   ;;  %vm4107_vm11 = vcmask 720512   ;;  %s4817_s19 = sshll.u32 %s8074_s21, 3 }
  0x12   : > { %s6130_s28 = scalar_lea.vmem %s7976_s1, %s5012_s25  ;;  %vm7998_vm12 = vcmask 786112   ;;  %vm4121_vm13 = vcmask 851712   ;;  %vm7997_vm14 = vcmask 917312   ;;  %vm4135_vm15 = vcmask 982912   ;;  %s310_s26 = scalar_lea.vmem %s7981_s6, %s4817_s19 }
  0x13   : > { %v6133_v1 = vld [vmem:[%s6130_s28 + $0x10] sm:$0xff]  ;;  %v6136_v2 = vld [vmem:[%s6130_s28] sm:$0xff]  ;;  %v6141_v3 = vld [vmem:[%s6130_s28 + $0x18] sm:$0xff] }
  0x14   : > { %363 = vperm.xlu1 %6002, %v6133_v1   ;;  %353 = vperm.xlu0 %6001, %v6136_v2   ;;  %v6144_v4 = vld [vmem:[%s6130_s28 + $0x8] sm:$0xff]  ;;  %v6152_v6 = vld [vmem:[%s6130_s28 + $0x20] sm:$0xff]  ;;  %v6157_v7 = vld [vmem:[%s6130_s28 + $0x38] sm:$0xff] }
  0x15   : > { %v6149_v5 = vld [vmem:[%s6130_s28 + $0x28] sm:$0xff]  ;;  %v6160_v8 = vld [vmem:[%s6130_s28 + $0x30] sm:$0xff]  ;;  %v6168_v10 = vld [vmem:[%s6130_s28 + $0x40] sm:$0xff] }
  0x16   : > { %v6165_v9 = vld [vmem:[%s6130_s28 + $0x48] sm:$0xff]  ;;  %v6173_v11 = vld [vmem:[%s6130_s28 + $0x58] sm:$0xff]  ;;  %v6176_v12 = vld [vmem:[%s6130_s28 + $0x50] sm:$0xff] }
  0x17   : > { %v6181_v13 = vld [vmem:[%s6130_s28 + $0x68] sm:$0xff]  ;;  %v6184_v14 = vld [vmem:[%s6130_s28 + $0x60] sm:$0xff]  ;;  %v6189_v15 = vld [vmem:[%s6130_s28 + $0x78] sm:$0xff] }
  0x18   : > { %368 = vperm.xlu1 %6002, %v6141_v3   ;;  %358 = vperm.xlu0 %6001, %v6144_v4   ;;  %v6192_v16 = vld [vmem:[%s6130_s28 + $0x70] sm:$0xff]  ;;  %v6197_v17 = vld [vmem:[%s6130_s28 + $0x88] sm:$0xff]  ;;  %v6200_v18 = vld [vmem:[%s6130_s28 + $0x80] sm:$0xff] }
  0x19   : > { %v6205_v19 = vld [vmem:[%s6130_s28 + $0x98] sm:$0xff]  ;;  %v6208_v20 = vld [vmem:[%s6130_s28 + $0x90] sm:$0xff]  ;;  %v6213_v21 = vld [vmem:[%s6130_s28 + $0xa8] sm:$0xff] }
  0x1a   : > { %v6216_v22 = vld [vmem:[%s6130_s28 + $0xa0] sm:$0xff]  ;;  %v6221_v23 = vld [vmem:[%s6130_s28 + $0xb8] sm:$0xff]  ;;  %v6224_v24 = vld [vmem:[%s6130_s28 + $0xb0] sm:$0xff] }
  0x1b   : > { %v6229_v25 = vld [vmem:[%s6130_s28 + $0xc8] sm:$0xff]  ;;  %v6232_v26 = vld [vmem:[%s6130_s28 + $0xc0] sm:$0xff]  ;;  %v6237_v27 = vld [vmem:[%s6130_s28 + $0xd8] sm:$0xff] }
  0x1c   : > { %378 = vperm.xlu1 %6002, %v6149_v5   ;;  %373 = vperm.xlu0 %6001, %v6152_v6   ;;  %7999 = vst [vmem:[#allocation2_spill] sm:$0xff] %v6237_v27  ;;  %v6240_v28 = vld [vmem:[%s6130_s28 + $0xd0] sm:$0xff]  ;;  %v6245_v29 = vld [vmem:[%s6130_s28 + $0xe8] sm:$0xff]  ;;  %v6248_v30 = vld [vmem:[%s6130_s28 + $0xe0] sm:$0xff] }
  0x1d   : > { %v6253_v31 = vld [vmem:[%s6130_s28 + $0xf8] sm:$0xff]  ;;  %v6256_v32 = vld [vmem:[%s6130_s28 + $0xf0] sm:$0xff] }
  0x1e   : > { %8000 = vst [vmem:[#allocation3_spill] sm:$0xff] %v6253_v31 }
  0x20   : > { %388 = vperm.xlu1 %6002, %v6157_v7   ;;  %383 = vperm.xlu0 %6001, %v6160_v8  }
  0x24   : > { %398 = vperm.xlu1 %6002, %v6165_v9   ;;  %393 = vperm.xlu0 %6001, %v6168_v10  }
  0x28   : > { %408 = vperm.xlu1 %6002, %v6173_v11   ;;  %403 = vperm.xlu0 %6001, %v6176_v12  }
  0x2c   : > { %418 = vperm.xlu1 %6002, %v6181_v13   ;;  %413 = vperm.xlu0 %6001, %v6184_v14  }
  0x30   : > { %428 = vperm.xlu1 %6002, %v6189_v15   ;;  %423 = vperm.xlu0 %6001, %v6192_v16  }
  0x34   : > { %438 = vperm.xlu1 %6002, %v6197_v17   ;;  %433 = vperm.xlu0 %6001, %v6200_v18  }
  0x38   : > { %448 = vperm.xlu1 %6002, %v6205_v19   ;;  %443 = vperm.xlu0 %6001, %v6208_v20  }
  0x3c   : > { %458 = vperm.xlu1 %6002, %v6213_v21   ;;  %453 = vperm.xlu0 %6001, %v6216_v22  }
  0x40   : > { %468 = vperm.xlu1 %6002, %v6221_v23   ;;  %463 = vperm.xlu0 %6001, %v6224_v24  }
  0x44   : > { %478 = vperm.xlu1 %6002, %v6229_v25   ;;  %473 = vperm.xlu0 %6001, %v6232_v26  }
  0x48   : > { %488 = vperm.xlu1 %6002, %v6237_v27   ;;  %483 = vperm.xlu0 %6001, %v6240_v28  }
  0x4c   : > { %498 = vperm.xlu1 %6002, %v6245_v29   ;;  %493 = vperm.xlu0 %6001, %v6248_v30  }
  0x50   : > { %508 = vperm.xlu1 %6002, %v6253_v31   ;;  %503 = vperm.xlu0 %6001, %v6256_v32  }
  0x54   : > { %6003 = vset.pattern.permute.xlu1 %v7986_v33  ;;  %6009 = vset.pattern.permute.xlu0 %v7988_v34 }
  0x55   : > { %580 = vperm.xlu1 %6003, %v6144_v4   ;;  %1040 = vperm.xlu0 %6009, %v6152_v6  }
  0x59   : > { %584 = vperm.xlu1 %6003, %v6133_v1   ;;  %1036 = vperm.xlu0 %6009, %v6141_v3  }
  0x5d   : > { %592 = vperm.xlu1 %6003, %v6152_v6   ;;  %1052 = vperm.xlu0 %6009, %v6157_v7  }
  0x61   : > { %6004 = vset.pattern.permute.xlu1 %v7984_v35  ;;  %6011 = vset.pattern.permute.xlu0 %v7986_v33 }
  0x62   : > { %800 = vperm.xlu1 %6004, %v6136_v2   ;;  %576 = vperm.xlu0 %6011, %v6136_v2  }
  0x66   : > { %816 = vperm.xlu1 %6004, %v6152_v6   ;;  %588 = vperm.xlu0 %6011, %v6141_v3  }
  0x6a   : > { %820 = vperm.xlu1 %6004, %v6149_v5   ;;  %596 = vperm.xlu0 %6011, %v6149_v5  }
  0x6e   : > { %6005 = vset.pattern.permute.xlu1 %v7986_v33  ;;  %600 = vperm.xlu0 %6011, %v6160_v8  }
  0x6f   : > { %604 = vperm.xlu1 %6005, %v6157_v7  }
  0x72   : > { %612 = vperm.xlu0 %6011, %v6165_v9  }
  0x73   : > { %6006 = vset.pattern.permute.xlu1 %v7984_v35 }
  0x74   : > { %808 = vperm.xlu1 %6006, %v6133_v1  }
  0x76   : > { %620 = vperm.xlu0 %6011, %v6173_v11  }
  0x78   : > { %6007 = vset.pattern.permute.xlu1 %v7988_v34 }
  0x79   : > { %1024 = vperm.xlu1 %6007, %v6136_v2  }
  0x7a   : > { %6015 = vset.pattern.permute.xlu0 %v7984_v35 }
  0x7b   : > { %804 = vperm.xlu0 %6015, %v6144_v4  }
  0x7d   : > { %1028 = vperm.xlu1 %6007, %v6144_v4  }
  0x7f   : > { %812 = vperm.xlu0 %6015, %v6141_v3  }
  0x81   : > { %6008 = vset.pattern.permute.xlu1 %v7984_v35 }
  0x82   : > { %828 = vperm.xlu1 %6008, %v6157_v7  }
  0x83   : > { %824 = vperm.xlu0 %6015, %v6160_v8  }
  0x86   : > { %6010 = vset.pattern.permute.xlu1 %v7988_v34 }
  0x87   : > { %1044 = vperm.xlu1 %6010, %v6149_v5   ;;  %832 = vperm.xlu0 %6015, %v6168_v10  }
  0x8b   : > { %1032 = vperm.xlu1 %6010, %v6133_v1   ;;  %852 = vperm.xlu0 %6015, %v6181_v13  }
  0x8f   : > { %1048 = vperm.xlu1 %6010, %v6160_v8   ;;  %840 = vperm.xlu0 %6015, %v6176_v12  }
  0x93   : > { %v6299_v36 = vpop.permute.xlu1 %363  ;;  %6012 = vset.pattern.permute.xlu1 %v7986_v33  ;;  %868 = vperm.xlu0 %6015, %v6197_v17   ;;  %v6303_v37 = vpop.permute.xlu0 %353 }
  0x94   : > { %608 = vperm.xlu1 %6012, %v6168_v10  }
  0x97   : > { %v6315_v39 = vpop.permute.xlu1 %368  ;;  %876 = vperm.xlu0 %6015, %v6205_v19   ;;  %v6318_v40 = vpop.permute.xlu0 %358 }
  0x98   : > { %624 = vperm.xlu1 %6012, %v6184_v14  }
  0x9b   : > { %v6321_v41 = vpop.permute.xlu1 %378  ;;  %888 = vperm.xlu0 %6015, %v6224_v24   ;;  %v6324_v42 = vpop.permute.xlu0 %373 }
  0x9c   : > { %628 = vperm.xlu1 %6012, %v6181_v13  }
  0x9f   : > { %v6327_v43 = vpop.permute.xlu1 %388  ;;  %6025 = vset.pattern.permute.xlu0 %v7988_v34  ;;  %v6330_v44 = vpop.permute.xlu0 %383 }
  0xa0   : > { %6013 = vset.pattern.permute.xlu1 %v7984_v35  ;;  %1060 = vperm.xlu0 %6025, %v6165_v9  }
  0xa1   : > { %836 = vperm.xlu1 %6013, %v6165_v9  }
  0xa3   : > { %v6335_v45 = vpop.permute.xlu1 %398  ;;  %v6337_v46 = vpop.permute.xlu0 %393 }
  0xa4   : > { %8001 = vst [vmem:[#allocation4_spill] sm:$0xff] %v6337_v46  ;;  %1072 = vperm.xlu0 %6025, %v6184_v14  }
  0xa5   : > { %848 = vperm.xlu1 %6013, %v6184_v14  }
  0xa7   : > { %v6341_v47 = vpop.permute.xlu1 %408  ;;  %v6343_v48 = vpop.permute.xlu0 %403 }
  0xa8   : > { %8002 = vst [vmem:[#allocation5_spill] sm:$0xff] %v6341_v47  ;;  %8003 = vst [vmem:[#allocation6_spill] sm:$0xff] %v6343_v48  ;;  %1064 = vperm.xlu0 %6025, %v6176_v12  }
  0xa9   : > { %6014 = vset.pattern.permute.xlu1 %v7986_v33 }
  0xaa   : > { %616 = vperm.xlu1 %6014, %v6176_v12  }
  0xab   : > { %v6348_v49 = vpop.permute.xlu1 %418  ;;  %v6350_v50 = vpop.permute.xlu0 %413 }
  0xac   : > { %8004 = vst [vmem:[#allocation7_spill] sm:$0xff] %v6348_v49  ;;  %8005 = vst [vmem:[#allocation8_spill] sm:$0xff] %v6350_v50  ;;  %1080 = vperm.xlu0 %6025, %v6192_v16   ;;  %v8029_v49 = vmov 3  }
  0xae   : > { %632 = vperm.xlu1 %6014, %v6192_v16  }
  0xaf   : > { %v6354_v51 = vpop.permute.xlu1 %428  ;;  %v6356_v52 = vpop.permute.xlu0 %423 }
  0xb0   : > { %8006 = vst [vmem:[#allocation9_spill] sm:$0xff] %v6354_v51  ;;  %8007 = vst [vmem:[#allocation10_spill] sm:$0xff] %v6356_v52  ;;  %1104 = vperm.xlu0 %6025, %v6216_v22   ;;  %v1228_v52 = vld [vmem:[%s7978_s3 + $0x28] sm:$0xff] }
  0xb2   : > { %636 = vperm.xlu1 %6014, %v6189_v15  }
  0xb3   : > { %v6360_v53 = vpop.permute.xlu1 %438  ;;  %v6362_v54 = vpop.permute.xlu0 %433 }
  0xb4   : > { %8008 = vst [vmem:[#allocation11_spill] sm:$0xff] %v6360_v53  ;;  %8009 = vst [vmem:[#allocation12_spill] sm:$0xff] %v6362_v54  ;;  %1100 = vperm.xlu0 %6025, %v6205_v19  }
  0xb6   : > { %6016 = vset.pattern.permute.xlu1 %v7984_v35 }
  0xb7   : > { %v6366_v55 = vpop.permute.xlu1 %448  ;;  %844 = vperm.xlu1 %6016, %v6173_v11   ;;  %v6369_v56 = vpop.permute.xlu0 %443 }
  0xb8   : > { %8010 = vst [vmem:[#allocation13_spill] sm:$0xff] %v6366_v55  ;;  %8011 = vst [vmem:[#allocation14_spill] sm:$0xff] %v6369_v56  ;;  %1116 = vperm.xlu0 %6025, %v6221_v23   ;;  %v8027_v55 = vmov 2  }
  0xbb   : > { %v6372_v57 = vpop.permute.xlu1 %458  ;;  %6017 = vset.pattern.permute.xlu1 %v7988_v34  ;;  %v6375_v58 = vpop.permute.xlu0 %453 }
  0xbc   : > { %8012 = vst [vmem:[#allocation15_spill] sm:$0xff] %v6372_v57  ;;  %8013 = vst [vmem:[#allocation16_spill] sm:$0xff] %v6375_v58  ;;  %1056 = vperm.xlu1 %6017, %v6168_v10   ;;  %6028 = vset.pattern.permute.xlu0 %v7986_v33 }
  0xbd   : > { %640 = vperm.xlu0 %6028, %v6200_v18  }
  0xbf   : > { %v6380_v59 = vpop.permute.xlu1 %468  ;;  %v6382_v60 = vpop.permute.xlu0 %463 }
  0xc0   : > { %8014 = vst [vmem:[#allocation17_spill] sm:$0xff] %v6380_v59  ;;  %8015 = vst [vmem:[#allocation18_spill] sm:$0xff] %v6382_v60  ;;  %6018 = vset.pattern.permute.xlu1 %v7984_v35  ;;  %v8026_v59 = vmov 0  }
  0xc1   : > { %856 = vperm.xlu1 %6018, %v6192_v16   ;;  %660 = vperm.xlu0 %6028, %v6213_v21   ;;  %v7990_v16 = vlaneseq }
  0xc3   : > { %v6387_v61 = vpop.permute.xlu1 %478  ;;  %v6389_v62 = vpop.permute.xlu0 %473 }
  0xc4   : > { %8016 = vst [vmem:[#allocation19_spill] sm:$0xff] %v6387_v61  ;;  %8017 = vst [vmem:[#allocation20_spill] sm:$0xff] %v6389_v62 }
  0xc5   : > { %860 = vperm.xlu1 %6018, %v6189_v15   ;;  %648 = vperm.xlu0 %6028, %v6208_v20  }
  0xc7   : > { %v6393_v63 = vpop.permute.xlu1 %488  ;;  %v6395_v1 = vpop.permute.xlu0 %483 }
  0xc8   : > { %8018 = vst [vmem:[#allocation21_spill] sm:$0xff] %v6393_v63  ;;  %8019 = vst [vmem:[#allocation22_spill] sm:$0xff] %v6395_v1 }
  0xc9   : > { %6019 = vset.pattern.permute.xlu1 %v7988_v34  ;;  %668 = vperm.xlu0 %6028, %v6221_v23  }
  0xca   : > { %1076 = vperm.xlu1 %6019, %v6181_v13  }
  0xcb   : > { %v6400_v2 = vpop.permute.xlu1 %498  ;;  %v6402_v3 = vpop.permute.xlu0 %493 }
  0xcc   : > { %8020 = vst [vmem:[#allocation23_spill] sm:$0xff] %v6400_v2  ;;  %8021 = vst [vmem:[#allocation24_spill] sm:$0xff] %v6402_v3  ;;  %v1223_v3 = vld [vmem:[%s7978_s3] sm:$0xff] }
  0xcd   : > { %676 = vperm.xlu0 %6028, %v6229_v25  }
  0xce   : > { %1068 = vperm.xlu1 %6019, %v6173_v11  }
  0xcf   : > { %v6406_v4 = vpop.permute.xlu1 %508  ;;  %v6408_v5 = vpop.permute.xlu0 %503 }
  0xd0   : > { %8022 = vst [vmem:[#allocation25_spill] sm:$0xff] %v6406_v4  ;;  %8023 = vst [vmem:[#allocation26_spill] sm:$0xff] %v6408_v5 }
  0xd1   : > { %684 = vperm.xlu0 %6028, %v6237_v27  }
  0xd2   : > { %1084 = vperm.xlu1 %6019, %v6189_v15  }
  0xd4   : > { %v581_v6 = vpop.permute.xlu1 %580  ;;  %v6412_v7 = vpop.permute.xlu0 %1040 }
  0xd5   : > { %6032 = vset.pattern.permute.xlu0 %v7984_v35 }
  0xd6   : > { %6020 = vset.pattern.permute.xlu1 %v7986_v33  ;;  %896 = vperm.xlu0 %6032, %v6232_v26   ;;  %v6437_v33 = vshrl.u32 %v7990_v16, 7  ;;  %v311_v16 = vld [vmem:[%s7975_s0] sm:$0x7] }
  0xd7   : > { %644 = vperm.xlu1 %6020, %v6197_v17  }
  0xd8   : > { %v6418_v8 = vpop.permute.xlu1 %584  ;;  %v6420_v9 = vpop.permute.xlu0 %1036  ;;  %8024 = vst [vmem:[#allocation27_spill] sm:$0xff] %v6437_v33  ;;  %v6442_v4 = vsub.s32 1, %v6437_v33  ;;  %v6450_v63 = vsub.s32 0, %v6437_v33  ;;  %v6458_v1 = vsub.s32 2, %v6437_v33  ;;  %v312_v33 = vld [vmem:[%s7975_s0 + $0x4] sm:$0x7] }
  0xda   : > { %916 = vperm.xlu0 %6032, %v6245_v29   ;;  %v706_v2 = vrot.slane %v311_v16, %v6442_v4  ;;  %v514_v62 = vrot.slane %v311_v16, %v6450_v63  ;;  %v930_v57 = vrot.slane %v311_v16, %v6458_v1  ;;  %v710_v54 = vrot.slane %v312_v33, %v6442_v4 }
  0xdb   : > { %656 = vperm.xlu1 %6020, %v6216_v22   ;;  %v6482_v53 = vrot.slane %v312_v33, %v6458_v1  ;;  %v518_v47 = vrot.slane %v312_v33, %v6450_v63  ;;  %v1230_v33 = vld [vmem:[%s7978_s3 + $0x38] sm:$0xff] }
  0xdc   : > { %v593_v10 = vpop.permute.xlu1 %592  ;;  %v6424_v11 = vpop.permute.xlu0 %1052  ;;  %v543_v56 = vmul.f32 %v514_v62, %v6303_v37  ;;  %v544_v16 = vmul.f32 %v514_v62, %v6318_v40 }
  0xde   : > { %904 = vperm.xlu0 %6032, %v6240_v28  }
  0xdf   : > { %6021 = vset.pattern.permute.xlu1 %v7984_v35 }
  0xe0   : > { %864 = vperm.xlu1 %6021, %v6200_v18  }
  0xe1   : > { %v801_v12 = vpop.permute.xlu1 %800  ;;  %v577_v13 = vpop.permute.xlu0 %576 }
  0xe2   : > { %6035 = vset.pattern.permute.xlu0 %v7988_v34  ;;  %v8025_v34 = vmov 1   ;;  %v735_v61 = vmul.f32 %v706_v2, %v577_v13  ;;  %v1226_v13 = vld [vmem:[%s7978_s3 + $0x18] sm:$0xff]  ;;  %v959_v51 = vmul.f32 %v930_v57, %v801_v12 }
  0xe3   : > { %1124 = vperm.xlu0 %6035, %v6229_v25  }
  0xe4   : > { %880 = vperm.xlu1 %6021, %v6216_v22   ;;  %v767_v37 = vadd.f32 %v735_v61, %v543_v56 }
  0xe5   : > { %v817_v14 = vpop.permute.xlu1 %816  ;;  %v589_v15 = vpop.permute.xlu0 %588 }
  0xe6   : > { %v991_v56 = vadd.f32 %v959_v51, %v767_v37  ;;  %v963_v40 = vmul.f32 %v6482_v53, %v817_v14  ;;  %v548_v51 = vmul.f32 %v518_v47, %v6321_v41 }
  0xe7   : > { %1136 = vperm.xlu0 %6035, %v6248_v30  }
  0xe8   : > { %884 = vperm.xlu1 %6021, %v6213_v21  }
  0xe9   : > { %v6434_v0 = vpop.permute.xlu1 %820  ;;  %v597_v35 = vpop.permute.xlu0 %596 }
  0xea   : > { %v740_v50 = vmul.f32 %v710_v54, %v597_v35 }
  0xeb   : > { %1128 = vperm.xlu0 %6035, %v6240_v28  }
  0xec   : > { %6022 = vset.pattern.permute.xlu1 %v8025_v34 }
  0xed   : > { %652 = vperm.xlu1 %6022, %v6205_v19   ;;  %v6445_v22 = vpop.permute.xlu0 %600 }
  0xee   : > { %v6447_v5 = vpop.permute.xlu1 %604 }
  0xef   : > { %1144 = vperm.xlu0 %6035, %v6256_v32  }
  0xf1   : > { %664 = vperm.xlu1 %6022, %v6224_v24   ;;  %v6461_v19 = vpop.permute.xlu0 %612 }
  0xf3   : > { %v809_v60 = vpop.permute.xlu1 %808  ;;  %6038 = vset.pattern.permute.xlu0 %v8026_v59 }
  0xf4   : > { %1233 = vperm.xlu0 %6038, %v1223_v3   ;;  %v736_v3 = vmul.f32 %v706_v2, %v581_v6 }
  0xf5   : > { %6023 = vset.pattern.permute.xlu1 %v8027_v55  ;;  %v6474_v58 = vpop.permute.xlu0 %620 }
  0xf6   : > { %8028 = vst [vmem:[#allocation28_spill] sm:$0xff] %v6474_v58  ;;  %872 = vperm.xlu1 %6023, %v6208_v20   ;;  %v739_v58 = vmul.f32 %v710_v54, %v593_v10  ;;  %v768_v6 = vadd.f32 %v736_v3, %v544_v16  ;;  %v737_v16 = vmul.f32 %v706_v2, %v6418_v8 }
  0xf8   : > { %v1025_v59 = vpop.permute.xlu1 %1024  ;;  %1248 = vperm.xlu0 %6038, %v1226_v13   ;;  %v547_v13 = vmul.f32 %v518_v47, %v6324_v42 }
  0xf9   : > { %v1151_v27 = vadd.f32 %v1025_v59, %v991_v56 }
  0xfa   : > { %6024 = vset.pattern.permute.xlu1 %v8029_v49  ;;  %v805_v48 = vpop.permute.xlu0 %804  ;;  %v771_v10 = vadd.f32 %v739_v58, %v547_v13  ;;  %v2217_v58 = vld [vmem:[%s7980_s5 + $0x8] sm:$0xff] }
  0xfb   : > { %v960_v61 = vmul.f32 %v930_v57, %v805_v48  ;;  %1088 = vperm.xlu1 %6024, %v6200_v18   ;;  %v738_v48 = vmul.f32 %v706_v2, %v589_v15  ;;  %v546_v18 = vmul.f32 %v514_v62, %v6315_v39  ;;  %v1183_v35 = vmax.f32 %v1151_v27, 0.0 }
  0xfc   : > { %v1029_v12 = vpop.permute.xlu1 %1028  ;;  %1258 = vperm.xlu0 %6038, %v1228_v52   ;;  %v995_v42 = vadd.f32 %v963_v40, %v771_v10  ;;  %v772_v52 = vadd.f32 %v740_v50, %v548_v51  ;;  %v545_v27 = vmul.f32 %v514_v62, %v6299_v36  ;;  %v961_v50 = vmul.f32 %v930_v57, %v809_v60 }
  0xfd   : > { %v992_v31 = vadd.f32 %v960_v61, %v768_v6  ;;  %v770_v41 = vadd.f32 %v738_v48, %v546_v18  ;;  %v550_v15 = vmul.f32 %v518_v47, %v6327_v43  ;;  %v549_v62 = vmul.f32 %v518_v47, %v6330_v44 }
  0xfe   : > { %v813_v46 = vpop.permute.xlu0 %812  ;;  %v769_v6 = vadd.f32 %v737_v16, %v545_v27  ;;  %v6586_v27 = vld [vmem:[%s7977_s2 + $0x30] sm:$0xff] }
  0xff   : > { %v1152_v3 = vadd.f32 %v1029_v12, %v992_v31  ;;  %1092 = vperm.xlu1 %6024, %v6197_v17   ;;  %v962_v14 = vmul.f32 %v930_v57, %v813_v46  ;;  %v964_v31 = vmul.f32 %v6482_v53, %v6434_v0  ;;  %v742_v17 = vmul.f32 %v710_v54, %v6447_v5  ;;  %v2219_v5 = vld [vmem:[%s7980_s5 + $0x18] sm:$0xff] }
 0x100   : > { %1268 = vperm.xlu0 %6038, %v1230_v33   ;;  %v1155_v46 = vadd.f32 %v6412_v7, %v995_v42  ;;  %v993_v43 = vadd.f32 %v961_v50, %v769_v6 }
 0x101   : > { %v1184_v59 = vmax.f32 %v1152_v3, 0.0  ;;  %v829_v37 = vpop.permute.xlu1 %828  ;;  %v994_v2 = vadd.f32 %v962_v14, %v770_v41  ;;  %v996_v0 = vadd.f32 %v964_v31, %v772_v52  ;;  %v774_v57 = vadd.f32 %v742_v17, %v550_v15  ;;  %v6536_v52 = vld [vmem:[%s7977_s2 + $0x8] sm:$0xff]  ;;  %v6541_v14 = vld [vmem:[%s7977_s2 + $0x10] sm:$0xff]  ;;  %v6562_v41 = vld [vmem:[%s7977_s2 + $0x20] sm:$0xff] }
 0x102   : > { %v966_v8 = vmul.f32 %v6482_v53, %v829_v37  ;;  %v825_v56 = vpop.permute.xlu0 %824  ;;  %v1187_v7 = vmax.f32 %v1155_v46, 0.0  ;;  %v6553_v37 = vld [vmem:[%s7977_s2 + $0x18] sm:$0xff]  ;;  %v2229_v31 = vld [vmem:[%s7980_s5 + $0x68] sm:$0xff] }
 0x103   : > { %6026 = vset.pattern.permute.xlu1 %v8027_v55  ;;  %v5781_v39 = vpack.c.bf16 %v1184_v59, %v1183_v35  ;;  %v1154_v61 = vadd.f32 %v6420_v9, %v994_v2  ;;  %v965_v40 = vmul.f32 %v6482_v53, %v825_v56  ;;  %v6575_v17 = vld [vmem:[%s7977_s2 + $0x28] sm:$0xff]  ;;  %v2231_v46 = vld [vmem:[%s7980_s5 + $0x78] sm:$0xff] }
 0x104   : > { %892 = vperm.xlu1 %6026, %v6221_v23   ;;  %2239 = vperm.xlu0 %6038, %v2217_v58   ;;  %v741_v23 = vmul.f32 %v710_v54, %v6445_v22  ;;  %v998_v13 = vadd.f32 %v966_v8, %v774_v57  ;;  %v2221_v54 = vld [vmem:[%s7980_s5 + $0x28] sm:$0xff]  ;;  %v6601_v15 = vld [vmem:[%s7977_s2 + $0x38] sm:$0xff] }
 0x105   : > { %5782 = vmatprep.subr.bf16.mxu0 %v5781_v39  ;;  %v1186_v53 = vmax.f32 %v1154_v61, 0.0  ;;  %v8030_v61 = vld [vmem:[#allocation4_spill] sm:$0xff] }
 0x106   : > { %v1045_v36 = vpop.permute.xlu1 %1044  ;;  %5784 = vmatpush3.bf16.msra.mxu0 %v5781_v39  ;;  %v773_v33 = vadd.f32 %v741_v23, %v549_v62  ;;  %v1158_v10 = vadd.f32 %v6424_v11, %v998_v13  ;;  %v833_v58 = vpop.permute.xlu0 %832 }
 0x107   : > { %v1156_v60 = vadd.f32 %v1045_v36, %v996_v0 }
 0x108   : > { %6027 = vset.pattern.permute.xlu1 %v8029_v49  ;;  %2249 = vperm.xlu0 %6038, %v2219_v5   ;;  %v997_v9 = vadd.f32 %v965_v40, %v773_v33  ;;  %v1190_v11 = vmax.f32 %v1158_v10, 0.0  ;;  %v8032_v10 = vld [vmem:[#allocation2_spill] sm:$0xff] }
 0x109   : > { %v1188_v12 = vmax.f32 %v1156_v60, 0.0  ;;  %1108 = vperm.xlu1 %6027, %v6213_v21   ;;  %v2223_v21 = vld [vmem:[%s7980_s5 + $0x38] sm:$0xff] }
 0x10a   : > { %v1033_v22 = vpop.permute.xlu1 %1032  ;;  %v6588_v50 = vpop.permute.xlu0 %852 }
 0x10b   : > { %v1153_v44 = vadd.f32 %v1033_v22, %v993_v43  ;;  %v5789_v47 = vpack.c.bf16 %v1188_v12, %v1187_v7 }
 0x10c   : > { %2259 = vperm.xlu0 %6038, %v2221_v54  }
 0x10d   : > { %v1185_v51 = vmax.f32 %v1153_v44, 0.0  ;;  %1096 = vperm.xlu1 %6027, %v6208_v20   ;;  %5790 = vmatprep.subr.bf16.mxu1 %v5789_v47  ;;  %v2225_v20 = vld [vmem:[%s7980_s5 + $0x48] sm:$0xff] }
 0x10e   : > { %v1049_v48 = vpop.permute.xlu1 %1048  ;;  %5792 = vmatpush3.bf16.msra.mxu1 %v5789_v47  ;;  %v6612_v8 = vpop.permute.xlu0 %840 }
 0x10f   : > { %v1157_v3 = vadd.f32 %v1049_v48, %v997_v9  ;;  %v5785_v18 = vpack.c.bf16 %v1186_v53, %v1185_v51 }
 0x110   : > { %2269 = vperm.xlu0 %6038, %v2223_v21  }
 0x111   : > { %v1189_v42 = vmax.f32 %v1157_v3, 0.0  ;;  %1112 = vperm.xlu1 %6027, %v6224_v24   ;;  %5786 = vmatprep.subr.bf16.mxu0 %v5785_v18  ;;  %v2227_v24 = vld [vmem:[%s7980_s5 + $0x58] sm:$0xff] }
 0x112   : > { %5788 = vmatpush3.bf16.msra.mxu0 %v5785_v18  ;;  %v6624_v5 = vpop.permute.xlu0 %868 }
 0x113   : > { %v609_v35 = vpop.permute.xlu1 %608  ;;  %v5793_v59 = vpack.c.bf16 %v1190_v11, %v1189_v42 }
 0x114   : > { %2279 = vperm.xlu0 %6038, %v2225_v20   ;;  %v8033_v20 = vld [vmem:[#allocation8_spill] sm:$0xff] }
 0x115   : > { %6029 = vset.pattern.permute.xlu1 %v8025_v34  ;;  %5310 = vmatmul.mubr.msk.f32.vlgmr.msra.gmra.mrb[0].mxu0 %vm1271_vm0, %v6536_v52 }
 0x116   : > { %5794 = vmatprep.subr.bf16.mxu1 %v5793_v59  ;;  %672 = vperm.xlu1 %6029, %v6232_v26  }
 0x117   : > { %5796 = vmatpush3.bf16.msra.mxu1 %v5793_v59  ;;  %v6555_v16 = vpop.permute.xlu1 %624  ;;  %5312 = vmatprep.mubr.msk.f32.mxu0 %vm1271_vm0, %v6541_v14 }
 0x118   : > { %2289 = vperm.xlu0 %6038, %v2227_v24  }
 0x119   : > { %5313 = vmatmul.mubr.msk.f32.gmra.mrb[2].mxu0 %vm1271_vm0, %v6553_v37 }
 0x11a   : > { %5330 = vmatmul.mubr.msk.f32.vlgmr.msra.gmra.mrb[0].mxu1 %vm1271_vm0, %v6536_v52  ;;  %688 = vperm.xlu1 %6029, %v6248_v30  }
 0x11b   : > { %v6577_v39 = vpop.permute.xlu1 %628  ;;  %5315 = vmatprep.mubr.msk.f32.mxu0 %vm1271_vm0, %v6562_v41  ;;  %5332 = vmatprep.mubr.msk.f32.mxu1 %vm1271_vm0, %v6541_v14 }
 0x11c   : > { %2299 = vperm.xlu0 %6038, %v2229_v31  }
 0x11d   : > { %5316 = vmatmul.mubr.msk.f32.gmra.mrb[4].mxu0 %vm1271_vm0, %v6575_v17 }
 0x11e   : > { %5333 = vmatmul.mubr.msk.f32.gmra.mrb[2].mxu1 %vm1271_vm0, %v6553_v37  ;;  %692 = vperm.xlu1 %6029, %v6245_v29  }
 0x11f   : > { %5318 = vmatprep.mubr.msk.f32.mxu0 %vm1271_vm0, %v6586_v27  ;;  %5335 = vmatprep.mubr.msk.f32.mxu1 %vm1271_vm0, %v6562_v41 }
 0x120   : > { %v837_v2 = vpop.permute.xlu1 %836  ;;  %2309 = vperm.xlu0 %6038, %v2231_v46  }
 0x121   : > { %5319 = vmatmul.mubr.msk.f32.gmra.mrb[6].mxu0 %vm1271_vm0, %v6601_v15 }
 0x122   : > { %5336 = vmatmul.mubr.msk.f32.gmra.mrb[4].mxu1 %vm1271_vm0, %v6575_v17  ;;  %6030 = vset.pattern.permute.xlu1 %v8027_v55 }
 0x123   : > { %900 = vperm.xlu1 %6030, %v6229_v25   ;;  %5338 = vmatprep.mubr.msk.f32.mxu1 %vm1271_vm0, %v6586_v27  ;;  %v313_v25 = vld [vmem:[%s7975_s0 + $0x8] sm:$0x7] }
 0x124   : > { %v849_v0 = vpop.permute.xlu1 %848  ;;  %5349 = vmatprep.mubr.msk.f32.mxu0 %vm1271_vm0, %v6308_v38  ;;  %v714_v56 = vrot.slane %v313_v25, %v6442_v4  ;;  %v522_v23 = vrot.slane %v313_v25, %v6450_v63  ;;  %v938_v60 = vrot.slane %v313_v25, %v6458_v1 }
 0x126   : > { %5339 = vmatmul.mubr.msk.f32.gmra.mrb[6].mxu1 %vm1271_vm0, %v6601_v15  ;;  %v744_v57 = vmul.f32 %v714_v56, %v6461_v19  ;;  %v552_v43 = vmul.f32 %v522_v23, %v6335_v45  ;;  %v743_v7 = vmul.f32 %v714_v56, %v609_v35  ;;  %v551_v13 = vmul.f32 %v522_v23, %v8030_v61  ;;  %v314_v19 = vld [vmem:[%s7975_s0 + $0xc] sm:$0x7] }
 0x127   : > { %912 = vperm.xlu1 %6030, %v6248_v30   ;;  %5369 = vmatprep.mubr.msk.f32.mxu1 %vm1271_vm0, %v6308_v38  ;;  %v6633_v30 = vpop.permute.xlu0 %876  ;;  %v967_v44 = vmul.f32 %v938_v60, %v833_v58  ;;  %v718_v45 = vrot.slane %v314_v19, %v6442_v4  ;;  %v526_v53 = vrot.slane %v314_v19, %v6450_v63 }
 0x128   : > { %v776_v40 = vadd.f32 %v744_v57, %v552_v43  ;;  %v775_v54 = vadd.f32 %v743_v7, %v551_v13  ;;  %v942_v3 = vrot.slane %v314_v19, %v6458_v1  ;;  %v8035_v43 = vld [vmem:[#allocation7_spill] sm:$0xff] }
 0x129   : > { %v617_v6 = vpop.permute.xlu1 %616  ;;  %v747_v18 = vmul.f32 %v718_v45, %v6555_v16  ;;  %v555_v35 = vmul.f32 %v526_v53, %v8033_v20  ;;  %v748_v58 = vmul.f32 %v718_v45, %v6577_v39  ;;  %v556_v7 = vmul.f32 %v526_v53, %v8035_v43  ;;  %v8039_v20 = vld [vmem:[#allocation9_spill] sm:$0xff] }
 0x12a   : > { %v999_v9 = vadd.f32 %v967_v44, %v775_v54  ;;  %v971_v59 = vmul.f32 %v942_v3, %v849_v0  ;;  %v745_v24 = vmul.f32 %v714_v56, %v617_v6  ;;  %v969_v39 = vmul.f32 %v938_v60, %v6612_v8  ;;  %v8036_v6 = vld [vmem:[#allocation28_spill] sm:$0xff] }
 0x12b   : > { %6031 = vset.pattern.permute.xlu1 %v8025_v34  ;;  %v968_v34 = vmul.f32 %v938_v60, %v837_v2  ;;  %v6641_v12 = vpop.permute.xlu0 %888  ;;  %v8034_v2 = vld [vmem:[#allocation6_spill] sm:$0xff]  ;;  %v779_v57 = vadd.f32 %v747_v18, %v555_v35  ;;  %v746_v13 = vmul.f32 %v714_v56, %v8036_v6  ;;  %v1229_v6 = vld [vmem:[%s7978_s3 + $0x30] sm:$0xff] }
 0x12c   : > { %680 = vperm.xlu1 %6031, %v6240_v28   ;;  %v8031_v28 = vld [vmem:[#allocation3_spill] sm:$0xff]  ;;  %v553_v25 = vmul.f32 %v522_v23, %v8034_v2 }
 0x12d   : > { %v633_v36 = vpop.permute.xlu1 %632  ;;  %v1000_v22 = vadd.f32 %v968_v34, %v776_v40  ;;  %v1003_v16 = vadd.f32 %v971_v59, %v779_v57  ;;  %v972_v40 = vmul.f32 %v942_v3, %v6588_v50  ;;  %v558_v50 = vmul.f32 %v526_v53, %v8039_v20  ;;  %v2224_v20 = vld [vmem:[%s7980_s5 + $0x40] sm:$0xff] }
 0x12e   : > { %v777_v61 = vadd.f32 %v745_v24, %v553_v25  ;;  %v749_v54 = vmul.f32 %v718_v45, %v633_v36 }
 0x12f   : > { %v1061_v47 = vpop.permute.xlu0 %1060 }
 0x130   : > { %696 = vperm.xlu1 %6031, %v6256_v32   ;;  %v1160_v51 = vadd.f32 %v1061_v47, %v1000_v22  ;;  %v8037_v22 = vld [vmem:[#allocation5_spill] sm:$0xff]  ;;  %v8038_v47 = vld [vmem:[#allocation10_spill] sm:$0xff] }
 0x131   : > { %v637_v62 = vpop.permute.xlu1 %636  ;;  %v554_v19 = vmul.f32 %v522_v23, %v8037_v22 }
 0x132   : > { %v1192_v42 = vmax.f32 %v1160_v51, 0.0  ;;  %v557_v51 = vmul.f32 %v526_v53, %v8038_v47  ;;  %v2220_v47 = vld [vmem:[%s7980_s5 + $0x20] sm:$0xff] }
 0x133   : > { %v1073_v34 = vpop.permute.xlu0 %1072 }
 0x134   : > { %700 = vperm.xlu1 %6031, %v8031_v28   ;;  %v1163_v44 = vadd.f32 %v1073_v34, %v1003_v16  ;;  %v781_v8 = vadd.f32 %v749_v54, %v557_v51  ;;  %v1224_v34 = vld [vmem:[%s7978_s3 + $0x8] sm:$0xff]  ;;  %v2216_v54 = vld [vmem:[%s7980_s5] sm:$0xff]  ;;  %v315_v51 = vld [vmem:[%s7975_s0 + $0x10] sm:$0x7] }
 0x136   : > { %v845_v33 = vpop.permute.xlu1 %844  ;;  %v1195_v36 = vmax.f32 %v1163_v44, 0.0  ;;  %v2218_v44 = vld [vmem:[%s7980_s5 + $0x10] sm:$0xff] }
 0x138   : > { %6033 = vset.pattern.permute.xlu1 %v8027_v55 }
 0x139   : > { %908 = vperm.xlu1 %6033, %v8032_v10  }
 0x13b   : > { %v1057_v21 = vpop.permute.xlu1 %1056 }
 0x13c   : > { %v1159_v48 = vadd.f32 %v1057_v21, %v999_v9  ;;  %v970_v9 = vmul.f32 %v938_v60, %v845_v33 }
 0x13d   : > { %6034 = vset.pattern.permute.xlu1 %v8029_v49 }
 0x13e   : > { %v1191_v11 = vmax.f32 %v1159_v48, 0.0  ;;  %1120 = vperm.xlu1 %6034, %v6232_v26   ;;  %v780_v26 = vadd.f32 %v748_v58, %v556_v7  ;;  %v1065_v48 = vpop.permute.xlu0 %1064 }
 0x140   : > { %v857_v31 = vpop.permute.xlu1 %856  ;;  %v5797_v46 = vpack.c.bf16 %v1192_v42, %v1191_v11  ;;  %v1004_v21 = vadd.f32 %v972_v40, %v780_v26  ;;  %v778_v42 = vadd.f32 %v746_v13, %v554_v19  ;;  %v750_v11 = vmul.f32 %v718_v45, %v637_v62 }
 0x142   : > { %6036 = vset.pattern.permute.xlu1 %v8027_v55  ;;  %5798 = vmatprep.subr.bf16.mxu0 %v5797_v46  ;;  %v1001_v55 = vadd.f32 %v969_v39, %v777_v61  ;;  %v1002_v60 = vadd.f32 %v970_v9, %v778_v42  ;;  %v782_v58 = vadd.f32 %v750_v11, %v558_v50  ;;  %v1081_v2 = vpop.permute.xlu0 %1080  ;;  %v8041_v50 = vld [vmem:[#allocation11_spill] sm:$0xff] }
 0x143   : > { %920 = vperm.xlu1 %6036, %v6256_v32   ;;  %5800 = vmatpush3.bf16.msra.mxu0 %v5797_v46  ;;  %v973_v32 = vmul.f32 %v942_v3, %v857_v31 }
 0x144   : > { %v861_v0 = vpop.permute.xlu1 %860  ;;  %v1161_v23 = vadd.f32 %v1065_v48, %v1001_v55  ;;  %v2222_v48 = vld [vmem:[%s7980_s5 + $0x30] sm:$0xff] }
 0x145   : > { %v1005_v35 = vadd.f32 %v973_v32, %v781_v8  ;;  %v974_v59 = vmul.f32 %v942_v3, %v861_v0  ;;  %v1227_v0 = vld [vmem:[%s7978_s3 + $0x20] sm:$0xff] }
 0x146   : > { %v1193_v53 = vmax.f32 %v1161_v23, 0.0  ;;  %v6688_v26 = vpop.permute.xlu0 %1104  ;;  %v8042_v23 = vld [vmem:[#allocation12_spill] sm:$0xff] }
 0x147   : > { %924 = vperm.xlu1 %6036, %v8031_v28   ;;  %v1165_v25 = vadd.f32 %v1081_v2, %v1005_v35  ;;  %v1006_v45 = vadd.f32 %v974_v59, %v782_v58  ;;  %v316_v59 = vld [vmem:[%s7975_s0 + $0x14] sm:$0x7] }
 0x148   : > { %v534_v58 = vrot.slane %v316_v59, %v6450_v63  ;;  %v2226_v2 = vld [vmem:[%s7980_s5 + $0x50] sm:$0xff] }
 0x149   : > { %v1077_v18 = vpop.permute.xlu1 %1076 }
 0x14a   : > { %v1164_v56 = vadd.f32 %v1077_v18, %v1004_v21  ;;  %v6708_v40 = vpop.permute.xlu0 %1100  ;;  %v722_v21 = vrot.slane %v315_v51, %v6442_v4  ;;  %v946_v18 = vrot.slane %v315_v51, %v6458_v1 }
 0x14b   : > { %6037 = vset.pattern.permute.xlu1 %v8029_v49 }
 0x14c   : > { %v1196_v24 = vmax.f32 %v1164_v56, 0.0  ;;  %1140 = vperm.xlu1 %6037, %v6245_v29   ;;  %v1197_v29 = vmax.f32 %v1165_v25, 0.0  ;;  %v976_v25 = vmul.f32 %v946_v18, %v6624_v5 }
 0x14d   : > { %v1069_v33 = vpop.permute.xlu1 %1068 }
 0x14e   : > { %v1162_v31 = vadd.f32 %v1069_v33, %v1002_v60  ;;  %v5805_v46 = vpack.c.bf16 %v1196_v24, %v1195_v36  ;;  %v6723_v19 = vpop.permute.xlu0 %1116 }
 0x150   : > { %v1194_v62 = vmax.f32 %v1162_v31, 0.0  ;;  %1132 = vperm.xlu1 %6037, %v8032_v10   ;;  %5806 = vmatprep.subr.bf16.mxu1 %v5805_v46  ;;  %v8040_v10 = vmov 0   ;;  %v726_v31 = vrot.slane %v316_v59, %v6442_v4 }
 0x151   : > { %v1085_v49 = vpop.permute.xlu1 %1084  ;;  %5808 = vmatpush3.bf16.msra.mxu1 %v5805_v46 }
 0x152   : > { %v1166_v57 = vadd.f32 %v1085_v49, %v1006_v45  ;;  %v5801_v3 = vpack.c.bf16 %v1194_v62, %v1193_v53  ;;  %v641_v9 = vpop.permute.xlu0 %640  ;;  %v950_v45 = vrot.slane %v316_v59, %v6458_v1  ;;  %v8047_v59 = vld [vmem:[#allocation17_spill] sm:$0xff] }
 0x153   : > { %v751_v42 = vmul.f32 %v722_v21, %v641_v9 }
 0x154   : > { %v1198_v43 = vmax.f32 %v1166_v57, 0.0  ;;  %1148 = vperm.xlu1 %6037, %v8031_v28   ;;  %5802 = vmatprep.subr.bf16.mxu0 %v5801_v3  ;;  %v1225_v28 = vld [vmem:[%s7978_s3 + $0x10] sm:$0xff] }
 0x155   : > { %5804 = vmatpush3.bf16.msra.mxu0 %v5801_v3 }
 0x156   : > { %v645_v7 = vpop.permute.xlu1 %644  ;;  %v5809_v16 = vpack.c.bf16 %v1198_v43, %v1197_v29  ;;  %v661_v56 = vpop.permute.xlu0 %660  ;;  %v8043_v43 = vld [vmem:[#allocation16_spill] sm:$0xff] }
 0x157   : > { %v752_v8 = vmul.f32 %v722_v21, %v645_v7  ;;  %v563_v29 = vmul.f32 %v534_v58, %v8043_v43 }
 0x158   : > { %6039 = vset.pattern.permute.xlu1 %v8040_v10  ;;  %5350 = vmatmul.mubr.msk.f32.vlgmr.msra.gmra.mrb[8].mxu0 %vm1271_vm0, %v6536_v52 }
 0x159   : > { %5810 = vmatprep.subr.bf16.mxu1 %v5809_v16  ;;  %1238 = vperm.xlu1 %6039, %v1224_v34   ;;  %v2228_v34 = vld [vmem:[%s7980_s5 + $0x60] sm:$0xff] }
 0x15a   : > { %5812 = vmatpush3.bf16.msra.mxu1 %v5809_v16  ;;  %v6677_v61 = vpop.permute.xlu1 %656  ;;  %5352 = vmatprep.mubr.msk.f32.mxu0 %vm1271_vm0, %v6541_v14  ;;  %v649_v53 = vpop.permute.xlu0 %648 }
 0x15b   : > { %v755_v49 = vmul.f32 %v726_v31, %v6677_v61 }
 0x15c   : > { %5353 = vmatmul.mubr.msk.f32.gmra.mrb[10].mxu0 %vm1271_vm0, %v6553_v37 }
 0x15d   : > { %5370 = vmatmul.mubr.msk.f32.vlgmr.msra.gmra.mrb[8].mxu1 %vm1271_vm0, %v6536_v52  ;;  %1243 = vperm.xlu1 %6039, %v1225_v28   ;;  %v787_v5 = vadd.f32 %v755_v49, %v563_v29 }
 0x15e   : > { %5355 = vmatprep.mubr.msk.f32.mxu0 %vm1271_vm0, %v6562_v41  ;;  %5372 = vmatprep.mubr.msk.f32.mxu1 %vm1271_vm0, %v6541_v14  ;;  %v669_v61 = vpop.permute.xlu0 %668 }
 0x15f   : > { %v865_v39 = vpop.permute.xlu1 %864 }
 0x160   : > { %5356 = vmatmul.mubr.msk.f32.gmra.mrb[12].mxu0 %vm1271_vm0, %v6575_v17  ;;  %v975_v24 = vmul.f32 %v946_v18, %v865_v39 }
 0x161   : > { %5373 = vmatmul.mubr.msk.f32.gmra.mrb[10].mxu1 %vm1271_vm0, %v6553_v37  ;;  %1253 = vperm.xlu1 %6039, %v1227_v0   ;;  %v8044_v0 = vld [vmem:[#allocation13_spill] sm:$0xff] }
 0x162   : > { %5358 = vmatprep.mubr.msk.f32.mxu0 %vm1271_vm0, %v6586_v27  ;;  %5375 = vmatprep.mubr.msk.f32.mxu1 %vm1271_vm0, %v6562_v41 }
 0x163   : > { %v881_v13 = vpop.permute.xlu1 %880 }
 0x164   : > { %5359 = vmatmul.mubr.msk.f32.gmra.mrb[14].mxu0 %vm1271_vm0, %v6601_v15  ;;  %v979_v7 = vmul.f32 %v950_v45, %v881_v13  ;;  %v2230_v13 = vld [vmem:[%s7980_s5 + $0x70] sm:$0xff] }
 0x165   : > { %5376 = vmatmul.mubr.msk.f32.gmra.mrb[12].mxu1 %vm1271_vm0, %v6575_v17  ;;  %1263 = vperm.xlu1 %6039, %v1229_v6   ;;  %v756_v6 = vmul.f32 %v726_v31, %v661_v56  ;;  %v758_v56 = vmul.f32 %v726_v31, %v669_v61  ;;  %v6040_v61 = vld [vmem:[%s7977_s2] sm:$0xff] }
 0x166   : > { %5378 = vmatprep.mubr.msk.f32.mxu1 %vm1271_vm0, %v6586_v27  ;;  %5389 = vmatprep.mubr.msk.f32.mxu0 %vm1271_vm0, %v6308_v38 }
 0x167   : > { %v885_v22 = vpop.permute.xlu1 %884 }
 0x169   : > { %5379 = vmatmul.mubr.msk.f32.gmra.mrb[14].mxu1 %vm1271_vm0, %v6601_v15  ;;  %2234 = vperm.xlu1 %6039, %v2216_v54  }
 0x16a   : > { %5409 = vmatprep.mubr.msk.f32.mxu1 %vm1271_vm0, %v6308_v38  ;;  %v530_v38 = vrot.slane %v315_v51, %v6450_v63  ;;  %v8045_v51 = vld [vmem:[#allocation15_spill] sm:$0xff] }
 0x16b   : > { %v564_v9 = vmul.f32 %v534_v58, %v8045_v51 }
 0x16c   : > { %v653_v55 = vpop.permute.xlu1 %652  ;;  %v560_v36 = vmul.f32 %v530_v38, %v8041_v50  ;;  %v559_v35 = vmul.f32 %v530_v38, %v8042_v23  ;;  %v562_v39 = vmul.f32 %v530_v38, %v8044_v0  ;;  %v8046_v23 = vld [vmem:[#allocation14_spill] sm:$0xff] }
 0x16d   : > { %2244 = vperm.xlu1 %6039, %v2218_v44   ;;  %v754_v10 = vmul.f32 %v722_v21, %v653_v55  ;;  %v788_v50 = vadd.f32 %v756_v6, %v564_v9 }
 0x16e   : > { %v783_v60 = vadd.f32 %v751_v42, %v559_v35  ;;  %v784_v33 = vadd.f32 %v752_v8, %v560_v36  ;;  %v753_v36 = vmul.f32 %v722_v21, %v649_v53  ;;  %v561_v35 = vmul.f32 %v530_v38, %v8046_v23 }
 0x16f   : > { %v786_v42 = vadd.f32 %v754_v10, %v562_v39 }
 0x170   : > { %v665_v32 = vpop.permute.xlu1 %664  ;;  %v1007_v62 = vadd.f32 %v975_v24, %v783_v60  ;;  %v1008_v3 = vadd.f32 %v976_v25, %v784_v33  ;;  %v566_v24 = vmul.f32 %v534_v58, %v8047_v59 }
 0x171   : > { %2254 = vperm.xlu1 %6039, %v2220_v47   ;;  %v1011_v47 = vadd.f32 %v979_v7, %v787_v5  ;;  %v757_v33 = vmul.f32 %v726_v31, %v665_v32  ;;  %v981_v32 = vmul.f32 %v950_v45, %v6641_v12 }
 0x172   : > { %v790_v21 = vadd.f32 %v758_v56, %v566_v24 }
 0x173   : > { %v1171_v60 = vadd.f32 %v6688_v26, %v1011_v47 }
 0x175   : > { %2264 = vperm.xlu1 %6039, %v2222_v48   ;;  %v873_v11 = vpop.permute.xlu1 %872  ;;  %v980_v48 = vmul.f32 %v950_v45, %v885_v22  ;;  %v1203_v43 = vmax.f32 %v1171_v60, 0.0 }
 0x176   : > { %v977_v22 = vmul.f32 %v946_v18, %v873_v11 }
 0x177   : > { %v1012_v25 = vadd.f32 %v980_v48, %v788_v50  ;;  %v317_v48 = vld [vmem:[%s7975_s0 + $0x18] sm:$0x7] }
 0x179   : > { %2274 = vperm.xlu1 %6039, %v2224_v20   ;;  %v978_v20 = vmul.f32 %v946_v18, %v6633_v30 }
 0x17a   : > { %v1089_v46 = vpop.permute.xlu1 %1088 }
 0x17b   : > { %v1167_v57 = vadd.f32 %v1089_v46, %v1007_v62  ;;  %v1010_v46 = vadd.f32 %v978_v20, %v786_v42  ;;  %v8048_v62 = vld [vmem:[#allocation18_spill] sm:$0xff]  ;;  %v538_v20 = vrot.slane %v317_v48, %v6450_v63 }
 0x17c   : > { %v565_v49 = vmul.f32 %v534_v58, %v8048_v62 }
 0x17d   : > { %2284 = vperm.xlu1 %6039, %v2226_v2   ;;  %v1199_v54 = vmax.f32 %v1167_v57, 0.0  ;;  %v785_v57 = vadd.f32 %v753_v36, %v561_v35  ;;  %v954_v36 = vrot.slane %v317_v48, %v6458_v1  ;;  %v8049_v35 = vld [vmem:[#allocation19_spill] sm:$0xff] }
 0x17e   : > { %v1093_v16 = vpop.permute.xlu1 %1092  ;;  %v568_v59 = vmul.f32 %v538_v20, %v8049_v35 }
 0x17f   : > { %v1168_v28 = vadd.f32 %v1093_v16, %v1008_v3  ;;  %v789_v3 = vadd.f32 %v757_v33, %v565_v49  ;;  %v1009_v7 = vadd.f32 %v977_v22, %v785_v57  ;;  %v1170_v16 = vadd.f32 %v6708_v40, %v1010_v46  ;;  %v8050_v33 = vld [vmem:[#allocation20_spill] sm:$0xff]  ;;  %v318_v57 = vld [vmem:[%s7975_s0 + $0x1c] sm:$0x7] }
 0x180   : > { %v567_v46 = vmul.f32 %v538_v20, %v8050_v33 }
 0x181   : > { %v1200_v44 = vmax.f32 %v1168_v28, 0.0  ;;  %2294 = vperm.xlu1 %6039, %v2228_v34   ;;  %v1013_v58 = vadd.f32 %v981_v32, %v789_v3  ;;  %v1202_v10 = vmax.f32 %v1170_v16, 0.0  ;;  %v958_v16 = vrot.slane %v318_v57, %v6458_v1 }
 0x183   : > { %v893_v8 = vpop.permute.xlu1 %892  ;;  %v5813_v55 = vpack.c.bf16 %v1200_v44, %v1199_v54 }
 0x184   : > { %v982_v2 = vmul.f32 %v950_v45, %v893_v8  ;;  %v677_v45 = vpop.permute.xlu0 %676  ;;  %v730_v8 = vrot.slane %v317_v48, %v6442_v4 }
 0x185   : > { %2304 = vperm.xlu1 %6039, %v2230_v13   ;;  %5814 = vmatprep.subr.bf16.mxu0 %v5813_v55 }
 0x186   : > { %5816 = vmatpush3.bf16.msra.mxu0 %v5813_v55  ;;  %v1014_v29 = vadd.f32 %v982_v2, %v790_v21  ;;  %v760_v50 = vmul.f32 %v730_v8, %v677_v45  ;;  %v734_v21 = vrot.slane %v318_v57, %v6442_v4 }
 0x188   : > { %v1109_v30 = vpop.permute.xlu1 %1108  ;;  %v1174_v11 = vadd.f32 %v6723_v19, %v1014_v29  ;;  %v685_v47 = vpop.permute.xlu0 %684  ;;  %v792_v22 = vadd.f32 %v760_v50, %v568_v59  ;;  %v8055_v50 = vld [vmem:[#allocation26_spill] sm:$0xff] }
 0x189   : > { %v1172_v53 = vadd.f32 %v1109_v30, %v1012_v25 }
 0x18a   : > { %v1206_v6 = vmax.f32 %v1174_v11, 0.0 }
 0x18b   : > { %v1204_v38 = vmax.f32 %v1172_v53, 0.0 }
 0x18c   : > { %v1097_v26 = vpop.permute.xlu1 %1096  ;;  %v897_v51 = vpop.permute.xlu0 %896 }
 0x18d   : > { %v1169_v31 = vadd.f32 %v1097_v26, %v1009_v7  ;;  %v5821_v18 = vpack.c.bf16 %v1204_v38, %v1203_v43  ;;  %v983_v25 = vmul.f32 %v954_v36, %v897_v51  ;;  %v542_v43 = vrot.slane %v318_v57, %v6450_v63  ;;  %v8054_v51 = vld [vmem:[#allocation21_spill] sm:$0xff] }
 0x18f   : > { %v1201_v34 = vmax.f32 %v1169_v31, 0.0  ;;  %5822 = vmatprep.subr.bf16.mxu1 %v5821_v18  ;;  %v8051_v31 = vld [vmem:[#allocation24_spill] sm:$0xff]  ;;  %v573_v35 = vmul.f32 %v542_v43, %v8055_v50 }
 0x190   : > { %v1113_v28 = vpop.permute.xlu1 %1112  ;;  %5824 = vmatpush3.bf16.msra.mxu1 %v5821_v18  ;;  %v917_v42 = vpop.permute.xlu0 %916  ;;  %v571_v18 = vmul.f32 %v542_v43, %v8051_v31 }
 0x191   : > { %v1173_v5 = vadd.f32 %v1113_v28, %v1013_v58  ;;  %v5817_v0 = vpack.c.bf16 %v1202_v10, %v1201_v34 }
 0x193   : > { %v1205_v39 = vmax.f32 %v1173_v5, 0.0  ;;  %5818 = vmatprep.subr.bf16.mxu0 %v5817_v0  ;;  %v8052_v5 = vld [vmem:[#allocation22_spill] sm:$0xff] }
 0x194   : > { %5820 = vmatpush3.bf16.msra.mxu0 %v5817_v0  ;;  %v905_v56 = vpop.permute.xlu0 %904  ;;  %v569_v4 = vmul.f32 %v538_v20, %v8052_v5 }
 0x195   : > { %v673_v40 = vpop.permute.xlu1 %672  ;;  %v5825_v54 = vpack.c.bf16 %v1206_v6, %v1205_v39  ;;  %v8053_v39 = vld [vmem:[#allocation23_spill] sm:$0xff]  ;;  %v985_v63 = vmul.f32 %v954_v36, %v905_v56 }
 0x196   : > { %v759_v24 = vmul.f32 %v730_v8, %v673_v40  ;;  %v572_v6 = vmul.f32 %v542_v43, %v8053_v39 }
 0x197   : > { %5390 = vmatmul.mubr.msk.f32.vlgmr.msra.gmra.mrb[16].mxu0 %vm1271_vm0, %v6536_v52  ;;  %5826 = vmatprep.subr.bf16.mxu1 %v5825_v54 }
 0x198   : > { %5828 = vmatpush3.bf16.msra.mxu1 %v5825_v54  ;;  %5392 = vmatprep.mubr.msk.f32.mxu0 %vm1271_vm0, %v6541_v14  ;;  %v791_v2 = vadd.f32 %v759_v24, %v567_v46  ;;  %v1125_v30 = vpop.permute.xlu0 %1124 }
 0x199   : > { %v689_v12 = vpop.permute.xlu1 %688 }
 0x19a   : > { %v1015_v3 = vadd.f32 %v983_v25, %v791_v2  ;;  %v763_v7 = vmul.f32 %v734_v21, %v689_v12  ;;  %v988_v12 = vmul.f32 %v958_v16, %v917_v42  ;;  %v8056_v42 = vld [vmem:[#allocation25_spill] sm:$0xff] }
 0x19b   : > { %5393 = vmatmul.mubr.msk.f32.gmra.mrb[18].mxu0 %vm1271_vm0, %v6553_v37  ;;  %5410 = vmatmul.mubr.msk.f32.vlgmr.msra.gmra.mrb[16].mxu1 %vm1271_vm0, %v6536_v52 }
 0x19c   : > { %5395 = vmatprep.mubr.msk.f32.mxu0 %vm1271_vm0, %v6562_v41  ;;  %5412 = vmatprep.mubr.msk.f32.mxu1 %vm1271_vm0, %v6541_v14  ;;  %v795_v0 = vadd.f32 %v763_v7, %v571_v18  ;;  %v1137_v45 = vpop.permute.xlu0 %1136 }
 0x19d   : > { %v693_v19 = vpop.permute.xlu1 %692 }
 0x19e   : > { %v764_v58 = vmul.f32 %v734_v21, %v693_v19  ;;  %v570_v19 = vmul.f32 %v538_v20, %v8054_v51 }
 0x19f   : > { %5396 = vmatmul.mubr.msk.f32.gmra.mrb[20].mxu0 %vm1271_vm0, %v6575_v17  ;;  %5413 = vmatmul.mubr.msk.f32.gmra.mrb[18].mxu1 %vm1271_vm0, %v6553_v37 }
 0x1a0   : > { %5398 = vmatprep.mubr.msk.f32.mxu0 %vm1271_vm0, %v6586_v27  ;;  %5415 = vmatprep.mubr.msk.f32.mxu1 %vm1271_vm0, %v6562_v41  ;;  %v796_v1 = vadd.f32 %v764_v58, %v572_v6  ;;  %v1129_v59 = vpop.permute.xlu0 %1128 }
 0x1a2   : > { %v901_v44 = vpop.permute.xlu1 %900  ;;  %v1020_v33 = vadd.f32 %v988_v12, %v796_v1 }
 0x1a3   : > { %5399 = vmatmul.mubr.msk.f32.gmra.mrb[22].mxu0 %vm1271_vm0, %v6601_v15  ;;  %5416 = vmatmul.mubr.msk.f32.gmra.mrb[20].mxu1 %vm1271_vm0, %v6575_v17  ;;  %v984_v60 = vmul.f32 %v954_v36, %v901_v44 }
 0x1a4   : > { %5418 = vmatprep.mubr.msk.f32.mxu1 %vm1271_vm0, %v6586_v27  ;;  %5429 = vmatprep.mubr.msk.f32.mxu0 %vm1271_vm0, %v6040_v61 }
 0x1a5   : > { %v1016_v62 = vadd.f32 %v984_v60, %v792_v22 }
 0x1a6   : > { %v913_v13 = vpop.permute.xlu1 %912 }
 0x1a7   : > { %5419 = vmatmul.mubr.msk.f32.gmra.mrb[22].mxu1 %vm1271_vm0, %v6601_v15  ;;  %v1176_v53 = vadd.f32 %v1125_v30, %v1016_v62  ;;  %v987_v11 = vmul.f32 %v958_v16, %v913_v13  ;;  %v574_v62 = vmul.f32 %v542_v43, %v8056_v42 }
 0x1a8   : > { %5449 = vmatprep.mubr.msk.f32.mxu1 %vm1271_vm0, %v6040_v61  ;;  %v762_v61 = vmul.f32 %v730_v8, %v685_v47 }
 0x1a9   : > { %v1208_v26 = vmax.f32 %v1176_v53, 0.0  ;;  %v1019_v40 = vadd.f32 %v987_v11, %v795_v0 }
 0x1aa   : > { %v794_v46 = vadd.f32 %v762_v61, %v570_v19 }
 0x1ab   : > { %v681_v9 = vpop.permute.xlu1 %680 }
 0x1ac   : > { %v761_v34 = vmul.f32 %v730_v8, %v681_v9  ;;  %v1179_v9 = vadd.f32 %v1137_v45, %v1019_v40 }
 0x1ae   : > { %v793_v54 = vadd.f32 %v761_v34, %v569_v4  ;;  %v1211_v30 = vmax.f32 %v1179_v9, 0.0 }
 0x1af   : > { %v697_v55 = vpop.permute.xlu1 %696 }
 0x1b0   : > { %v765_v13 = vmul.f32 %v734_v21, %v697_v55  ;;  %v1017_v48 = vadd.f32 %v985_v63, %v793_v54 }
 0x1b2   : > { %v797_v22 = vadd.f32 %v765_v13, %v573_v35  ;;  %v1177_v47 = vadd.f32 %v1129_v59, %v1017_v48 }
 0x1b3   : > { %v701_v23 = vpop.permute.xlu1 %700 }
 0x1b4   : > { %v766_v2 = vmul.f32 %v734_v21, %v701_v23 }
 0x1b8   : > { %v909_v49 = vpop.permute.xlu1 %908 }
 0x1b9   : > { %v986_v24 = vmul.f32 %v954_v36, %v909_v49  ;;  %v1145_v36 = vpop.permute.xlu0 %1144  ;;  %v1209_v49 = vmax.f32 %v1177_v47, 0.0 }
 0x1bb   : > { %v1018_v57 = vadd.f32 %v986_v24, %v794_v46 }
 0x1bd   : > { %v1121_v29 = vpop.permute.xlu1 %1120  ;;  %v6840_v11 = vpop.permute.xlu0 %1233 }
 0x1be   : > { %v1175_v38 = vadd.f32 %v1121_v29, %v1015_v3  ;;  %v798_v3 = vadd.f32 %v766_v2, %v574_v62 }
 0x1c0   : > { %v1207_v32 = vmax.f32 %v1175_v38, 0.0 }
 0x1c2   : > { %v921_v10 = vpop.permute.xlu1 %920  ;;  %v5829_v28 = vpack.c.bf16 %v1208_v26, %v1207_v32 }
 0x1c3   : > { %v989_v60 = vmul.f32 %v958_v16, %v921_v10 }
 0x1c4   : > { %5830 = vmatprep.subr.bf16.mxu0 %v5829_v28 }
 0x1c5   : > { %5832 = vmatpush3.bf16.msra.mxu0 %v5829_v28  ;;  %v1021_v55 = vadd.f32 %v989_v60, %v797_v22 }
 0x1c6   : > { %v925_v44 = vpop.permute.xlu1 %924 }
 0x1c7   : > { %v990_v8 = vmul.f32 %v958_v16, %v925_v44  ;;  %v1181_v7 = vadd.f32 %v1145_v36, %v1021_v55 }
 0x1c9   : > { %v1022_v32 = vadd.f32 %v990_v8, %v798_v3  ;;  %v1213_v31 = vmax.f32 %v1181_v7, 0.0 }
 0x1cb   : > { %v1141_v56 = vpop.permute.xlu1 %1140 }
 0x1cc   : > { %v1180_v25 = vadd.f32 %v1141_v56, %v1020_v33 }
 0x1ce   : > { %v1212_v20 = vmax.f32 %v1180_v25, 0.0 }
 0x1cf   : > { %v1133_v53 = vpop.permute.xlu1 %1132 }
 0x1d0   : > { %v1178_v29 = vadd.f32 %v1133_v53, %v1018_v57  ;;  %v5837_v38 = vpack.c.bf16 %v1212_v20, %v1211_v30 }
 0x1d2   : > { %v1210_v26 = vmax.f32 %v1178_v29, 0.0  ;;  %5838 = vmatprep.subr.bf16.mxu1 %v5837_v38 }
 0x1d3   : > { %v1149_v23 = vpop.permute.xlu1 %1148  ;;  %5840 = vmatpush3.bf16.msra.mxu1 %v5837_v38 }
 0x1d4   : > { %v1182_v21 = vadd.f32 %v1149_v23, %v1022_v32  ;;  %v5833_v43 = vpack.c.bf16 %v1210_v26, %v1209_v49 }
 0x1d6   : > { %v1214_v18 = vmax.f32 %v1182_v21, 0.0  ;;  %5834 = vmatprep.subr.bf16.mxu0 %v5833_v43 }
 0x1d7   : > { %5836 = vmatpush3.bf16.msra.mxu0 %v5833_v43 }
 0x1d8   : > { %v5841_v16 = vpack.c.bf16 %v1214_v18, %v1213_v31  ;;  %v6842_v34 = vpop.permute.xlu1 %1238 }
 0x1da   : > { %5430 = vmatmul.mubr.msk.f32.vlgmr.msra.gmra.mrb[24].mxu0 %vm1271_vm0, %v6536_v52  ;;  %5842 = vmatprep.subr.bf16.mxu1 %v5841_v16 }
 0x1db   : > { %5844 = vmatpush3.bf16.msra.mxu1 %v5841_v16  ;;  %5432 = vmatprep.mubr.msk.f32.mxu0 %vm1271_vm0, %v6541_v14 }
 0x1de   : > { %5433 = vmatmul.mubr.msk.f32.gmra.mrb[26].mxu0 %vm1271_vm0, %v6553_v37  ;;  %5450 = vmatmul.mubr.msk.f32.vlgmr.msra.gmra.mrb[24].mxu1 %vm1271_vm0, %v6536_v52  ;;  %v6855_v52 = vld [vmem:[%s7979_s4] sm:$0xff] }
 0x1df   : > { %5435 = vmatprep.mubr.msk.f32.mxu0 %vm1271_vm0, %v6562_v41  ;;  %5452 = vmatprep.mubr.msk.f32.mxu1 %vm1271_vm0, %v6541_v14  ;;  %v6857_v14 = vpop.permute.xlu0 %1248 }
 0x1e2   : > { %5436 = vmatmul.mubr.msk.f32.gmra.mrb[28].mxu0 %vm1271_vm0, %v6575_v17  ;;  %5453 = vmatmul.mubr.msk.f32.gmra.mrb[26].mxu1 %vm1271_vm0, %v6553_v37  ;;  %v6867_v37 = vpop.permute.xlu1 %1243 }
 0x1e3   : > { %5438 = vmatprep.mubr.msk.f32.mxu0 %vm1271_vm0, %v6586_v27  ;;  %5455 = vmatprep.mubr.msk.f32.mxu1 %vm1271_vm0, %v6562_v41 }
 0x1e6   : > { %5439 = vmatmul.mubr.msk.f32.gmra.mrb[30].mxu0 %vm1271_vm0, %v6601_v15  ;;  %5456 = vmatmul.mubr.msk.f32.gmra.mrb[28].mxu1 %vm1271_vm0, %v6575_v17  ;;  %v6875_v17 = vpop.permute.xlu0 %1258  ;;  %v6878_v63 = vpop.permute.xlu1 %1253 }
 0x1e7   : > { %5458 = vmatprep.mubr.msk.f32.mxu1 %vm1271_vm0, %v6586_v27  ;;  %5477 = vmatprep.mubr.msk.f32.mxu0 %vm2312_vm1, %v6855_v52 }
 0x1e8   : > { %v5311_v41 = vpop.f32.mrb[0].mxu0 }
 0x1e9   : > { %v1368_v58 = vadd.f32 %v5311_v41, %v6842_v34  ;;  %v1362_v10 = vpop.f32.mrb[1].mxu0  ;;  %v6900_v41 = vld [vmem:[%s7979_s4 + $0x8] sm:$0xff] }
 0x1ea   : > { %v1363_v28 = vadd.f32 %v1362_v10, %v6840_v11  ;;  %5459 = vmatmul.mubr.msk.f32.gmra.mrb[30].mxu1 %vm1271_vm0, %v6601_v15  ;;  %v6886_v60 = vpop.permute.xlu0 %1268  ;;  %v6889_v22 = vpop.permute.xlu1 %1263  ;;  %vm4142_vm0 = vcmask 1048512  }
 0x1eb   : > { %v2137_v5 = vmax.f32 %v1368_v58, 0.0  ;;  %5517 = vmatprep.mubr.msk.f32.mxu1 %vm2312_vm1, %v6855_v52  ;;  %v6905_v58 = vld [vmem:[%s7979_s4 + $0x10] sm:$0xff] }
 0x1ec   : > { %v2136_v27 = vmax.f32 %v1363_v28, 0.0  ;;  %v5314_v4 = vpop.f32.mrb[2].mxu0  ;;  %v6914_v28 = vld [vmem:[%s7979_s4 + $0x18] sm:$0xff] }
 0x1ed   : > { %v1378_v0 = vadd.f32 %v5314_v4, %v6857_v14  ;;  %v5331_v39 = vpop.f32.mrb[0].mxu1  ;;  %v1372_v6 = vpop.f32.mrb[3].mxu0  ;;  %v6937_v4 = vld [vmem:[%s7979_s4 + $0x30] sm:$0xff] }
 0x1ee   : > { %v5845_v40 = vpack.c.bf16 %v2137_v5, %v2136_v27  ;;  %v1473_v54 = vadd.f32 %v5331_v39, %v6842_v34  ;;  %v1373_v1 = vadd.f32 %v1372_v6, %v6867_v37  ;;  %v1467_v15 = vpop.f32.mrb[1].mxu1  ;;  %v6919_v5 = vld [vmem:[%s7979_s4 + $0x20] sm:$0xff]  ;;  %v6930_v27 = vld [vmem:[%s7979_s4 + $0x28] sm:$0xff] }
 0x1ef   : > { %v2139_v12 = vmax.f32 %v1378_v0, 0.0  ;;  %v1468_v45 = vadd.f32 %v1467_v15, %v6840_v11  ;;  %v6948_v0 = vld [vmem:[%s7979_s4 + $0x38] sm:$0xff]  ;;  %v6955_v39 = vld [vmem:[%s7979_s4 + $0x40] sm:$0xff]  ;;  %v6966_v6 = vld [vmem:[%s7979_s4 + $0x48] sm:$0xff] }
 0x1f0   : > { %v2145_v44 = vmax.f32 %v1473_v54, 0.0  ;;  %v2138_v61 = vmax.f32 %v1373_v1, 0.0  ;;  %v5317_v13 = vpop.f32.mrb[4].mxu0  ;;  %5846 = vmatprep.subr.bf16.mxu0 %v5845_v40  ;;  %v6984_v54 = vld [vmem:[%s7979_s4 + $0x58] sm:$0xff]  ;;  %v6991_v1 = vld [vmem:[%s7979_s4 + $0x60] sm:$0xff]  ;;  %v7002_v15 = vld [vmem:[%s7979_s4 + $0x68] sm:$0xff] }
 0x1f1   : > { %v2144_v51 = vmax.f32 %v1468_v45, 0.0  ;;  %v1388_v19 = vadd.f32 %v5317_v13, %v6875_v17  ;;  %v5334_v9 = vpop.f32.mrb[2].mxu1  ;;  %v1382_v48 = vpop.f32.mrb[5].mxu0  ;;  %5848 = vmatpush3.bf16.msra.mxu0 %v5845_v40  ;;  %v6973_v40 = vld [vmem:[%s7979_s4 + $0x50] sm:$0xff]  ;;  %v7020_v45 = vld [vmem:[%s7979_s4 + $0x78] sm:$0xff] }
 0x1f2   : > { %v5849_v50 = vpack.c.bf16 %v2139_v12, %v2138_v61  ;;  %v1483_v35 = vadd.f32 %v5334_v9, %v6857_v14  ;;  %v1383_v59 = vadd.f32 %v1382_v48, %v6878_v63  ;;  %v1477_v24 = vpop.f32.mrb[3].mxu1  ;;  %v7009_v12 = vld [vmem:[%s7979_s4 + $0x70] sm:$0xff] }
 0x1f3   : > { %v5861_v33 = vpack.c.bf16 %v2145_v44, %v2144_v51  ;;  %v2141_v56 = vmax.f32 %v1388_v19, 0.0  ;;  %v1478_v46 = vadd.f32 %v1477_v24, %v6867_v37 }
 0x1f4   : > { %v2147_v2 = vmax.f32 %v1483_v35, 0.0  ;;  %v2140_v25 = vmax.f32 %v1383_v59, 0.0  ;;  %v5320_v42 = vpop.f32.mrb[6].mxu0  ;;  %5850 = vmatprep.subr.bf16.mxu0 %v5849_v50 }
 0x1f5   : > { %v2146_v62 = vmax.f32 %v1478_v46, 0.0  ;;  %v1398_v30 = vadd.f32 %v5320_v42, %v6886_v60  ;;  %v5337_v47 = vpop.f32.mrb[4].mxu1  ;;  %5862 = vmatprep.subr.bf16.mxu1 %v5861_v33  ;;  %v1392_v8 = vpop.f32.mrb[7].mxu0  ;;  %5852 = vmatpush3.bf16.msra.mxu0 %v5849_v50 }
 0x1f6   : > { %v5853_v55 = vpack.c.bf16 %v2141_v56, %v2140_v25  ;;  %v1493_v20 = vadd.f32 %v5337_v47, %v6875_v17  ;;  %v1393_v57 = vadd.f32 %v1392_v8, %v6889_v22  ;;  %v1487_v53 = vpop.f32.mrb[5].mxu1  ;;  %5864 = vmatpush3.bf16.msra.mxu1 %v5861_v33 }
 0x1f7   : > { %v5865_v3 = vpack.c.bf16 %v2147_v2, %v2146_v62  ;;  %v2143_v29 = vmax.f32 %v1398_v30, 0.0  ;;  %v1488_v38 = vadd.f32 %v1487_v53, %v6878_v63 }
 0x1f8   : > { %v2149_v36 = vmax.f32 %v1493_v20, 0.0  ;;  %v2142_v49 = vmax.f32 %v1393_v57, 0.0  ;;  %5854 = vmatprep.subr.bf16.mxu0 %v5853_v55 }
 0x1f9   : > { %v2148_v7 = vmax.f32 %v1488_v38, 0.0  ;;  %v5340_v26 = vpop.f32.mrb[6].mxu1  ;;  %5866 = vmatprep.subr.bf16.mxu1 %v5865_v3  ;;  %5856 = vmatpush3.bf16.msra.mxu0 %v5853_v55 }
 0x1fa   : > { %v5857_v32 = vpack.c.bf16 %v2143_v29, %v2142_v49  ;;  %v1503_v23 = vadd.f32 %v5340_v26, %v6886_v60  ;;  %v1497_v21 = vpop.f32.mrb[7].mxu1  ;;  %5868 = vmatpush3.bf16.msra.mxu1 %v5865_v3 }
 0x1fb   : > { %v5869_v43 = vpack.c.bf16 %v2149_v36, %v2148_v7  ;;  %v1498_v31 = vadd.f32 %v1497_v21, %v6889_v22 }
 0x1fc   : > { %v2151_v18 = vmax.f32 %v1503_v23, 0.0  ;;  %5858 = vmatprep.subr.bf16.mxu0 %v5857_v32 }
 0x1fd   : > { %v2150_v16 = vmax.f32 %v1498_v31, 0.0  ;;  %5870 = vmatprep.subr.bf16.mxu1 %v5869_v43  ;;  %5860 = vmatpush3.bf16.msra.mxu0 %v5857_v32 }
 0x1fe   : > { %5872 = vmatpush3.bf16.msra.mxu1 %v5869_v43 }
 0x1ff   : > { %v5873_v10 = vpack.c.bf16 %v2151_v18, %v2150_v16 }
 0x200   : > { %5478 = vmatmul.mubr.msk.f32.vlgmr.msra.gmra.mrb[32].mxu0 %vm2312_vm1, %v6900_v41 }
 0x201   : > { %5874 = vmatprep.subr.bf16.mxu1 %v5873_v10  ;;  %5480 = vmatprep.mubr.msk.f32.mxu0 %vm2312_vm1, %v6905_v58 }
 0x202   : > { %5876 = vmatpush3.bf16.msra.mxu1 %v5873_v10 }
 0x204   : > { %5481 = vmatmul.mubr.msk.f32.gmra.mrb[34].mxu0 %vm2312_vm1, %v6914_v28 }
 0x205   : > { %5518 = vmatmul.mubr.msk.f32.vlgmr.msra.gmra.mrb[32].mxu1 %vm2312_vm1, %v6900_v41  ;;  %5483 = vmatprep.mubr.msk.f32.mxu0 %vm2312_vm1, %v6919_v5 }
 0x206   : > { %5520 = vmatprep.mubr.msk.f32.mxu1 %vm2312_vm1, %v6905_v58 }
 0x208   : > { %5484 = vmatmul.mubr.msk.f32.gmra.mrb[36].mxu0 %vm2312_vm1, %v6930_v27 }
 0x209   : > { %5521 = vmatmul.mubr.msk.f32.gmra.mrb[34].mxu1 %vm2312_vm1, %v6914_v28  ;;  %5486 = vmatprep.mubr.msk.f32.mxu0 %vm2312_vm1, %v6937_v4 }
 0x20a   : > { %5523 = vmatprep.mubr.msk.f32.mxu1 %vm2312_vm1, %v6919_v5 }
 0x20c   : > { %5487 = vmatmul.mubr.msk.f32.gmra.mrb[38].mxu0 %vm2312_vm1, %v6948_v0 }
 0x20d   : > { %5524 = vmatmul.mubr.msk.f32.gmra.mrb[36].mxu1 %vm2312_vm1, %v6930_v27  ;;  %5489 = vmatprep.mubr.msk.f32.mxu0 %vm2312_vm1, %v6955_v39 }
 0x20e   : > { %5526 = vmatprep.mubr.msk.f32.mxu1 %vm2312_vm1, %v6937_v4 }
 0x210   : > { %5490 = vmatmul.mubr.msk.f32.gmra.mrb[40].mxu0 %vm2312_vm1, %v6966_v6 }
 0x211   : > { %5527 = vmatmul.mubr.msk.f32.gmra.mrb[38].mxu1 %vm2312_vm1, %v6948_v0  ;;  %5492 = vmatprep.mubr.msk.f32.mxu0 %vm2312_vm1, %v6973_v40 }
 0x212   : > { %5529 = vmatprep.mubr.msk.f32.mxu1 %vm2312_vm1, %v6955_v39 }
 0x214   : > { %5493 = vmatmul.mubr.msk.f32.gmra.mrb[42].mxu0 %vm2312_vm1, %v6984_v54 }
 0x215   : > { %5530 = vmatmul.mubr.msk.f32.gmra.mrb[40].mxu1 %vm2312_vm1, %v6966_v6  ;;  %5495 = vmatprep.mubr.msk.f32.mxu0 %vm2312_vm1, %v6991_v1 }
 0x216   : > { %5532 = vmatprep.mubr.msk.f32.mxu1 %vm2312_vm1, %v6973_v40 }
 0x218   : > { %5496 = vmatmul.mubr.msk.f32.gmra.mrb[44].mxu0 %vm2312_vm1, %v7002_v15 }
 0x219   : > { %5533 = vmatmul.mubr.msk.f32.gmra.mrb[42].mxu1 %vm2312_vm1, %v6984_v54  ;;  %5498 = vmatprep.mubr.msk.f32.mxu0 %vm2312_vm1, %v7009_v12 }
 0x21a   : > { %5535 = vmatprep.mubr.msk.f32.mxu1 %vm2312_vm1, %v6991_v1 }
 0x21c   : > { %5499 = vmatmul.mubr.msk.f32.gmra.mrb[46].mxu0 %vm2312_vm1, %v7020_v45 }
 0x21d   : > { %5536 = vmatmul.mubr.msk.f32.gmra.mrb[44].mxu1 %vm2312_vm1, %v7002_v15  ;;  %5557 = vmatprep.mubr.msk.f32.mxu0 %vm2312_vm1, %v6855_v52 }
 0x21e   : > { %5538 = vmatprep.mubr.msk.f32.mxu1 %vm2312_vm1, %v7009_v12 }
 0x221   : > { %5539 = vmatmul.mubr.msk.f32.gmra.mrb[46].mxu1 %vm2312_vm1, %v7020_v45 }
 0x222   : > { %5597 = vmatprep.mubr.msk.f32.mxu1 %vm2312_vm1, %v6855_v52 }
 0x22b   : > { %v5351_v44 = vpop.f32.mrb[8].mxu0 }
 0x22c   : > { %v1578_v61 = vadd.f32 %v5351_v44, %v6842_v34  ;;  %v1572_v13 = vpop.f32.mrb[9].mxu0 }
 0x22d   : > { %v1573_v51 = vadd.f32 %v1572_v13, %v6840_v11 }
 0x22e   : > { %v2153_v19 = vmax.f32 %v1578_v61, 0.0 }
 0x22f   : > { %v2152_v9 = vmax.f32 %v1573_v51, 0.0  ;;  %v5354_v48 = vpop.f32.mrb[10].mxu0 }
 0x230   : > { %v1588_v50 = vadd.f32 %v5354_v48, %v6857_v14  ;;  %v5371_v35 = vpop.f32.mrb[8].mxu1  ;;  %v1582_v59 = vpop.f32.mrb[11].mxu0 }
 0x231   : > { %v5877_v24 = vpack.c.bf16 %v2153_v19, %v2152_v9  ;;  %v1683_v33 = vadd.f32 %v5371_v35, %v6842_v34  ;;  %v1583_v56 = vadd.f32 %v1582_v59, %v6867_v37  ;;  %v1677_v46 = vpop.f32.mrb[9].mxu1 }
 0x232   : > { %v2155_v2 = vmax.f32 %v1588_v50, 0.0  ;;  %v1678_v25 = vadd.f32 %v1677_v46, %v6840_v11 }
 0x233   : > { %v2161_v42 = vmax.f32 %v1683_v33, 0.0  ;;  %v2154_v62 = vmax.f32 %v1583_v56, 0.0  ;;  %v5357_v30 = vpop.f32.mrb[12].mxu0  ;;  %5878 = vmatprep.subr.bf16.mxu0 %v5877_v24 }
 0x234   : > { %v2160_v47 = vmax.f32 %v1678_v25, 0.0  ;;  %v1598_v8 = vadd.f32 %v5357_v30, %v6875_v17  ;;  %v5374_v55 = vpop.f32.mrb[10].mxu1  ;;  %v1592_v20 = vpop.f32.mrb[13].mxu0  ;;  %5880 = vmatpush3.bf16.msra.mxu0 %v5877_v24 }
 0x235   : > { %v5881_v57 = vpack.c.bf16 %v2155_v2, %v2154_v62  ;;  %v1693_v53 = vadd.f32 %v5374_v55, %v6857_v14  ;;  %v1593_v3 = vadd.f32 %v1592_v20, %v6878_v63  ;;  %v1687_v29 = vpop.f32.mrb[11].mxu1 }
 0x236   : > { %v5893_v38 = vpack.c.bf16 %v2161_v42, %v2160_v47  ;;  %v2157_v36 = vmax.f32 %v1598_v8, 0.0  ;;  %v1688_v49 = vadd.f32 %v1687_v29, %v6867_v37 }
 0x237   : > { %v2163_v7 = vmax.f32 %v1693_v53, 0.0  ;;  %v2156_v26 = vmax.f32 %v1593_v3, 0.0  ;;  %v5360_v32 = vpop.f32.mrb[14].mxu0  ;;  %5882 = vmatprep.subr.bf16.mxu0 %v5881_v57 }
 0x238   : > { %v2162_v23 = vmax.f32 %v1688_v49, 0.0  ;;  %v1608_v21 = vadd.f32 %v5360_v32, %v6886_v60  ;;  %v5377_v43 = vpop.f32.mrb[12].mxu1  ;;  %5894 = vmatprep.subr.bf16.mxu1 %v5893_v38  ;;  %v1602_v31 = vpop.f32.mrb[15].mxu0  ;;  %5884 = vmatpush3.bf16.msra.mxu0 %v5881_v57 }
 0x239   : > { %v5885_v18 = vpack.c.bf16 %v2157_v36, %v2156_v26  ;;  %v1703_v16 = vadd.f32 %v5377_v43, %v6875_v17  ;;  %v1603_v10 = vadd.f32 %v1602_v31, %v6889_v22  ;;  %v1697_v44 = vpop.f32.mrb[13].mxu1  ;;  %5896 = vmatpush3.bf16.msra.mxu1 %v5893_v38 }
 0x23a   : > { %v5897_v61 = vpack.c.bf16 %v2163_v7, %v2162_v23  ;;  %v2159_v13 = vmax.f32 %v1608_v21, 0.0  ;;  %v1698_v51 = vadd.f32 %v1697_v44, %v6878_v63 }
 0x23b   : > { %v2165_v19 = vmax.f32 %v1703_v16, 0.0  ;;  %v2158_v9 = vmax.f32 %v1603_v10, 0.0  ;;  %5886 = vmatprep.subr.bf16.mxu0 %v5885_v18 }
 0x23c   : > { %v2164_v48 = vmax.f32 %v1698_v51, 0.0  ;;  %v5380_v50 = vpop.f32.mrb[14].mxu1  ;;  %5898 = vmatprep.subr.bf16.mxu1 %v5897_v61  ;;  %5888 = vmatpush3.bf16.msra.mxu0 %v5885_v18 }
 0x23d   : > { %v5889_v35 = vpack.c.bf16 %v2159_v13, %v2158_v9  ;;  %v1713_v59 = vadd.f32 %v5380_v50, %v6886_v60  ;;  %v1707_v24 = vpop.f32.mrb[15].mxu1  ;;  %5900 = vmatpush3.bf16.msra.mxu1 %v5897_v61 }
 0x23e   : > { %v5901_v33 = vpack.c.bf16 %v2165_v19, %v2164_v48  ;;  %v1708_v56 = vadd.f32 %v1707_v24, %v6889_v22 }
 0x23f   : > { %v2167_v46 = vmax.f32 %v1713_v59, 0.0  ;;  %5890 = vmatprep.subr.bf16.mxu0 %v5889_v35 }
 0x240   : > { %v2166_v2 = vmax.f32 %v1708_v56, 0.0  ;;  %5902 = vmatprep.subr.bf16.mxu1 %v5901_v33  ;;  %5892 = vmatpush3.bf16.msra.mxu0 %v5889_v35 }
 0x241   : > { %5904 = vmatpush3.bf16.msra.mxu1 %v5901_v33 }
 0x242   : > { %v5905_v25 = vpack.c.bf16 %v2167_v46, %v2166_v2 }
 0x243   : > { %5558 = vmatmul.mubr.msk.f32.vlgmr.msra.gmra.mrb[48].mxu0 %vm2312_vm1, %v6900_v41 }
 0x244   : > { %5906 = vmatprep.subr.bf16.mxu1 %v5905_v25  ;;  %5560 = vmatprep.mubr.msk.f32.mxu0 %vm2312_vm1, %v6905_v58 }
 0x245   : > { %5908 = vmatpush3.bf16.msra.mxu1 %v5905_v25 }
 0x247   : > { %5561 = vmatmul.mubr.msk.f32.gmra.mrb[50].mxu0 %vm2312_vm1, %v6914_v28 }
 0x248   : > { %5598 = vmatmul.mubr.msk.f32.vlgmr.msra.gmra.mrb[48].mxu1 %vm2312_vm1, %v6900_v41  ;;  %5563 = vmatprep.mubr.msk.f32.mxu0 %vm2312_vm1, %v6919_v5 }
 0x249   : > { %5600 = vmatprep.mubr.msk.f32.mxu1 %vm2312_vm1, %v6905_v58 }
 0x24b   : > { %5564 = vmatmul.mubr.msk.f32.gmra.mrb[52].mxu0 %vm2312_vm1, %v6930_v27 }
 0x24c   : > { %5601 = vmatmul.mubr.msk.f32.gmra.mrb[50].mxu1 %vm2312_vm1, %v6914_v28  ;;  %5566 = vmatprep.mubr.msk.f32.mxu0 %vm2312_vm1, %v6937_v4 }
 0x24d   : > { %5603 = vmatprep.mubr.msk.f32.mxu1 %vm2312_vm1, %v6919_v5 }
 0x24f   : > { %5567 = vmatmul.mubr.msk.f32.gmra.mrb[54].mxu0 %vm2312_vm1, %v6948_v0 }
 0x250   : > { %5604 = vmatmul.mubr.msk.f32.gmra.mrb[52].mxu1 %vm2312_vm1, %v6930_v27  ;;  %5569 = vmatprep.mubr.msk.f32.mxu0 %vm2312_vm1, %v6955_v39 }
 0x251   : > { %5606 = vmatprep.mubr.msk.f32.mxu1 %vm2312_vm1, %v6937_v4 }
 0x253   : > { %5570 = vmatmul.mubr.msk.f32.gmra.mrb[56].mxu0 %vm2312_vm1, %v6966_v6 }
 0x254   : > { %5607 = vmatmul.mubr.msk.f32.gmra.mrb[54].mxu1 %vm2312_vm1, %v6948_v0  ;;  %5572 = vmatprep.mubr.msk.f32.mxu0 %vm2312_vm1, %v6973_v40 }
 0x255   : > { %5609 = vmatprep.mubr.msk.f32.mxu1 %vm2312_vm1, %v6955_v39 }
 0x257   : > { %5573 = vmatmul.mubr.msk.f32.gmra.mrb[58].mxu0 %vm2312_vm1, %v6984_v54 }
 0x258   : > { %5610 = vmatmul.mubr.msk.f32.gmra.mrb[56].mxu1 %vm2312_vm1, %v6966_v6  ;;  %5575 = vmatprep.mubr.msk.f32.mxu0 %vm2312_vm1, %v6991_v1 }
 0x259   : > { %5612 = vmatprep.mubr.msk.f32.mxu1 %vm2312_vm1, %v6973_v40 }
 0x25b   : > { %5576 = vmatmul.mubr.msk.f32.gmra.mrb[60].mxu0 %vm2312_vm1, %v7002_v15 }
 0x25c   : > { %5613 = vmatmul.mubr.msk.f32.gmra.mrb[58].mxu1 %vm2312_vm1, %v6984_v54  ;;  %5578 = vmatprep.mubr.msk.f32.mxu0 %vm2312_vm1, %v7009_v12 }
 0x25d   : > { %5615 = vmatprep.mubr.msk.f32.mxu1 %vm2312_vm1, %v6991_v1 }
 0x25f   : > { %5579 = vmatmul.mubr.msk.f32.gmra.mrb[62].mxu0 %vm2312_vm1, %v7020_v45 }
 0x260   : > { %5616 = vmatmul.mubr.msk.f32.gmra.mrb[60].mxu1 %vm2312_vm1, %v7002_v15  ;;  %5637 = vmatprep.mubr.msk.f32.mxu0 %vm2312_vm1, %v6855_v52 }
 0x261   : > { %5618 = vmatprep.mubr.msk.f32.mxu1 %vm2312_vm1, %v7009_v12 }
 0x264   : > { %5619 = vmatmul.mubr.msk.f32.gmra.mrb[62].mxu1 %vm2312_vm1, %v7020_v45 }
 0x265   : > { %5677 = vmatprep.mubr.msk.f32.mxu1 %vm2312_vm1, %v6855_v52 }
 0x26a   : > { %v5391_v42 = vpop.f32.mrb[16].mxu0 }
 0x26b   : > { %v1788_v62 = vadd.f32 %v5391_v42, %v6842_v34  ;;  %v1782_v30 = vpop.f32.mrb[17].mxu0 }
 0x26c   : > { %v1783_v47 = vadd.f32 %v1782_v30, %v6840_v11 }
 0x26d   : > { %v2169_v8 = vmax.f32 %v1788_v62, 0.0 }
 0x26e   : > { %v2168_v55 = vmax.f32 %v1783_v47, 0.0  ;;  %v5394_v20 = vpop.f32.mrb[18].mxu0  ;;  %v5411_v57 = vpop.f32.mrb[16].mxu1 }
 0x26f   : > { %v1798_v53 = vadd.f32 %v5394_v20, %v6857_v14  ;;  %v1893_v3 = vadd.f32 %v5411_v57, %v6842_v34  ;;  %v1792_v29 = vpop.f32.mrb[19].mxu0  ;;  %v1887_v38 = vpop.f32.mrb[17].mxu1 }
 0x270   : > { %v5909_v36 = vpack.c.bf16 %v2169_v8, %v2168_v55  ;;  %v1793_v49 = vadd.f32 %v1792_v29, %v6867_v37  ;;  %v1888_v7 = vadd.f32 %v1887_v38, %v6840_v11 }
 0x271   : > { %v2171_v26 = vmax.f32 %v1798_v53, 0.0  ;;  %v2177_v32 = vmax.f32 %v1893_v3, 0.0 }
 0x272   : > { %v2170_v23 = vmax.f32 %v1793_v49, 0.0  ;;  %v2176_v21 = vmax.f32 %v1888_v7, 0.0  ;;  %v5397_v43 = vpop.f32.mrb[20].mxu0  ;;  %v5414_v31 = vpop.f32.mrb[18].mxu1  ;;  %5910 = vmatprep.subr.bf16.mxu0 %v5909_v36 }
 0x273   : > { %v1808_v18 = vadd.f32 %v5397_v43, %v6875_v17  ;;  %v1903_v16 = vadd.f32 %v5414_v31, %v6857_v14  ;;  %v1802_v10 = vpop.f32.mrb[21].mxu0  ;;  %v1897_v44 = vpop.f32.mrb[19].mxu1  ;;  %5912 = vmatpush3.bf16.msra.mxu0 %v5909_v36 }
 0x274   : > { %v5913_v61 = vpack.c.bf16 %v2171_v26, %v2170_v23  ;;  %v5925_v13 = vpack.c.bf16 %v2177_v32, %v2176_v21  ;;  %v1803_v51 = vadd.f32 %v1802_v10, %v6878_v63  ;;  %v1898_v19 = vadd.f32 %v1897_v44, %v6867_v37 }
 0x275   : > { %v2173_v9 = vmax.f32 %v1808_v18, 0.0  ;;  %v2179_v48 = vmax.f32 %v1903_v16, 0.0 }
 0x276   : > { %v2172_v50 = vmax.f32 %v1803_v51, 0.0  ;;  %v2178_v35 = vmax.f32 %v1898_v19, 0.0  ;;  %v5400_v59 = vpop.f32.mrb[22].mxu0  ;;  %v5417_v24 = vpop.f32.mrb[20].mxu1  ;;  %5914 = vmatprep.subr.bf16.mxu0 %v5913_v61  ;;  %5926 = vmatprep.subr.bf16.mxu1 %v5925_v13 }
 0x277   : > { %v1818_v33 = vadd.f32 %v5400_v59, %v6886_v60  ;;  %v1913_v56 = vadd.f32 %v5417_v24, %v6875_v17  ;;  %v1812_v46 = vpop.f32.mrb[23].mxu0  ;;  %v1907_v2 = vpop.f32.mrb[21].mxu1  ;;  %5916 = vmatpush3.bf16.msra.mxu0 %v5913_v61  ;;  %5928 = vmatpush3.bf16.msra.mxu1 %v5925_v13 }
 0x278   : > { %v5917_v25 = vpack.c.bf16 %v2173_v9, %v2172_v50  ;;  %v5929_v42 = vpack.c.bf16 %v2179_v48, %v2178_v35  ;;  %v1813_v62 = vadd.f32 %v1812_v46, %v6889_v22  ;;  %v1908_v30 = vadd.f32 %v1907_v2, %v6878_v63 }
 0x279   : > { %v2175_v47 = vmax.f32 %v1818_v33, 0.0  ;;  %v2181_v8 = vmax.f32 %v1913_v56, 0.0 }
 0x27a   : > { %v2174_v55 = vmax.f32 %v1813_v62, 0.0  ;;  %v2180_v20 = vmax.f32 %v1908_v30, 0.0  ;;  %v5420_v57 = vpop.f32.mrb[22].mxu1  ;;  %5918 = vmatprep.subr.bf16.mxu0 %v5917_v25  ;;  %5930 = vmatprep.subr.bf16.mxu1 %v5929_v42 }
 0x27b   : > { %v1923_v53 = vadd.f32 %v5420_v57, %v6886_v60  ;;  %v1917_v3 = vpop.f32.mrb[23].mxu1  ;;  %5920 = vmatpush3.bf16.msra.mxu0 %v5917_v25  ;;  %5932 = vmatpush3.bf16.msra.mxu1 %v5929_v42 }
 0x27c   : > { %v5921_v29 = vpack.c.bf16 %v2175_v47, %v2174_v55  ;;  %v5933_v38 = vpack.c.bf16 %v2181_v8, %v2180_v20  ;;  %v1918_v36 = vadd.f32 %v1917_v3, %v6889_v22 }
 0x27d   : > { %v2183_v49 = vmax.f32 %v1923_v53, 0.0 }
 0x27e   : > { %v2182_v7 = vmax.f32 %v1918_v36, 0.0  ;;  %5922 = vmatprep.subr.bf16.mxu0 %v5921_v29  ;;  %5934 = vmatprep.subr.bf16.mxu1 %v5933_v38 }
 0x27f   : > { %5924 = vmatpush3.bf16.msra.mxu0 %v5921_v29  ;;  %5936 = vmatpush3.bf16.msra.mxu1 %v5933_v38 }
 0x280   : > { %v5937_v26 = vpack.c.bf16 %v2183_v49, %v2182_v7 }
 0x282   : > { %5638 = vmatmul.mubr.msk.f32.vlgmr.msra.gmra.mrb[64].mxu0 %vm2312_vm1, %v6900_v41  ;;  %5938 = vmatprep.subr.bf16.mxu1 %v5937_v26 }
 0x283   : > { %5940 = vmatpush3.bf16.msra.mxu1 %v5937_v26  ;;  %5640 = vmatprep.mubr.msk.f32.mxu0 %vm2312_vm1, %v6905_v58 }
 0x286   : > { %5641 = vmatmul.mubr.msk.f32.gmra.mrb[66].mxu0 %vm2312_vm1, %v6914_v28  ;;  %5678 = vmatmul.mubr.msk.f32.vlgmr.msra.gmra.mrb[64].mxu1 %vm2312_vm1, %v6900_v41 }
 0x287   : > { %5643 = vmatprep.mubr.msk.f32.mxu0 %vm2312_vm1, %v6919_v5  ;;  %5680 = vmatprep.mubr.msk.f32.mxu1 %vm2312_vm1, %v6905_v58 }
 0x28a   : > { %5644 = vmatmul.mubr.msk.f32.gmra.mrb[68].mxu0 %vm2312_vm1, %v6930_v27  ;;  %5681 = vmatmul.mubr.msk.f32.gmra.mrb[66].mxu1 %vm2312_vm1, %v6914_v28 }
 0x28b   : > { %5646 = vmatprep.mubr.msk.f32.mxu0 %vm2312_vm1, %v6937_v4  ;;  %5683 = vmatprep.mubr.msk.f32.mxu1 %vm2312_vm1, %v6919_v5 }
 0x28e   : > { %5647 = vmatmul.mubr.msk.f32.gmra.mrb[70].mxu0 %vm2312_vm1, %v6948_v0  ;;  %5684 = vmatmul.mubr.msk.f32.gmra.mrb[68].mxu1 %vm2312_vm1, %v6930_v27 }
 0x28f   : > { %5649 = vmatprep.mubr.msk.f32.mxu0 %vm2312_vm1, %v6955_v39  ;;  %5686 = vmatprep.mubr.msk.f32.mxu1 %vm2312_vm1, %v6937_v4 }
 0x292   : > { %5650 = vmatmul.mubr.msk.f32.gmra.mrb[72].mxu0 %vm2312_vm1, %v6966_v6  ;;  %5687 = vmatmul.mubr.msk.f32.gmra.mrb[70].mxu1 %vm2312_vm1, %v6948_v0 }
 0x293   : > { %5652 = vmatprep.mubr.msk.f32.mxu0 %vm2312_vm1, %v6973_v40  ;;  %5689 = vmatprep.mubr.msk.f32.mxu1 %vm2312_vm1, %v6955_v39 }
 0x296   : > { %5653 = vmatmul.mubr.msk.f32.gmra.mrb[74].mxu0 %vm2312_vm1, %v6984_v54  ;;  %5690 = vmatmul.mubr.msk.f32.gmra.mrb[72].mxu1 %vm2312_vm1, %v6966_v6 }
 0x297   : > { %5655 = vmatprep.mubr.msk.f32.mxu0 %vm2312_vm1, %v6991_v1  ;;  %5692 = vmatprep.mubr.msk.f32.mxu1 %vm2312_vm1, %v6973_v40 }
 0x29a   : > { %5656 = vmatmul.mubr.msk.f32.gmra.mrb[76].mxu0 %vm2312_vm1, %v7002_v15  ;;  %5693 = vmatmul.mubr.msk.f32.gmra.mrb[74].mxu1 %vm2312_vm1, %v6984_v54 }
 0x29b   : > { %5658 = vmatprep.mubr.msk.f32.mxu0 %vm2312_vm1, %v7009_v12  ;;  %5695 = vmatprep.mubr.msk.f32.mxu1 %vm2312_vm1, %v6991_v1 }
 0x29e   : > { %5659 = vmatmul.mubr.msk.f32.gmra.mrb[78].mxu0 %vm2312_vm1, %v7020_v45  ;;  %5696 = vmatmul.mubr.msk.f32.gmra.mrb[76].mxu1 %vm2312_vm1, %v7002_v15 }
 0x29f   : > { %5698 = vmatprep.mubr.msk.f32.mxu1 %vm2312_vm1, %v7009_v12  ;;  %5717 = vmatprep.mubr.msk.f32.mxu0 %vm2312_vm1, %v6855_v52 }
 0x2a2   : > { %5699 = vmatmul.mubr.msk.f32.gmra.mrb[78].mxu1 %vm2312_vm1, %v7020_v45 }
 0x2a3   : > { %5757 = vmatprep.mubr.msk.f32.mxu1 %vm2312_vm1, %v6855_v52 }
 0x2ad   : > { %v5431_v32 = vpop.f32.mrb[24].mxu0 }
 0x2ae   : > { %v1998_v23 = vadd.f32 %v5431_v32, %v6842_v34  ;;  %v1992_v21 = vpop.f32.mrb[25].mxu0 }
 0x2af   : > { %v1993_v43 = vadd.f32 %v1992_v21, %v6840_v11 }
 0x2b0   : > { %v2185_v31 = vmax.f32 %v1998_v23, 0.0 }
 0x2b1   : > { %v2184_v18 = vmax.f32 %v1993_v43, 0.0  ;;  %v5434_v16 = vpop.f32.mrb[26].mxu0  ;;  %v5451_v10 = vpop.f32.mrb[24].mxu1 }
 0x2b2   : > { %v2008_v44 = vadd.f32 %v5434_v16, %v6857_v14  ;;  %v2103_v61 = vadd.f32 %v5451_v10, %v6842_v34  ;;  %v2002_v13 = vpop.f32.mrb[27].mxu0  ;;  %v2097_v51 = vpop.f32.mrb[25].mxu1 }
 0x2b3   : > { %v5941_v19 = vpack.c.bf16 %v2185_v31, %v2184_v18  ;;  %v2003_v9 = vadd.f32 %v2002_v13, %v6867_v37  ;;  %v2098_v52 = vadd.f32 %v2097_v51, %v6840_v11 }
 0x2b4   : > { %v2187_v48 = vmax.f32 %v2008_v44, 0.0  ;;  %v2193_v50 = vmax.f32 %v2103_v61, 0.0 }
 0x2b5   : > { %v2186_v35 = vmax.f32 %v2003_v9, 0.0  ;;  %v2192_v59 = vmax.f32 %v2098_v52, 0.0  ;;  %v5437_v24 = vpop.f32.mrb[28].mxu0  ;;  %v5454_v33 = vpop.f32.mrb[26].mxu1  ;;  %5942 = vmatprep.subr.bf16.mxu0 %v5941_v19 }
 0x2b6   : > { %v2018_v56 = vadd.f32 %v5437_v24, %v6875_v17  ;;  %v2113_v46 = vadd.f32 %v5454_v33, %v6857_v14  ;;  %v2012_v2 = vpop.f32.mrb[29].mxu0  ;;  %v2107_v34 = vpop.f32.mrb[27].mxu1  ;;  %5944 = vmatpush3.bf16.msra.mxu0 %v5941_v19 }
 0x2b7   : > { %v5945_v25 = vpack.c.bf16 %v2187_v48, %v2186_v35  ;;  %v5957_v42 = vpack.c.bf16 %v2193_v50, %v2192_v59  ;;  %v2013_v62 = vadd.f32 %v2012_v2, %v6878_v63  ;;  %v2108_v11 = vadd.f32 %v2107_v34, %v6867_v37 }
 0x2b8   : > { %v2189_v30 = vmax.f32 %v2018_v56, 0.0  ;;  %v2195_v47 = vmax.f32 %v2113_v46, 0.0 }
 0x2b9   : > { %v2188_v8 = vmax.f32 %v2013_v62, 0.0  ;;  %v2194_v55 = vmax.f32 %v2108_v11, 0.0  ;;  %v5440_v20 = vpop.f32.mrb[30].mxu0  ;;  %v5457_v57 = vpop.f32.mrb[28].mxu1  ;;  %5946 = vmatprep.subr.bf16.mxu0 %v5945_v25  ;;  %5958 = vmatprep.subr.bf16.mxu1 %v5957_v42 }
 0x2ba   : > { %v2028_v53 = vadd.f32 %v5440_v20, %v6886_v60  ;;  %v2123_v14 = vadd.f32 %v5457_v57, %v6875_v17  ;;  %v2022_v3 = vpop.f32.mrb[31].mxu0  ;;  %v2117_v29 = vpop.f32.mrb[29].mxu1  ;;  %5948 = vmatpush3.bf16.msra.mxu0 %v5945_v25  ;;  %5960 = vmatpush3.bf16.msra.mxu1 %v5957_v42 }
 0x2bb   : > { %v5949_v38 = vpack.c.bf16 %v2189_v30, %v2188_v8  ;;  %v5961_v36 = vpack.c.bf16 %v2195_v47, %v2194_v55  ;;  %v2023_v37 = vadd.f32 %v2022_v3, %v6889_v22  ;;  %v2118_v49 = vadd.f32 %v2117_v29, %v6878_v63 }
 0x2bc   : > { %v2191_v7 = vmax.f32 %v2028_v53, 0.0  ;;  %v2197_v26 = vmax.f32 %v2123_v14, 0.0 }
 0x2bd   : > { %v2190_v32 = vmax.f32 %v2023_v37, 0.0  ;;  %v2196_v23 = vmax.f32 %v2118_v49, 0.0  ;;  %v5460_v21 = vpop.f32.mrb[30].mxu1  ;;  %5950 = vmatprep.subr.bf16.mxu0 %v5949_v38  ;;  %5962 = vmatprep.subr.bf16.mxu1 %v5961_v36 }
 0x2be   : > { %v2133_v43 = vadd.f32 %v5460_v21, %v6886_v60  ;;  %v2127_v17 = vpop.f32.mrb[31].mxu1  ;;  %5952 = vmatpush3.bf16.msra.mxu0 %v5949_v38  ;;  %5964 = vmatpush3.bf16.msra.mxu1 %v5961_v36  ;;  %v7240_v60 = vpop.permute.xlu0 %2239 }
 0x2bf   : > { %v5953_v31 = vpack.c.bf16 %v2191_v7, %v2190_v32  ;;  %v5965_v18 = vpack.c.bf16 %v2197_v26, %v2196_v23  ;;  %v2128_v16 = vadd.f32 %v2127_v17, %v6889_v22 }
 0x2c0   : > { %v2199_v10 = vmax.f32 %v2133_v43, 0.0 }
 0x2c1   : > { %v2198_v44 = vmax.f32 %v2128_v16, 0.0  ;;  %5954 = vmatprep.subr.bf16.mxu0 %v5953_v31  ;;  %5966 = vmatprep.subr.bf16.mxu1 %v5965_v18 }
 0x2c2   : > { %5956 = vmatpush3.bf16.msra.mxu0 %v5953_v31  ;;  %5968 = vmatpush3.bf16.msra.mxu1 %v5965_v18 }
 0x2c3   : > { %v5969_v63 = vpack.c.bf16 %v2199_v10, %v2198_v44 }
 0x2c5   : > { %5718 = vmatmul.mubr.msk.f32.vlgmr.msra.gmra.mrb[80].mxu0 %vm2312_vm1, %v6900_v41  ;;  %5970 = vmatprep.subr.bf16.mxu1 %v5969_v63 }
 0x2c6   : > { %5972 = vmatpush3.bf16.msra.mxu1 %v5969_v63  ;;  %5720 = vmatprep.mubr.msk.f32.mxu0 %vm2312_vm1, %v6905_v58 }
 0x2c9   : > { %5721 = vmatmul.mubr.msk.f32.gmra.mrb[82].mxu0 %vm2312_vm1, %v6914_v28  ;;  %5758 = vmatmul.mubr.msk.f32.vlgmr.msra.gmra.mrb[80].mxu1 %vm2312_vm1, %v6900_v41 }
 0x2ca   : > { %5723 = vmatprep.mubr.msk.f32.mxu0 %vm2312_vm1, %v6919_v5  ;;  %5760 = vmatprep.mubr.msk.f32.mxu1 %vm2312_vm1, %v6905_v58 }
 0x2cd   : > { %5724 = vmatmul.mubr.msk.f32.gmra.mrb[84].mxu0 %vm2312_vm1, %v6930_v27  ;;  %5761 = vmatmul.mubr.msk.f32.gmra.mrb[82].mxu1 %vm2312_vm1, %v6914_v28  ;;  %v7243_v28 = vpop.permute.xlu1 %2234 }
 0x2ce   : > { %5726 = vmatprep.mubr.msk.f32.mxu0 %vm2312_vm1, %v6937_v4  ;;  %5763 = vmatprep.mubr.msk.f32.mxu1 %vm2312_vm1, %v6919_v5 }
 0x2d1   : > { %5727 = vmatmul.mubr.msk.f32.gmra.mrb[86].mxu0 %vm2312_vm1, %v6948_v0  ;;  %5764 = vmatmul.mubr.msk.f32.gmra.mrb[84].mxu1 %vm2312_vm1, %v6930_v27 }
 0x2d2   : > { %5729 = vmatprep.mubr.msk.f32.mxu0 %vm2312_vm1, %v6955_v39  ;;  %5766 = vmatprep.mubr.msk.f32.mxu1 %vm2312_vm1, %v6937_v4 }
 0x2d3   : > { %v5479_v22 = vpop.f32.mrb[32].mxu0 }
 0x2d4   : > { %v2433_v41 = vadd.f32 %v5479_v22, %v7240_v60  ;;  %v2427_v58 = vpop.f32.mrb[33].mxu0 }
 0x2d5   : > { %5730 = vmatmul.mubr.msk.f32.gmra.mrb[88].mxu0 %vm2312_vm1, %v6966_v6  ;;  %5767 = vmatmul.mubr.msk.f32.gmra.mrb[86].mxu1 %vm2312_vm1, %v6948_v0  ;;  %v2428_v19 = vadd.f32 %v2427_v58, %v7243_v28 }
 0x2d6   : > { %v3524_v5 = vsel %vm2312_vm1, %v2433_v41, -inf  ;;  %5732 = vmatprep.mubr.msk.f32.mxu0 %vm2312_vm1, %v6973_v40  ;;  %5769 = vmatprep.mubr.msk.f32.mxu1 %vm2312_vm1, %v6955_v39  ;;  %v7264_v39 = vpop.permute.xlu1 %2244 }
 0x2d7   : > { %v5482_v27 = vpop.f32.mrb[34].mxu0  ;;  %3525 = vmax.xlane.f32.xlu0 %v3524_v5  ;;  %v3521_v56 = vsel %vm2312_vm1, %v2428_v19, -inf }
 0x2d8   : > { %v5519_v4 = vpop.f32.mrb[32].mxu1  ;;  %v2437_v61 = vpop.f32.mrb[35].mxu0 }
 0x2d9   : > { %v2578_v13 = vadd.f32 %v5519_v4, %v7240_v60  ;;  %v2572_v51 = vpop.f32.mrb[33].mxu1  ;;  %5733 = vmatmul.mubr.msk.f32.gmra.mrb[90].mxu0 %vm2312_vm1, %v6984_v54  ;;  %5770 = vmatmul.mubr.msk.f32.gmra.mrb[88].mxu1 %vm2312_vm1, %v6966_v6  ;;  %v2438_v48 = vadd.f32 %v2437_v61, %v7264_v39 }
 0x2da   : > { %v2573_v0 = vadd.f32 %v2572_v51, %v7243_v28  ;;  %5735 = vmatprep.mubr.msk.f32.mxu0 %vm2312_vm1, %v6991_v1  ;;  %5772 = vmatprep.mubr.msk.f32.mxu1 %vm2312_vm1, %v6973_v40  ;;  %v7272_v40 = vpop.permute.xlu0 %2249 }
 0x2db   : > { %v5485_v9 = vpop.f32.mrb[36].mxu0  ;;  %v3572_v52 = vsel %vm2312_vm1, %v2578_v13, -inf  ;;  %v2443_v24 = vadd.f32 %v5482_v27, %v7272_v40  ;;  %v3527_v25 = vsel %vm2312_vm1, %v2438_v48, -inf }
 0x2dc   : > { %v5522_v50 = vpop.f32.mrb[34].mxu1  ;;  %3573 = vmax.xlane.f32.xlu1 %v3572_v52  ;;  %v2447_v6 = vpop.f32.mrb[37].mxu0  ;;  %v3569_v35 = vsel %vm2312_vm1, %v2573_v0, -inf }
 0x2dd   : > { %v2582_v59 = vpop.f32.mrb[35].mxu1  ;;  %3570 = vmax.xlane.f32.xlu0 %v3569_v35  ;;  %5736 = vmatmul.mubr.msk.f32.gmra.mrb[92].mxu0 %vm2312_vm1, %v7002_v15  ;;  %v2588_v62 = vadd.f32 %v5522_v50, %v7272_v40  ;;  %v3530_v11 = vsel %vm2312_vm1, %v2443_v24, -inf }
 0x2de   : > { %5773 = vmatmul.mubr.msk.f32.gmra.mrb[90].mxu1 %vm2312_vm1, %v6984_v54  ;;  %5738 = vmatprep.mubr.msk.f32.mxu0 %vm2312_vm1, %v7009_v12  ;;  %v2583_v46 = vadd.f32 %v2582_v59, %v7264_v39  ;;  %v7288_v54 = vpop.permute.xlu1 %2254 }
 0x2df   : > { %v5488_v33 = vpop.f32.mrb[38].mxu0  ;;  %5775 = vmatprep.mubr.msk.f32.mxu1 %vm2312_vm1, %v6991_v1  ;;  %v2448_v30 = vadd.f32 %v2447_v6, %v7288_v54  ;;  %v3578_v14 = vsel %vm2312_vm1, %v2588_v62, -inf }
 0x2e0   : > { %v5525_v2 = vpop.f32.mrb[36].mxu1  ;;  %3522 = vmax.xlane.f32.xlu1 %v3521_v56  ;;  %v2457_v34 = vpop.f32.mrb[39].mxu0  ;;  %v3575_v55 = vsel %vm2312_vm1, %v2583_v46, -inf }
 0x2e1   : > { %v2592_v42 = vpop.f32.mrb[37].mxu1  ;;  %3528 = vmax.xlane.f32.xlu0 %v3527_v25  ;;  %5739 = vmatmul.mubr.msk.f32.gmra.mrb[94].mxu0 %vm2312_vm1, %v7020_v45  ;;  %v3533_v38 = vsel %vm2312_vm1, %v2448_v30, -inf }
 0x2e2   : > { %5776 = vmatmul.mubr.msk.f32.gmra.mrb[92].mxu1 %vm2312_vm1, %v7002_v15  ;;  %v7296_v15 = vpop.permute.xlu0 %2259  ;;  %v7304_v37 = vpop.permute.xlu1 %2264 }
 0x2e3   : > { %v5491_v1 = vpop.f32.mrb[40].mxu0  ;;  %5778 = vmatprep.mubr.msk.f32.mxu1 %vm2312_vm1, %v7009_v12  ;;  %v2453_v57 = vadd.f32 %v5485_v9, %v7296_v15  ;;  %v2593_v12 = vadd.f32 %v2592_v42, %v7288_v54  ;;  %v2598_v49 = vadd.f32 %v5525_v2, %v7296_v15  ;;  %v2458_v26 = vadd.f32 %v2457_v34, %v7304_v37 }
 0x2e4   : > { %v5528_v47 = vpop.f32.mrb[38].mxu1  ;;  %3531 = vmax.xlane.f32.xlu1 %v3530_v11  ;;  %v2467_v8 = vpop.f32.mrb[41].mxu0 }
 0x2e5   : > { %v2602_v20 = vpop.f32.mrb[39].mxu1  ;;  %3576 = vmax.xlane.f32.xlu0 %v3575_v55  ;;  %v3581_v21 = vsel %vm2312_vm1, %v2593_v12, -inf  ;;  %v3584_v16 = vsel %vm2312_vm1, %v2598_v49, -inf  ;;  %v3539_v22 = vsel %vm2312_vm1, %v2458_v26, -inf }
 0x2e6   : > { %5779 = vmatmul.mubr.msk.f32.gmra.mrb[94].mxu1 %vm2312_vm1, %v7020_v45  ;;  %v3536_v45 = vsel %vm2312_vm1, %v2453_v57, -inf  ;;  %v7310_v17 = vpop.permute.xlu0 %2269  ;;  %v2603_v10 = vadd.f32 %v2602_v20, %v7304_v37  ;;  %v7316_v58 = vpop.permute.xlu1 %2274 }
 0x2e7   : > { %v5494_v53 = vpop.f32.mrb[42].mxu0  ;;  %v2463_v31 = vadd.f32 %v5488_v33, %v7310_v17  ;;  %v2608_v5 = vadd.f32 %v5528_v47, %v7310_v17  ;;  %v2468_v4 = vadd.f32 %v2467_v8, %v7316_v58 }
 0x2e8   : > { %v5531_v3 = vpop.f32.mrb[40].mxu1  ;;  %3579 = vmax.xlane.f32.xlu1 %v3578_v14  ;;  %v2477_v29 = vpop.f32.mrb[43].mxu0  ;;  %v3587_v13 = vsel %vm2312_vm1, %v2603_v10, -inf }
 0x2e9   : > { %v2612_v36 = vpop.f32.mrb[41].mxu1  ;;  %3534 = vmax.xlane.f32.xlu0 %v3533_v38  ;;  %v3542_v27 = vsel %vm2312_vm1, %v2463_v31, -inf  ;;  %v3590_v9 = vsel %vm2312_vm1, %v2608_v5, -inf  ;;  %v3545_v48 = vsel %vm2312_vm1, %v2468_v4, -inf }
 0x2ea   : > { %v7322_v0 = vpop.permute.xlu0 %2279  ;;  %v2613_v52 = vadd.f32 %v2612_v36, %v7316_v58  ;;  %v7328_v50 = vpop.permute.xlu1 %2284 }
 0x2eb   : > { %v5497_v7 = vpop.f32.mrb[44].mxu0  ;;  %v2473_v19 = vadd.f32 %v5491_v1, %v7322_v0  ;;  %v2618_v6 = vadd.f32 %v5531_v3, %v7322_v0  ;;  %v2478_v59 = vadd.f32 %v2477_v29, %v7328_v50 }
 0x2ec   : > { %v5534_v32 = vpop.f32.mrb[42].mxu1  ;;  %3537 = vmax.xlane.f32.xlu1 %v3536_v45  ;;  %v2487_v23 = vpop.f32.mrb[45].mxu0  ;;  %v3593_v24 = vsel %vm2312_vm1, %v2613_v52, -inf }
 0x2ed   : > { %v2622_v43 = vpop.f32.mrb[43].mxu1  ;;  %3582 = vmax.xlane.f32.xlu0 %v3581_v21  ;;  %v3548_v35 = vsel %vm2312_vm1, %v2473_v19, -inf  ;;  %v3596_v46 = vsel %vm2312_vm1, %v2618_v6, -inf  ;;  %v3551_v34 = vsel %vm2312_vm1, %v2478_v59, -inf }
 0x2ee   : > { %v7334_v33 = vpop.permute.xlu0 %2289  ;;  %v2623_v2 = vadd.f32 %v2622_v43, %v7328_v50  ;;  %v7340_v25 = vpop.permute.xlu1 %2294 }
 0x2ef   : > { %v5500_v18 = vpop.f32.mrb[46].mxu0  ;;  %v2483_v56 = vadd.f32 %v5494_v53, %v7334_v33  ;;  %v2628_v42 = vadd.f32 %v5534_v32, %v7334_v33  ;;  %v2488_v1 = vadd.f32 %v2487_v23, %v7340_v25 }
 0x2f0   : > { %v5537_v44 = vpop.f32.mrb[44].mxu1  ;;  %3585 = vmax.xlane.f32.xlu1 %v3584_v16  ;;  %v2497_v63 = vpop.f32.mrb[47].mxu0  ;;  %v3599_v11 = vsel %vm2312_vm1, %v2623_v2, -inf }
 0x2f1   : > { %v2632_v41 = vpop.f32.mrb[45].mxu1  ;;  %3540 = vmax.xlane.f32.xlu0 %v3539_v22  ;;  %v3554_v62 = vsel %vm2312_vm1, %v2483_v56, -inf  ;;  %v3602_v8 = vsel %vm2312_vm1, %v2628_v42, -inf  ;;  %v3557_v20 = vsel %vm2312_vm1, %v2488_v1, -inf }
 0x2f2   : > { %v7346_v30 = vpop.permute.xlu0 %2299  ;;  %v2633_v55 = vadd.f32 %v2632_v41, %v7340_v25  ;;  %v7352_v57 = vpop.permute.xlu1 %2304 }
 0x2f3   : > { %v2493_v47 = vadd.f32 %v5497_v7, %v7346_v30  ;;  %v2638_v53 = vadd.f32 %v5537_v44, %v7346_v30  ;;  %v2498_v12 = vadd.f32 %v2497_v63, %v7352_v57 }
 0x2f4   : > { %v5540_v61 = vpop.f32.mrb[46].mxu1  ;;  %3543 = vmax.xlane.f32.xlu1 %v3542_v27  ;;  %v3605_v3 = vsel %vm2312_vm1, %v2633_v55, -inf }
 0x2f5   : > { %v2642_v51 = vpop.f32.mrb[47].mxu1  ;;  %3588 = vmax.xlane.f32.xlu0 %v3587_v13  ;;  %v3560_v14 = vsel %vm2312_vm1, %v2493_v47, -inf  ;;  %v3608_v36 = vsel %vm2312_vm1, %v2638_v53, -inf  ;;  %v3563_v7 = vsel %vm2312_vm1, %v2498_v12, -inf }
 0x2f6   : > { %v7358_v29 = vpop.permute.xlu0 %2309  ;;  %v2643_v49 = vadd.f32 %v2642_v51, %v7352_v57 }
 0x2f7   : > { %v2503_v38 = vadd.f32 %v5500_v18, %v7358_v29  ;;  %v2648_v45 = vadd.f32 %v5540_v61, %v7358_v29 }
 0x2f8   : > { %3591 = vmax.xlane.f32.xlu1 %v3590_v9  ;;  %v3611_v32 = vsel %vm2312_vm1, %v2643_v49, -inf }
 0x2f9   : > { %3546 = vmax.xlane.f32.xlu0 %v3545_v48  ;;  %v3566_v26 = vsel %vm2312_vm1, %v2503_v38, -inf  ;;  %v3614_v31 = vsel %vm2312_vm1, %v2648_v45, -inf }
 0x2fc   : > { %3549 = vmax.xlane.f32.xlu1 %v3548_v35 }
 0x2fd   : > { %3594 = vmax.xlane.f32.xlu0 %v3593_v24 }
 0x300   : > { %3597 = vmax.xlane.f32.xlu1 %v3596_v46 }
 0x301   : > { %3552 = vmax.xlane.f32.xlu0 %v3551_v34 }
 0x304   : > { %3555 = vmax.xlane.f32.xlu1 %v3554_v62 }
 0x305   : > { %3600 = vmax.xlane.f32.xlu0 %v3599_v11 }
 0x308   : > { %3603 = vmax.xlane.f32.xlu1 %v3602_v8 }
 0x309   : > { %3558 = vmax.xlane.f32.xlu0 %v3557_v20 }
 0x30c   : > { %3561 = vmax.xlane.f32.xlu1 %v3560_v14 }
 0x30d   : > { %3606 = vmax.xlane.f32.xlu0 %v3605_v3 }
 0x310   : > { %3609 = vmax.xlane.f32.xlu1 %v3608_v36 }
 0x311   : > { %3564 = vmax.xlane.f32.xlu0 %v3563_v7 }
 0x314   : > { %3567 = vmax.xlane.f32.xlu1 %v3566_v26 }
 0x315   : > { %3612 = vmax.xlane.f32.xlu0 %v3611_v32 }
 0x316   : > { %v5559_v23 = vpop.f32.mrb[48].mxu0 }
 0x317   : > { %v2723_v21 = vadd.f32 %v5559_v23, %v7240_v60  ;;  %v2717_v43 = vpop.f32.mrb[49].mxu0 }
 0x318   : > { %v2718_v18 = vadd.f32 %v2717_v43, %v7243_v28  ;;  %3615 = vmax.xlane.f32.xlu1 %v3614_v31 }
 0x319   : > { %v3620_v16 = vsel %vm2312_vm1, %v2723_v21, -inf }
 0x31a   : > { %v5562_v10 = vpop.f32.mrb[50].mxu0  ;;  %v3617_v44 = vsel %vm2312_vm1, %v2718_v18, -inf }
 0x31b   : > { %v5599_v63 = vpop.f32.mrb[48].mxu1  ;;  %v2727_v22 = vpop.f32.mrb[51].mxu0  ;;  %3618 = vmax.xlane.f32.xlu0 %v3617_v44  ;;  %v2733_v13 = vadd.f32 %v5562_v10, %v7272_v40 }
 0x31c   : > { %v2868_v41 = vadd.f32 %v5599_v63, %v7240_v60  ;;  %v2862_v5 = vpop.f32.mrb[49].mxu1  ;;  %3621 = vmax.xlane.f32.xlu1 %v3620_v16  ;;  %v2728_v51 = vadd.f32 %v2727_v22, %v7264_v39 }
 0x31d   : > { %v2863_v27 = vadd.f32 %v2862_v5, %v7243_v28  ;;  %v3626_v2 = vsel %vm2312_vm1, %v2733_v13, -inf }
 0x31e   : > { %v5565_v4 = vpop.f32.mrb[52].mxu0  ;;  %v3668_v61 = vsel %vm2312_vm1, %v2868_v41, -inf  ;;  %v3623_v46 = vsel %vm2312_vm1, %v2728_v51, -inf }
 0x31f   : > { %v5602_v19 = vpop.f32.mrb[50].mxu1  ;;  %v2737_v9 = vpop.f32.mrb[53].mxu0  ;;  %v3665_v52 = vsel %vm2312_vm1, %v2863_v27, -inf  ;;  %v2743_v62 = vadd.f32 %v5565_v4, %v7296_v15 }
 0x320   : > { %v2872_v48 = vpop.f32.mrb[51].mxu1  ;;  %3666 = vmax.xlane.f32.xlu0 %v3665_v52  ;;  %3669 = vmax.xlane.f32.xlu1 %v3668_v61  ;;  %v2878_v35 = vadd.f32 %v5602_v19, %v7272_v40  ;;  %v2738_v1 = vadd.f32 %v2737_v9, %v7288_v54 }
 0x321   : > { %v2873_v59 = vadd.f32 %v2872_v48, %v7264_v39  ;;  %v3632_v49 = vsel %vm2312_vm1, %v2743_v62, -inf }
 0x322   : > { %v5568_v6 = vpop.f32.mrb[54].mxu0  ;;  %v3674_v55 = vsel %vm2312_vm1, %v2878_v35, -inf  ;;  %v3629_v36 = vsel %vm2312_vm1, %v2738_v1, -inf }
 0x323   : > { %v5605_v24 = vpop.f32.mrb[52].mxu1  ;;  %v2747_v56 = vpop.f32.mrb[55].mxu0  ;;  %v3671_v8 = vsel %vm2312_vm1, %v2873_v59, -inf  ;;  %v2753_v26 = vadd.f32 %v5568_v6, %v7310_v17 }
 0x324   : > { %v2882_v34 = vpop.f32.mrb[53].mxu1  ;;  %3624 = vmax.xlane.f32.xlu0 %v3623_v46  ;;  %3627 = vmax.xlane.f32.xlu1 %v3626_v2  ;;  %v2888_v14 = vadd.f32 %v5605_v24, %v7296_v15  ;;  %v2748_v32 = vadd.f32 %v2747_v56, %v7304_v37 }
 0x325   : > { %v2883_v12 = vadd.f32 %v2882_v34, %v7288_v54  ;;  %v3638_v5 = vsel %vm2312_vm1, %v2753_v26, -inf }
 0x326   : > { %v5571_v42 = vpop.f32.mrb[56].mxu0  ;;  %v3680_v31 = vsel %vm2312_vm1, %v2888_v14, -inf  ;;  %v3635_v41 = vsel %vm2312_vm1, %v2748_v32, -inf }
 0x327   : > { %v5608_v11 = vpop.f32.mrb[54].mxu1  ;;  %v2757_v47 = vpop.f32.mrb[57].mxu0  ;;  %v3677_v43 = vsel %vm2312_vm1, %v2883_v12, -inf  ;;  %v2763_v4 = vadd.f32 %v5571_v42, %v7322_v0 }
 0x328   : > { %v2892_v20 = vpop.f32.mrb[55].mxu1  ;;  %3672 = vmax.xlane.f32.xlu0 %v3671_v8  ;;  %3675 = vmax.xlane.f32.xlu1 %v3674_v55  ;;  %v2898_v10 = vadd.f32 %v5608_v11, %v7310_v17  ;;  %v2758_v61 = vadd.f32 %v2757_v47, %v7316_v58 }
 0x329   : > { %v2893_v44 = vadd.f32 %v2892_v20, %v7304_v37  ;;  %v3644_v35 = vsel %vm2312_vm1, %v2763_v4, -inf }
 0x32a   : > { %v5574_v53 = vpop.f32.mrb[58].mxu0  ;;  %v3686_v19 = vsel %vm2312_vm1, %v2898_v10, -inf  ;;  %v3641_v6 = vsel %vm2312_vm1, %v2758_v61, -inf }
 0x32b   : > { %v5611_v3 = vpop.f32.mrb[56].mxu1  ;;  %v2767_v38 = vpop.f32.mrb[59].mxu0  ;;  %v3683_v51 = vsel %vm2312_vm1, %v2893_v44, -inf  ;;  %v2773_v59 = vadd.f32 %v5574_v53, %v7334_v33 }
 0x32c   : > { %v2902_v7 = vpop.f32.mrb[57].mxu1  ;;  %3630 = vmax.xlane.f32.xlu0 %v3629_v36  ;;  %3633 = vmax.xlane.f32.xlu1 %v3632_v49  ;;  %v2908_v52 = vadd.f32 %v5611_v3, %v7322_v0  ;;  %v2768_v24 = vadd.f32 %v2767_v38, %v7328_v50 }
 0x32d   : > { %v2903_v48 = vadd.f32 %v2902_v7, %v7316_v58  ;;  %v3650_v62 = vsel %vm2312_vm1, %v2773_v59, -inf }
 0x32e   : > { %v5577_v45 = vpop.f32.mrb[60].mxu0  ;;  %v3692_v46 = vsel %vm2312_vm1, %v2908_v52, -inf  ;;  %v3647_v42 = vsel %vm2312_vm1, %v2768_v24, -inf }
 0x32f   : > { %v5614_v23 = vpop.f32.mrb[58].mxu1  ;;  %v2777_v21 = vpop.f32.mrb[61].mxu0  ;;  %v3689_v56 = vsel %vm2312_vm1, %v2903_v48, -inf  ;;  %v2783_v1 = vadd.f32 %v5577_v45, %v7346_v30 }
 0x330   : > { %v2912_v18 = vpop.f32.mrb[59].mxu1  ;;  %3678 = vmax.xlane.f32.xlu0 %v3677_v43  ;;  %3681 = vmax.xlane.f32.xlu1 %v3680_v31  ;;  %v2918_v2 = vadd.f32 %v5614_v23, %v7334_v33  ;;  %v2778_v11 = vadd.f32 %v2777_v21, %v7340_v25 }
 0x331   : > { %v2913_v34 = vadd.f32 %v2912_v18, %v7328_v50  ;;  %v3656_v14 = vsel %vm2312_vm1, %v2783_v1, -inf }
 0x332   : > { %v5580_v16 = vpop.f32.mrb[62].mxu0  ;;  %v3698_v8 = vsel %vm2312_vm1, %v2918_v2, -inf  ;;  %v3653_v53 = vsel %vm2312_vm1, %v2778_v11, -inf }
 0x333   : > { %v5617_v63 = vpop.f32.mrb[60].mxu1  ;;  %v2787_v22 = vpop.f32.mrb[63].mxu0  ;;  %v3695_v47 = vsel %vm2312_vm1, %v2913_v34, -inf  ;;  %v2793_v12 = vadd.f32 %v5580_v16, %v7358_v29 }
 0x334   : > { %v2922_v27 = vpop.f32.mrb[61].mxu1  ;;  %3636 = vmax.xlane.f32.xlu0 %v3635_v41  ;;  %3639 = vmax.xlane.f32.xlu1 %v3638_v5  ;;  %v2928_v55 = vadd.f32 %v5617_v63, %v7346_v30  ;;  %v2788_v3 = vadd.f32 %v2787_v22, %v7352_v57 }
 0x335   : > { %v2923_v20 = vadd.f32 %v2922_v27, %v7340_v25  ;;  %v3662_v26 = vsel %vm2312_vm1, %v2793_v12, -inf }
 0x336   : > { %v3704_v36 = vsel %vm2312_vm1, %v2928_v55, -inf  ;;  %v3659_v45 = vsel %vm2312_vm1, %v2788_v3, -inf }
 0x337   : > { %v5620_v13 = vpop.f32.mrb[62].mxu1  ;;  %v3701_v38 = vsel %vm2312_vm1, %v2923_v20, -inf }
 0x338   : > { %v2932_v9 = vpop.f32.mrb[63].mxu1  ;;  %3684 = vmax.xlane.f32.xlu0 %v3683_v51  ;;  %3687 = vmax.xlane.f32.xlu1 %v3686_v19  ;;  %v2938_v49 = vadd.f32 %v5620_v13, %v7358_v29 }
 0x339   : > { %v2933_v7 = vadd.f32 %v2932_v9, %v7352_v57 }
 0x33a   : > { %v3710_v18 = vsel %vm2312_vm1, %v2938_v49, -inf }
 0x33b   : > { %v3707_v31 = vsel %vm2312_vm1, %v2933_v7, -inf }
 0x33c   : > { %3642 = vmax.xlane.f32.xlu0 %v3641_v6  ;;  %3645 = vmax.xlane.f32.xlu1 %v3644_v35  ;;  %v8057_v6 = vlaneseq }
 0x33e   : > { %v7443_v35 = vand.u32 127, %v8057_v6 }
 0x340   : > { %3690 = vmax.xlane.f32.xlu0 %v3689_v56  ;;  %3693 = vmax.xlane.f32.xlu1 %v3692_v46  ;;  %v4039_v1 = vadd.s32 4294967288, %v7443_v35  ;;  %v4046_v12 = vadd.s32 4294967280, %v7443_v35 }
 0x344   : > { %3648 = vmax.xlane.f32.xlu0 %v3647_v42  ;;  %3651 = vmax.xlane.f32.xlu1 %v3650_v62 }
 0x348   : > { %3696 = vmax.xlane.f32.xlu0 %v3695_v47  ;;  %3699 = vmax.xlane.f32.xlu1 %v3698_v8 }
 0x34c   : > { %3654 = vmax.xlane.f32.xlu0 %v3653_v53  ;;  %3657 = vmax.xlane.f32.xlu1 %v3656_v14  ;;  %v8058_v53 = vld [vmem:[#allocation27_spill] sm:$0xff] }
 0x34d   : > { %v7458_v14 = vsub.s32 %v7443_v35, %v8058_v53  ;;  %v7466_v7 = vsub.s32 %v4039_v1, %v8058_v53 }
 0x350   : > { %3702 = vmax.xlane.f32.xlu0 %v3701_v38  ;;  %3705 = vmax.xlane.f32.xlu1 %v3704_v36 }
 0x354   : > { %3660 = vmax.xlane.f32.xlu0 %v3659_v45  ;;  %3663 = vmax.xlane.f32.xlu1 %v3662_v26 }
 0x355   : > { %v5639_v32 = vpop.f32.mrb[64].mxu0 }
 0x356   : > { %v3007_v23 = vpop.f32.mrb[65].mxu0  ;;  %v3013_v21 = vadd.f32 %v5639_v32, %v7240_v60  ;;  %v4053_v32 = vadd.s32 4294967272, %v7443_v35 }
 0x357   : > { %v3008_v43 = vadd.f32 %v3007_v23, %v7243_v28 }
 0x358   : > { %3708 = vmax.xlane.f32.xlu0 %v3707_v31  ;;  %3711 = vmax.xlane.f32.xlu1 %v3710_v18  ;;  %v3716_v27 = vsel %vm2312_vm1, %v3013_v21, -inf  ;;  %v7474_v18 = vsub.s32 %v4046_v12, %v8058_v53 }
 0x359   : > { %v5642_v16 = vpop.f32.mrb[66].mxu0  ;;  %v5679_v10 = vpop.f32.mrb[64].mxu1  ;;  %v3713_v44 = vsel %vm2312_vm1, %v3008_v43, -inf }
 0x35a   : > { %v3017_v63 = vpop.f32.mrb[67].mxu0  ;;  %v3152_v22 = vpop.f32.mrb[65].mxu1  ;;  %v3158_v41 = vadd.f32 %v5679_v10, %v7240_v60  ;;  %v3023_v9 = vadd.f32 %v5642_v16, %v7272_v40 }
 0x35b   : > { %v3153_v5 = vadd.f32 %v3152_v22, %v7243_v28  ;;  %v3018_v52 = vadd.f32 %v3017_v63, %v7264_v39 }
 0x35c   : > { %3714 = vmax.xlane.f32.xlu0 %v3713_v44  ;;  %3717 = vmax.xlane.f32.xlu1 %v3716_v27  ;;  %v3764_v48 = vsel %vm2312_vm1, %v3158_v41, -inf  ;;  %v3722_v62 = vsel %vm2312_vm1, %v3023_v9, -inf }
 0x35d   : > { %v5645_v4 = vpop.f32.mrb[68].mxu0  ;;  %v5682_v61 = vpop.f32.mrb[66].mxu1  ;;  %v3761_v13 = vsel %vm2312_vm1, %v3153_v5, -inf  ;;  %v3719_v42 = vsel %vm2312_vm1, %v3018_v52, -inf }
 0x35e   : > { %v3027_v51 = vpop.f32.mrb[69].mxu0  ;;  %v3162_v19 = vpop.f32.mrb[67].mxu1  ;;  %v3168_v2 = vadd.f32 %v5682_v61, %v7272_v40  ;;  %v3033_v3 = vadd.f32 %v5645_v4, %v7296_v15  ;;  %v7488_v61 = vsub.s32 %v4053_v32, %v8058_v53 }
 0x35f   : > { %v3163_v34 = vadd.f32 %v3162_v19, %v7264_v39  ;;  %v3028_v23 = vadd.f32 %v3027_v51, %v7288_v54 }
 0x360   : > { %3762 = vmax.xlane.f32.xlu0 %v3761_v13  ;;  %3765 = vmax.xlane.f32.xlu1 %v3764_v48  ;;  %v3770_v49 = vsel %vm2312_vm1, %v3168_v2, -inf  ;;  %v3728_v41 = vsel %vm2312_vm1, %v3033_v3, -inf  ;;  %v4060_v48 = vadd.s32 4294967264, %v7443_v35 }
 0x361   : > { %v5648_v59 = vpop.f32.mrb[70].mxu0  ;;  %v5685_v24 = vpop.f32.mrb[68].mxu1  ;;  %v3767_v36 = vsel %vm2312_vm1, %v3163_v34, -inf  ;;  %v3725_v52 = vsel %vm2312_vm1, %v3028_v23, -inf }
 0x362   : > { %v7445_v56 = vpop.f32.mrb[71].mxu0  ;;  %v3172_v46 = vpop.f32.mrb[69].mxu1  ;;  %v3178_v38 = vadd.f32 %v5685_v24, %v7296_v15  ;;  %v3043_v6 = vadd.f32 %v5648_v59, %v7310_v17 }
 0x363   : > { %v3173_v16 = vadd.f32 %v3172_v46, %v7288_v54  ;;  %v3038_v59 = vadd.f32 %v7445_v56, %v7304_v37 }
 0x364   : > { %3720 = vmax.xlane.f32.xlu0 %v3719_v42  ;;  %3723 = vmax.xlane.f32.xlu1 %v3722_v62  ;;  %v3526_v11 = vpop.xlane.xlu0 %3525  ;;  %v3776_v22 = vsel %vm2312_vm1, %v3178_v38, -inf }
 0x365   : > { %v7452_v47 = vpop.f32.mrb[72].mxu0  ;;  %v5688_v8 = vpop.f32.mrb[70].mxu1  ;;  %v4043_v13 = vrot.slane %v3526_v11, %v7466_v7  ;;  %v3773_v42 = vsel %vm2312_vm1, %v3173_v16, -inf }
 0x366   : > { %v7454_v55 = vpop.f32.mrb[73].mxu0  ;;  %v3182_v20 = vpop.f32.mrb[71].mxu1  ;;  %v3188_v24 = vadd.f32 %v5688_v8, %v7310_v17 }
 0x368   : > { %3768 = vmax.xlane.f32.xlu0 %v3767_v36  ;;  %3771 = vmax.xlane.f32.xlu1 %v3770_v49  ;;  %v7514_v36 = vsub.s32 %v4060_v48, %v8058_v53  ;;  %v4067_v49 = vadd.s32 4294967256, %v7443_v35  ;;  %v3782_v56 = vsel %vm2312_vm1, %v3188_v24, -inf  ;;  %v3053_v48 = vadd.f32 %v7452_v47, %v7322_v0 }
 0x369   : > { %v3574_v45 = vpop.xlane.xlu1 %3573  ;;  %v7468_v26 = vpop.f32.mrb[74].mxu0 }
 0x36a   : > { %v4151_v21 = vrot.slane %v3574_v45, %v7466_v7  ;;  %v5691_v43 = vpop.f32.mrb[72].mxu1  ;;  %v3571_v31 = vpop.xlane.xlu0 %3570  ;;  %v3183_v45 = vadd.f32 %v3182_v20, %v7304_v37 }
 0x36b   : > { %v4147_v10 = vrot.slane %v3571_v31, %v7458_v14  ;;  %v7478_v44 = vpop.f32.mrb[75].mxu0  ;;  %v7480_v63 = vpop.f32.mrb[73].mxu1  ;;  %v3734_v31 = vsel %vm2312_vm1, %v3043_v6, -inf }
 0x36c   : > { %3777 = vmax.xlane.f32.xlu0 %v3776_v22  ;;  %3729 = vmax.xlane.f32.xlu1 %v3728_v41  ;;  %v3779_v24 = vsel %vm2312_vm1, %v3183_v45, -inf  ;;  %v3740_v45 = vsel %vm2312_vm1, %v3053_v48, -inf }
 0x36d   : > { %v4152_v5 = vsel %vm4044_vm2, %v4151_v21, %v4147_v10  ;;  %v3523_v27 = vpop.xlane.xlu1 %3522  ;;  %v7485_v4 = vpop.f32.mrb[76].mxu0 }
 0x36e   : > { %v4038_v51 = vrot.slane %v3523_v27, %v7458_v14  ;;  %v7492_v19 = vpop.f32.mrb[74].mxu1  ;;  %v3529_v9 = vpop.xlane.xlu0 %3528 }
 0x36f   : > { %v4050_v46 = vrot.slane %v3529_v9, %v7474_v18  ;;  %v7499_v2 = vpop.f32.mrb[77].mxu0  ;;  %v7501_v34 = vpop.f32.mrb[75].mxu1  ;;  %v7534_v9 = vsub.s32 %v4067_v49, %v8058_v53 }
 0x370   : > { %v4045_v62 = vsel %vm4044_vm2, %v4043_v13, %v4038_v51  ;;  %3726 = vmax.xlane.f32.xlu0 %v3725_v52  ;;  %3774 = vmax.xlane.f32.xlu1 %v3773_v42  ;;  %v3731_v51 = vsel %vm2312_vm1, %v3038_v59, -inf  ;;  %v4074_v52 = vadd.s32 4294967248, %v7443_v35  ;;  %v4081_v59 = vadd.s32 4294967240, %v7443_v35 }
 0x371   : > { %v4052_v1 = vsel %vm4051_vm3, %v4050_v46, %v4045_v62  ;;  %v3532_v11 = vpop.xlane.xlu1 %3531  ;;  %v7506_v12 = vpop.f32.mrb[78].mxu0 }
 0x372   : > { %v4057_v8 = vrot.slane %v3532_v11, %v7488_v61  ;;  %v7511_v3 = vpop.f32.mrb[76].mxu1  ;;  %v3577_v38 = vpop.xlane.xlu0 %3576 }
 0x373   : > { %v4156_v32 = vrot.slane %v3577_v38, %v7474_v18  ;;  %v7519_v23 = vpop.f32.mrb[79].mxu0  ;;  %v7521_v21 = vpop.f32.mrb[77].mxu1 }
 0x374   : > { %v4059_v16 = vsel %vm4058_vm4, %v4057_v8, %v4052_v1  ;;  %3783 = vmax.xlane.f32.xlu0 %v3782_v56  ;;  %3735 = vmax.xlane.f32.xlu1 %v3734_v31  ;;  %v3048_v1 = vadd.f32 %v7454_v55, %v7316_v58  ;;  %v3193_v8 = vadd.f32 %v7480_v63, %v7316_v58 }
 0x375   : > { %v4157_v10 = vsel %vm4051_vm3, %v4156_v32, %v4152_v5  ;;  %v3580_v22 = vpop.xlane.xlu1 %3579  ;;  %v7527_v41 = vpop.f32.mrb[78].mxu1  ;;  %v3198_v5 = vadd.f32 %v5691_v43, %v7322_v0  ;;  %v7548_v43 = vsub.s32 %v4074_v52, %v8058_v53  ;;  %v7561_v63 = vsub.s32 %v4081_v59, %v8058_v53 }
 0x376   : > { %v4161_v20 = vrot.slane %v3580_v22, %v7488_v61  ;;  %v3535_v27 = vpop.xlane.xlu0 %3534  ;;  %v7530_v13 = vpop.f32.mrb[79].mxu1  ;;  %v4088_v22 = vadd.s32 4294967232, %v7443_v35  ;;  %v3785_v52 = vsel %vm2312_vm1, %v3193_v8, -inf }
 0x377   : > { %v4064_v6 = vrot.slane %v3535_v27, %v7514_v36  ;;  %v3788_v49 = vsel %vm2312_vm1, %v3198_v5, -inf  ;;  %v3208_v27 = vadd.f32 %v7492_v19, %v7334_v33 }
 0x378   : > { %v4162_v46 = vsel %vm4058_vm4, %v4161_v20, %v4157_v10  ;;  %3732 = vmax.xlane.f32.xlu0 %v3731_v51  ;;  %3780 = vmax.xlane.f32.xlu1 %v3779_v24  ;;  %v3737_v10 = vsel %vm2312_vm1, %v3048_v1, -inf  ;;  %v3063_v20 = vadd.f32 %v7468_v26, %v7334_v33  ;;  %v3058_v24 = vadd.f32 %v7478_v44, %v7328_v50 }
 0x379   : > { %v4066_v42 = vsel %vm4065_vm5, %v4064_v6, %v4059_v16  ;;  %v3538_v62 = vpop.xlane.xlu1 %3537  ;;  %v7576_v19 = vsub.s32 %v4088_v22, %v8058_v53 }
 0x37a   : > { %v4071_v11 = vrot.slane %v3538_v62, %v7534_v9  ;;  %v3583_v47 = vpop.xlane.xlu0 %3582  ;;  %v3203_v62 = vadd.f32 %v7501_v34, %v7328_v50 }
 0x37b   : > { %v4166_v38 = vrot.slane %v3583_v47, %v7514_v36  ;;  %v3746_v47 = vsel %vm2312_vm1, %v3063_v20, -inf  ;;  %v3068_v20 = vadd.f32 %v7499_v2, %v7340_v25 }
 0x37c   : > { %v4073_v32 = vsel %vm4072_vm6, %v4071_v11, %v4066_v42  ;;  %3789 = vmax.xlane.f32.xlu0 %v3788_v49  ;;  %3741 = vmax.xlane.f32.xlu1 %v3740_v45  ;;  %v4095_v42 = vadd.s32 4294967224, %v7443_v35  ;;  %v3794_v11 = vsel %vm2312_vm1, %v3208_v27, -inf }
 0x37d   : > { %v4167_v55 = vsel %vm4065_vm5, %v4166_v38, %v4162_v46  ;;  %v3586_v56 = vpop.xlane.xlu1 %3585  ;;  %v3073_v38 = vadd.f32 %v7485_v4, %v7346_v30 }
 0x37e   : > { %v4171_v31 = vrot.slane %v3586_v56, %v7534_v9  ;;  %v3541_v16 = vpop.xlane.xlu0 %3540  ;;  %v7590_v45 = vsub.s32 %v4095_v42, %v8058_v53  ;;  %v3083_v42 = vadd.f32 %v7506_v12, %v7358_v29 }
 0x37f   : > { %v4078_v51 = vrot.slane %v3541_v16, %v7548_v43  ;;  %v3791_v16 = vsel %vm2312_vm1, %v3203_v62, -inf }
 0x380   : > { %v4172_v48 = vsel %vm4072_vm6, %v4171_v31, %v4167_v55  ;;  %3738 = vmax.xlane.f32.xlu0 %v3737_v10  ;;  %3786 = vmax.xlane.f32.xlu1 %v3785_v52  ;;  %v3218_v55 = vadd.f32 %v7511_v3, %v7346_v30  ;;  %v3743_v31 = vsel %vm2312_vm1, %v3058_v24, -inf  ;;  %v4109_v52 = vadd.s32 4294967208, %v7443_v35 }
 0x381   : > { %v4080_v5 = vsel %vm4079_vm7, %v4078_v51, %v4073_v32  ;;  %v3544_v6 = vpop.xlane.xlu1 %3543  ;;  %v4102_v32 = vadd.s32 4294967216, %v7443_v35  ;;  %v3752_v24 = vsel %vm2312_vm1, %v3073_v38, -inf }
 0x382   : > { %v4085_v26 = vrot.slane %v3544_v6, %v7561_v63  ;;  %v3589_v46 = vpop.xlane.xlu0 %3588  ;;  %v3800_v6 = vsel %vm2312_vm1, %v3218_v55, -inf }
 0x383   : > { %v4176_v1 = vrot.slane %v3589_v46, %v7548_v43  ;;  %v7604_v51 = vsub.s32 %v4102_v32, %v8058_v53 }
 0x384   : > { %v4087_v59 = vsel %vm4086_vm8, %v4085_v26, %v4080_v5  ;;  %3795 = vmax.xlane.f32.xlu0 %v3794_v11  ;;  %3747 = vmax.xlane.f32.xlu1 %v3746_v47  ;;  %v4116_v11 = vadd.s32 4294967200, %v7443_v35  ;;  %v3228_v47 = vadd.f32 %v7527_v41, %v7358_v29 }
 0x385   : > { %v4177_v44 = vsel %vm4079_vm7, %v4176_v1, %v4172_v48  ;;  %v3592_v8 = vpop.xlane.xlu1 %3591  ;;  %v3213_v48 = vadd.f32 %v7521_v21, %v7340_v25  ;;  %v7618_v1 = vsub.s32 %v4109_v52, %v8058_v53 }
 0x386   : > { %v4181_v49 = vrot.slane %v3592_v8, %v7561_v63  ;;  %v3547_v34 = vpop.xlane.xlu0 %3546  ;;  %v7632_v55 = vsub.s32 %v4116_v11, %v8058_v53 }
 0x387   : > { %v4092_v56 = vrot.slane %v3547_v34, %v7576_v19  ;;  %v3797_v8 = vsel %vm2312_vm1, %v3213_v48, -inf  ;;  %v3078_v34 = vadd.f32 %v7519_v23, %v7352_v57 }
 0x388   : > { %v4182_v10 = vsel %vm4086_vm8, %v4181_v49, %v4177_v44  ;;  %3744 = vmax.xlane.f32.xlu0 %v3743_v31  ;;  %3792 = vmax.xlane.f32.xlu1 %v3791_v16  ;;  %v3749_v44 = vsel %vm2312_vm1, %v3068_v20, -inf  ;;  %v3223_v31 = vadd.f32 %v7530_v13, %v7352_v57 }
 0x389   : > { %v4094_v4 = vsel %vm4093_vm9, %v4092_v56, %v4087_v59  ;;  %v3550_v22 = vpop.xlane.xlu1 %3549  ;;  %v4123_v56 = vadd.s32 4294967192, %v7443_v35  ;;  %v3755_v48 = vsel %vm2312_vm1, %v3078_v34, -inf }
 0x38a   : > { %v4099_v27 = vrot.slane %v3550_v22, %v7590_v45  ;;  %v3595_v3 = vpop.xlane.xlu0 %3594 }
 0x38b   : > { %v4186_v5 = vrot.slane %v3595_v3, %v7576_v19  ;;  %v7644_v52 = vsub.s32 %v4123_v56, %v8058_v53 }
 0x38c   : > { %v4101_v26 = vsel %vm4100_vm10, %v4099_v27, %v4094_v4  ;;  %3801 = vmax.xlane.f32.xlu0 %v3800_v6  ;;  %3753 = vmax.xlane.f32.xlu1 %v3752_v24  ;;  %v3758_v4 = vsel %vm2312_vm1, %v3083_v42, -inf  ;;  %v4130_v6 = vadd.s32 4294967184, %v7443_v35 }
 0x38d   : > { %v4187_v2 = vsel %vm4093_vm9, %v4186_v5, %v4182_v10  ;;  %v3598_v46 = vpop.xlane.xlu1 %3597  ;;  %v3806_v10 = vsel %vm2312_vm1, %v3228_v47, -inf  ;;  %v3803_v5 = vsel %vm2312_vm1, %v3223_v31, -inf }
 0x38e   : > { %v4191_v62 = vrot.slane %v3598_v46, %v7590_v45  ;;  %v3553_v21 = vpop.xlane.xlu0 %3552 }
 0x38f   : > { %v4106_v59 = vrot.slane %v3553_v21, %v7604_v51 }
 0x390   : > { %v4192_v38 = vsel %vm4100_vm10, %v4191_v62, %v4187_v2  ;;  %3750 = vmax.xlane.f32.xlu0 %v3749_v44  ;;  %3798 = vmax.xlane.f32.xlu1 %v3797_v8 }
 0x391   : > { %v4108_v12 = vsel %vm4107_vm11, %v4106_v59, %v4101_v26  ;;  %v3556_v49 = vpop.xlane.xlu1 %3555  ;;  %v4137_v59 = vadd.s32 4294967176, %v7443_v35 }
 0x392   : > { %v4113_v32 = vrot.slane %v3556_v49, %v7618_v1  ;;  %v3601_v41 = vpop.xlane.xlu0 %3600 }
 0x393   : > { %v4196_v16 = vrot.slane %v3601_v41, %v7604_v51 }
 0x394   : > { %v4115_v22 = vsel %vm7998_vm12, %v4113_v32, %v4108_v12  ;;  %3807 = vmax.xlane.f32.xlu0 %v3806_v10  ;;  %3759 = vmax.xlane.f32.xlu1 %v3758_v4 }
 0x395   : > { %v4197_v23 = vsel %vm4107_vm11, %v4196_v16, %v4192_v38  ;;  %v3604_v20 = vpop.xlane.xlu1 %3603  ;;  %v7659_v38 = vsub.s32 %v4130_v6, %v8058_v53 }
 0x396   : > { %v4201_v27 = vrot.slane %v3604_v20, %v7618_v1  ;;  %v3559_v3 = vpop.xlane.xlu0 %3558 }
 0x397   : > { %v4120_v13 = vrot.slane %v3559_v3, %v7632_v55 }
 0x398   : > { %v4202_v24 = vsel %vm7998_vm12, %v4201_v27, %v4197_v23  ;;  %3756 = vmax.xlane.f32.xlu0 %v3755_v48  ;;  %3804 = vmax.xlane.f32.xlu1 %v3803_v5  ;;  %v5719_v26 = vpop.f32.mrb[80].mxu0 }
 0x399   : > { %v4122_v2 = vsel %vm4121_vm13, %v4120_v13, %v4115_v22  ;;  %v3303_v46 = vadd.f32 %v5719_v26, %v7240_v60  ;;  %v3562_v42 = vpop.xlane.xlu1 %3561  ;;  %v3297_v62 = vpop.f32.mrb[81].mxu0  ;;  %v7667_v22 = vsub.s32 %v4137_v59, %v8058_v53 }
 0x39a   : > { %v4127_v21 = vrot.slane %v3562_v42, %v7644_v52  ;;  %v3298_v11 = vadd.f32 %v3297_v62, %v7243_v28  ;;  %v3607_v47 = vpop.xlane.xlu0 %3606 }
 0x39b   : > { %v4206_v44 = vrot.slane %v3607_v47, %v7632_v55  ;;  %v3812_v8 = vsel %vm2312_vm1, %v3303_v46, -inf }
 0x39c   : > { %v4129_v12 = vsel %vm7997_vm14, %v4127_v21, %v4122_v2  ;;  %v5722_v49 = vpop.f32.mrb[82].mxu0  ;;  %v5759_v34 = vpop.f32.mrb[80].mxu1  ;;  %3813 = vmax.xlane.f32.xlu0 %v3812_v8  ;;  %v3809_v32 = vsel %vm2312_vm1, %v3298_v11, -inf }
 0x39d   : > { %v4207_v41 = vsel %vm4121_vm13, %v4206_v44, %v4202_v24  ;;  %v3448_v56 = vadd.f32 %v5759_v34, %v7240_v60  ;;  %v3610_v31 = vpop.xlane.xlu1 %3609  ;;  %v3307_v35 = vpop.f32.mrb[83].mxu0  ;;  %3810 = vmax.xlane.f32.xlu1 %v3809_v32  ;;  %v3313_v23 = vadd.f32 %v5722_v49, %v7272_v40 }
 0x39e   : > { %v4211_v16 = vrot.slane %v3610_v31, %v7644_v52  ;;  %v3442_v10 = vpop.f32.mrb[81].mxu1  ;;  %v3565_v4 = vpop.xlane.xlu0 %3564 }
 0x39f   : > { %v3443_v20 = vadd.f32 %v3442_v10, %v7243_v28  ;;  %v4134_v27 = vrot.slane %v3565_v4, %v7659_v38  ;;  %v3860_v3 = vsel %vm2312_vm1, %v3448_v56, -inf  ;;  %v3818_v21 = vsel %vm2312_vm1, %v3313_v23, -inf }
 0x3a0   : > { %v4212_v60 = vsel %vm7997_vm14, %v4211_v16, %v4207_v41  ;;  %v5725_v13 = vpop.f32.mrb[84].mxu0  ;;  %v5762_v48 = vpop.f32.mrb[82].mxu1  ;;  %3861 = vmax.xlane.f32.xlu0 %v3860_v3  ;;  %vm4697_vm14 = vcmask 1041409   ;;  %v3308_v41 = vadd.f32 %v3307_v35, %v7264_v39 }
 0x3a1   : > { %v4136_v5 = vsel %vm4135_vm15, %v4134_v27, %v4129_v12  ;;  %v3568_v6 = vpop.xlane.xlu1 %3567  ;;  %v3317_v24 = vpop.f32.mrb[85].mxu0  ;;  %v3857_v53 = vsel %vm2312_vm1, %v3443_v20, -inf  ;;  %v3458_v46 = vadd.f32 %v5762_v48, %v7272_v40 }
 0x3a2   : > { %v4141_v26 = vrot.slane %v3568_v6, %v7667_v22  ;;  %v3452_v2 = vpop.f32.mrb[83].mxu1  ;;  %3858 = vmax.xlane.f32.xlu1 %v3857_v53  ;;  %v3613_v28 = vpop.xlane.xlu0 %3612  ;;  %v3318_v44 = vadd.f32 %v3317_v24, %v7288_v54  ;;  %v3815_v6 = vsel %vm2312_vm1, %v3308_v41, -inf }
 0x3a3   : > { %v3453_v42 = vadd.f32 %v3452_v2, %v7264_v39  ;;  %v4216_v62 = vrot.slane %v3613_v28, %v7659_v38  ;;  %v3866_v56 = vsel %vm2312_vm1, %v3458_v46, -inf }
 0x3a4   : > { %v4143_v11 = vsel %vm4142_vm0, %v4141_v26, %v4136_v5  ;;  %v5728_v47 = vpop.f32.mrb[86].mxu0  ;;  %v5765_v59 = vpop.f32.mrb[84].mxu1  ;;  %3819 = vmax.xlane.f32.xlu0 %v3818_v21  ;;  %v3821_v3 = vsel %vm2312_vm1, %v3318_v44, -inf  ;;  %v3323_v5 = vadd.f32 %v5725_v13, %v7296_v15 }
 0x3a5   : > { %v4217_v8 = vsel %vm4135_vm15, %v4216_v62, %v4212_v60  ;;  %v3616_v12 = vpop.xlane.xlu1 %3615  ;;  %v3327_v49 = vpop.f32.mrb[87].mxu0  ;;  %v3863_v34 = vsel %vm2312_vm1, %v3453_v42, -inf }
 0x3a6   : > { %v4221_v40 = vrot.slane %v3616_v12, %v7667_v22  ;;  %v3462_v32 = vpop.f32.mrb[85].mxu1  ;;  %3864 = vmax.xlane.f32.xlu1 %v3863_v34  ;;  %v3328_v26 = vadd.f32 %v3327_v49, %v7304_v37  ;;  %v3824_v44 = vsel %vm2312_vm1, %v3323_v5, -inf }
 0x3a7   : > { %v3463_v23 = vadd.f32 %v3462_v32, %v7288_v54 }
 0x3a8   : > { %v4222_v31 = vsel %vm4142_vm0, %v4221_v40, %v4217_v8  ;;  %v7689_v16 = vpop.f32.mrb[88].mxu0  ;;  %v5768_v10 = vpop.f32.mrb[86].mxu1  ;;  %3867 = vmax.xlane.f32.xlu0 %v3866_v56  ;;  %v3827_v32 = vsel %vm2312_vm1, %v3328_v26, -inf }
 0x3a9   : > { %v7691_v4 = vsel %vm4697_vm14, %v4222_v31, %v4143_v11  ;;  %v3622_v20 = vpop.xlane.xlu1 %3621  ;;  %v3619_v27 = vpop.xlane.xlu0 %3618  ;;  %v3869_v46 = vsel %vm2312_vm1, %v3463_v23, -inf  ;;  %v3468_v11 = vadd.f32 %v5765_v59, %v7296_v15  ;;  %v3333_v15 = vadd.f32 %v5728_v47, %v7310_v17 }
 0x3aa   : > { %v4230_v60 = vrot.slane %v3622_v20, %v7466_v7  ;;  %v4226_v39 = vrot.slane %v3619_v27, %v7458_v14  ;;  %v3337_v35 = vpop.f32.mrb[89].mxu0  ;;  %v3472_v48 = vpop.f32.mrb[87].mxu1  ;;  %3822 = vmax.xlane.f32.xlu1 %v3821_v3  ;;  %vm8059_vm14 = vcmask 917312  }
 0x3ab   : > { %v3473_v49 = vadd.f32 %v3472_v48, %v7304_v37  ;;  %v3872_v20 = vsel %vm2312_vm1, %v3468_v11, -inf  ;;  %v3338_v37 = vadd.f32 %v3337_v35, %v7316_v58 }
 0x3ac   : > { %v4231_v24 = vsel %vm4044_vm2, %v4230_v60, %v4226_v39  ;;  %v7700_v53 = vpop.f32.mrb[90].mxu0  ;;  %v7702_v54 = vpop.f32.mrb[88].mxu1  ;;  %3816 = vmax.xlane.f32.xlu0 %v3815_v6 }
 0x3ad   : > { %v3670_v2 = vpop.xlane.xlu1 %3669  ;;  %v3667_v28 = vpop.xlane.xlu0 %3666  ;;  %v3875_v48 = vsel %vm2312_vm1, %v3473_v49, -inf }
 0x3ae   : > { %v4309_v42 = vrot.slane %v3670_v2, %v7466_v7  ;;  %v4305_v62 = vrot.slane %v3667_v28, %v7458_v14  ;;  %v3347_v13 = vpop.f32.mrb[91].mxu0  ;;  %v3482_v21 = vpop.f32.mrb[89].mxu1  ;;  %3870 = vmax.xlane.f32.xlu1 %v3869_v46  ;;  %v3478_v2 = vadd.f32 %v5768_v10, %v7310_v17  ;;  %v3343_v10 = vadd.f32 %v7689_v16, %v7322_v0 }
 0x3af   : > { %v3483_v46 = vadd.f32 %v3482_v21, %v7316_v58  ;;  %v3488_v16 = vadd.f32 %v7702_v54, %v7322_v0  ;;  %v3353_v0 = vadd.f32 %v7700_v53, %v7334_v33 }
 0x3b0   : > { %v4310_v8 = vsel %vm4044_vm2, %v4309_v42, %v4305_v62  ;;  %v7711_v12 = vpop.f32.mrb[92].mxu0  ;;  %3825 = vmax.xlane.f32.xlu0 %v3824_v44  ;;  %v3833_v44 = vsel %vm2312_vm1, %v3338_v37, -inf  ;;  %v3878_v21 = vsel %vm2312_vm1, %v3478_v2, -inf }
 0x3b1   : > { %v7714_v34 = vpop.f32.mrb[90].mxu1  ;;  %v3628_v40 = vpop.xlane.xlu1 %3627 }
 0x3b2   : > { %v4240_v41 = vrot.slane %v3628_v40, %v7488_v61  ;;  %v3625_v56 = vpop.xlane.xlu0 %3624  ;;  %v3357_v31 = vpop.f32.mrb[93].mxu0  ;;  %3828 = vmax.xlane.f32.xlu1 %v3827_v32  ;;  %v3498_v53 = vadd.f32 %v7714_v34, %v7334_v33  ;;  %v3363_v33 = vadd.f32 %v7711_v12, %v7346_v30 }
 0x3b3   : > { %v4235_v59 = vrot.slane %v3625_v56, %v7474_v18  ;;  %v3492_v23 = vpop.f32.mrb[91].mxu1 }
 0x3b4   : > { %v7721_v27 = vpop.f32.mrb[94].mxu0  ;;  %3873 = vmax.xlane.f32.xlu0 %v3872_v20 }
 0x3b5   : > { %v4236_v3 = vsel %vm4051_vm3, %v4235_v59, %v4231_v24  ;;  %v7725_v60 = vpop.f32.mrb[92].mxu1  ;;  %v3676_v39 = vpop.xlane.xlu1 %3675  ;;  %v3830_v24 = vsel %vm2312_vm1, %v3333_v15, -inf  ;;  %v3881_v15 = vsel %vm2312_vm1, %v3483_v46, -inf }
 0x3b6   : > { %v4319_v5 = vrot.slane %v3676_v39, %v7488_v61  ;;  %v3673_v47 = vpop.xlane.xlu0 %3672  ;;  %v7729_v6 = vpop.f32.mrb[95].mxu0  ;;  %3876 = vmax.xlane.f32.xlu1 %v3875_v48  ;;  %v4241_v26 = vsel %vm4058_vm4, %v4240_v41, %v4236_v3  ;;  %v3836_v39 = vsel %vm2312_vm1, %v3343_v10, -inf  ;;  %v3508_v12 = vadd.f32 %v7725_v60, %v7346_v30 }
 0x3b7   : > { %v4314_v28 = vrot.slane %v3673_v47, %v7474_v18  ;;  %v3502_v35 = vpop.f32.mrb[93].mxu1 }
 0x3b8   : > { %3831 = vmax.xlane.f32.xlu0 %v3830_v24  ;;  %v3884_v24 = vsel %vm2312_vm1, %v3488_v16, -inf }
 0x3b9   : > { %v4315_v42 = vsel %vm4051_vm3, %v4314_v28, %v4310_v8  ;;  %v7737_v62 = vpop.f32.mrb[94].mxu1  ;;  %v3634_v11 = vpop.xlane.xlu1 %3633  ;;  %v3348_v8 = vadd.f32 %v3347_v13, %v7328_v50  ;;  %v3493_v13 = vadd.f32 %v3492_v23, %v7328_v50  ;;  %v3358_v50 = vadd.f32 %v3357_v31, %v7340_v25 }
 0x3ba   : > { %v4250_v49 = vrot.slane %v3634_v11, %v7534_v9  ;;  %v3631_v40 = vpop.xlane.xlu0 %3630  ;;  %v7741_v32 = vpop.f32.mrb[95].mxu1  ;;  %3834 = vmax.xlane.f32.xlu1 %v3833_v44  ;;  %v4320_v17 = vsel %vm4058_vm4, %v4319_v5, %v4315_v42  ;;  %v3503_v31 = vadd.f32 %v3502_v35, %v7340_v25  ;;  %v3373_v25 = vadd.f32 %v7721_v27, %v7358_v29 }
 0x3bb   : > { %v4245_v58 = vrot.slane %v3631_v40, %v7514_v36  ;;  %v3839_v47 = vsel %vm2312_vm1, %v3348_v8, -inf  ;;  %v3887_v42 = vsel %vm2312_vm1, %v3493_v13, -inf  ;;  %v3848_v13 = vsel %vm2312_vm1, %v3363_v33, -inf }
 0x3bc   : > { %3879 = vmax.xlane.f32.xlu0 %v3878_v21  ;;  %v3845_v21 = vsel %vm2312_vm1, %v3358_v50, -inf  ;;  %v3368_v27 = vadd.f32 %v7729_v6, %v7352_v57  ;;  %v3513_v30 = vadd.f32 %v7741_v32, %v7352_v57  ;;  %v3518_v6 = vadd.f32 %v7737_v62, %v7358_v29 }
 0x3bd   : > { %v4246_v41 = vsel %vm4065_vm5, %v4245_v58, %v4241_v26  ;;  %v3682_v56 = vpop.xlane.xlu1 %3681 }
 0x3be   : > { %v4329_v59 = vrot.slane %v3682_v56, %v7534_v9  ;;  %v3679_v20 = vpop.xlane.xlu0 %3678  ;;  %3882 = vmax.xlane.f32.xlu1 %v3881_v15  ;;  %v4251_v37 = vsel %vm4072_vm6, %v4250_v49, %v4246_v41  ;;  %v3890_v15 = vsel %vm2312_vm1, %v3498_v53, -inf  ;;  %v3851_v50 = vsel %vm2312_vm1, %v3368_v27, -inf }
 0x3bf   : > { %v4324_v3 = vrot.slane %v3679_v20, %v7514_v36  ;;  %v3893_v20 = vsel %vm2312_vm1, %v3503_v31, -inf  ;;  %v3899_v32 = vsel %vm2312_vm1, %v3513_v30, -inf  ;;  %v3902_v29 = vsel %vm2312_vm1, %v3518_v6, -inf }
 0x3c0   : > { %3837 = vmax.xlane.f32.xlu0 %v3836_v39 }
 0x3c1   : > { %v4325_v48 = vsel %vm4065_vm5, %v4324_v3, %v4320_v17  ;;  %v3640_v5 = vpop.xlane.xlu1 %3639  ;;  %v3842_v17 = vsel %vm2312_vm1, %v3353_v0, -inf  ;;  %v3896_v0 = vsel %vm2312_vm1, %v3508_v12, -inf }
 0x3c2   : > { %v4260_v26 = vrot.slane %v3640_v5, %v7561_v63  ;;  %v3637_v2 = vpop.xlane.xlu0 %3636  ;;  %3840 = vmax.xlane.f32.xlu1 %v3839_v47  ;;  %v4330_v28 = vsel %vm4072_vm6, %v4329_v59, %v4325_v48  ;;  %v3854_v47 = vsel %vm2312_vm1, %v3373_v25, -inf  ;;  %vm8060_vm1 = vmmov %vm8059_vm14 }
 0x3c3   : > { %v4255_v54 = vrot.slane %v3637_v2, %v7548_v43 }
 0x3c4   : > { %3885 = vmax.xlane.f32.xlu0 %v3884_v24 }
 0x3c5   : > { %v4256_v23 = vsel %vm4079_vm7, %v4255_v54, %v4251_v37  ;;  %v3688_v46 = vpop.xlane.xlu1 %3687 }
 0x3c6   : > { %v4339_v11 = vrot.slane %v3688_v46, %v7561_v63  ;;  %v3685_v44 = vpop.xlane.xlu0 %3684  ;;  %3888 = vmax.xlane.f32.xlu1 %v3887_v42  ;;  %v4261_v49 = vsel %vm4086_vm8, %v4260_v26, %v4256_v23 }
 0x3c7   : > { %v4334_v40 = vrot.slane %v3685_v44, %v7548_v43 }
 0x3c8   : > { %3843 = vmax.xlane.f32.xlu0 %v3842_v17 }
 0x3c9   : > { %v4335_v10 = vsel %vm4079_vm7, %v4334_v40, %v4330_v28  ;;  %v3646_v58 = vpop.xlane.xlu1 %3645 }
 0x3ca   : > { %v4270_v8 = vrot.slane %v3646_v58, %v7590_v45  ;;  %v3643_v41 = vpop.xlane.xlu0 %3642  ;;  %3846 = vmax.xlane.f32.xlu1 %v3845_v21  ;;  %v4340_v56 = vsel %vm4086_vm8, %v4339_v11, %v4335_v10 }
 0x3cb   : > { %v4265_v34 = vrot.slane %v3643_v41, %v7576_v19 }
 0x3cc   : > { %3891 = vmax.xlane.f32.xlu0 %v3890_v15 }
 0x3cd   : > { %v4266_v35 = vsel %vm4093_vm9, %v4265_v34, %v4261_v49  ;;  %v3694_v59 = vpop.xlane.xlu1 %3693 }
 0x3ce   : > { %v4349_v37 = vrot.slane %v3694_v59, %v7590_v45  ;;  %v3691_v16 = vpop.xlane.xlu0 %3690  ;;  %3894 = vmax.xlane.f32.xlu1 %v3893_v20  ;;  %v4271_v3 = vsel %vm4100_vm10, %v4270_v8, %v4266_v35 }
 0x3cf   : > { %v4344_v39 = vrot.slane %v3691_v16, %v7576_v19 }
 0x3d0   : > { %3849 = vmax.xlane.f32.xlu0 %v3848_v13 }
 0x3d1   : > { %v4345_v48 = vsel %vm4093_vm9, %v4344_v39, %v4340_v56  ;;  %v3652_v5 = vpop.xlane.xlu1 %3651 }
 0x3d2   : > { %v4280_v26 = vrot.slane %v3652_v5, %v7618_v1  ;;  %v3649_v2 = vpop.xlane.xlu0 %3648  ;;  %3855 = vmax.xlane.f32.xlu1 %v3854_v47  ;;  %v4350_v28 = vsel %vm4100_vm10, %v4349_v37, %v4345_v48 }
 0x3d3   : > { %v4275_v60 = vrot.slane %v3649_v2, %v7604_v51 }
 0x3d4   : > { %3897 = vmax.xlane.f32.xlu0 %v3896_v0 }
 0x3d5   : > { %v4276_v54 = vsel %vm4107_vm11, %v4275_v60, %v4271_v3  ;;  %v3700_v24 = vpop.xlane.xlu1 %3699 }
 0x3d6   : > { %v4359_v23 = vrot.slane %v3700_v24, %v7618_v1  ;;  %v3697_v46 = vpop.xlane.xlu0 %3696  ;;  %3852 = vmax.xlane.f32.xlu1 %v3851_v50  ;;  %v4281_v42 = vsel %vm7998_vm12, %v4280_v26, %v4276_v54 }
 0x3d7   : > { %v4354_v57 = vrot.slane %v3697_v46, %v7604_v51 }
 0x3d8   : > { %3900 = vmax.xlane.f32.xlu0 %v3899_v32 }
 0x3d9   : > { %v4355_v11 = vsel %vm4107_vm11, %v4354_v57, %v4350_v28  ;;  %v3658_v44 = vpop.xlane.xlu1 %3657 }
 0x3da   : > { %v4290_v62 = vrot.slane %v3658_v44, %v7644_v52  ;;  %v3655_v49 = vpop.xlane.xlu0 %3654  ;;  %3903 = vmax.xlane.f32.xlu1 %v3902_v29  ;;  %v4360_v53 = vsel %vm7998_vm12, %v4359_v23, %v4355_v11  ;;  %vm4699_vm12 = vcmask 1042434  }
 0x3db   : > { %v4285_v40 = vrot.slane %v3655_v49, %v7632_v55 }
 0x3dd   : > { %v4286_v17 = vsel %vm4121_vm13, %v4285_v40, %v4281_v42  ;;  %v3706_v31 = vpop.xlane.xlu1 %3705 }
 0x3de   : > { %v4369_v10 = vrot.slane %v3706_v31, %v7644_v52  ;;  %v3703_v58 = vpop.xlane.xlu0 %3702  ;;  %v4291_v21 = vsel %vm8059_vm14, %v4290_v62, %v4286_v17  ;;  %vm4701_vm14 = vcmask 1043459  }
 0x3df   : > { %v4364_v8 = vrot.slane %v3703_v58, %v7632_v55 }
 0x3e1   : > { %v4365_v41 = vsel %vm4121_vm13, %v4364_v8, %v4360_v53  ;;  %v3664_v56 = vpop.xlane.xlu1 %3663 }
 0x3e2   : > { %v4300_v33 = vrot.slane %v3664_v56, %v7667_v22  ;;  %v3661_v34 = vpop.xlane.xlu0 %3660  ;;  %v4370_v15 = vsel %vm8060_vm1, %v4369_v10, %v4365_v41 }
 0x3e3   : > { %v4295_v25 = vrot.slane %v3661_v34, %v7659_v38 }
 0x3e5   : > { %v4296_v35 = vsel %vm4135_vm15, %v4295_v25, %v4291_v21  ;;  %v3712_v59 = vpop.xlane.xlu1 %3711 }
 0x3e6   : > { %v4301_v20 = vsel %vm4142_vm0, %v4300_v33, %v4296_v35  ;;  %v4379_v37 = vrot.slane %v3712_v59, %v7667_v22  ;;  %v3709_v16 = vpop.xlane.xlu0 %3708 }
 0x3e7   : > { %v4700_v3 = vsel %vm4699_vm12, %v4301_v20, %v7691_v4  ;;  %v4374_v12 = vrot.slane %v3709_v16, %v7659_v38  ;;  %vm8061_vm12 = vcmask 786112  }
 0x3e8   : > { %vm8062_vm1 = vmmov %vm8061_vm12 }
 0x3e9   : > { %v4375_v39 = vsel %vm4135_vm15, %v4374_v12, %v4370_v15  ;;  %v3718_v13 = vpop.xlane.xlu1 %3717 }
 0x3ea   : > { %v4380_v27 = vsel %vm4142_vm0, %v4379_v37, %v4375_v39  ;;  %v4388_v48 = vrot.slane %v3718_v13, %v7466_v7  ;;  %v3715_v5 = vpop.xlane.xlu0 %3714 }
 0x3eb   : > { %v7833_v47 = vsel %vm4701_vm14, %v4380_v27, %v4700_v3  ;;  %v4384_v26 = vrot.slane %v3715_v5, %v7458_v14  ;;  %vm8063_vm14 = vcmask 917312  }
 0x3ed   : > { %v4389_v2 = vsel %vm4044_vm2, %v4388_v48, %v4384_v26  ;;  %v3766_v28 = vpop.xlane.xlu1 %3765 }
 0x3ee   : > { %v4467_v4 = vrot.slane %v3766_v28, %v7466_v7  ;;  %v3763_v30 = vpop.xlane.xlu0 %3762 }
 0x3ef   : > { %v4463_v60 = vrot.slane %v3763_v30, %v7458_v14 }
 0x3f1   : > { %v4468_v0 = vsel %vm4044_vm2, %v4467_v4, %v4463_v60  ;;  %v3724_v6 = vpop.xlane.xlu1 %3723 }
 0x3f2   : > { %v4398_v54 = vrot.slane %v3724_v6, %v7488_v61  ;;  %v3721_v24 = vpop.xlane.xlu0 %3720 }
 0x3f3   : > { %v4393_v50 = vrot.slane %v3721_v24, %v7474_v18 }
 0x3f5   : > { %v4394_v23 = vsel %vm4051_vm3, %v4393_v50, %v4389_v2  ;;  %v3772_v46 = vpop.xlane.xlu1 %3771 }
 0x3f6   : > { %v4477_v42 = vrot.slane %v3772_v46, %v7488_v61  ;;  %v3769_v57 = vpop.xlane.xlu0 %3768  ;;  %v4399_v32 = vsel %vm4058_vm4, %v4398_v54, %v4394_v23 }
 0x3f7   : > { %v4472_v11 = vrot.slane %v3769_v57, %v7474_v18 }
 0x3f9   : > { %v4473_v44 = vsel %vm4051_vm3, %v4472_v11, %v4468_v0  ;;  %v3730_v29 = vpop.xlane.xlu1 %3729 }
 0x3fa   : > { %v3778_v62 = vpop.xlane.xlu0 %3777  ;;  %v4478_v49 = vsel %vm4058_vm4, %v4477_v42, %v4473_v44  ;;  %v4408_v58 = vrot.slane %v3730_v29, %v7534_v9 }
 0x3fb   : > { %v4487_v31 = vrot.slane %v3778_v62, %v7534_v9 }
 0x3fd   : > { %v3775_v53 = vpop.xlane.xlu1 %3774 }
 0x3fe   : > { %v4482_v40 = vrot.slane %v3775_v53, %v7514_v36  ;;  %v3727_v17 = vpop.xlane.xlu0 %3726 }
 0x3ff   : > { %v4403_v10 = vrot.slane %v3727_v17, %v7514_v36 }
 0x400   : > { %v4483_v21 = vsel %vm4065_vm5, %v4482_v40, %v4478_v49 }
 0x401   : > { %v4404_v8 = vsel %vm4065_vm5, %v4403_v10, %v4399_v32  ;;  %v3736_v41 = vpop.xlane.xlu1 %3735  ;;  %v4488_v56 = vsel %vm4072_vm6, %v4487_v31, %v4483_v21 }
 0x402   : > { %v3784_v33 = vpop.xlane.xlu0 %3783  ;;  %v4409_v34 = vsel %vm4072_vm6, %v4408_v58, %v4404_v8  ;;  %v4418_v37 = vrot.slane %v3736_v41, %v7561_v63 }
 0x403   : > { %v4497_v59 = vrot.slane %v3784_v33, %v7561_v63 }
 0x405   : > { %v3781_v15 = vpop.xlane.xlu1 %3780 }
 0x406   : > { %v4492_v25 = vrot.slane %v3781_v15, %v7548_v43  ;;  %v3733_v35 = vpop.xlane.xlu0 %3732 }
 0x407   : > { %v4413_v20 = vrot.slane %v3733_v35, %v7548_v43 }
 0x408   : > { %v4493_v16 = vsel %vm4079_vm7, %v4492_v25, %v4488_v56 }
 0x409   : > { %v4414_v3 = vsel %vm4079_vm7, %v4413_v20, %v4409_v34  ;;  %v3742_v12 = vpop.xlane.xlu1 %3741  ;;  %v4498_v39 = vsel %vm4086_vm8, %v4497_v59, %v4493_v16 }
 0x40a   : > { %v3790_v13 = vpop.xlane.xlu0 %3789  ;;  %v4419_v27 = vsel %vm4086_vm8, %v4418_v37, %v4414_v3  ;;  %v4428_v4 = vrot.slane %v3742_v12, %v7590_v45 }
 0x40b   : > { %v4507_v2 = vrot.slane %v3790_v13, %v7590_v45 }
 0x40d   : > { %v3787_v48 = vpop.xlane.xlu1 %3786 }
 0x40e   : > { %v4502_v5 = vrot.slane %v3787_v48, %v7576_v19  ;;  %v3739_v26 = vpop.xlane.xlu0 %3738 }
 0x40f   : > { %v4423_v28 = vrot.slane %v3739_v26, %v7576_v19 }
 0x410   : > { %v4503_v30 = vsel %vm4093_vm9, %v4502_v5, %v4498_v39 }
 0x411   : > { %v4424_v60 = vsel %vm4093_vm9, %v4423_v28, %v4419_v27  ;;  %v3748_v0 = vpop.xlane.xlu1 %3747  ;;  %v4508_v6 = vsel %vm4100_vm10, %v4507_v2, %v4503_v30 }
 0x412   : > { %v3796_v54 = vpop.xlane.xlu0 %3795  ;;  %v4429_v24 = vsel %vm4100_vm10, %v4428_v4, %v4424_v60  ;;  %v4438_v32 = vrot.slane %v3748_v0, %v7618_v1 }
 0x413   : > { %v4517_v42 = vrot.slane %v3796_v54, %v7618_v1 }
 0x415   : > { %v3793_v50 = vpop.xlane.xlu1 %3792 }
 0x416   : > { %v4512_v23 = vrot.slane %v3793_v50, %v7604_v51  ;;  %v3745_v46 = vpop.xlane.xlu0 %3744 }
 0x417   : > { %v4433_v57 = vrot.slane %v3745_v46, %v7604_v51 }
 0x418   : > { %v4513_v11 = vsel %vm4107_vm11, %v4512_v23, %v4508_v6 }
 0x419   : > { %v4434_v44 = vsel %vm4107_vm11, %v4433_v57, %v4429_v24  ;;  %v3754_v29 = vpop.xlane.xlu1 %3753  ;;  %v4518_v62 = vsel %vm8061_vm12, %v4517_v42, %v4513_v11  ;;  %vm8064_vm12 = vmmov %vm8063_vm14 }
 0x41a   : > { %v3802_v49 = vpop.xlane.xlu0 %3801  ;;  %v4439_v53 = vsel %vm8062_vm1, %v4438_v32, %v4434_v44  ;;  %v4448_v21 = vrot.slane %v3754_v29, %v7644_v52  ;;  %vm4703_vm1 = vcmask 1044484  }
 0x41b   : > { %v4527_v10 = vrot.slane %v3802_v49, %v7644_v52 }
 0x41d   : > { %v3799_v40 = vpop.xlane.xlu1 %3798 }
 0x41e   : > { %v4522_v17 = vrot.slane %v3799_v40, %v7632_v55  ;;  %v3751_v31 = vpop.xlane.xlu0 %3750 }
 0x41f   : > { %v4443_v58 = vrot.slane %v3751_v31, %v7632_v55 }
 0x420   : > { %v4523_v8 = vsel %vm4121_vm13, %v4522_v17, %v4518_v62 }
 0x421   : > { %v4444_v41 = vsel %vm4121_vm13, %v4443_v58, %v4439_v53  ;;  %v3760_v56 = vpop.xlane.xlu1 %3759  ;;  %v4528_v33 = vsel %vm8063_vm14, %v4527_v10, %v4523_v8  ;;  %vm4705_vm14 = vcmask 1045509  }
 0x422   : > { %v3808_v34 = vpop.xlane.xlu0 %3807  ;;  %v4449_v15 = vsel %vm8064_vm12, %v4448_v21, %v4444_v41  ;;  %v4458_v16 = vrot.slane %v3760_v56, %v7667_v22 }
 0x423   : > { %v4537_v20 = vrot.slane %v3808_v34, %v7667_v22 }
 0x425   : > { %v3805_v25 = vpop.xlane.xlu1 %3804 }
 0x426   : > { %v4532_v35 = vrot.slane %v3805_v25, %v7659_v38  ;;  %v3757_v59 = vpop.xlane.xlu0 %3756 }
 0x427   : > { %v4453_v37 = vrot.slane %v3757_v59, %v7659_v38 }
 0x428   : > { %v4533_v3 = vsel %vm4135_vm15, %v4532_v35, %v4528_v33 }
 0x429   : > { %v4538_v12 = vsel %vm4142_vm0, %v4537_v20, %v4533_v3  ;;  %v4454_v39 = vsel %vm4135_vm15, %v4453_v37, %v4449_v15 }
 0x42a   : > { %v4459_v13 = vsel %vm4142_vm0, %v4458_v16, %v4454_v39  ;;  %v3814_v27 = vpop.xlane.xlu0 %3813  ;;  %v3811_v48 = vpop.xlane.xlu1 %3810 }
 0x42b   : > { %v4704_v5 = vsel %vm4703_vm1, %v4459_v13, %v7833_v47  ;;  %v4546_v57 = vrot.slane %v3814_v27, %v7466_v7  ;;  %v4542_v32 = vrot.slane %v3811_v48, %v7458_v14 }
 0x42c   : > { %v7897_v26 = vsel %vm4705_vm14, %v4538_v12, %v4704_v5 }
 0x42d   : > { %v4547_v29 = vsel %vm4044_vm2, %v4546_v57, %v4542_v32 }
 0x42e   : > { %v3862_v2 = vpop.xlane.xlu0 %3861 }
 0x42f   : > { %v3859_v28 = vpop.xlane.xlu1 %3858  ;;  %v4625_v10 = vrot.slane %v3862_v2, %v7466_v7 }
 0x430   : > { %v4621_v58 = vrot.slane %v3859_v28, %v7458_v14 }
 0x432   : > { %v3820_v4 = vpop.xlane.xlu0 %3819  ;;  %v4626_v35 = vsel %vm4044_vm2, %v4625_v10, %v4621_v58  ;;  %vm8065_vm2 = vcmask 786112  }
 0x433   : > { %v3865_v30 = vpop.xlane.xlu1 %3864  ;;  %v4556_v53 = vrot.slane %v3820_v4, %v7488_v61 }
 0x434   : > { %v4630_v8 = vrot.slane %v3865_v30, %v7474_v18 }
 0x436   : > { %v3868_v60 = vpop.xlane.xlu0 %3867  ;;  %v4631_v59 = vsel %vm4051_vm3, %v4630_v8, %v4626_v35 }
 0x437   : > { %v3823_v0 = vpop.xlane.xlu1 %3822  ;;  %v4635_v56 = vrot.slane %v3868_v60, %v7488_v61 }
 0x438   : > { %v4561_v21 = vrot.slane %v3823_v0, %v7514_v36 }
 0x439   : > { %v4636_v61 = vsel %vm4058_vm4, %v4635_v56, %v4631_v59 }
 0x43a   : > { %v3817_v6 = vpop.xlane.xlu0 %3816 }
 0x43b   : > { %v3871_v54 = vpop.xlane.xlu1 %3870  ;;  %v4551_v11 = vrot.slane %v3817_v6, %v7474_v18 }
 0x43c   : > { %v4640_v15 = vrot.slane %v3871_v54, %v7514_v36 }
 0x43d   : > { %v4552_v49 = vsel %vm4051_vm3, %v4551_v11, %v4547_v29  ;;  %vm8066_vm3 = vmmov %vm8065_vm2 }
 0x43e   : > { %v3826_v24 = vpop.xlane.xlu0 %3825  ;;  %v4557_v17 = vsel %vm4058_vm4, %v4556_v53, %v4552_v49  ;;  %v4641_v16 = vsel %vm4065_vm5, %v4640_v15, %v4636_v61  ;;  %vm8067_vm4 = vmmov %vm8064_vm12 }
 0x43f   : > { %v3829_v50 = vpop.xlane.xlu1 %3828  ;;  %v4566_v41 = vrot.slane %v3826_v24, %v7534_v9  ;;  %v4562_v33 = vsel %vm4065_vm5, %v4561_v21, %v4557_v17  ;;  %vm4707_vm5 = vcmask 1046534  }
 0x440   : > { %v4571_v7 = vrot.slane %v3829_v50, %v7548_v43 }
 0x441   : > { %v4567_v18 = vsel %vm4072_vm6, %v4566_v41, %v4562_v33 }
 0x442   : > { %v3874_v23 = vpop.xlane.xlu0 %3873  ;;  %v4572_v12 = vsel %vm4079_vm7, %v4571_v7, %v4567_v18 }
 0x443   : > { %v3877_v46 = vpop.xlane.xlu1 %3876  ;;  %v4645_v14 = vrot.slane %v3874_v23, %v7534_v9 }
 0x444   : > { %v4650_v36 = vrot.slane %v3877_v46, %v7548_v43 }
 0x445   : > { %v4646_v39 = vsel %vm4072_vm6, %v4645_v14, %v4641_v16  ;;  %vm8068_vm6 = vmmov %vm8067_vm4 }
 0x446   : > { %v3832_v42 = vpop.xlane.xlu0 %3831  ;;  %v4651_v2 = vsel %vm4079_vm7, %v4650_v36, %v4646_v39  ;;  %vm4709_vm7 = vcmask 1047559  }
 0x447   : > { %v3835_v47 = vpop.xlane.xlu1 %3834  ;;  %v4576_v20 = vrot.slane %v3832_v42, %v7561_v63 }
 0x448   : > { %v4581_v9 = vrot.slane %v3835_v47, %v7576_v19 }
 0x449   : > { %v4577_v27 = vsel %vm4086_vm8, %v4576_v20, %v4572_v12 }
 0x44a   : > { %v3880_v44 = vpop.xlane.xlu0 %3879  ;;  %v4582_v43 = vsel %vm4093_vm9, %v4581_v9, %v4577_v27 }
 0x44b   : > { %v3883_v62 = vpop.xlane.xlu1 %3882  ;;  %v4655_v13 = vrot.slane %v3880_v44, %v7561_v63 }
 0x44c   : > { %v4660_v28 = vrot.slane %v3883_v62, %v7576_v19 }
 0x44d   : > { %v4656_v30 = vsel %vm4086_vm8, %v4655_v13, %v4651_v2 }
 0x44e   : > { %v3838_v40 = vpop.xlane.xlu0 %3837  ;;  %v4661_v24 = vsel %vm4093_vm9, %v4660_v28, %v4656_v30 }
 0x44f   : > { %v3841_v31 = vpop.xlane.xlu1 %3840  ;;  %v4586_v48 = vrot.slane %v3838_v40, %v7590_v45 }
 0x450   : > { %v4591_v60 = vrot.slane %v3841_v31, %v7604_v51 }
 0x451   : > { %v4587_v63 = vsel %vm4100_vm10, %v4586_v48, %v4582_v43 }
 0x452   : > { %v3886_v34 = vpop.xlane.xlu0 %3885  ;;  %v4592_v19 = vsel %vm4107_vm11, %v4591_v60, %v4587_v63 }
 0x453   : > { %v3889_v25 = vpop.xlane.xlu1 %3888  ;;  %v4665_v0 = vrot.slane %v3886_v34, %v7590_v45 }
 0x454   : > { %v4670_v50 = vrot.slane %v3889_v25, %v7604_v51 }
 0x455   : > { %v4666_v46 = vsel %vm4100_vm10, %v4665_v0, %v4661_v24 }
 0x456   : > { %v3844_v37 = vpop.xlane.xlu0 %3843  ;;  %v4671_v11 = vsel %vm4107_vm11, %v4670_v50, %v4666_v46 }
 0x457   : > { %v3847_v3 = vpop.xlane.xlu1 %3846  ;;  %v4596_v6 = vrot.slane %v3844_v37, %v7618_v1 }
 0x458   : > { %v4601_v42 = vrot.slane %v3847_v3, %v7632_v55 }
 0x459   : > { %v4597_v45 = vsel %vm8065_vm2, %v4596_v6, %v4592_v19 }
 0x45a   : > { %v3892_v5 = vpop.xlane.xlu0 %3891  ;;  %v4602_v29 = vsel %vm4121_vm13, %v4601_v42, %v4597_v45 }
 0x45b   : > { %v3895_v4 = vpop.xlane.xlu1 %3894  ;;  %v4675_v57 = vrot.slane %v3892_v5, %v7618_v1 }
 0x45c   : > { %v4680_v44 = vrot.slane %v3895_v4, %v7632_v55 }
 0x45d   : > { %v4676_v62 = vsel %vm8066_vm3, %v4675_v57, %v4671_v11 }
 0x45e   : > { %v3850_v54 = vpop.xlane.xlu0 %3849  ;;  %v4681_v10 = vsel %vm4121_vm13, %v4680_v44, %v4676_v62 }
 0x45f   : > { %v3856_v23 = vpop.xlane.xlu1 %3855  ;;  %v4606_v32 = vrot.slane %v3850_v54, %v7644_v52 }
 0x460   : > { %v4616_v40 = vrot.slane %v3856_v23, %v7667_v22 }
 0x461   : > { %v4607_v1 = vsel %vm8067_vm4, %v4606_v32, %v4602_v29 }
 0x462   : > { %v3898_v47 = vpop.xlane.xlu0 %3897 }
 0x463   : > { %v3853_v51 = vpop.xlane.xlu1 %3852  ;;  %v4685_v49 = vrot.slane %v3898_v47, %v7644_v52 }
 0x464   : > { %v4611_v53 = vrot.slane %v3853_v51, %v7659_v38 }
 0x465   : > { %v4686_v52 = vsel %vm8068_vm6, %v4685_v49, %v4681_v10 }
 0x466   : > { %v4612_v17 = vsel %vm4135_vm15, %v4611_v53, %v4607_v1  ;;  %v3901_v31 = vpop.xlane.xlu0 %3900 }
 0x467   : > { %v4617_v55 = vsel %vm4142_vm0, %v4616_v40, %v4612_v17  ;;  %v4690_v58 = vrot.slane %v3901_v31, %v7659_v38  ;;  %v3904_v21 = vpop.xlane.xlu1 %3903 }
 0x468   : > { %v4695_v8 = vrot.slane %v3904_v21, %v7667_v22  ;;  %v4708_v33 = vsel %vm4707_vm5, %v4617_v55, %v7897_v26 }
 0x469   : > { %v4691_v41 = vsel %vm4135_vm15, %v4690_v58, %v4686_v52 }
 0x46a   : > { %v4696_v56 = vsel %vm4142_vm0, %v4695_v8, %v4691_v41 }
 0x46b   : > { %v4710_v34 = vsel %vm4709_vm7, %v4696_v56, %v4708_v33 }
 0x46c   : > { %4712 = vst [vmem:[%s310_s26] sm:$0xff] %v4710_v34 }
 0x46d PF: > { %s16_s23 = sadd.s32 1, %s6063_s23   ;;  %s8069_s21 = smov %s6059_s22 }
 0x46e   : > { %p13_p5 = scmp.ge.s32.totalorder %s16_s23, 9   ;;  %s8070_s22 = smov %s8072_s24 }
 0x470   :  { %15 = sbr.rel (!%p13_p5) target bundleno = 2 (0x2), region = 77 }

// kernel: body.7
= control target key start
LH: loop header
LB: loop body
LE: loop exit
PB: predicated region body
PF: predicated region fallthrough
CT: control target
= control target key end

     0   :  { %v7730_v0 = vmov 0   ;;  %v7729_v9 = vlaneseq  ;;  %v7732_v46 = vmov 1   ;;  %v7736_v47 = vmov 3   ;;  %s7722_s1 = inlined_call_operand.vmem [shape: f32[1,8,32,4], index: 1, kind: input, shape index: {}]   ;;  %s7723_s0 = inlined_call_operand.vmem [shape: f32[8,3,64], index: 0, kind: input, shape index: {}]   ;;  %s7724_s2 = inlined_call_operand.vmem [shape: f32[64,32], index: 2, kind: input, shape index: {}]   ;;  %s7725_s3 = inlined_call_operand.vmem [shape: f32[64,1], index: 3, kind: input, shape index: {}]   ;;  %s7726_s5 = inlined_call_operand.vmem [shape: f32[128,1], index: 5, kind: input, shape index: {}]   ;;  %s7727_s4 = inlined_call_operand.vmem [shape: f32[128,64], index: 4, kind: input, shape index: {}]   ;;  %s7728_s6 = inlined_call_operand.vmem [shape: f32[1,8,128], index: 6, kind: output, shape index: {}]  }
   0x1   :  { %5586 = vset.pattern.permute.xlu1 %v7730_v0  ;;  %5585 = vset.pattern.permute.xlu0 %v7730_v0  ;;  %v5671_v1 = vld [vmem:[%s7722_s1 + $0x10] sm:$0xff]  ;;  %v5676_v2 = vld [vmem:[%s7722_s1] sm:$0xff]  ;;  %v5683_v3 = vld [vmem:[%s7722_s1 + $0x18] sm:$0xff]  ;;  %v7734_v48 = vmov 2   ;;  %vm983_vm0 = vcmask 261120   ;;  %vm2024_vm1 = vcmask 523264  }
   0x2   :  { %75 = vperm.xlu1 %5586, %v5671_v1   ;;  %65 = vperm.xlu0 %5585, %v5676_v2   ;;  %v5688_v4 = vld [vmem:[%s7722_s1 + $0x8] sm:$0xff]  ;;  %v5700_v6 = vld [vmem:[%s7722_s1 + $0x20] sm:$0xff]  ;;  %v5707_v7 = vld [vmem:[%s7722_s1 + $0x38] sm:$0xff]  ;;  %v5729_v12 = vshrl.u32 %v7729_v9, 7  ;;  %vm3756_vm2 = vcmask 130112   ;;  %vm3763_vm3 = vcmask 195712  }
   0x3   :  { %v5695_v5 = vld [vmem:[%s7722_s1 + $0x28] sm:$0xff]  ;;  %v5712_v8 = vld [vmem:[%s7722_s1 + $0x30] sm:$0xff]  ;;  %v5724_v11 = vld [vmem:[%s7722_s1 + $0x40] sm:$0xff]  ;;  %vm3770_vm4 = vcmask 261312   ;;  %vm3777_vm5 = vcmask 326912   ;;  %vm3784_vm6 = vcmask 392512  }
   0x4   :  { %v5719_v10 = vld [vmem:[%s7722_s1 + $0x48] sm:$0xff]  ;;  %7758 = vst [vmem:[#allocation2_spill] sm:$0xff] %v5729_v12  ;;  %v5734_v13 = vld [vmem:[%s7722_s1 + $0x58] sm:$0xff]  ;;  %v5739_v14 = vld [vmem:[%s7722_s1 + $0x50] sm:$0xff]  ;;  %v5744_v15 = vsub.s32 0, %v5729_v12  ;;  %vm3791_vm7 = vcmask 458112  }
   0x5   :  { %v5749_v16 = vld [vmem:[%s7722_s1 + $0x68] sm:$0xff]  ;;  %v5754_v17 = vld [vmem:[%s7722_s1 + $0x60] sm:$0xff]  ;;  %v5770_v20 = vld [vmem:[%s7722_s1 + $0x78] sm:$0xff]  ;;  %vm3798_vm8 = vcmask 523712   ;;  %vm3805_vm9 = vcmask 589312   ;;  %vm3812_vm10 = vcmask 654912  }
   0x6   :  { %80 = vperm.xlu1 %5586, %v5683_v3   ;;  %70 = vperm.xlu0 %5585, %v5688_v4   ;;  %v5759_v18 = vld [vmem:[%s7723_s0 + $0xc] sm:$0x7]  ;;  %v5775_v21 = vld [vmem:[%s7722_s1 + $0x70] sm:$0xff]  ;;  %v5787_v23 = vld [vmem:[%s7722_s1 + $0x80] sm:$0xff]  ;;  %vm3819_vm11 = vcmask 720512   ;;  %vm7756_vm12 = vcmask 786112  }
   0x7   :  { %v5763_v19 = vrot.slane %v5759_v18, %v5744_v15  ;;  %v5782_v22 = vld [vmem:[%s7722_s1 + $0x88] sm:$0xff]  ;;  %v5792_v24 = vld [vmem:[%s7723_s0 + $0x10] sm:$0x7]  ;;  %v5803_v26 = vld [vmem:[%s7722_s1 + $0x98] sm:$0xff]  ;;  %vm7757_vm13 = vcmask 851712   ;;  %vm7755_vm14 = vcmask 917312  }
   0x8   :  { %7759 = vst [vmem:[#allocation3_spill] sm:$0xff] %v5792_v24  ;;  %v5796_v25 = vrot.slane %v5792_v24, %v5744_v15  ;;  %v5808_v27 = vld [vmem:[%s7722_s1 + $0x90] sm:$0xff]  ;;  %v5815_v28 = vld [vmem:[%s7722_s1 + $0xa8] sm:$0xff]  ;;  %v5820_v29 = vld [vmem:[%s7722_s1 + $0xa0] sm:$0xff]  ;;  %vm3847_vm15 = vcmask 982912  }
   0x9   :  { %v5825_v30 = vld [vmem:[%s7723_s0 + $0x14] sm:$0x7]  ;;  %v5836_v32 = vld [vmem:[%s7722_s1 + $0xb8] sm:$0xff]  ;;  %v5848_v34 = vld [vmem:[%s7722_s1 + $0xc8] sm:$0xff] }
   0xa   :  { %90 = vperm.xlu1 %5586, %v5695_v5   ;;  %85 = vperm.xlu0 %5585, %v5700_v6   ;;  %7760 = vst [vmem:[#allocation4_spill] sm:$0xff] %v5796_v25  ;;  %7761 = vst [vmem:[#allocation5_spill] sm:$0xff] %v5825_v30  ;;  %v5829_v31 = vrot.slane %v5825_v30, %v5744_v15  ;;  %v5841_v33 = vld [vmem:[%s7722_s1 + $0xb0] sm:$0xff]  ;;  %v5853_v35 = vld [vmem:[%s7722_s1 + $0xc0] sm:$0xff] }
   0xb   :  { %v5858_v36 = vld [vmem:[%s7723_s0 + $0x18] sm:$0x7]  ;;  %v5874_v39 = vld [vmem:[%s7722_s1 + $0xd0] sm:$0xff]  ;;  %v5881_v40 = vld [vmem:[%s7722_s1 + $0xe8] sm:$0xff] }
   0xc   :  { %7762 = vst [vmem:[#allocation6_spill] sm:$0xff] %v5829_v31  ;;  %7763 = vst [vmem:[#allocation7_spill] sm:$0xff] %v5858_v36  ;;  %v5862_v37 = vrot.slane %v5858_v36, %v5744_v15  ;;  %v5869_v38 = vld [vmem:[%s7722_s1 + $0xd8] sm:$0xff]  ;;  %v5886_v41 = vld [vmem:[%s7722_s1 + $0xe0] sm:$0xff] }
   0xd   :  { %7765 = vst [vmem:[#allocation9_spill] sm:$0xff] %v5869_v38  ;;  %v30_v42 = vld [vmem:[%s7723_s0 + $0x1c] sm:$0x7]  ;;  %v5904_v45 = vld [vmem:[%s7722_s1 + $0xf0] sm:$0xff]  ;;  %v5956_v51 = vld [vmem:[%s7724_s2] sm:$0xff] }
   0xe   :  { %100 = vperm.xlu1 %5586, %v5707_v7   ;;  %95 = vperm.xlu0 %5585, %v5712_v8   ;;  %7764 = vst [vmem:[#allocation8_spill] sm:$0xff] %v5862_v37  ;;  %v5892_v43 = vrot.slane %v30_v42, %v5744_v15  ;;  %v5899_v44 = vld [vmem:[%s7722_s1 + $0xf8] sm:$0xff]  ;;  %7768 = vst [vmem:[#allocation12_spill] sm:$0xff] %v5904_v45 }
   0xf   :  { %7767 = vst [vmem:[#allocation11_spill] sm:$0xff] %v5899_v44  ;;  %4917 = vmatprep.mubr.msk.f32.mxu0 %vm983_vm0, %v5956_v51  ;;  %4937 = vmatprep.mubr.msk.f32.mxu1 %vm983_vm0, %v5956_v51 }
  0x10   :  { %7766 = vst [vmem:[#allocation10_spill] sm:$0xff] %v5892_v43 }
  0x12   :  { %110 = vperm.xlu1 %5586, %v5719_v10   ;;  %105 = vperm.xlu0 %5585, %v5724_v11  }
  0x16   :  { %120 = vperm.xlu1 %5586, %v5734_v13   ;;  %115 = vperm.xlu0 %5585, %v5739_v14  }
  0x1a   :  { %130 = vperm.xlu1 %5586, %v5749_v16   ;;  %125 = vperm.xlu0 %5585, %v5754_v17  }
  0x1e   :  { %140 = vperm.xlu1 %5586, %v5770_v20   ;;  %135 = vperm.xlu0 %5585, %v5775_v21  }
  0x22   :  { %150 = vperm.xlu1 %5586, %v5782_v22   ;;  %145 = vperm.xlu0 %5585, %v5787_v23  }
  0x26   :  { %160 = vperm.xlu1 %5586, %v5803_v26   ;;  %155 = vperm.xlu0 %5585, %v5808_v27  }
  0x2a   :  { %170 = vperm.xlu1 %5586, %v5815_v28   ;;  %165 = vperm.xlu0 %5585, %v5820_v29  }
  0x2e   :  { %180 = vperm.xlu1 %5586, %v5836_v32   ;;  %175 = vperm.xlu0 %5585, %v5841_v33  }
  0x32   :  { %190 = vperm.xlu1 %5586, %v5848_v34   ;;  %185 = vperm.xlu0 %5585, %v5853_v35  }
  0x36   :  { %200 = vperm.xlu1 %5586, %v5869_v38   ;;  %195 = vperm.xlu0 %5585, %v5874_v39  }
  0x3a   :  { %210 = vperm.xlu1 %5586, %v5881_v40   ;;  %205 = vperm.xlu0 %5585, %v5886_v41  }
  0x3e   :  { %220 = vperm.xlu1 %5586, %v5899_v44   ;;  %215 = vperm.xlu0 %5585, %v5904_v45  }
  0x42   :  { %5587 = vset.pattern.permute.xlu1 %v7732_v46  ;;  %5593 = vset.pattern.permute.xlu0 %v7736_v47 }
  0x43   :  { %292 = vperm.xlu1 %5587, %v5688_v4   ;;  %752 = vperm.xlu0 %5593, %v5700_v6  }
  0x47   :  { %296 = vperm.xlu1 %5587, %v5671_v1   ;;  %748 = vperm.xlu0 %5593, %v5683_v3  }
  0x4b   :  { %304 = vperm.xlu1 %5587, %v5700_v6   ;;  %764 = vperm.xlu0 %5593, %v5707_v7  }
  0x4f   :  { %5588 = vset.pattern.permute.xlu1 %v7734_v48  ;;  %5595 = vset.pattern.permute.xlu0 %v7732_v46 }
  0x50   :  { %512 = vperm.xlu1 %5588, %v5676_v2   ;;  %288 = vperm.xlu0 %5595, %v5676_v2  }
  0x54   :  { %528 = vperm.xlu1 %5588, %v5700_v6   ;;  %300 = vperm.xlu0 %5595, %v5683_v3  }
  0x58   :  { %532 = vperm.xlu1 %5588, %v5695_v5   ;;  %308 = vperm.xlu0 %5595, %v5695_v5  }
  0x5c   :  { %5589 = vset.pattern.permute.xlu1 %v7732_v46  ;;  %312 = vperm.xlu0 %5595, %v5712_v8  }
  0x5d   :  { %316 = vperm.xlu1 %5589, %v5707_v7  }
  0x60   :  { %324 = vperm.xlu0 %5595, %v5719_v10  }
  0x61   :  { %5590 = vset.pattern.permute.xlu1 %v7734_v48 }
  0x62   :  { %520 = vperm.xlu1 %5590, %v5671_v1  }
  0x64   :  { %332 = vperm.xlu0 %5595, %v5734_v13  }
  0x66   :  { %5591 = vset.pattern.permute.xlu1 %v7736_v47 }
  0x67   :  { %736 = vperm.xlu1 %5591, %v5676_v2  }
  0x68   :  { %5599 = vset.pattern.permute.xlu0 %v7734_v48 }
  0x69   :  { %516 = vperm.xlu0 %5599, %v5688_v4  }
  0x6b   :  { %740 = vperm.xlu1 %5591, %v5688_v4  }
  0x6d   :  { %524 = vperm.xlu0 %5599, %v5683_v3  }
  0x6f   :  { %5592 = vset.pattern.permute.xlu1 %v7734_v48 }
  0x70   :  { %540 = vperm.xlu1 %5592, %v5707_v7  }
  0x71   :  { %536 = vperm.xlu0 %5599, %v5712_v8  }
  0x74   :  { %5594 = vset.pattern.permute.xlu1 %v7736_v47 }
  0x75   :  { %756 = vperm.xlu1 %5594, %v5695_v5   ;;  %544 = vperm.xlu0 %5599, %v5724_v11  }
  0x79   :  { %744 = vperm.xlu1 %5594, %v5671_v1   ;;  %564 = vperm.xlu0 %5599, %v5749_v16  }
  0x7d   :  { %760 = vperm.xlu1 %5594, %v5712_v8   ;;  %552 = vperm.xlu0 %5599, %v5739_v14  }
  0x81   :  { %v5947_v49 = vpop.permute.xlu1 %75  ;;  %5596 = vset.pattern.permute.xlu1 %v7732_v46  ;;  %580 = vperm.xlu0 %5599, %v5782_v22   ;;  %v5951_v50 = vpop.permute.xlu0 %65 }
  0x82   :  { %320 = vperm.xlu1 %5596, %v5724_v11  }
  0x85   :  { %v5963_v52 = vpop.permute.xlu1 %80  ;;  %588 = vperm.xlu0 %5599, %v5803_v26   ;;  %v5966_v53 = vpop.permute.xlu0 %70 }
  0x86   :  { %336 = vperm.xlu1 %5596, %v5754_v17  }
  0x89   :  { %v5969_v54 = vpop.permute.xlu1 %90  ;;  %600 = vperm.xlu0 %5599, %v5841_v33   ;;  %v5972_v55 = vpop.permute.xlu0 %85 }
  0x8a   :  { %340 = vperm.xlu1 %5596, %v5749_v16  }
  0x8d   :  { %v5975_v56 = vpop.permute.xlu1 %100  ;;  %5609 = vset.pattern.permute.xlu0 %v7736_v47  ;;  %v5978_v57 = vpop.permute.xlu0 %95 }
  0x8e   :  { %5597 = vset.pattern.permute.xlu1 %v7734_v48  ;;  %772 = vperm.xlu0 %5609, %v5719_v10  }
  0x8f   :  { %548 = vperm.xlu1 %5597, %v5719_v10  }
  0x91   :  { %v5983_v58 = vpop.permute.xlu1 %110  ;;  %v5985_v59 = vpop.permute.xlu0 %105 }
  0x92   :  { %7769 = vst [vmem:[#allocation13_spill] sm:$0xff] %v5983_v58  ;;  %7770 = vst [vmem:[#allocation14_spill] sm:$0xff] %v5985_v59  ;;  %784 = vperm.xlu0 %5609, %v5754_v17  }
  0x93   :  { %560 = vperm.xlu1 %5597, %v5754_v17  }
  0x95   :  { %v5989_v60 = vpop.permute.xlu1 %120  ;;  %v5991_v61 = vpop.permute.xlu0 %115 }
  0x96   :  { %7771 = vst [vmem:[#allocation15_spill] sm:$0xff] %v5989_v60  ;;  %7772 = vst [vmem:[#allocation16_spill] sm:$0xff] %v5991_v61  ;;  %776 = vperm.xlu0 %5609, %v5739_v14  }
  0x97   :  { %5598 = vset.pattern.permute.xlu1 %v7732_v46 }
  0x98   :  { %328 = vperm.xlu1 %5598, %v5739_v14  }
  0x99   :  { %v5996_v62 = vpop.permute.xlu1 %130  ;;  %v5998_v63 = vpop.permute.xlu0 %125 }
  0x9a   :  { %792 = vperm.xlu0 %5609, %v5775_v21  }
  0x9c   :  { %344 = vperm.xlu1 %5598, %v5775_v21  }
  0x9d   :  { %v6002_v1 = vpop.permute.xlu1 %140  ;;  %v6004_v2 = vpop.permute.xlu0 %135 }
  0x9e   :  { %7773 = vst [vmem:[#allocation17_spill] sm:$0xff] %v6002_v1  ;;  %7774 = vst [vmem:[#allocation18_spill] sm:$0xff] %v6004_v2  ;;  %816 = vperm.xlu0 %5609, %v5820_v29  }
  0xa0   :  { %348 = vperm.xlu1 %5598, %v5770_v20  }
  0xa1   :  { %v6008_v3 = vpop.permute.xlu1 %150  ;;  %v6010_v4 = vpop.permute.xlu0 %145 }
  0xa2   :  { %7775 = vst [vmem:[#allocation19_spill] sm:$0xff] %v6008_v3  ;;  %7776 = vst [vmem:[#allocation20_spill] sm:$0xff] %v6010_v4  ;;  %812 = vperm.xlu0 %5609, %v5803_v26  }
  0xa4   :  { %5600 = vset.pattern.permute.xlu1 %v7734_v48 }
  0xa5   :  { %v6014_v5 = vpop.permute.xlu1 %160  ;;  %556 = vperm.xlu1 %5600, %v5734_v13   ;;  %v6017_v6 = vpop.permute.xlu0 %155 }
  0xa6   :  { %7777 = vst [vmem:[#allocation21_spill] sm:$0xff] %v6014_v5  ;;  %7778 = vst [vmem:[#allocation22_spill] sm:$0xff] %v6017_v6  ;;  %828 = vperm.xlu0 %5609, %v5836_v32  }
  0xa9   :  { %v6020_v7 = vpop.permute.xlu1 %170  ;;  %5601 = vset.pattern.permute.xlu1 %v7736_v47  ;;  %v6023_v8 = vpop.permute.xlu0 %165 }
  0xaa   :  { %7779 = vst [vmem:[#allocation23_spill] sm:$0xff] %v6020_v7  ;;  %7780 = vst [vmem:[#allocation24_spill] sm:$0xff] %v6023_v8  ;;  %768 = vperm.xlu1 %5601, %v5724_v11   ;;  %5612 = vset.pattern.permute.xlu0 %v7732_v46  ;;  %v7795_v7 = vmov 0  }
  0xab   :  { %352 = vperm.xlu0 %5612, %v5787_v23  }
  0xad   :  { %v6028_v10 = vpop.permute.xlu1 %180  ;;  %v6030_v14 = vpop.permute.xlu0 %175 }
  0xae   :  { %7781 = vst [vmem:[#allocation25_spill] sm:$0xff] %v6028_v10  ;;  %7782 = vst [vmem:[#allocation26_spill] sm:$0xff] %v6030_v14  ;;  %5602 = vset.pattern.permute.xlu1 %v7734_v48  ;;  %v6100_v10 = vsub.s32 2, %v5729_v12 }
  0xaf   :  { %568 = vperm.xlu1 %5602, %v5775_v21   ;;  %372 = vperm.xlu0 %5612, %v5815_v28  }
  0xb1   :  { %v6035_v17 = vpop.permute.xlu1 %190  ;;  %v6037_v42 = vpop.permute.xlu0 %185 }
  0xb2   :  { %7783 = vst [vmem:[#allocation27_spill] sm:$0xff] %v6035_v17  ;;  %7784 = vst [vmem:[#allocation28_spill] sm:$0xff] %v6037_v42  ;;  %v7793_v42 = vmov 3   ;;  %v23_v17 = vld [vmem:[%s7723_s0] sm:$0x7] }
  0xb3   :  { %572 = vperm.xlu1 %5602, %v5770_v20   ;;  %360 = vperm.xlu0 %5612, %v5808_v27   ;;  %v226_v6 = vrot.slane %v23_v17, %v5744_v15  ;;  %v642_v25 = vrot.slane %v23_v17, %v6100_v10 }
  0xb5   :  { %v6041_v11 = vpop.permute.xlu1 %200  ;;  %v6043_v9 = vpop.permute.xlu0 %195  ;;  %v255_v30 = vmul.f32 %v226_v6, %v5951_v50 }
  0xb6   :  { %7785 = vst [vmem:[#allocation29_spill] sm:$0xff] %v6041_v11  ;;  %7786 = vst [vmem:[#allocation30_spill] sm:$0xff] %v6043_v9  ;;  %v6087_v11 = vsub.s32 1, %v5729_v12  ;;  %v24_v12 = vld [vmem:[%s7723_s0 + $0x4] sm:$0x7] }
  0xb7   :  { %5603 = vset.pattern.permute.xlu1 %v7736_v47  ;;  %380 = vperm.xlu0 %5612, %v5836_v32   ;;  %v230_v59 = vrot.slane %v24_v12, %v5744_v15 }
  0xb8   :  { %788 = vperm.xlu1 %5603, %v5749_v16   ;;  %v7791_v16 = vmov 2   ;;  %v418_v36 = vrot.slane %v23_v17, %v6087_v11  ;;  %v6122_v24 = vrot.slane %v24_v12, %v6087_v11  ;;  %v256_v17 = vmul.f32 %v226_v6, %v5966_v53 }
  0xb9   :  { %v6048_v21 = vpop.permute.xlu1 %210  ;;  %v6050_v0 = vpop.permute.xlu0 %205 }
  0xba   :  { %7787 = vst [vmem:[#allocation31_spill] sm:$0xff] %v6048_v21  ;;  %7788 = vst [vmem:[#allocation32_spill] sm:$0xff] %v6050_v0  ;;  %v7792_v21 = vmov 1  }
  0xbb   :  { %388 = vperm.xlu0 %5612, %v5848_v34  }
  0xbc   :  { %780 = vperm.xlu1 %5603, %v5734_v13  }
  0xbd   :  { %v6054_v46 = vpop.permute.xlu1 %220  ;;  %v6056_v48 = vpop.permute.xlu0 %215 }
  0xbe   :  { %7789 = vst [vmem:[#allocation33_spill] sm:$0xff] %v6054_v46  ;;  %7790 = vst [vmem:[#allocation34_spill] sm:$0xff] %v6056_v48 }
  0xbf   :  { %396 = vperm.xlu0 %5612, %v5869_v38  }
  0xc0   :  { %796 = vperm.xlu1 %5603, %v5770_v20  }
  0xc2   :  { %v293_v47 = vpop.permute.xlu1 %292  ;;  %v6060_v9 = vpop.permute.xlu0 %752 }
  0xc3   :  { %5616 = vset.pattern.permute.xlu0 %v7791_v16  ;;  %v448_v50 = vmul.f32 %v418_v36, %v293_v47 }
  0xc4   :  { %5604 = vset.pattern.permute.xlu1 %v7792_v21  ;;  %608 = vperm.xlu0 %5616, %v5853_v35  }
  0xc5   :  { %356 = vperm.xlu1 %5604, %v5782_v22  }
  0xc6   :  { %v6066_v13 = vpop.permute.xlu1 %296  ;;  %v6068_v46 = vpop.permute.xlu0 %748 }
  0xc8   :  { %628 = vperm.xlu0 %5616, %v5881_v40  }
  0xc9   :  { %368 = vperm.xlu1 %5604, %v5820_v29  }
  0xca   :  { %v305_v20 = vpop.permute.xlu1 %304  ;;  %v6072_v48 = vpop.permute.xlu0 %764 }
  0xcb   :  { %v451_v1 = vmul.f32 %v6122_v24, %v305_v20  ;;  %v942_v20 = vld [vmem:[%s7725_s3 + $0x38] sm:$0xff] }
  0xcc   :  { %616 = vperm.xlu0 %5616, %v5874_v39  }
  0xcd   :  { %5605 = vset.pattern.permute.xlu1 %v7791_v16 }
  0xce   :  { %576 = vperm.xlu1 %5605, %v5787_v23  }
  0xcf   :  { %v513_v43 = vpop.permute.xlu1 %512  ;;  %v289_v0 = vpop.permute.xlu0 %288 }
  0xd0   :  { %5619 = vset.pattern.permute.xlu0 %v7793_v42  ;;  %v447_v61 = vmul.f32 %v418_v36, %v289_v0  ;;  %v938_v0 = vld [vmem:[%s7725_s3 + $0x18] sm:$0xff]  ;;  %v671_v44 = vmul.f32 %v642_v25, %v513_v43 }
  0xd1   :  { %836 = vperm.xlu0 %5619, %v5848_v34  }
  0xd2   :  { %592 = vperm.xlu1 %5605, %v5820_v29  }
  0xd3   :  { %v529_v14 = vpop.permute.xlu1 %528  ;;  %v301_v5 = vpop.permute.xlu0 %300 }
  0xd5   :  { %848 = vperm.xlu0 %5619, %v5886_v41  }
  0xd6   :  { %596 = vperm.xlu1 %5605, %v5815_v28  }
  0xd7   :  { %v6082_v8 = vpop.permute.xlu1 %532  ;;  %v309_v3 = vpop.permute.xlu0 %308 }
  0xd9   :  { %840 = vperm.xlu0 %5619, %v5874_v39  }
  0xda   :  { %5606 = vset.pattern.permute.xlu1 %v7792_v21 }
  0xdb   :  { %364 = vperm.xlu1 %5606, %v5803_v26   ;;  %v6090_v37 = vpop.permute.xlu0 %312  ;;  %v935_v26 = vld [vmem:[%s7725_s3] sm:$0xff] }
  0xdc   :  { %v6092_v29 = vpop.permute.xlu1 %316 }
  0xdd   :  { %856 = vperm.xlu0 %5619, %v5904_v45   ;;  %v452_v45 = vmul.f32 %v6122_v24, %v309_v3 }
  0xdf   :  { %376 = vperm.xlu1 %5606, %v5841_v33   ;;  %v6103_v60 = vpop.permute.xlu0 %324 }
  0xe0   :  { %7794 = vst [vmem:[#allocation35_spill] sm:$0xff] %v6103_v60 }
  0xe1   :  { %v521_v31 = vpop.permute.xlu1 %520  ;;  %5622 = vset.pattern.permute.xlu0 %v7795_v7  ;;  %v6126_v7 = vrot.slane %v24_v12, %v6100_v10 }
  0xe2   :  { %945 = vperm.xlu0 %5622, %v935_v26   ;;  %v479_v26 = vadd.f32 %v447_v61, %v255_v30  ;;  %v480_v30 = vadd.f32 %v448_v50, %v256_v17 }
  0xe3   :  { %5607 = vset.pattern.permute.xlu1 %v7791_v16  ;;  %v6116_v4 = vpop.permute.xlu0 %332  ;;  %v675_v43 = vmul.f32 %v6126_v7, %v529_v14 }
  0xe4   :  { %7796 = vst [vmem:[#allocation36_spill] sm:$0xff] %v6116_v4  ;;  %584 = vperm.xlu1 %5607, %v5808_v27   ;;  %v940_v4 = vld [vmem:[%s7725_s3 + $0x28] sm:$0xff]  ;;  %v703_v61 = vadd.f32 %v671_v44, %v479_v26  ;;  %v260_v44 = vmul.f32 %v230_v59, %v5969_v54  ;;  %v450_v26 = vmul.f32 %v418_v36, %v301_v5 }
  0xe6   :  { %v737_v38 = vpop.permute.xlu1 %736  ;;  %960 = vperm.xlu0 %5622, %v938_v0   ;;  %v259_v0 = vmul.f32 %v230_v59, %v5972_v55  ;;  %v258_v55 = vmul.f32 %v226_v6, %v5963_v52  ;;  %v454_v52 = vmul.f32 %v6122_v24, %v6092_v29  ;;  %v1931_v29 = vld [vmem:[%s7726_s5 + $0x18] sm:$0xff] }
  0xe7   :  { %v863_v60 = vadd.f32 %v737_v38, %v703_v61 }
  0xe8   :  { %5608 = vset.pattern.permute.xlu1 %v7793_v42  ;;  %v517_v47 = vpop.permute.xlu0 %516  ;;  %v483_v2 = vadd.f32 %v451_v1, %v259_v0  ;;  %v1929_v1 = vld [vmem:[%s7726_s5 + $0x8] sm:$0xff]  ;;  %v482_v5 = vadd.f32 %v450_v26, %v258_v55 }
  0xe9   :  { %v672_v58 = vmul.f32 %v642_v25, %v517_v47  ;;  %800 = vperm.xlu1 %5608, %v5787_v23   ;;  %v895_v3 = vmax.f32 %v863_v60, 0.0  ;;  %v449_v47 = vmul.f32 %v418_v36, %v6066_v13  ;;  %v257_v60 = vmul.f32 %v226_v6, %v5947_v49 }
  0xea   :  { %v741_v53 = vpop.permute.xlu1 %740  ;;  %970 = vperm.xlu0 %5622, %v940_v4   ;;  %v707_v14 = vadd.f32 %v675_v43, %v483_v2  ;;  %v484_v4 = vadd.f32 %v452_v45, %v260_v44  ;;  %v673_v2 = vmul.f32 %v642_v25, %v521_v31  ;;  %v262_v36 = vmul.f32 %v230_v59, %v5975_v56 }
  0xeb   :  { %v704_v12 = vadd.f32 %v672_v58, %v480_v30  ;;  %v481_v0 = vadd.f32 %v449_v47, %v257_v60 }
  0xec   :  { %v525_v50 = vpop.permute.xlu0 %524  ;;  %v867_v30 = vadd.f32 %v6060_v9, %v707_v14  ;;  %v453_v9 = vmul.f32 %v6122_v24, %v6090_v37  ;;  %v1933_v24 = vld [vmem:[%s7726_s5 + $0x28] sm:$0xff] }
  0xed   :  { %v864_v23 = vadd.f32 %v741_v53, %v704_v12  ;;  %804 = vperm.xlu1 %5608, %v5782_v22   ;;  %v674_v58 = vmul.f32 %v642_v25, %v525_v50  ;;  %v676_v22 = vmul.f32 %v6126_v7, %v6082_v8  ;;  %v486_v25 = vadd.f32 %v454_v52, %v262_v36  ;;  %v6225_v36 = vld [vmem:[%s7724_s2 + $0x20] sm:$0xff] }
  0xee   :  { %980 = vperm.xlu0 %5622, %v942_v20   ;;  %v705_v56 = vadd.f32 %v673_v2, %v481_v0  ;;  %v899_v6 = vmax.f32 %v867_v30, 0.0  ;;  %v267_v2 = vmul.f32 %v5763_v19, %v5998_v63 }
  0xef   :  { %v896_v38 = vmax.f32 %v864_v23, 0.0  ;;  %v541_v17 = vpop.permute.xlu1 %540  ;;  %v706_v13 = vadd.f32 %v674_v58, %v482_v5  ;;  %v708_v8 = vadd.f32 %v676_v22, %v484_v4  ;;  %v6201_v5 = vld [vmem:[%s7724_s2 + $0x10] sm:$0xff]  ;;  %v1939_v22 = vld [vmem:[%s7726_s5 + $0x58] sm:$0xff] }
  0xf0   :  { %v537_v54 = vpop.permute.xlu0 %536  ;;  %v678_v61 = vmul.f32 %v6126_v7, %v541_v17 }
  0xf1   :  { %5610 = vset.pattern.permute.xlu1 %v7791_v16  ;;  %v5389_v45 = vpack.c.bf16 %v896_v38, %v895_v3  ;;  %v866_v53 = vadd.f32 %v6068_v46, %v706_v13  ;;  %v677_v20 = vmul.f32 %v6126_v7, %v537_v54  ;;  %v1941_v13 = vld [vmem:[%s7726_s5 + $0x68] sm:$0xff] }
  0xf2   :  { %604 = vperm.xlu1 %5610, %v5836_v32   ;;  %1951 = vperm.xlu0 %5622, %v1929_v1   ;;  %v261_v32 = vmul.f32 %v230_v59, %v5978_v57  ;;  %v710_v12 = vadd.f32 %v678_v61, %v486_v25  ;;  %v6190_v1 = vld [vmem:[%s7724_s2 + $0x8] sm:$0xff]  ;;  %v6234_v61 = vrot.slane %v5759_v18, %v6100_v10  ;;  %v1943_v25 = vld [vmem:[%s7726_s5 + $0x78] sm:$0xff] }
  0xf3   :  { %5390 = vmatprep.subr.bf16.mxu0 %v5389_v45  ;;  %v898_v7 = vmax.f32 %v866_v53, 0.0 }
  0xf4   :  { %v757_v43 = vpop.permute.xlu1 %756  ;;  %v6162_v49 = vpop.permute.xlu0 %544  ;;  %5392 = vmatpush3.bf16.msra.mxu0 %v5389_v45  ;;  %v485_v57 = vadd.f32 %v453_v9, %v261_v32  ;;  %v870_v23 = vadd.f32 %v6072_v48, %v710_v12  ;;  %v6215_v45 = vld [vmem:[%s7724_s2 + $0x18] sm:$0xff]  ;;  %v6256_v9 = vld [vmem:[%s7724_s2 + $0x30] sm:$0xff] }
  0xf5   :  { %v868_v31 = vadd.f32 %v757_v43, %v708_v8  ;;  %v6242_v8 = vld [vmem:[%s7724_s2 + $0x28] sm:$0xff] }
  0xf6   :  { %5611 = vset.pattern.permute.xlu1 %v7793_v42  ;;  %1961 = vperm.xlu0 %5622, %v1931_v29   ;;  %v709_v46 = vadd.f32 %v677_v20, %v485_v57  ;;  %v902_v48 = vmax.f32 %v870_v23, 0.0  ;;  %v7797_v23 = vld [vmem:[#allocation18_spill] sm:$0xff] }
  0xf7   :  { %v900_v50 = vmax.f32 %v868_v31, 0.0  ;;  %820 = vperm.xlu1 %5611, %v5815_v28   ;;  %v1935_v28 = vld [vmem:[%s7726_s5 + $0x38] sm:$0xff] }
  0xf8   :  { %v745_v37 = vpop.permute.xlu1 %744  ;;  %v565_v44 = vpop.permute.xlu0 %564 }
  0xf9   :  { %v865_v59 = vadd.f32 %v745_v37, %v705_v56  ;;  %v5397_v26 = vpack.c.bf16 %v900_v50, %v899_v6  ;;  %v684_v31 = vmul.f32 %v6234_v61, %v565_v44  ;;  %v25_v44 = vld [vmem:[%s7723_s0 + $0x8] sm:$0x7] }
  0xfa   :  { %1971 = vperm.xlu0 %5622, %v1933_v24  }
  0xfb   :  { %v897_v55 = vmax.f32 %v865_v59, 0.0  ;;  %808 = vperm.xlu1 %5611, %v5808_v27   ;;  %5398 = vmatprep.subr.bf16.mxu1 %v5397_v26  ;;  %v1937_v27 = vld [vmem:[%s7726_s5 + $0x48] sm:$0xff]  ;;  %v6307_v59 = vrot.slane %v25_v44, %v6087_v11 }
  0xfc   :  { %v761_v14 = vpop.permute.xlu1 %760  ;;  %v6179_v4 = vpop.permute.xlu0 %552  ;;  %5400 = vmatpush3.bf16.msra.mxu1 %v5397_v26 }
  0xfd   :  { %v869_v3 = vadd.f32 %v761_v14, %v709_v46  ;;  %v5393_v38 = vpack.c.bf16 %v898_v7, %v897_v55  ;;  %v269_v55 = vmul.f32 %v5763_v19, %v7797_v23  ;;  %v6321_v14 = vrot.slane %v25_v44, %v6100_v10 }
  0xfe   :  { %1981 = vperm.xlu0 %5622, %v1935_v28   ;;  %v7798_v28 = vld [vmem:[#allocation35_spill] sm:$0xff] }
  0xff   :  { %v901_v58 = vmax.f32 %v869_v3, 0.0  ;;  %824 = vperm.xlu1 %5611, %v5841_v33   ;;  %5394 = vmatprep.subr.bf16.mxu0 %v5393_v38  ;;  %v6196_v33 = vrot.slane %v5759_v18, %v6087_v11  ;;  %v268_v18 = vmul.f32 %v5763_v19, %v5996_v62  ;;  %v6270_v62 = vld [vmem:[%s7724_s2 + $0x38] sm:$0xff] }
 0x100   :  { %v6185_v17 = vpop.permute.xlu0 %580  ;;  %5396 = vmatpush3.bf16.msra.mxu0 %v5393_v38  ;;  %v7799_v38 = vld [vmem:[#allocation12_spill] sm:$0xff] }
 0x101   :  { %v6192_v47 = vpop.permute.xlu1 %320  ;;  %v5401_v54 = vpack.c.bf16 %v902_v48, %v901_v58  ;;  %v7801_v48 = vld [vmem:[#allocation17_spill] sm:$0xff] }
 0x102   :  { %1991 = vperm.xlu0 %5622, %v1937_v27   ;;  %v270_v27 = vmul.f32 %v5763_v19, %v7801_v48 }
 0x103   :  { %5613 = vset.pattern.permute.xlu1 %v7792_v21  ;;  %4918 = vmatmul.mubr.msk.f32.vlgmr.msra.gmra.mrb[0].mxu0 %vm983_vm0, %v6190_v1 }
 0x104   :  { %5402 = vmatprep.subr.bf16.mxu1 %v5401_v54  ;;  %384 = vperm.xlu1 %5613, %v5853_v35   ;;  %v6210_v52 = vpop.permute.xlu0 %588 }
 0x105   :  { %5404 = vmatpush3.bf16.msra.mxu1 %v5401_v54  ;;  %v337_v60 = vpop.permute.xlu1 %336  ;;  %4920 = vmatprep.mubr.msk.f32.mxu0 %vm983_vm0, %v6201_v5  ;;  %v455_v54 = vmul.f32 %v6307_v59, %v6192_v47  ;;  %v679_v47 = vmul.f32 %v6321_v14, %v6162_v49  ;;  %v7808_v49 = vld [vmem:[#allocation5_spill] sm:$0xff] }
 0x106   :  { %v459_v30 = vmul.f32 %v6196_v33, %v337_v60  ;;  %2001 = vperm.xlu0 %5622, %v1939_v22  }
 0x107   :  { %4921 = vmatmul.mubr.msk.f32.gmra.mrb[2].mxu0 %vm983_vm0, %v6215_v45 }
 0x108   :  { %v491_v63 = vadd.f32 %v459_v30, %v267_v2  ;;  %4938 = vmatmul.mubr.msk.f32.vlgmr.msra.gmra.mrb[0].mxu1 %vm983_vm0, %v6190_v1  ;;  %400 = vperm.xlu1 %5613, %v5886_v41   ;;  %v6244_v29 = vpop.permute.xlu0 %600  ;;  %v7802_v30 = vld [vmem:[#allocation14_spill] sm:$0xff] }
 0x109   :  { %v341_v0 = vpop.permute.xlu1 %340  ;;  %4923 = vmatprep.mubr.msk.f32.mxu0 %vm983_vm0, %v6225_v36  ;;  %4940 = vmatprep.mubr.msk.f32.mxu1 %vm983_vm0, %v6201_v5 }
 0x10a   :  { %v460_v43 = vmul.f32 %v6196_v33, %v341_v0  ;;  %2011 = vperm.xlu0 %5622, %v1941_v13  }
 0x10b   :  { %4924 = vmatmul.mubr.msk.f32.gmra.mrb[4].mxu0 %vm983_vm0, %v6242_v8 }
 0x10c   :  { %v492_v32 = vadd.f32 %v460_v43, %v268_v18  ;;  %4941 = vmatmul.mubr.msk.f32.gmra.mrb[2].mxu1 %vm983_vm0, %v6215_v45  ;;  %404 = vperm.xlu1 %5613, %v5881_v40   ;;  %v7803_v18 = vld [vmem:[#allocation11_spill] sm:$0xff] }
 0x10d   :  { %v773_v56 = vpop.permute.xlu0 %772  ;;  %4926 = vmatprep.mubr.msk.f32.mxu0 %vm983_vm0, %v6256_v9  ;;  %4943 = vmatprep.mubr.msk.f32.mxu1 %vm983_vm0, %v6225_v36 }
 0x10e   :  { %v549_v6 = vpop.permute.xlu1 %548  ;;  %v6276_v53 = vadd.f32 %v684_v31, %v492_v32  ;;  %2021 = vperm.xlu0 %5622, %v1943_v25   ;;  %v7805_v32 = vld [vmem:[#allocation3_spill] sm:$0xff] }
 0x10f   :  { %4927 = vmatmul.mubr.msk.f32.gmra.mrb[6].mxu0 %vm983_vm0, %v6270_v62  ;;  %v680_v22 = vmul.f32 %v6321_v14, %v549_v6  ;;  %v6345_v6 = vrot.slane %v7805_v32, %v6087_v11 }
 0x110   :  { %4944 = vmatmul.mubr.msk.f32.gmra.mrb[4].mxu1 %vm983_vm0, %v6242_v8  ;;  %5614 = vset.pattern.permute.xlu1 %v7791_v16 }
 0x111   :  { %612 = vperm.xlu1 %5614, %v5848_v34   ;;  %v6284_v12 = vpop.permute.xlu0 %784  ;;  %4946 = vmatprep.mubr.msk.f32.mxu1 %vm983_vm0, %v6256_v9 }
 0x112   :  { %v561_v20 = vpop.permute.xlu1 %560  ;;  %4957 = vmatprep.mubr.msk.f32.mxu0 %vm983_vm0, %v5956_v51 }
 0x113   :  { %v683_v50 = vmul.f32 %v6234_v61, %v561_v20 }
 0x114   :  { %4947 = vmatmul.mubr.msk.f32.gmra.mrb[6].mxu1 %vm983_vm0, %v6270_v62 }
 0x115   :  { %v6293_v24 = vadd.f32 %v683_v50, %v491_v63  ;;  %624 = vperm.xlu1 %5614, %v5886_v41   ;;  %v6296_v37 = vpop.permute.xlu0 %776  ;;  %4977 = vmatprep.mubr.msk.f32.mxu1 %vm983_vm0, %v5956_v51  ;;  %v6311_v41 = vrot.slane %v25_v44, %v5744_v15 }
 0x117   :  { %v329_v34 = vpop.permute.xlu1 %328  ;;  %v263_v13 = vmul.f32 %v6311_v41, %v7802_v30  ;;  %v7810_v30 = vld [vmem:[#allocation6_spill] sm:$0xff] }
 0x118   :  { %v457_v48 = vmul.f32 %v6307_v59, %v329_v34 }
 0x119   :  { %5615 = vset.pattern.permute.xlu1 %v7792_v21  ;;  %v6304_v57 = vpop.permute.xlu0 %792  ;;  %v456_v21 = vmul.f32 %v6307_v59, %v7798_v28  ;;  %v487_v43 = vadd.f32 %v455_v54, %v263_v13 }
 0x11a   :  { %392 = vperm.xlu1 %5615, %v5874_v39   ;;  %v7800_v39 = vld [vmem:[#allocation13_spill] sm:$0xff] }
 0x11b   :  { %v345_v26 = vpop.permute.xlu1 %344  ;;  %v264_v15 = vmul.f32 %v6311_v41, %v7800_v39  ;;  %v711_v50 = vadd.f32 %v679_v47, %v487_v43  ;;  %v6353_v39 = vrot.slane %v7808_v49, %v6087_v11 }
 0x11c   :  { %v461_v46 = vmul.f32 %v6196_v33, %v345_v26 }
 0x11d   :  { %v6316_v7 = vpop.permute.xlu0 %816  ;;  %v488_v63 = vadd.f32 %v456_v21, %v264_v15 }
 0x11e   :  { %v493_v3 = vadd.f32 %v461_v46, %v269_v55  ;;  %408 = vperm.xlu1 %5615, %v7799_v38   ;;  %v7806_v55 = vld [vmem:[#allocation20_spill] sm:$0xff] }
 0x11f   :  { %v349_v58 = vpop.permute.xlu1 %348  ;;  %v712_v25 = vadd.f32 %v680_v22, %v488_v63  ;;  %v7807_v46 = vld [vmem:[#allocation4_spill] sm:$0xff] }
 0x120   :  { %v462_v60 = vmul.f32 %v6196_v33, %v349_v58  ;;  %v7804_v33 = vld [vmem:[#allocation9_spill] sm:$0xff]  ;;  %v271_v28 = vmul.f32 %v7807_v46, %v7806_v55 }
 0x121   :  { %v6332_v2 = vpop.permute.xlu0 %812  ;;  %v872_v20 = vadd.f32 %v773_v56, %v712_v25  ;;  %v7811_v25 = vld [vmem:[#allocation16_spill] sm:$0xff] }
 0x122   :  { %v494_v0 = vadd.f32 %v462_v60, %v270_v27  ;;  %412 = vperm.xlu1 %5615, %v7803_v18   ;;  %v7809_v60 = vld [vmem:[#allocation23_spill] sm:$0xff]  ;;  %v265_v47 = vmul.f32 %v6311_v41, %v7811_v25 }
 0x123   :  { %v904_v15 = vmax.f32 %v872_v20, 0.0  ;;  %v276_v13 = vmul.f32 %v7810_v30, %v7809_v60  ;;  %v7815_v60 = vld [vmem:[#allocation25_spill] sm:$0xff] }
 0x124   :  { %v557_v31 = vpop.permute.xlu1 %556  ;;  %v489_v34 = vadd.f32 %v457_v48, %v265_v47 }
 0x125   :  { %v6337_v19 = vpop.permute.xlu0 %828 }
 0x126   :  { %5617 = vset.pattern.permute.xlu1 %v7791_v16 }
 0x127   :  { %620 = vperm.xlu1 %5617, %v7804_v33  }
 0x129   :  { %v769_v44 = vpop.permute.xlu1 %768 }
 0x12a   :  { %v871_v26 = vadd.f32 %v769_v44, %v711_v50  ;;  %v353_v23 = vpop.permute.xlu0 %352 }
 0x12b   :  { %v463_v21 = vmul.f32 %v6345_v6, %v353_v23  ;;  %5618 = vset.pattern.permute.xlu1 %v7793_v42 }
 0x12c   :  { %v903_v58 = vmax.f32 %v871_v26, 0.0  ;;  %832 = vperm.xlu1 %5618, %v5853_v35   ;;  %v7812_v26 = vld [vmem:[#allocation22_spill] sm:$0xff] }
 0x12d   :  { %v6356_v56 = vadd.f32 %v463_v21, %v271_v28  ;;  %v273_v23 = vmul.f32 %v7807_v46, %v7812_v26  ;;  %v7813_v21 = vld [vmem:[#allocation36_spill] sm:$0xff] }
 0x12e   :  { %v569_v27 = vpop.permute.xlu1 %568  ;;  %v373_v54 = vpop.permute.xlu0 %372  ;;  %v5405_v22 = vpack.c.bf16 %v904_v15, %v903_v58  ;;  %v7814_v58 = vld [vmem:[#allocation15_spill] sm:$0xff] }
 0x12f   :  { %v685_v63 = vmul.f32 %v6234_v61, %v569_v27  ;;  %v468_v43 = vmul.f32 %v6353_v39, %v373_v54  ;;  %v266_v48 = vmul.f32 %v6311_v41, %v7814_v58  ;;  %v875_v27 = vadd.f32 %v6284_v12, %v6293_v24 }
 0x130   :  { %5620 = vset.pattern.permute.xlu1 %v7791_v16  ;;  %5406 = vmatprep.subr.bf16.mxu0 %v5405_v22  ;;  %v458_v16 = vmul.f32 %v6307_v59, %v7813_v21  ;;  %v682_v54 = vmul.f32 %v6321_v14, %v557_v31  ;;  %v278_v59 = vmul.f32 %v7810_v30, %v7815_v60 }
 0x131   :  { %v717_v35 = vadd.f32 %v685_v63, %v493_v3  ;;  %v6366_v20 = vadd.f32 %v468_v43, %v276_v13  ;;  %632 = vperm.xlu1 %5620, %v7799_v38   ;;  %5408 = vmatpush3.bf16.msra.mxu0 %v5405_v22  ;;  %v681_v3 = vmul.f32 %v6321_v14, %v6179_v4  ;;  %v7816_v63 = vld [vmem:[#allocation7_spill] sm:$0xff]  ;;  %v907_v12 = vmax.f32 %v875_v27, 0.0 }
 0x132   :  { %v573_v50 = vpop.permute.xlu1 %572  ;;  %v361_v44 = vpop.permute.xlu0 %360  ;;  %v6390_v43 = vrot.slane %v7816_v63, %v6087_v11  ;;  %v7821_v63 = vmov 0  }
 0x133   :  { %v686_v55 = vmul.f32 %v6234_v61, %v573_v50  ;;  %v465_v28 = vmul.f32 %v6345_v6, %v361_v44  ;;  %v713_v61 = vadd.f32 %v681_v3, %v489_v34  ;;  %v7817_v34 = vld [vmem:[#allocation27_spill] sm:$0xff]  ;;  %v7818_v50 = vld [vmem:[#allocation8_spill] sm:$0xff]  ;;  %v7819_v3 = vld [vmem:[#allocation29_spill] sm:$0xff] }
 0x134   :  { %v280_v44 = vmul.f32 %v7818_v50, %v7817_v34 }
 0x135   :  { %v6377_v15 = vadd.f32 %v465_v28, %v273_v23  ;;  %636 = vperm.xlu1 %5620, %v7803_v18   ;;  %v718_v38 = vadd.f32 %v686_v55, %v494_v0  ;;  %v490_v0 = vadd.f32 %v458_v16, %v266_v48  ;;  %v873_v47 = vadd.f32 %v6296_v37, %v713_v61 }
 0x136   :  { %v381_v22 = vpop.permute.xlu0 %380  ;;  %v282_v37 = vmul.f32 %v7818_v50, %v7819_v3 }
 0x137   :  { %v470_v4 = vmul.f32 %v6353_v39, %v381_v22  ;;  %v789_v13 = vpop.permute.xlu1 %788  ;;  %v714_v31 = vadd.f32 %v682_v54, %v490_v0  ;;  %v905_v16 = vmax.f32 %v873_v47, 0.0  ;;  %v939_v47 = vld [vmem:[%s7725_s3 + $0x20] sm:$0xff] }
 0x138   :  { %v876_v41 = vadd.f32 %v789_v13, %v6276_v53 }
 0x139   :  { %v6393_v25 = vadd.f32 %v470_v4, %v278_v59  ;;  %5621 = vset.pattern.permute.xlu1 %v7793_v42  ;;  %v877_v42 = vadd.f32 %v6304_v57, %v717_v35  ;;  %v936_v59 = vld [vmem:[%s7725_s3 + $0x8] sm:$0xff] }
 0x13a   :  { %v908_v24 = vmax.f32 %v876_v41, 0.0  ;;  %852 = vperm.xlu1 %5621, %v5881_v40   ;;  %v389_v14 = vpop.permute.xlu0 %388  ;;  %v937_v41 = vld [vmem:[%s7725_s3 + $0x10] sm:$0xff] }
 0x13b   :  { %v472_v26 = vmul.f32 %v6390_v43, %v389_v14  ;;  %v781_v23 = vpop.permute.xlu1 %780  ;;  %v909_v57 = vmax.f32 %v877_v42, 0.0 }
 0x13c   :  { %v874_v55 = vadd.f32 %v781_v23, %v714_v31  ;;  %v5413_v53 = vpack.c.bf16 %v908_v24, %v907_v12  ;;  %v7822_v12 = vld [vmem:[#allocation24_spill] sm:$0xff] }
 0x13d   :  { %v6401_v28 = vadd.f32 %v472_v26, %v280_v44  ;;  %v275_v24 = vmul.f32 %v7810_v30, %v7822_v12  ;;  %v662_v26 = vrot.slane %v7808_v49, %v6100_v10  ;;  %v941_v23 = vld [vmem:[%s7725_s3 + $0x30] sm:$0xff] }
 0x13e   :  { %v906_v21 = vmax.f32 %v874_v55, 0.0  ;;  %844 = vperm.xlu1 %5621, %v7804_v33   ;;  %v397_v40 = vpop.permute.xlu0 %396  ;;  %5414 = vmatprep.subr.bf16.mxu1 %v5413_v53  ;;  %v6413_v33 = vrot.slane %v7805_v32, %v6100_v10 }
 0x13f   :  { %v474_v58 = vmul.f32 %v6390_v43, %v397_v40  ;;  %v797_v48 = vpop.permute.xlu1 %796  ;;  %5416 = vmatpush3.bf16.msra.mxu1 %v5413_v53 }
 0x140   :  { %v878_v27 = vadd.f32 %v797_v48, %v718_v38  ;;  %v5409_v61 = vpack.c.bf16 %v906_v21, %v905_v16  ;;  %v7820_v38 = vld [vmem:[#allocation19_spill] sm:$0xff]  ;;  %v1928_v21 = vld [vmem:[%s7726_s5] sm:$0xff]  ;;  %v1930_v16 = vld [vmem:[%s7726_s5 + $0x10] sm:$0xff] }
 0x141   :  { %v6408_v54 = vadd.f32 %v474_v58, %v282_v37  ;;  %v272_v4 = vmul.f32 %v7807_v46, %v7820_v38  ;;  %v7823_v58 = vld [vmem:[#allocation21_spill] sm:$0xff] }
 0x142   :  { %v910_v22 = vmax.f32 %v878_v27, 0.0  ;;  %860 = vperm.xlu1 %5621, %v7803_v18   ;;  %5410 = vmatprep.subr.bf16.mxu0 %v5409_v61  ;;  %v688_v18 = vmul.f32 %v6413_v33, %v6185_v17  ;;  %v274_v48 = vmul.f32 %v7807_v46, %v7823_v58  ;;  %v693_v46 = vmul.f32 %v662_v26, %v6244_v29 }
 0x143   :  { %5412 = vmatpush3.bf16.msra.mxu0 %v5409_v61  ;;  %v1932_v61 = vld [vmem:[%s7726_s5 + $0x20] sm:$0xff] }
 0x144   :  { %v357_v35 = vpop.permute.xlu1 %356  ;;  %v5417_v60 = vpack.c.bf16 %v910_v22, %v909_v57  ;;  %v690_v22 = vmul.f32 %v6413_v33, %v6210_v52 }
 0x145   :  { %v464_v13 = vmul.f32 %v6345_v6, %v357_v35 }
 0x146   :  { %5623 = vset.pattern.permute.xlu1 %v7821_v63  ;;  %4958 = vmatmul.mubr.msk.f32.vlgmr.msra.gmra.mrb[8].mxu0 %vm983_vm0, %v6190_v1 }
 0x147   :  { %v496_v32 = vadd.f32 %v464_v13, %v272_v4  ;;  %5418 = vmatprep.subr.bf16.mxu1 %v5417_v60  ;;  %950 = vperm.xlu1 %5623, %v936_v59  }
 0x148   :  { %5420 = vmatpush3.bf16.msra.mxu1 %v5417_v60  ;;  %v369_v0 = vpop.permute.xlu1 %368  ;;  %4960 = vmatprep.mubr.msk.f32.mxu0 %vm983_vm0, %v6201_v5 }
 0x149   :  { %v467_v14 = vmul.f32 %v6353_v39, %v369_v0  ;;  %v720_v31 = vadd.f32 %v688_v18, %v496_v32  ;;  %v1938_v18 = vld [vmem:[%s7726_s5 + $0x50] sm:$0xff]  ;;  %v1940_v0 = vld [vmem:[%s7726_s5 + $0x60] sm:$0xff] }
 0x14a   :  { %4961 = vmatmul.mubr.msk.f32.gmra.mrb[10].mxu0 %vm983_vm0, %v6215_v45 }
 0x14b   :  { %v499_v17 = vadd.f32 %v467_v14, %v275_v24  ;;  %4978 = vmatmul.mubr.msk.f32.vlgmr.msra.gmra.mrb[8].mxu1 %vm983_vm0, %v6190_v1  ;;  %955 = vperm.xlu1 %5623, %v937_v41  }
 0x14c   :  { %4963 = vmatprep.mubr.msk.f32.mxu0 %vm983_vm0, %v6225_v36  ;;  %4980 = vmatprep.mubr.msk.f32.mxu1 %vm983_vm0, %v6201_v5 }
 0x14d   :  { %v577_v34 = vpop.permute.xlu1 %576 }
 0x14e   :  { %v687_v44 = vmul.f32 %v6413_v33, %v577_v34  ;;  %4964 = vmatmul.mubr.msk.f32.gmra.mrb[12].mxu0 %vm983_vm0, %v6242_v8 }
 0x14f   :  { %4981 = vmatmul.mubr.msk.f32.gmra.mrb[10].mxu1 %vm983_vm0, %v6215_v45  ;;  %965 = vperm.xlu1 %5623, %v939_v47  }
 0x150   :  { %4966 = vmatprep.mubr.msk.f32.mxu0 %vm983_vm0, %v6256_v9  ;;  %4983 = vmatprep.mubr.msk.f32.mxu1 %vm983_vm0, %v6225_v36  ;;  %v719_v55 = vadd.f32 %v687_v44, %v6356_v56 }
 0x151   :  { %v593_v53 = vpop.permute.xlu1 %592 }
 0x152   :  { %v691_v42 = vmul.f32 %v662_v26, %v593_v53  ;;  %4967 = vmatmul.mubr.msk.f32.gmra.mrb[14].mxu0 %vm983_vm0, %v6270_v62 }
 0x153   :  { %4984 = vmatmul.mubr.msk.f32.gmra.mrb[12].mxu1 %vm983_vm0, %v6242_v8  ;;  %975 = vperm.xlu1 %5623, %v941_v23  }
 0x154   :  { %v723_v49 = vadd.f32 %v691_v42, %v499_v17  ;;  %4986 = vmatprep.mubr.msk.f32.mxu1 %vm983_vm0, %v6256_v9  ;;  %4997 = vmatprep.mubr.msk.f32.mxu0 %vm983_vm0, %v5956_v51 }
 0x155   :  { %v597_v56 = vpop.permute.xlu1 %596 }
 0x156   :  { %v692_v40 = vmul.f32 %v662_v26, %v597_v56  ;;  %v883_v34 = vadd.f32 %v6316_v7, %v723_v49  ;;  %v5624_v7 = vld [vmem:[%s7723_s0 + $0x18] sm:$0x7] }
 0x157   :  { %4987 = vmatmul.mubr.msk.f32.gmra.mrb[14].mxu1 %vm983_vm0, %v6270_v62  ;;  %1946 = vperm.xlu1 %5623, %v1928_v21   ;;  %v6516_v49 = vrot.slane %v5624_v7, %v6100_v10 }
 0x158   :  { %v724_v3 = vadd.f32 %v692_v40, %v6366_v20  ;;  %5017 = vmatprep.mubr.msk.f32.mxu1 %vm983_vm0, %v5956_v51  ;;  %v7824_v20 = vld [vmem:[#allocation26_spill] sm:$0xff] }
 0x159   :  { %v277_v60 = vmul.f32 %v7810_v30, %v7824_v20  ;;  %v1936_v30 = vld [vmem:[%s7726_s5 + $0x40] sm:$0xff]  ;;  %v5625_v20 = vld [vmem:[%s7723_s0 + $0x1c] sm:$0x7] }
 0x15a   :  { %v365_v37 = vpop.permute.xlu1 %364 }
 0x15b   :  { %v466_v27 = vmul.f32 %v6345_v6, %v365_v37  ;;  %1956 = vperm.xlu1 %5623, %v1930_v16   ;;  %v1934_v6 = vld [vmem:[%s7726_s5 + $0x30] sm:$0xff] }
 0x15d   :  { %v498_v57 = vadd.f32 %v466_v27, %v274_v48 }
 0x15e   :  { %v377_v35 = vpop.permute.xlu1 %376 }
 0x15f   :  { %v722_v51 = vadd.f32 %v690_v22, %v498_v57  ;;  %v469_v59 = vmul.f32 %v6353_v39, %v377_v35  ;;  %1966 = vperm.xlu1 %5623, %v1932_v61   ;;  %v7825_v61 = vld [vmem:[#allocation28_spill] sm:$0xff] }
 0x160   :  { %v279_v22 = vmul.f32 %v7818_v50, %v7825_v61 }
 0x161   :  { %v501_v38 = vadd.f32 %v469_v59, %v277_v60  ;;  %v882_v53 = vadd.f32 %v6332_v2, %v722_v51  ;;  %v446_v60 = vrot.slane %v5625_v20, %v6087_v11 }
 0x163   :  { %1976 = vperm.xlu1 %5623, %v1934_v6   ;;  %v585_v4 = vpop.permute.xlu1 %584  ;;  %v725_v13 = vadd.f32 %v693_v46, %v501_v38  ;;  %v7826_v6 = vld [vmem:[#allocation32_spill] sm:$0xff]  ;;  %v7827_v46 = vld [vmem:[#allocation10_spill] sm:$0xff] }
 0x164   :  { %v689_v52 = vmul.f32 %v6413_v33, %v585_v4  ;;  %v283_v38 = vmul.f32 %v7827_v46, %v7826_v6 }
 0x166   :  { %v721_v63 = vadd.f32 %v689_v52, %v6377_v15  ;;  %v1942_v15 = vld [vmem:[%s7726_s5 + $0x70] sm:$0xff] }
 0x167   :  { %1986 = vperm.xlu1 %5623, %v1936_v30  }
 0x168   :  { %v801_v39 = vpop.permute.xlu1 %800 }
 0x169   :  { %v879_v32 = vadd.f32 %v801_v39, %v719_v55  ;;  %v915_v55 = vmax.f32 %v883_v34, 0.0  ;;  %v7828_v39 = vld [vmem:[#allocation31_spill] sm:$0xff] }
 0x16b   :  { %1996 = vperm.xlu1 %5623, %v1938_v18   ;;  %v911_v41 = vmax.f32 %v879_v32, 0.0 }
 0x16c   :  { %v805_v29 = vpop.permute.xlu1 %804 }
 0x16d   :  { %v880_v33 = vadd.f32 %v805_v29, %v720_v31 }
 0x16f   :  { %v912_v12 = vmax.f32 %v880_v33, 0.0  ;;  %2006 = vperm.xlu1 %5623, %v1940_v0  }
 0x171   :  { %v605_v24 = vpop.permute.xlu1 %604  ;;  %v5421_v14 = vpack.c.bf16 %v912_v12, %v911_v41  ;;  %v5626_v12 = vld [vmem:[%s7724_s2] sm:$0xff] }
 0x172   :  { %v694_v17 = vmul.f32 %v662_v26, %v605_v24  ;;  %v914_v26 = vmax.f32 %v882_v53, 0.0 }
 0x173   :  { %2016 = vperm.xlu1 %5623, %v1942_v15   ;;  %5422 = vmatprep.subr.bf16.mxu0 %v5421_v14 }
 0x174   :  { %v726_v47 = vadd.f32 %v694_v17, %v6393_v25  ;;  %5424 = vmatpush3.bf16.msra.mxu0 %v5421_v14 }
 0x176   :  { %v821_v44 = vpop.permute.xlu1 %820  ;;  %v886_v40 = vadd.f32 %v6337_v19, %v726_v47 }
 0x177   :  { %v884_v23 = vadd.f32 %v821_v44, %v724_v3  ;;  %v609_v3 = vpop.permute.xlu0 %608  ;;  %v7829_v44 = vld [vmem:[#allocation30_spill] sm:$0xff] }
 0x178   :  { %v918_v48 = vmax.f32 %v886_v40, 0.0  ;;  %v695_v35 = vmul.f32 %v6516_v49, %v609_v3 }
 0x179   :  { %v916_v31 = vmax.f32 %v884_v23, 0.0  ;;  %v281_v23 = vmul.f32 %v7818_v50, %v7829_v44 }
 0x17a   :  { %v809_v42 = vpop.permute.xlu1 %808 }
 0x17b   :  { %v881_v21 = vadd.f32 %v809_v42, %v721_v63  ;;  %v5429_v56 = vpack.c.bf16 %v916_v31, %v915_v55  ;;  %v629_v11 = vpop.permute.xlu0 %628  ;;  %v7830_v42 = vld [vmem:[#allocation34_spill] sm:$0xff] }
 0x17d   :  { %v913_v16 = vmax.f32 %v881_v21, 0.0  ;;  %5430 = vmatprep.subr.bf16.mxu1 %v5429_v56  ;;  %v285_v21 = vmul.f32 %v7827_v46, %v7830_v42 }
 0x17e   :  { %v825_v37 = vpop.permute.xlu1 %824  ;;  %5432 = vmatpush3.bf16.msra.mxu1 %v5429_v56 }
 0x17f   :  { %v885_v25 = vadd.f32 %v825_v37, %v725_v13  ;;  %v5425_v58 = vpack.c.bf16 %v914_v26, %v913_v16  ;;  %v6533_v13 = vrot.slane %v5625_v20, %v6100_v10  ;;  %v284_v10 = vmul.f32 %v7827_v46, %v7828_v39  ;;  %v617_v47 = vpop.permute.xlu0 %616  ;;  %v7831_v37 = vld [vmem:[#allocation33_spill] sm:$0xff] }
 0x180   :  { %v697_v31 = vmul.f32 %v6516_v49, %v617_v47 }
 0x181   :  { %v917_v2 = vmax.f32 %v885_v25, 0.0  ;;  %5426 = vmatprep.subr.bf16.mxu0 %v5425_v58  ;;  %v700_v32 = vmul.f32 %v6533_v13, %v629_v11  ;;  %v286_v25 = vmul.f32 %v7827_v46, %v7831_v37 }
 0x182   :  { %5428 = vmatpush3.bf16.msra.mxu0 %v5425_v58 }
 0x183   :  { %v385_v19 = vpop.permute.xlu1 %384  ;;  %v5433_v27 = vpack.c.bf16 %v918_v48, %v917_v2  ;;  %v837_v50 = vpop.permute.xlu0 %836 }
 0x184   :  { %v471_v57 = vmul.f32 %v6390_v43, %v385_v19 }
 0x185   :  { %4998 = vmatmul.mubr.msk.f32.vlgmr.msra.gmra.mrb[16].mxu0 %vm983_vm0, %v6190_v1  ;;  %5434 = vmatprep.subr.bf16.mxu1 %v5433_v27 }
 0x186   :  { %v503_v51 = vadd.f32 %v471_v57, %v279_v22  ;;  %5436 = vmatpush3.bf16.msra.mxu1 %v5433_v27  ;;  %5000 = vmatprep.mubr.msk.f32.mxu0 %vm983_vm0, %v6201_v5 }
 0x187   :  { %v401_v59 = vpop.permute.xlu1 %400 }
 0x188   :  { %v475_v4 = vmul.f32 %v446_v60, %v401_v59  ;;  %v727_v52 = vadd.f32 %v695_v35, %v503_v51  ;;  %v849_v59 = vpop.permute.xlu0 %848 }
 0x189   :  { %5001 = vmatmul.mubr.msk.f32.gmra.mrb[18].mxu0 %vm983_vm0, %v6215_v45  ;;  %5018 = vmatmul.mubr.msk.f32.vlgmr.msra.gmra.mrb[16].mxu1 %vm983_vm0, %v6190_v1 }
 0x18a   :  { %v507_v30 = vadd.f32 %v475_v4, %v283_v38  ;;  %5003 = vmatprep.mubr.msk.f32.mxu0 %vm983_vm0, %v6225_v36  ;;  %5020 = vmatprep.mubr.msk.f32.mxu1 %vm983_vm0, %v6201_v5 }
 0x18b   :  { %v405_v63 = vpop.permute.xlu1 %404 }
 0x18c   :  { %v476_v18 = vmul.f32 %v446_v60, %v405_v63  ;;  %v841_v38 = vpop.permute.xlu0 %840 }
 0x18d   :  { %5004 = vmatmul.mubr.msk.f32.gmra.mrb[20].mxu0 %vm983_vm0, %v6242_v8  ;;  %5021 = vmatmul.mubr.msk.f32.gmra.mrb[18].mxu1 %vm983_vm0, %v6215_v45 }
 0x18e   :  { %v508_v29 = vadd.f32 %v476_v18, %v284_v10  ;;  %5006 = vmatprep.mubr.msk.f32.mxu0 %vm983_vm0, %v6256_v9  ;;  %5023 = vmatprep.mubr.msk.f32.mxu1 %vm983_vm0, %v6225_v36 }
 0x190   :  { %v613_v0 = vpop.permute.xlu1 %612  ;;  %v732_v33 = vadd.f32 %v700_v32, %v508_v29  ;;  %v857_v18 = vpop.permute.xlu0 %856 }
 0x191   :  { %v696_v41 = vmul.f32 %v6516_v49, %v613_v0  ;;  %5007 = vmatmul.mubr.msk.f32.gmra.mrb[22].mxu0 %vm983_vm0, %v6270_v62  ;;  %5024 = vmatmul.mubr.msk.f32.gmra.mrb[20].mxu1 %vm983_vm0, %v6242_v8 }
 0x192   :  { %5026 = vmatprep.mubr.msk.f32.mxu1 %vm983_vm0, %v6256_v9  ;;  %5037 = vmatprep.mubr.msk.f32.mxu0 %vm983_vm0, %v5626_v12 }
 0x193   :  { %v728_v15 = vadd.f32 %v696_v41, %v6401_v28 }
 0x194   :  { %v625_v24 = vpop.permute.xlu1 %624 }
 0x195   :  { %v699_v14 = vmul.f32 %v6533_v13, %v625_v24  ;;  %5027 = vmatmul.mubr.msk.f32.gmra.mrb[22].mxu1 %vm983_vm0, %v6270_v62  ;;  %v888_v48 = vadd.f32 %v837_v50, %v728_v15 }
 0x196   :  { %5057 = vmatprep.mubr.msk.f32.mxu1 %vm983_vm0, %v5626_v12 }
 0x197   :  { %v731_v17 = vadd.f32 %v699_v14, %v507_v30  ;;  %v920_v61 = vmax.f32 %v888_v48, 0.0  ;;  %v6594_v14 = vpop.permute.xlu0 %945 }
 0x199   :  { %v393_v34 = vpop.permute.xlu1 %392 }
 0x19a   :  { %v473_v55 = vmul.f32 %v6390_v43, %v393_v34 }
 0x19c   :  { %v505_v53 = vadd.f32 %v473_v55, %v281_v23 }
 0x19d   :  { %v409_v28 = vpop.permute.xlu1 %408 }
 0x19e   :  { %v477_v56 = vmul.f32 %v446_v60, %v409_v28  ;;  %v729_v40 = vadd.f32 %v697_v31, %v505_v53 }
 0x1a0   :  { %v509_v16 = vadd.f32 %v477_v56, %v285_v21 }
 0x1a1   :  { %v413_v26 = vpop.permute.xlu1 %412 }
 0x1a2   :  { %v478_v58 = vmul.f32 %v446_v60, %v413_v26 }
 0x1a4   :  { %v510_v7 = vadd.f32 %v478_v58, %v286_v25 }
 0x1a6   :  { %v621_v2 = vpop.permute.xlu1 %620 }
 0x1a7   :  { %v698_v3 = vmul.f32 %v6516_v49, %v621_v2  ;;  %v891_v49 = vadd.f32 %v849_v59, %v731_v17 }
 0x1a9   :  { %v730_v43 = vadd.f32 %v698_v3, %v6408_v54  ;;  %v923_v11 = vmax.f32 %v891_v49, 0.0 }
 0x1ab   :  { %v833_v19 = vpop.permute.xlu1 %832 }
 0x1ac   :  { %v887_v27 = vadd.f32 %v833_v19, %v727_v52  ;;  %v889_v52 = vadd.f32 %v841_v38, %v729_v40 }
 0x1ae   :  { %v919_v22 = vmax.f32 %v887_v27, 0.0  ;;  %v921_v32 = vmax.f32 %v889_v52, 0.0 }
 0x1b0   :  { %v633_v57 = vpop.permute.xlu1 %632  ;;  %v5437_v35 = vpack.c.bf16 %v920_v61, %v919_v22 }
 0x1b1   :  { %v701_v20 = vmul.f32 %v6533_v13, %v633_v57 }
 0x1b2   :  { %5438 = vmatprep.subr.bf16.mxu0 %v5437_v35 }
 0x1b3   :  { %5440 = vmatpush3.bf16.msra.mxu0 %v5437_v35  ;;  %v733_v51 = vadd.f32 %v701_v20, %v509_v16 }
 0x1b4   :  { %v637_v60 = vpop.permute.xlu1 %636 }
 0x1b5   :  { %v702_v6 = vmul.f32 %v6533_v13, %v637_v60  ;;  %v893_v29 = vadd.f32 %v857_v18, %v733_v51 }
 0x1b7   :  { %v734_v46 = vadd.f32 %v702_v6, %v510_v7  ;;  %v925_v15 = vmax.f32 %v893_v29, 0.0 }
 0x1b9   :  { %v853_v54 = vpop.permute.xlu1 %852 }
 0x1ba   :  { %v892_v4 = vadd.f32 %v853_v54, %v732_v33 }
 0x1bc   :  { %v924_v30 = vmax.f32 %v892_v4, 0.0 }
 0x1bd   :  { %v845_v63 = vpop.permute.xlu1 %844 }
 0x1be   :  { %v890_v39 = vadd.f32 %v845_v63, %v730_v43  ;;  %v5445_v10 = vpack.c.bf16 %v924_v30, %v923_v11 }
 0x1c0   :  { %v922_v0 = vmax.f32 %v890_v39, 0.0  ;;  %5446 = vmatprep.subr.bf16.mxu1 %v5445_v10 }
 0x1c1   :  { %v861_v41 = vpop.permute.xlu1 %860  ;;  %5448 = vmatpush3.bf16.msra.mxu1 %v5445_v10 }
 0x1c2   :  { %v894_v12 = vadd.f32 %v861_v41, %v734_v46  ;;  %v5441_v13 = vpack.c.bf16 %v922_v0, %v921_v32 }
 0x1c4   :  { %v926_v24 = vmax.f32 %v894_v12, 0.0  ;;  %5442 = vmatprep.subr.bf16.mxu0 %v5441_v13 }
 0x1c5   :  { %5444 = vmatpush3.bf16.msra.mxu0 %v5441_v13 }
 0x1c6   :  { %v5449_v33 = vpack.c.bf16 %v926_v24, %v925_v15  ;;  %v6596_v17 = vpop.permute.xlu1 %950 }
 0x1c8   :  { %5038 = vmatmul.mubr.msk.f32.vlgmr.msra.gmra.mrb[24].mxu0 %vm983_vm0, %v6190_v1  ;;  %5450 = vmatprep.subr.bf16.mxu1 %v5449_v33 }
 0x1c9   :  { %5452 = vmatpush3.bf16.msra.mxu1 %v5449_v33  ;;  %5040 = vmatprep.mubr.msk.f32.mxu0 %vm983_vm0, %v6201_v5 }
 0x1cc   :  { %5041 = vmatmul.mubr.msk.f32.gmra.mrb[26].mxu0 %vm983_vm0, %v6215_v45  ;;  %5058 = vmatmul.mubr.msk.f32.vlgmr.msra.gmra.mrb[24].mxu1 %vm983_vm0, %v6190_v1  ;;  %v6609_v1 = vld [vmem:[%s7727_s4] sm:$0xff] }
 0x1cd   :  { %5043 = vmatprep.mubr.msk.f32.mxu0 %vm983_vm0, %v6225_v36  ;;  %5060 = vmatprep.mubr.msk.f32.mxu1 %vm983_vm0, %v6201_v5  ;;  %v6611_v5 = vpop.permute.xlu0 %960 }
 0x1d0   :  { %5044 = vmatmul.mubr.msk.f32.gmra.mrb[28].mxu0 %vm983_vm0, %v6242_v8  ;;  %5061 = vmatmul.mubr.msk.f32.gmra.mrb[26].mxu1 %vm983_vm0, %v6215_v45  ;;  %v6621_v45 = vpop.permute.xlu1 %955 }
 0x1d1   :  { %5046 = vmatprep.mubr.msk.f32.mxu0 %vm983_vm0, %v6256_v9  ;;  %5063 = vmatprep.mubr.msk.f32.mxu1 %vm983_vm0, %v6225_v36 }
 0x1d4   :  { %5047 = vmatmul.mubr.msk.f32.gmra.mrb[30].mxu0 %vm983_vm0, %v6270_v62  ;;  %5064 = vmatmul.mubr.msk.f32.gmra.mrb[28].mxu1 %vm983_vm0, %v6242_v8  ;;  %v6629_v8 = vpop.permute.xlu0 %970  ;;  %v6632_v42 = vpop.permute.xlu1 %965 }
 0x1d5   :  { %5066 = vmatprep.mubr.msk.f32.mxu1 %vm983_vm0, %v6256_v9  ;;  %5085 = vmatprep.mubr.msk.f32.mxu0 %vm2024_vm1, %v6609_v1 }
 0x1d6   :  { %v4919_v36 = vpop.f32.mrb[0].mxu0 }
 0x1d7   :  { %v1080_v47 = vadd.f32 %v4919_v36, %v6596_v17  ;;  %v1074_v34 = vpop.f32.mrb[1].mxu0  ;;  %v6654_v36 = vld [vmem:[%s7727_s4 + $0x8] sm:$0xff] }
 0x1d8   :  { %v1075_v44 = vadd.f32 %v1074_v34, %v6594_v14  ;;  %5067 = vmatmul.mubr.msk.f32.gmra.mrb[30].mxu1 %vm983_vm0, %v6270_v62  ;;  %v6640_v61 = vpop.permute.xlu0 %980  ;;  %v6643_v20 = vpop.permute.xlu1 %975  ;;  %vm3854_vm0 = vcmask 1048512  }
 0x1d9   :  { %v1849_v23 = vmax.f32 %v1080_v47, 0.0  ;;  %5125 = vmatprep.mubr.msk.f32.mxu1 %vm2024_vm1, %v6609_v1  ;;  %v6659_v47 = vld [vmem:[%s7727_s4 + $0x10] sm:$0xff] }
 0x1da   :  { %v1848_v9 = vmax.f32 %v1075_v44, 0.0  ;;  %v4922_v31 = vpop.f32.mrb[2].mxu0  ;;  %v6668_v44 = vld [vmem:[%s7727_s4 + $0x18] sm:$0xff] }
 0x1db   :  { %v1090_v55 = vadd.f32 %v4922_v31, %v6611_v5  ;;  %v4939_v53 = vpop.f32.mrb[0].mxu1  ;;  %v1084_v28 = vpop.f32.mrb[3].mxu0  ;;  %v6691_v31 = vld [vmem:[%s7727_s4 + $0x30] sm:$0xff] }
 0x1dc   :  { %v5453_v21 = vpack.c.bf16 %v1849_v23, %v1848_v9  ;;  %v1185_v56 = vadd.f32 %v4939_v53, %v6596_v17  ;;  %v1085_v40 = vadd.f32 %v1084_v28, %v6621_v45  ;;  %v1179_v62 = vpop.f32.mrb[1].mxu1  ;;  %v6673_v23 = vld [vmem:[%s7727_s4 + $0x20] sm:$0xff]  ;;  %v6684_v9 = vld [vmem:[%s7727_s4 + $0x28] sm:$0xff] }
 0x1dd   :  { %v1851_v16 = vmax.f32 %v1090_v55, 0.0  ;;  %v1180_v26 = vadd.f32 %v1179_v62, %v6594_v14  ;;  %v6702_v55 = vld [vmem:[%s7727_s4 + $0x38] sm:$0xff]  ;;  %v6709_v53 = vld [vmem:[%s7727_s4 + $0x40] sm:$0xff]  ;;  %v6720_v28 = vld [vmem:[%s7727_s4 + $0x48] sm:$0xff] }
 0x1de   :  { %v1857_v37 = vmax.f32 %v1185_v56, 0.0  ;;  %v1850_v25 = vmax.f32 %v1085_v40, 0.0  ;;  %v4925_v58 = vpop.f32.mrb[4].mxu0  ;;  %5454 = vmatprep.subr.bf16.mxu0 %v5453_v21  ;;  %v6738_v56 = vld [vmem:[%s7727_s4 + $0x58] sm:$0xff]  ;;  %v6745_v40 = vld [vmem:[%s7727_s4 + $0x60] sm:$0xff]  ;;  %v6756_v62 = vld [vmem:[%s7727_s4 + $0x68] sm:$0xff] }
 0x1df   :  { %v1856_v7 = vmax.f32 %v1180_v26, 0.0  ;;  %v1100_v2 = vadd.f32 %v4925_v58, %v6629_v8  ;;  %v4942_v50 = vpop.f32.mrb[2].mxu1  ;;  %v1094_v3 = vpop.f32.mrb[5].mxu0  ;;  %5456 = vmatpush3.bf16.msra.mxu0 %v5453_v21  ;;  %v6727_v21 = vld [vmem:[%s7727_s4 + $0x50] sm:$0xff]  ;;  %v6774_v26 = vld [vmem:[%s7727_s4 + $0x78] sm:$0xff] }
 0x1e0   :  { %v5457_v43 = vpack.c.bf16 %v1851_v16, %v1850_v25  ;;  %v1195_v48 = vadd.f32 %v4942_v50, %v6611_v5  ;;  %v1095_v19 = vadd.f32 %v1094_v3, %v6632_v42  ;;  %v1189_v27 = vpop.f32.mrb[3].mxu1  ;;  %v6763_v16 = vld [vmem:[%s7727_s4 + $0x70] sm:$0xff] }
 0x1e1   :  { %v5469_v22 = vpack.c.bf16 %v1857_v37, %v1856_v7  ;;  %v1853_v57 = vmax.f32 %v1100_v2, 0.0  ;;  %v1190_v35 = vadd.f32 %v1189_v27, %v6621_v45 }
 0x1e2   :  { %v1859_v51 = vmax.f32 %v1195_v48, 0.0  ;;  %v1852_v60 = vmax.f32 %v1095_v19, 0.0  ;;  %v4928_v59 = vpop.f32.mrb[6].mxu0  ;;  %5458 = vmatprep.subr.bf16.mxu0 %v5457_v43 }
 0x1e3   :  { %v1858_v6 = vmax.f32 %v1190_v35, 0.0  ;;  %v1110_v46 = vadd.f32 %v4928_v59, %v6640_v61  ;;  %v4945_v49 = vpop.f32.mrb[4].mxu1  ;;  %5470 = vmatprep.subr.bf16.mxu1 %v5469_v22  ;;  %v1104_v38 = vpop.f32.mrb[7].mxu0  ;;  %5460 = vmatpush3.bf16.msra.mxu0 %v5457_v43 }
 0x1e4   :  { %v5461_v54 = vpack.c.bf16 %v1853_v57, %v1852_v60  ;;  %v1205_v4 = vadd.f32 %v4945_v49, %v6629_v8  ;;  %v1105_v11 = vadd.f32 %v1104_v38, %v6643_v20  ;;  %v1199_v52 = vpop.f32.mrb[5].mxu1  ;;  %5472 = vmatpush3.bf16.msra.mxu1 %v5469_v22 }
 0x1e5   :  { %v5473_v30 = vpack.c.bf16 %v1859_v51, %v1858_v6  ;;  %v1855_v63 = vmax.f32 %v1110_v46, 0.0  ;;  %v1200_v39 = vadd.f32 %v1199_v52, %v6632_v42 }
 0x1e6   :  { %v1861_v10 = vmax.f32 %v1205_v4, 0.0  ;;  %v1854_v18 = vmax.f32 %v1105_v11, 0.0  ;;  %5462 = vmatprep.subr.bf16.mxu0 %v5461_v54 }
 0x1e7   :  { %v1860_v32 = vmax.f32 %v1200_v39, 0.0  ;;  %v4948_v29 = vpop.f32.mrb[6].mxu1  ;;  %5474 = vmatprep.subr.bf16.mxu1 %v5473_v30  ;;  %5464 = vmatpush3.bf16.msra.mxu0 %v5461_v54 }
 0x1e8   :  { %v5465_v0 = vpack.c.bf16 %v1855_v63, %v1854_v18  ;;  %v1215_v41 = vadd.f32 %v4948_v29, %v6640_v61  ;;  %v1209_v12 = vpop.f32.mrb[7].mxu1  ;;  %5476 = vmatpush3.bf16.msra.mxu1 %v5473_v30 }
 0x1e9   :  { %v5477_v13 = vpack.c.bf16 %v1861_v10, %v1860_v32  ;;  %v1210_v15 = vadd.f32 %v1209_v12, %v6643_v20 }
 0x1ea   :  { %v1863_v24 = vmax.f32 %v1215_v41, 0.0  ;;  %5466 = vmatprep.subr.bf16.mxu0 %v5465_v0 }
 0x1eb   :  { %v1862_v33 = vmax.f32 %v1210_v15, 0.0  ;;  %5478 = vmatprep.subr.bf16.mxu1 %v5477_v13  ;;  %5468 = vmatpush3.bf16.msra.mxu0 %v5465_v0 }
 0x1ec   :  { %5480 = vmatpush3.bf16.msra.mxu1 %v5477_v13 }
 0x1ed   :  { %v5481_v34 = vpack.c.bf16 %v1863_v24, %v1862_v33 }
 0x1ee   :  { %5086 = vmatmul.mubr.msk.f32.vlgmr.msra.gmra.mrb[32].mxu0 %vm2024_vm1, %v6654_v36 }
 0x1ef   :  { %5482 = vmatprep.subr.bf16.mxu1 %v5481_v34  ;;  %5088 = vmatprep.mubr.msk.f32.mxu0 %vm2024_vm1, %v6659_v47 }
 0x1f0   :  { %5484 = vmatpush3.bf16.msra.mxu1 %v5481_v34 }
 0x1f2   :  { %5089 = vmatmul.mubr.msk.f32.gmra.mrb[34].mxu0 %vm2024_vm1, %v6668_v44 }
 0x1f3   :  { %5126 = vmatmul.mubr.msk.f32.vlgmr.msra.gmra.mrb[32].mxu1 %vm2024_vm1, %v6654_v36  ;;  %5091 = vmatprep.mubr.msk.f32.mxu0 %vm2024_vm1, %v6673_v23 }
 0x1f4   :  { %5128 = vmatprep.mubr.msk.f32.mxu1 %vm2024_vm1, %v6659_v47 }
 0x1f6   :  { %5092 = vmatmul.mubr.msk.f32.gmra.mrb[36].mxu0 %vm2024_vm1, %v6684_v9 }
 0x1f7   :  { %5129 = vmatmul.mubr.msk.f32.gmra.mrb[34].mxu1 %vm2024_vm1, %v6668_v44  ;;  %5094 = vmatprep.mubr.msk.f32.mxu0 %vm2024_vm1, %v6691_v31 }
 0x1f8   :  { %5131 = vmatprep.mubr.msk.f32.mxu1 %vm2024_vm1, %v6673_v23 }
 0x1fa   :  { %5095 = vmatmul.mubr.msk.f32.gmra.mrb[38].mxu0 %vm2024_vm1, %v6702_v55 }
 0x1fb   :  { %5132 = vmatmul.mubr.msk.f32.gmra.mrb[36].mxu1 %vm2024_vm1, %v6684_v9  ;;  %5097 = vmatprep.mubr.msk.f32.mxu0 %vm2024_vm1, %v6709_v53 }
 0x1fc   :  { %5134 = vmatprep.mubr.msk.f32.mxu1 %vm2024_vm1, %v6691_v31 }
 0x1fe   :  { %5098 = vmatmul.mubr.msk.f32.gmra.mrb[40].mxu0 %vm2024_vm1, %v6720_v28 }
 0x1ff   :  { %5135 = vmatmul.mubr.msk.f32.gmra.mrb[38].mxu1 %vm2024_vm1, %v6702_v55  ;;  %5100 = vmatprep.mubr.msk.f32.mxu0 %vm2024_vm1, %v6727_v21 }
 0x200   :  { %5137 = vmatprep.mubr.msk.f32.mxu1 %vm2024_vm1, %v6709_v53 }
 0x202   :  { %5101 = vmatmul.mubr.msk.f32.gmra.mrb[42].mxu0 %vm2024_vm1, %v6738_v56 }
 0x203   :  { %5138 = vmatmul.mubr.msk.f32.gmra.mrb[40].mxu1 %vm2024_vm1, %v6720_v28  ;;  %5103 = vmatprep.mubr.msk.f32.mxu0 %vm2024_vm1, %v6745_v40 }
 0x204   :  { %5140 = vmatprep.mubr.msk.f32.mxu1 %vm2024_vm1, %v6727_v21 }
 0x206   :  { %5104 = vmatmul.mubr.msk.f32.gmra.mrb[44].mxu0 %vm2024_vm1, %v6756_v62 }
 0x207   :  { %5141 = vmatmul.mubr.msk.f32.gmra.mrb[42].mxu1 %vm2024_vm1, %v6738_v56  ;;  %5106 = vmatprep.mubr.msk.f32.mxu0 %vm2024_vm1, %v6763_v16 }
 0x208   :  { %5143 = vmatprep.mubr.msk.f32.mxu1 %vm2024_vm1, %v6745_v40 }
 0x20a   :  { %5107 = vmatmul.mubr.msk.f32.gmra.mrb[46].mxu0 %vm2024_vm1, %v6774_v26 }
 0x20b   :  { %5144 = vmatmul.mubr.msk.f32.gmra.mrb[44].mxu1 %vm2024_vm1, %v6756_v62  ;;  %5165 = vmatprep.mubr.msk.f32.mxu0 %vm2024_vm1, %v6609_v1 }
 0x20c   :  { %5146 = vmatprep.mubr.msk.f32.mxu1 %vm2024_vm1, %v6763_v16 }
 0x20f   :  { %5147 = vmatmul.mubr.msk.f32.gmra.mrb[46].mxu1 %vm2024_vm1, %v6774_v26 }
 0x210   :  { %5205 = vmatprep.mubr.msk.f32.mxu1 %vm2024_vm1, %v6609_v1 }
 0x219   :  { %v4959_v37 = vpop.f32.mrb[8].mxu0 }
 0x21a   :  { %v1290_v25 = vadd.f32 %v4959_v37, %v6596_v17  ;;  %v1284_v58 = vpop.f32.mrb[9].mxu0 }
 0x21b   :  { %v1285_v7 = vadd.f32 %v1284_v58, %v6594_v14 }
 0x21c   :  { %v1865_v2 = vmax.f32 %v1290_v25, 0.0 }
 0x21d   :  { %v1864_v50 = vmax.f32 %v1285_v7, 0.0  ;;  %v4962_v3 = vpop.f32.mrb[10].mxu0 }
 0x21e   :  { %v1300_v43 = vadd.f32 %v4962_v3, %v6611_v5  ;;  %v4979_v48 = vpop.f32.mrb[8].mxu1  ;;  %v1294_v19 = vpop.f32.mrb[11].mxu0 }
 0x21f   :  { %v5485_v27 = vpack.c.bf16 %v1865_v2, %v1864_v50  ;;  %v1395_v22 = vadd.f32 %v4979_v48, %v6596_v17  ;;  %v1295_v57 = vadd.f32 %v1294_v19, %v6621_v45  ;;  %v1389_v35 = vpop.f32.mrb[9].mxu1 }
 0x220   :  { %v1867_v51 = vmax.f32 %v1300_v43, 0.0  ;;  %v1390_v60 = vadd.f32 %v1389_v35, %v6594_v14 }
 0x221   :  { %v1873_v59 = vmax.f32 %v1395_v22, 0.0  ;;  %v1866_v6 = vmax.f32 %v1295_v57, 0.0  ;;  %v4965_v46 = vpop.f32.mrb[12].mxu0  ;;  %5486 = vmatprep.subr.bf16.mxu0 %v5485_v27 }
 0x222   :  { %v1872_v49 = vmax.f32 %v1390_v60, 0.0  ;;  %v1310_v38 = vadd.f32 %v4965_v46, %v6629_v8  ;;  %v4982_v54 = vpop.f32.mrb[10].mxu1  ;;  %v1304_v4 = vpop.f32.mrb[13].mxu0  ;;  %5488 = vmatpush3.bf16.msra.mxu0 %v5485_v27 }
 0x223   :  { %v5489_v11 = vpack.c.bf16 %v1867_v51, %v1866_v6  ;;  %v1405_v52 = vadd.f32 %v4982_v54, %v6611_v5  ;;  %v1305_v30 = vadd.f32 %v1304_v4, %v6632_v42  ;;  %v1399_v63 = vpop.f32.mrb[11].mxu1 }
 0x224   :  { %v5501_v39 = vpack.c.bf16 %v1873_v59, %v1872_v49  ;;  %v1869_v10 = vmax.f32 %v1310_v38, 0.0  ;;  %v1400_v18 = vadd.f32 %v1399_v63, %v6621_v45 }
 0x225   :  { %v1875_v32 = vmax.f32 %v1405_v52, 0.0  ;;  %v1868_v29 = vmax.f32 %v1305_v30, 0.0  ;;  %v4968_v0 = vpop.f32.mrb[14].mxu0  ;;  %5490 = vmatprep.subr.bf16.mxu0 %v5489_v11 }
 0x226   :  { %v1874_v41 = vmax.f32 %v1400_v18, 0.0  ;;  %v1320_v12 = vadd.f32 %v4968_v0, %v6640_v61  ;;  %v4985_v13 = vpop.f32.mrb[12].mxu1  ;;  %5502 = vmatprep.subr.bf16.mxu1 %v5501_v39  ;;  %v1314_v15 = vpop.f32.mrb[15].mxu0  ;;  %5492 = vmatpush3.bf16.msra.mxu0 %v5489_v11 }
 0x227   :  { %v5493_v24 = vpack.c.bf16 %v1869_v10, %v1868_v29  ;;  %v1415_v33 = vadd.f32 %v4985_v13, %v6629_v8  ;;  %v1315_v34 = vadd.f32 %v1314_v15, %v6643_v20  ;;  %v1409_v37 = vpop.f32.mrb[13].mxu1  ;;  %5504 = vmatpush3.bf16.msra.mxu1 %v5501_v39 }
 0x228   :  { %v5505_v25 = vpack.c.bf16 %v1875_v32, %v1874_v41  ;;  %v1871_v58 = vmax.f32 %v1320_v12, 0.0  ;;  %v1410_v7 = vadd.f32 %v1409_v37, %v6632_v42 }
 0x229   :  { %v1877_v2 = vmax.f32 %v1415_v33, 0.0  ;;  %v1870_v50 = vmax.f32 %v1315_v34, 0.0  ;;  %5494 = vmatprep.subr.bf16.mxu0 %v5493_v24 }
 0x22a   :  { %v1876_v3 = vmax.f32 %v1410_v7, 0.0  ;;  %v4988_v43 = vpop.f32.mrb[14].mxu1  ;;  %5506 = vmatprep.subr.bf16.mxu1 %v5505_v25  ;;  %5496 = vmatpush3.bf16.msra.mxu0 %v5493_v24 }
 0x22b   :  { %v5497_v48 = vpack.c.bf16 %v1871_v58, %v1870_v50  ;;  %v1425_v19 = vadd.f32 %v4988_v43, %v6640_v61  ;;  %v1419_v27 = vpop.f32.mrb[15].mxu1  ;;  %5508 = vmatpush3.bf16.msra.mxu1 %v5505_v25 }
 0x22c   :  { %v5509_v22 = vpack.c.bf16 %v1877_v2, %v1876_v3  ;;  %v1420_v57 = vadd.f32 %v1419_v27, %v6643_v20 }
 0x22d   :  { %v1879_v35 = vmax.f32 %v1425_v19, 0.0  ;;  %5498 = vmatprep.subr.bf16.mxu0 %v5497_v48 }
 0x22e   :  { %v1878_v51 = vmax.f32 %v1420_v57, 0.0  ;;  %5510 = vmatprep.subr.bf16.mxu1 %v5509_v22  ;;  %5500 = vmatpush3.bf16.msra.mxu0 %v5497_v48 }
 0x22f   :  { %5512 = vmatpush3.bf16.msra.mxu1 %v5509_v22 }
 0x230   :  { %v5513_v60 = vpack.c.bf16 %v1879_v35, %v1878_v51 }
 0x231   :  { %5166 = vmatmul.mubr.msk.f32.vlgmr.msra.gmra.mrb[48].mxu0 %vm2024_vm1, %v6654_v36 }
 0x232   :  { %5514 = vmatprep.subr.bf16.mxu1 %v5513_v60  ;;  %5168 = vmatprep.mubr.msk.f32.mxu0 %vm2024_vm1, %v6659_v47 }
 0x233   :  { %5516 = vmatpush3.bf16.msra.mxu1 %v5513_v60 }
 0x235   :  { %5169 = vmatmul.mubr.msk.f32.gmra.mrb[50].mxu0 %vm2024_vm1, %v6668_v44 }
 0x236   :  { %5206 = vmatmul.mubr.msk.f32.vlgmr.msra.gmra.mrb[48].mxu1 %vm2024_vm1, %v6654_v36  ;;  %5171 = vmatprep.mubr.msk.f32.mxu0 %vm2024_vm1, %v6673_v23 }
 0x237   :  { %5208 = vmatprep.mubr.msk.f32.mxu1 %vm2024_vm1, %v6659_v47 }
 0x239   :  { %5172 = vmatmul.mubr.msk.f32.gmra.mrb[52].mxu0 %vm2024_vm1, %v6684_v9 }
 0x23a   :  { %5209 = vmatmul.mubr.msk.f32.gmra.mrb[50].mxu1 %vm2024_vm1, %v6668_v44  ;;  %5174 = vmatprep.mubr.msk.f32.mxu0 %vm2024_vm1, %v6691_v31 }
 0x23b   :  { %5211 = vmatprep.mubr.msk.f32.mxu1 %vm2024_vm1, %v6673_v23 }
 0x23d   :  { %5175 = vmatmul.mubr.msk.f32.gmra.mrb[54].mxu0 %vm2024_vm1, %v6702_v55 }
 0x23e   :  { %5212 = vmatmul.mubr.msk.f32.gmra.mrb[52].mxu1 %vm2024_vm1, %v6684_v9  ;;  %5177 = vmatprep.mubr.msk.f32.mxu0 %vm2024_vm1, %v6709_v53 }
 0x23f   :  { %5214 = vmatprep.mubr.msk.f32.mxu1 %vm2024_vm1, %v6691_v31 }
 0x241   :  { %5178 = vmatmul.mubr.msk.f32.gmra.mrb[56].mxu0 %vm2024_vm1, %v6720_v28 }
 0x242   :  { %5215 = vmatmul.mubr.msk.f32.gmra.mrb[54].mxu1 %vm2024_vm1, %v6702_v55  ;;  %5180 = vmatprep.mubr.msk.f32.mxu0 %vm2024_vm1, %v6727_v21 }
 0x243   :  { %5217 = vmatprep.mubr.msk.f32.mxu1 %vm2024_vm1, %v6709_v53 }
 0x245   :  { %5181 = vmatmul.mubr.msk.f32.gmra.mrb[58].mxu0 %vm2024_vm1, %v6738_v56 }
 0x246   :  { %5218 = vmatmul.mubr.msk.f32.gmra.mrb[56].mxu1 %vm2024_vm1, %v6720_v28  ;;  %5183 = vmatprep.mubr.msk.f32.mxu0 %vm2024_vm1, %v6745_v40 }
 0x247   :  { %5220 = vmatprep.mubr.msk.f32.mxu1 %vm2024_vm1, %v6727_v21 }
 0x249   :  { %5184 = vmatmul.mubr.msk.f32.gmra.mrb[60].mxu0 %vm2024_vm1, %v6756_v62 }
 0x24a   :  { %5221 = vmatmul.mubr.msk.f32.gmra.mrb[58].mxu1 %vm2024_vm1, %v6738_v56  ;;  %5186 = vmatprep.mubr.msk.f32.mxu0 %vm2024_vm1, %v6763_v16 }
 0x24b   :  { %5223 = vmatprep.mubr.msk.f32.mxu1 %vm2024_vm1, %v6745_v40 }
 0x24d   :  { %5187 = vmatmul.mubr.msk.f32.gmra.mrb[62].mxu0 %vm2024_vm1, %v6774_v26 }
 0x24e   :  { %5224 = vmatmul.mubr.msk.f32.gmra.mrb[60].mxu1 %vm2024_vm1, %v6756_v62  ;;  %5245 = vmatprep.mubr.msk.f32.mxu0 %vm2024_vm1, %v6609_v1 }
 0x24f   :  { %5226 = vmatprep.mubr.msk.f32.mxu1 %vm2024_vm1, %v6763_v16 }
 0x252   :  { %5227 = vmatmul.mubr.msk.f32.gmra.mrb[62].mxu1 %vm2024_vm1, %v6774_v26 }
 0x253   :  { %5285 = vmatprep.mubr.msk.f32.mxu1 %vm2024_vm1, %v6609_v1 }
 0x258   :  { %v4999_v59 = vpop.f32.mrb[16].mxu0 }
 0x259   :  { %v1500_v6 = vadd.f32 %v4999_v59, %v6596_v17  ;;  %v1494_v46 = vpop.f32.mrb[17].mxu0 }
 0x25a   :  { %v1495_v49 = vadd.f32 %v1494_v46, %v6594_v14 }
 0x25b   :  { %v1881_v38 = vmax.f32 %v1500_v6, 0.0 }
 0x25c   :  { %v1880_v54 = vmax.f32 %v1495_v49, 0.0  ;;  %v5002_v4 = vpop.f32.mrb[18].mxu0  ;;  %v5019_v11 = vpop.f32.mrb[16].mxu1 }
 0x25d   :  { %v1510_v52 = vadd.f32 %v5002_v4, %v6611_v5  ;;  %v1605_v30 = vadd.f32 %v5019_v11, %v6596_v17  ;;  %v1504_v63 = vpop.f32.mrb[19].mxu0  ;;  %v1599_v39 = vpop.f32.mrb[17].mxu1 }
 0x25e   :  { %v5517_v10 = vpack.c.bf16 %v1881_v38, %v1880_v54  ;;  %v1505_v18 = vadd.f32 %v1504_v63, %v6621_v45  ;;  %v1600_v32 = vadd.f32 %v1599_v39, %v6594_v14 }
 0x25f   :  { %v1883_v29 = vmax.f32 %v1510_v52, 0.0  ;;  %v1889_v0 = vmax.f32 %v1605_v30, 0.0 }
 0x260   :  { %v1882_v41 = vmax.f32 %v1505_v18, 0.0  ;;  %v1888_v12 = vmax.f32 %v1600_v32, 0.0  ;;  %v5005_v13 = vpop.f32.mrb[20].mxu0  ;;  %v5022_v15 = vpop.f32.mrb[18].mxu1  ;;  %5518 = vmatprep.subr.bf16.mxu0 %v5517_v10 }
 0x261   :  { %v1520_v24 = vadd.f32 %v5005_v13, %v6629_v8  ;;  %v1615_v33 = vadd.f32 %v5022_v15, %v6611_v5  ;;  %v1514_v34 = vpop.f32.mrb[21].mxu0  ;;  %v1609_v37 = vpop.f32.mrb[19].mxu1  ;;  %5520 = vmatpush3.bf16.msra.mxu0 %v5517_v10 }
 0x262   :  { %v5521_v25 = vpack.c.bf16 %v1883_v29, %v1882_v41  ;;  %v5533_v58 = vpack.c.bf16 %v1889_v0, %v1888_v12  ;;  %v1515_v7 = vadd.f32 %v1514_v34, %v6632_v42  ;;  %v1610_v2 = vadd.f32 %v1609_v37, %v6621_v45 }
 0x263   :  { %v1885_v50 = vmax.f32 %v1520_v24, 0.0  ;;  %v1891_v3 = vmax.f32 %v1615_v33, 0.0 }
 0x264   :  { %v1884_v43 = vmax.f32 %v1515_v7, 0.0  ;;  %v1890_v48 = vmax.f32 %v1610_v2, 0.0  ;;  %v5008_v19 = vpop.f32.mrb[22].mxu0  ;;  %v5025_v27 = vpop.f32.mrb[20].mxu1  ;;  %5522 = vmatprep.subr.bf16.mxu0 %v5521_v25  ;;  %5534 = vmatprep.subr.bf16.mxu1 %v5533_v58 }
 0x265   :  { %v1530_v22 = vadd.f32 %v5008_v19, %v6640_v61  ;;  %v1625_v57 = vadd.f32 %v5025_v27, %v6629_v8  ;;  %v1524_v35 = vpop.f32.mrb[23].mxu0  ;;  %v1619_v51 = vpop.f32.mrb[21].mxu1  ;;  %5524 = vmatpush3.bf16.msra.mxu0 %v5521_v25  ;;  %5536 = vmatpush3.bf16.msra.mxu1 %v5533_v58 }
 0x266   :  { %v5525_v60 = vpack.c.bf16 %v1885_v50, %v1884_v43  ;;  %v5537_v59 = vpack.c.bf16 %v1891_v3, %v1890_v48  ;;  %v1525_v6 = vadd.f32 %v1524_v35, %v6643_v20  ;;  %v1620_v46 = vadd.f32 %v1619_v51, %v6632_v42 }
 0x267   :  { %v1887_v49 = vmax.f32 %v1530_v22, 0.0  ;;  %v1893_v38 = vmax.f32 %v1625_v57, 0.0 }
 0x268   :  { %v1886_v54 = vmax.f32 %v1525_v6, 0.0  ;;  %v1892_v4 = vmax.f32 %v1620_v46, 0.0  ;;  %v5028_v11 = vpop.f32.mrb[22].mxu1  ;;  %5526 = vmatprep.subr.bf16.mxu0 %v5525_v60  ;;  %5538 = vmatprep.subr.bf16.mxu1 %v5537_v59 }
 0x269   :  { %v1635_v52 = vadd.f32 %v5028_v11, %v6640_v61  ;;  %v1629_v30 = vpop.f32.mrb[23].mxu1  ;;  %5528 = vmatpush3.bf16.msra.mxu0 %v5525_v60  ;;  %5540 = vmatpush3.bf16.msra.mxu1 %v5537_v59 }
 0x26a   :  { %v5529_v63 = vpack.c.bf16 %v1887_v49, %v1886_v54  ;;  %v5541_v39 = vpack.c.bf16 %v1893_v38, %v1892_v4  ;;  %v1630_v10 = vadd.f32 %v1629_v30, %v6643_v20 }
 0x26b   :  { %v1895_v18 = vmax.f32 %v1635_v52, 0.0 }
 0x26c   :  { %v1894_v32 = vmax.f32 %v1630_v10, 0.0  ;;  %5530 = vmatprep.subr.bf16.mxu0 %v5529_v63  ;;  %5542 = vmatprep.subr.bf16.mxu1 %v5541_v39 }
 0x26d   :  { %5532 = vmatpush3.bf16.msra.mxu0 %v5529_v63  ;;  %5544 = vmatpush3.bf16.msra.mxu1 %v5541_v39 }
 0x26e   :  { %v5545_v29 = vpack.c.bf16 %v1895_v18, %v1894_v32 }
 0x270   :  { %5246 = vmatmul.mubr.msk.f32.vlgmr.msra.gmra.mrb[64].mxu0 %vm2024_vm1, %v6654_v36  ;;  %5546 = vmatprep.subr.bf16.mxu1 %v5545_v29 }
 0x271   :  { %5548 = vmatpush3.bf16.msra.mxu1 %v5545_v29  ;;  %5248 = vmatprep.mubr.msk.f32.mxu0 %vm2024_vm1, %v6659_v47 }
 0x274   :  { %5249 = vmatmul.mubr.msk.f32.gmra.mrb[66].mxu0 %vm2024_vm1, %v6668_v44  ;;  %5286 = vmatmul.mubr.msk.f32.vlgmr.msra.gmra.mrb[64].mxu1 %vm2024_vm1, %v6654_v36 }
 0x275   :  { %5251 = vmatprep.mubr.msk.f32.mxu0 %vm2024_vm1, %v6673_v23  ;;  %5288 = vmatprep.mubr.msk.f32.mxu1 %vm2024_vm1, %v6659_v47 }
 0x278   :  { %5252 = vmatmul.mubr.msk.f32.gmra.mrb[68].mxu0 %vm2024_vm1, %v6684_v9  ;;  %5289 = vmatmul.mubr.msk.f32.gmra.mrb[66].mxu1 %vm2024_vm1, %v6668_v44 }
 0x279   :  { %5254 = vmatprep.mubr.msk.f32.mxu0 %vm2024_vm1, %v6691_v31  ;;  %5291 = vmatprep.mubr.msk.f32.mxu1 %vm2024_vm1, %v6673_v23 }
 0x27c   :  { %5255 = vmatmul.mubr.msk.f32.gmra.mrb[70].mxu0 %vm2024_vm1, %v6702_v55  ;;  %5292 = vmatmul.mubr.msk.f32.gmra.mrb[68].mxu1 %vm2024_vm1, %v6684_v9 }
 0x27d   :  { %5257 = vmatprep.mubr.msk.f32.mxu0 %vm2024_vm1, %v6709_v53  ;;  %5294 = vmatprep.mubr.msk.f32.mxu1 %vm2024_vm1, %v6691_v31 }
 0x280   :  { %5258 = vmatmul.mubr.msk.f32.gmra.mrb[72].mxu0 %vm2024_vm1, %v6720_v28  ;;  %5295 = vmatmul.mubr.msk.f32.gmra.mrb[70].mxu1 %vm2024_vm1, %v6702_v55 }
 0x281   :  { %5260 = vmatprep.mubr.msk.f32.mxu0 %vm2024_vm1, %v6727_v21  ;;  %5297 = vmatprep.mubr.msk.f32.mxu1 %vm2024_vm1, %v6709_v53 }
 0x284   :  { %5261 = vmatmul.mubr.msk.f32.gmra.mrb[74].mxu0 %vm2024_vm1, %v6738_v56  ;;  %5298 = vmatmul.mubr.msk.f32.gmra.mrb[72].mxu1 %vm2024_vm1, %v6720_v28 }
 0x285   :  { %5263 = vmatprep.mubr.msk.f32.mxu0 %vm2024_vm1, %v6745_v40  ;;  %5300 = vmatprep.mubr.msk.f32.mxu1 %vm2024_vm1, %v6727_v21 }
 0x288   :  { %5264 = vmatmul.mubr.msk.f32.gmra.mrb[76].mxu0 %vm2024_vm1, %v6756_v62  ;;  %5301 = vmatmul.mubr.msk.f32.gmra.mrb[74].mxu1 %vm2024_vm1, %v6738_v56 }
 0x289   :  { %5266 = vmatprep.mubr.msk.f32.mxu0 %vm2024_vm1, %v6763_v16  ;;  %5303 = vmatprep.mubr.msk.f32.mxu1 %vm2024_vm1, %v6745_v40 }
 0x28c   :  { %5267 = vmatmul.mubr.msk.f32.gmra.mrb[78].mxu0 %vm2024_vm1, %v6774_v26  ;;  %5304 = vmatmul.mubr.msk.f32.gmra.mrb[76].mxu1 %vm2024_vm1, %v6756_v62 }
 0x28d   :  { %5306 = vmatprep.mubr.msk.f32.mxu1 %vm2024_vm1, %v6763_v16  ;;  %5325 = vmatprep.mubr.msk.f32.mxu0 %vm2024_vm1, %v6609_v1 }
 0x290   :  { %5307 = vmatmul.mubr.msk.f32.gmra.mrb[78].mxu1 %vm2024_vm1, %v6774_v26 }
 0x291   :  { %5365 = vmatprep.mubr.msk.f32.mxu1 %vm2024_vm1, %v6609_v1 }
 0x29b   :  { %v5039_v0 = vpop.f32.mrb[24].mxu0 }
 0x29c   :  { %v1710_v41 = vadd.f32 %v5039_v0, %v6596_v17  ;;  %v1704_v12 = vpop.f32.mrb[25].mxu0 }
 0x29d   :  { %v1705_v13 = vadd.f32 %v1704_v12, %v6594_v14 }
 0x29e   :  { %v1897_v15 = vmax.f32 %v1710_v41, 0.0 }
 0x29f   :  { %v1896_v24 = vmax.f32 %v1705_v13, 0.0  ;;  %v5042_v33 = vpop.f32.mrb[26].mxu0  ;;  %v5059_v34 = vpop.f32.mrb[24].mxu1 }
 0x2a0   :  { %v1720_v37 = vadd.f32 %v5042_v33, %v6611_v5  ;;  %v1815_v25 = vadd.f32 %v5059_v34, %v6596_v17  ;;  %v1714_v58 = vpop.f32.mrb[27].mxu0  ;;  %v1809_v7 = vpop.f32.mrb[25].mxu1 }
 0x2a1   :  { %v5549_v2 = vpack.c.bf16 %v1897_v15, %v1896_v24  ;;  %v1715_v50 = vadd.f32 %v1714_v58, %v6621_v45  ;;  %v1810_v1 = vadd.f32 %v1809_v7, %v6594_v14 }
 0x2a2   :  { %v1899_v3 = vmax.f32 %v1720_v37, 0.0  ;;  %v1905_v43 = vmax.f32 %v1815_v25, 0.0 }
 0x2a3   :  { %v1898_v48 = vmax.f32 %v1715_v50, 0.0  ;;  %v1904_v19 = vmax.f32 %v1810_v1, 0.0  ;;  %v5045_v27 = vpop.f32.mrb[28].mxu0  ;;  %v5062_v22 = vpop.f32.mrb[26].mxu1  ;;  %5550 = vmatprep.subr.bf16.mxu0 %v5549_v2 }
 0x2a4   :  { %v1730_v57 = vadd.f32 %v5045_v27, %v6629_v8  ;;  %v1825_v35 = vadd.f32 %v5062_v22, %v6611_v5  ;;  %v1724_v51 = vpop.f32.mrb[29].mxu0  ;;  %v1819_v17 = vpop.f32.mrb[27].mxu1  ;;  %5552 = vmatpush3.bf16.msra.mxu0 %v5549_v2 }
 0x2a5   :  { %v5553_v60 = vpack.c.bf16 %v1899_v3, %v1898_v48  ;;  %v5565_v59 = vpack.c.bf16 %v1905_v43, %v1904_v19  ;;  %v1725_v6 = vadd.f32 %v1724_v51, %v6632_v42  ;;  %v1820_v14 = vadd.f32 %v1819_v17, %v6621_v45 }
 0x2a6   :  { %v1901_v46 = vmax.f32 %v1730_v57, 0.0  ;;  %v1907_v49 = vmax.f32 %v1825_v35, 0.0 }
 0x2a7   :  { %v1900_v38 = vmax.f32 %v1725_v6, 0.0  ;;  %v1906_v54 = vmax.f32 %v1820_v14, 0.0  ;;  %v5048_v4 = vpop.f32.mrb[30].mxu0  ;;  %v5065_v11 = vpop.f32.mrb[28].mxu1  ;;  %5554 = vmatprep.subr.bf16.mxu0 %v5553_v60  ;;  %5566 = vmatprep.subr.bf16.mxu1 %v5565_v59 }
 0x2a8   :  { %v1740_v52 = vadd.f32 %v5048_v4, %v6640_v61  ;;  %v1835_v5 = vadd.f32 %v5065_v11, %v6629_v8  ;;  %v1734_v30 = vpop.f32.mrb[31].mxu0  ;;  %v1829_v63 = vpop.f32.mrb[29].mxu1  ;;  %5556 = vmatpush3.bf16.msra.mxu0 %v5553_v60  ;;  %5568 = vmatpush3.bf16.msra.mxu1 %v5565_v59 }
 0x2a9   :  { %v5557_v39 = vpack.c.bf16 %v1901_v46, %v1900_v38  ;;  %v5569_v10 = vpack.c.bf16 %v1907_v49, %v1906_v54  ;;  %v1735_v45 = vadd.f32 %v1734_v30, %v6643_v20  ;;  %v1830_v18 = vadd.f32 %v1829_v63, %v6632_v42 }
 0x2aa   :  { %v1903_v32 = vmax.f32 %v1740_v52, 0.0  ;;  %v1909_v29 = vmax.f32 %v1835_v5, 0.0 }
 0x2ab   :  { %v1902_v0 = vmax.f32 %v1735_v45, 0.0  ;;  %v1908_v41 = vmax.f32 %v1830_v18, 0.0  ;;  %v5068_v12 = vpop.f32.mrb[30].mxu1  ;;  %5558 = vmatprep.subr.bf16.mxu0 %v5557_v39  ;;  %5570 = vmatprep.subr.bf16.mxu1 %v5569_v10 }
 0x2ac   :  { %v1845_v13 = vadd.f32 %v5068_v12, %v6640_v61  ;;  %v1839_v8 = vpop.f32.mrb[31].mxu1  ;;  %5560 = vmatpush3.bf16.msra.mxu0 %v5557_v39  ;;  %5572 = vmatpush3.bf16.msra.mxu1 %v5569_v10  ;;  %v6994_v61 = vpop.permute.xlu0 %1951 }
 0x2ad   :  { %v5561_v15 = vpack.c.bf16 %v1903_v32, %v1902_v0  ;;  %v5573_v24 = vpack.c.bf16 %v1909_v29, %v1908_v41  ;;  %v1840_v33 = vadd.f32 %v1839_v8, %v6643_v20 }
 0x2ae   :  { %v1911_v34 = vmax.f32 %v1845_v13, 0.0 }
 0x2af   :  { %v1910_v37 = vmax.f32 %v1840_v33, 0.0  ;;  %5562 = vmatprep.subr.bf16.mxu0 %v5561_v15  ;;  %5574 = vmatprep.subr.bf16.mxu1 %v5573_v24 }
 0x2b0   :  { %5564 = vmatpush3.bf16.msra.mxu0 %v5561_v15  ;;  %5576 = vmatpush3.bf16.msra.mxu1 %v5573_v24 }
 0x2b1   :  { %v5577_v42 = vpack.c.bf16 %v1911_v34, %v1910_v37 }
 0x2b3   :  { %5326 = vmatmul.mubr.msk.f32.vlgmr.msra.gmra.mrb[80].mxu0 %vm2024_vm1, %v6654_v36  ;;  %5578 = vmatprep.subr.bf16.mxu1 %v5577_v42 }
 0x2b4   :  { %5580 = vmatpush3.bf16.msra.mxu1 %v5577_v42  ;;  %5328 = vmatprep.mubr.msk.f32.mxu0 %vm2024_vm1, %v6659_v47 }
 0x2b7   :  { %5329 = vmatmul.mubr.msk.f32.gmra.mrb[82].mxu0 %vm2024_vm1, %v6668_v44  ;;  %5366 = vmatmul.mubr.msk.f32.vlgmr.msra.gmra.mrb[80].mxu1 %vm2024_vm1, %v6654_v36 }
 0x2b8   :  { %5331 = vmatprep.mubr.msk.f32.mxu0 %vm2024_vm1, %v6673_v23  ;;  %5368 = vmatprep.mubr.msk.f32.mxu1 %vm2024_vm1, %v6659_v47 }
 0x2bb   :  { %5332 = vmatmul.mubr.msk.f32.gmra.mrb[84].mxu0 %vm2024_vm1, %v6684_v9  ;;  %5369 = vmatmul.mubr.msk.f32.gmra.mrb[82].mxu1 %vm2024_vm1, %v6668_v44  ;;  %v6997_v44 = vpop.permute.xlu1 %1946 }
 0x2bc   :  { %5334 = vmatprep.mubr.msk.f32.mxu0 %vm2024_vm1, %v6691_v31  ;;  %5371 = vmatprep.mubr.msk.f32.mxu1 %vm2024_vm1, %v6673_v23 }
 0x2bf   :  { %5335 = vmatmul.mubr.msk.f32.gmra.mrb[86].mxu0 %vm2024_vm1, %v6702_v55  ;;  %5372 = vmatmul.mubr.msk.f32.gmra.mrb[84].mxu1 %vm2024_vm1, %v6684_v9 }
 0x2c0   :  { %5337 = vmatprep.mubr.msk.f32.mxu0 %vm2024_vm1, %v6709_v53  ;;  %5374 = vmatprep.mubr.msk.f32.mxu1 %vm2024_vm1, %v6691_v31 }
 0x2c1   :  { %v5087_v20 = vpop.f32.mrb[32].mxu0 }
 0x2c2   :  { %v2145_v36 = vadd.f32 %v5087_v20, %v6994_v61  ;;  %v2139_v47 = vpop.f32.mrb[33].mxu0 }
 0x2c3   :  { %5338 = vmatmul.mubr.msk.f32.gmra.mrb[88].mxu0 %vm2024_vm1, %v6720_v28  ;;  %5375 = vmatmul.mubr.msk.f32.gmra.mrb[86].mxu1 %vm2024_vm1, %v6702_v55  ;;  %v2140_v2 = vadd.f32 %v2139_v47, %v6997_v44 }
 0x2c4   :  { %v3236_v23 = vsel %vm2024_vm1, %v2145_v36, -inf  ;;  %5340 = vmatprep.mubr.msk.f32.mxu0 %vm2024_vm1, %v6727_v21  ;;  %5377 = vmatprep.mubr.msk.f32.mxu1 %vm2024_vm1, %v6709_v53  ;;  %v7018_v53 = vpop.permute.xlu1 %1956 }
 0x2c5   :  { %3237 = vmax.xlane.f32.xlu0 %v3236_v23  ;;  %v5090_v9 = vpop.f32.mrb[34].mxu0  ;;  %v3233_v57 = vsel %vm2024_vm1, %v2140_v2, -inf }
 0x2c6   :  { %v5127_v31 = vpop.f32.mrb[32].mxu1  ;;  %v2149_v25 = vpop.f32.mrb[35].mxu0 }
 0x2c7   :  { %v2290_v58 = vadd.f32 %v5127_v31, %v6994_v61  ;;  %v2284_v7 = vpop.f32.mrb[33].mxu1  ;;  %5341 = vmatmul.mubr.msk.f32.gmra.mrb[90].mxu0 %vm2024_vm1, %v6738_v56  ;;  %5378 = vmatmul.mubr.msk.f32.gmra.mrb[88].mxu1 %vm2024_vm1, %v6720_v28  ;;  %v2150_v3 = vadd.f32 %v2149_v25, %v7018_v53 }
 0x2c8   :  { %v2285_v55 = vadd.f32 %v2284_v7, %v6997_v44  ;;  %5343 = vmatprep.mubr.msk.f32.mxu0 %vm2024_vm1, %v6745_v40  ;;  %5380 = vmatprep.mubr.msk.f32.mxu1 %vm2024_vm1, %v6727_v21  ;;  %v7026_v21 = vpop.permute.xlu0 %1961 }
 0x2c9   :  { %v3284_v50 = vsel %vm2024_vm1, %v2290_v58, -inf  ;;  %v5093_v1 = vpop.f32.mrb[36].mxu0  ;;  %v2155_v27 = vadd.f32 %v5090_v9, %v7026_v21  ;;  %v3239_v60 = vsel %vm2024_vm1, %v2150_v3, -inf }
 0x2ca   :  { %3285 = vmax.xlane.f32.xlu1 %v3284_v50  ;;  %v5130_v43 = vpop.f32.mrb[34].mxu1  ;;  %v3281_v28 = vsel %vm2024_vm1, %v2285_v55, -inf  ;;  %v2159_v48 = vpop.f32.mrb[37].mxu0 }
 0x2cb   :  { %v2294_v19 = vpop.f32.mrb[35].mxu1  ;;  %3282 = vmax.xlane.f32.xlu0 %v3281_v28  ;;  %5344 = vmatmul.mubr.msk.f32.gmra.mrb[92].mxu0 %vm2024_vm1, %v6756_v62  ;;  %v2300_v6 = vadd.f32 %v5130_v43, %v7026_v21  ;;  %v3242_v14 = vsel %vm2024_vm1, %v2155_v27, -inf }
 0x2cc   :  { %5381 = vmatmul.mubr.msk.f32.gmra.mrb[90].mxu1 %vm2024_vm1, %v6738_v56  ;;  %5346 = vmatprep.mubr.msk.f32.mxu0 %vm2024_vm1, %v6763_v16  ;;  %v2295_v35 = vadd.f32 %v2294_v19, %v7018_v53  ;;  %v7042_v56 = vpop.permute.xlu1 %1966 }
 0x2cd   :  { %v5096_v22 = vpop.f32.mrb[38].mxu0  ;;  %5383 = vmatprep.mubr.msk.f32.mxu1 %vm2024_vm1, %v6745_v40  ;;  %v2160_v46 = vadd.f32 %v2159_v48, %v7042_v56  ;;  %v3290_v5 = vsel %vm2024_vm1, %v2300_v6, -inf }
 0x2ce   :  { %v5133_v51 = vpop.f32.mrb[36].mxu1  ;;  %3234 = vmax.xlane.f32.xlu1 %v3233_v57  ;;  %v2169_v17 = vpop.f32.mrb[39].mxu0  ;;  %v3287_v54 = vsel %vm2024_vm1, %v2295_v35, -inf }
 0x2cf   :  { %v2304_v59 = vpop.f32.mrb[37].mxu1  ;;  %3240 = vmax.xlane.f32.xlu0 %v3239_v60  ;;  %5347 = vmatmul.mubr.msk.f32.gmra.mrb[94].mxu0 %vm2024_vm1, %v6774_v26  ;;  %v3245_v39 = vsel %vm2024_vm1, %v2160_v46, -inf }
 0x2d0   :  { %5384 = vmatmul.mubr.msk.f32.gmra.mrb[92].mxu1 %vm2024_vm1, %v6756_v62  ;;  %v7050_v62 = vpop.permute.xlu0 %1971  ;;  %v7058_v45 = vpop.permute.xlu1 %1976 }
 0x2d1   :  { %v5099_v40 = vpop.f32.mrb[40].mxu0  ;;  %5386 = vmatprep.mubr.msk.f32.mxu1 %vm2024_vm1, %v6763_v16  ;;  %v2165_v11 = vadd.f32 %v5093_v1, %v7050_v62  ;;  %v2305_v16 = vadd.f32 %v2304_v59, %v7042_v56  ;;  %v2310_v18 = vadd.f32 %v5133_v51, %v7050_v62  ;;  %v2170_v29 = vadd.f32 %v2169_v17, %v7058_v45 }
 0x2d2   :  { %v5136_v49 = vpop.f32.mrb[38].mxu1  ;;  %3243 = vmax.xlane.f32.xlu1 %v3242_v14  ;;  %v2179_v38 = vpop.f32.mrb[41].mxu0 }
 0x2d3   :  { %v2314_v4 = vpop.f32.mrb[39].mxu1  ;;  %3288 = vmax.xlane.f32.xlu0 %v3287_v54  ;;  %v3293_v12 = vsel %vm2024_vm1, %v2305_v16, -inf  ;;  %v3296_v33 = vsel %vm2024_vm1, %v2310_v18, -inf  ;;  %v3251_v20 = vsel %vm2024_vm1, %v2170_v29, -inf }
 0x2d4   :  { %5387 = vmatmul.mubr.msk.f32.gmra.mrb[94].mxu1 %vm2024_vm1, %v6774_v26  ;;  %v3248_v26 = vsel %vm2024_vm1, %v2165_v11, -inf  ;;  %v7064_v8 = vpop.permute.xlu0 %1981  ;;  %v2315_v34 = vadd.f32 %v2314_v4, %v7058_v45  ;;  %v7070_v47 = vpop.permute.xlu1 %1986 }
 0x2d5   :  { %v5102_v52 = vpop.f32.mrb[42].mxu0  ;;  %v2175_v15 = vadd.f32 %v5096_v22, %v7064_v8  ;;  %v2320_v23 = vadd.f32 %v5136_v49, %v7064_v8  ;;  %v2180_v31 = vadd.f32 %v2179_v38, %v7070_v47 }
 0x2d6   :  { %v5139_v30 = vpop.f32.mrb[40].mxu1  ;;  %3291 = vmax.xlane.f32.xlu1 %v3290_v5  ;;  %v2189_v63 = vpop.f32.mrb[43].mxu0  ;;  %v3299_v58 = vsel %vm2024_vm1, %v2315_v34, -inf }
 0x2d7   :  { %v2324_v10 = vpop.f32.mrb[41].mxu1  ;;  %3246 = vmax.xlane.f32.xlu0 %v3245_v39  ;;  %v3254_v9 = vsel %vm2024_vm1, %v2175_v15, -inf  ;;  %v3302_v50 = vsel %vm2024_vm1, %v2320_v23, -inf  ;;  %v3257_v3 = vsel %vm2024_vm1, %v2180_v31, -inf }
 0x2d8   :  { %v7076_v55 = vpop.permute.xlu0 %1991  ;;  %v2325_v1 = vadd.f32 %v2324_v10, %v7070_v47  ;;  %v7082_v43 = vpop.permute.xlu1 %1996 }
 0x2d9   :  { %v5105_v32 = vpop.f32.mrb[44].mxu0  ;;  %v2185_v2 = vadd.f32 %v5099_v40, %v7076_v55  ;;  %v2330_v28 = vadd.f32 %v5139_v30, %v7076_v55  ;;  %v2190_v19 = vadd.f32 %v2189_v63, %v7082_v43 }
 0x2da   :  { %v5142_v0 = vpop.f32.mrb[42].mxu1  ;;  %3249 = vmax.xlane.f32.xlu1 %v3248_v26  ;;  %v2199_v41 = vpop.f32.mrb[45].mxu0  ;;  %v3305_v27 = vsel %vm2024_vm1, %v2325_v1, -inf }
 0x2db   :  { %v2334_v13 = vpop.f32.mrb[43].mxu1  ;;  %3294 = vmax.xlane.f32.xlu0 %v3293_v12  ;;  %v3260_v48 = vsel %vm2024_vm1, %v2185_v2, -inf  ;;  %v3308_v35 = vsel %vm2024_vm1, %v2330_v28, -inf  ;;  %v3263_v17 = vsel %vm2024_vm1, %v2190_v19, -inf }
 0x2dc   :  { %v7088_v22 = vpop.permute.xlu0 %2001  ;;  %v2335_v51 = vadd.f32 %v2334_v13, %v7082_v43  ;;  %v7094_v60 = vpop.permute.xlu1 %2006 }
 0x2dd   :  { %v5108_v24 = vpop.f32.mrb[46].mxu0  ;;  %v2195_v57 = vadd.f32 %v5102_v52, %v7088_v22  ;;  %v2340_v59 = vadd.f32 %v5142_v0, %v7088_v22  ;;  %v2200_v40 = vadd.f32 %v2199_v41, %v7094_v60 }
 0x2de   :  { %v5145_v37 = vpop.f32.mrb[44].mxu1  ;;  %3297 = vmax.xlane.f32.xlu1 %v3296_v33  ;;  %v2209_v42 = vpop.f32.mrb[47].mxu0  ;;  %v3311_v14 = vsel %vm2024_vm1, %v2335_v51, -inf }
 0x2df   :  { %v2344_v36 = vpop.f32.mrb[45].mxu1  ;;  %3252 = vmax.xlane.f32.xlu0 %v3251_v20  ;;  %v3266_v6 = vsel %vm2024_vm1, %v2195_v57, -inf  ;;  %v3314_v38 = vsel %vm2024_vm1, %v2340_v59, -inf  ;;  %v3269_v4 = vsel %vm2024_vm1, %v2200_v40, -inf }
 0x2e0   :  { %v7100_v46 = vpop.permute.xlu0 %2011  ;;  %v2345_v54 = vadd.f32 %v2344_v36, %v7094_v60  ;;  %v7106_v11 = vpop.permute.xlu1 %2016 }
 0x2e1   :  { %v2205_v49 = vadd.f32 %v5105_v32, %v7100_v46  ;;  %v2350_v52 = vadd.f32 %v5145_v37, %v7100_v46  ;;  %v2210_v16 = vadd.f32 %v2209_v42, %v7106_v11 }
 0x2e2   :  { %v5148_v25 = vpop.f32.mrb[46].mxu1  ;;  %3255 = vmax.xlane.f32.xlu1 %v3254_v9  ;;  %v3317_v30 = vsel %vm2024_vm1, %v2345_v54, -inf }
 0x2e3   :  { %v2354_v7 = vpop.f32.mrb[47].mxu1  ;;  %3300 = vmax.xlane.f32.xlu0 %v3299_v58  ;;  %v3272_v5 = vsel %vm2024_vm1, %v2205_v49, -inf  ;;  %v3320_v10 = vsel %vm2024_vm1, %v2350_v52, -inf  ;;  %v3275_v32 = vsel %vm2024_vm1, %v2210_v16, -inf }
 0x2e4   :  { %v7112_v63 = vpop.permute.xlu0 %2021  ;;  %v2355_v18 = vadd.f32 %v2354_v7, %v7106_v11 }
 0x2e5   :  { %v2215_v39 = vadd.f32 %v5108_v24, %v7112_v63  ;;  %v2360_v26 = vadd.f32 %v5148_v25, %v7112_v63 }
 0x2e6   :  { %3303 = vmax.xlane.f32.xlu1 %v3302_v50  ;;  %v3323_v0 = vsel %vm2024_vm1, %v2355_v18, -inf }
 0x2e7   :  { %3258 = vmax.xlane.f32.xlu0 %v3257_v3  ;;  %v3278_v29 = vsel %vm2024_vm1, %v2215_v39, -inf  ;;  %v3326_v15 = vsel %vm2024_vm1, %v2360_v26, -inf }
 0x2ea   :  { %3261 = vmax.xlane.f32.xlu1 %v3260_v48 }
 0x2eb   :  { %3306 = vmax.xlane.f32.xlu0 %v3305_v27 }
 0x2ee   :  { %3309 = vmax.xlane.f32.xlu1 %v3308_v35 }
 0x2ef   :  { %3264 = vmax.xlane.f32.xlu0 %v3263_v17 }
 0x2f2   :  { %3267 = vmax.xlane.f32.xlu1 %v3266_v6 }
 0x2f3   :  { %3312 = vmax.xlane.f32.xlu0 %v3311_v14 }
 0x2f6   :  { %3315 = vmax.xlane.f32.xlu1 %v3314_v38 }
 0x2f7   :  { %3270 = vmax.xlane.f32.xlu0 %v3269_v4 }
 0x2fa   :  { %3273 = vmax.xlane.f32.xlu1 %v3272_v5 }
 0x2fb   :  { %3318 = vmax.xlane.f32.xlu0 %v3317_v30 }
 0x2fe   :  { %3321 = vmax.xlane.f32.xlu1 %v3320_v10 }
 0x2ff   :  { %3276 = vmax.xlane.f32.xlu0 %v3275_v32 }
 0x302   :  { %3279 = vmax.xlane.f32.xlu1 %v3278_v29 }
 0x303   :  { %3324 = vmax.xlane.f32.xlu0 %v3323_v0 }
 0x304   :  { %v5167_v41 = vpop.f32.mrb[48].mxu0 }
 0x305   :  { %v2435_v12 = vadd.f32 %v5167_v41, %v6994_v61  ;;  %v2429_v13 = vpop.f32.mrb[49].mxu0 }
 0x306   :  { %v2430_v24 = vadd.f32 %v2429_v13, %v6997_v44  ;;  %3327 = vmax.xlane.f32.xlu1 %v3326_v15 }
 0x307   :  { %v3332_v33 = vsel %vm2024_vm1, %v2435_v12, -inf }
 0x308   :  { %v5170_v34 = vpop.f32.mrb[50].mxu0  ;;  %v3329_v37 = vsel %vm2024_vm1, %v2430_v24, -inf }
 0x309   :  { %v5207_v42 = vpop.f32.mrb[48].mxu1  ;;  %v2439_v20 = vpop.f32.mrb[51].mxu0  ;;  %3330 = vmax.xlane.f32.xlu0 %v3329_v37  ;;  %v2445_v58 = vadd.f32 %v5170_v34, %v7026_v21 }
 0x30a   :  { %v2580_v36 = vadd.f32 %v5207_v42, %v6994_v61  ;;  %v2574_v23 = vpop.f32.mrb[49].mxu1  ;;  %3333 = vmax.xlane.f32.xlu1 %v3332_v33  ;;  %v2440_v7 = vadd.f32 %v2439_v20, %v7018_v53 }
 0x30b   :  { %v2575_v9 = vadd.f32 %v2574_v23, %v6997_v44  ;;  %v3338_v51 = vsel %vm2024_vm1, %v2445_v58, -inf }
 0x30c   :  { %v5173_v31 = vpop.f32.mrb[52].mxu0  ;;  %v3380_v25 = vsel %vm2024_vm1, %v2580_v36, -inf  ;;  %v3335_v35 = vsel %vm2024_vm1, %v2440_v7, -inf }
 0x30d   :  { %v5210_v2 = vpop.f32.mrb[50].mxu1  ;;  %v2449_v50 = vpop.f32.mrb[53].mxu0  ;;  %v3377_v1 = vsel %vm2024_vm1, %v2575_v9, -inf  ;;  %v2455_v6 = vadd.f32 %v5173_v31, %v7050_v62 }
 0x30e   :  { %v2584_v3 = vpop.f32.mrb[51].mxu1  ;;  %3378 = vmax.xlane.f32.xlu0 %v3377_v1  ;;  %3381 = vmax.xlane.f32.xlu1 %v3380_v25  ;;  %v2590_v48 = vadd.f32 %v5210_v2, %v7026_v21  ;;  %v2450_v40 = vadd.f32 %v2449_v50, %v7042_v56 }
 0x30f   :  { %v2585_v19 = vadd.f32 %v2584_v3, %v7018_v53  ;;  %v3344_v18 = vsel %vm2024_vm1, %v2455_v6, -inf }
 0x310   :  { %v5176_v28 = vpop.f32.mrb[54].mxu0  ;;  %v3386_v54 = vsel %vm2024_vm1, %v2590_v48, -inf  ;;  %v3341_v10 = vsel %vm2024_vm1, %v2450_v40, -inf }
 0x311   :  { %v5213_v27 = vpop.f32.mrb[52].mxu1  ;;  %v2459_v57 = vpop.f32.mrb[55].mxu0  ;;  %v3383_v38 = vsel %vm2024_vm1, %v2585_v19, -inf  ;;  %v2465_v29 = vadd.f32 %v5176_v28, %v7064_v8 }
 0x312   :  { %v2594_v17 = vpop.f32.mrb[53].mxu1  ;;  %3336 = vmax.xlane.f32.xlu0 %v3335_v35  ;;  %3339 = vmax.xlane.f32.xlu1 %v3338_v51  ;;  %v2600_v5 = vadd.f32 %v5213_v27, %v7050_v62  ;;  %v2460_v0 = vadd.f32 %v2459_v57, %v7058_v45 }
 0x313   :  { %v2595_v16 = vadd.f32 %v2594_v17, %v7042_v56  ;;  %v3350_v23 = vsel %vm2024_vm1, %v2465_v29, -inf }
 0x314   :  { %v5179_v59 = vpop.f32.mrb[56].mxu0  ;;  %v3392_v15 = vsel %vm2024_vm1, %v2600_v5, -inf  ;;  %v3347_v36 = vsel %vm2024_vm1, %v2460_v0, -inf }
 0x315   :  { %v5216_v14 = vpop.f32.mrb[54].mxu1  ;;  %v2469_v49 = vpop.f32.mrb[57].mxu0  ;;  %v3389_v13 = vsel %vm2024_vm1, %v2595_v16, -inf  ;;  %v2475_v31 = vadd.f32 %v5179_v59, %v7076_v55 }
 0x316   :  { %v2604_v4 = vpop.f32.mrb[55].mxu1  ;;  %3384 = vmax.xlane.f32.xlu0 %v3383_v38  ;;  %3387 = vmax.xlane.f32.xlu1 %v3386_v54  ;;  %v2610_v34 = vadd.f32 %v5216_v14, %v7064_v8  ;;  %v2470_v25 = vadd.f32 %v2469_v49, %v7070_v47 }
 0x317   :  { %v2605_v37 = vadd.f32 %v2604_v4, %v7058_v45  ;;  %v3356_v48 = vsel %vm2024_vm1, %v2475_v31, -inf }
 0x318   :  { %v5182_v52 = vpop.f32.mrb[58].mxu0  ;;  %v3398_v2 = vsel %vm2024_vm1, %v2610_v34, -inf  ;;  %v3353_v28 = vsel %vm2024_vm1, %v2470_v25, -inf }
 0x319   :  { %v5219_v30 = vpop.f32.mrb[56].mxu1  ;;  %v2479_v39 = vpop.f32.mrb[59].mxu0  ;;  %v3395_v7 = vsel %vm2024_vm1, %v2605_v37, -inf  ;;  %v2485_v19 = vadd.f32 %v5182_v52, %v7088_v22 }
 0x31a   :  { %v2614_v32 = vpop.f32.mrb[57].mxu1  ;;  %3342 = vmax.xlane.f32.xlu0 %v3341_v10  ;;  %3345 = vmax.xlane.f32.xlu1 %v3344_v18  ;;  %v2620_v1 = vadd.f32 %v5219_v30, %v7076_v55  ;;  %v2480_v27 = vadd.f32 %v2479_v39, %v7082_v43 }
 0x31b   :  { %v2615_v3 = vadd.f32 %v2614_v32, %v7070_v47  ;;  %v3362_v6 = vsel %vm2024_vm1, %v2485_v19, -inf }
 0x31c   :  { %v5185_v26 = vpop.f32.mrb[60].mxu0  ;;  %v3404_v35 = vsel %vm2024_vm1, %v2620_v1, -inf  ;;  %v3359_v59 = vsel %vm2024_vm1, %v2480_v27, -inf }
 0x31d   :  { %v5222_v41 = vpop.f32.mrb[58].mxu1  ;;  %v2489_v12 = vpop.f32.mrb[61].mxu0  ;;  %v3401_v57 = vsel %vm2024_vm1, %v2615_v3, -inf  ;;  %v2495_v40 = vadd.f32 %v5185_v26, %v7100_v46 }
 0x31e   :  { %v2624_v24 = vpop.f32.mrb[59].mxu1  ;;  %3390 = vmax.xlane.f32.xlu0 %v3389_v13  ;;  %3393 = vmax.xlane.f32.xlu1 %v3392_v15  ;;  %v2630_v51 = vadd.f32 %v5222_v41, %v7088_v22  ;;  %v2490_v14 = vadd.f32 %v2489_v12, %v7094_v60 }
 0x31f   :  { %v2625_v17 = vadd.f32 %v2624_v24, %v7082_v43  ;;  %v3368_v5 = vsel %vm2024_vm1, %v2495_v40, -inf }
 0x320   :  { %v5188_v33 = vpop.f32.mrb[62].mxu0  ;;  %v3410_v38 = vsel %vm2024_vm1, %v2630_v51, -inf  ;;  %v3365_v52 = vsel %vm2024_vm1, %v2490_v14, -inf }
 0x321   :  { %v5225_v42 = vpop.f32.mrb[60].mxu1  ;;  %v2499_v20 = vpop.f32.mrb[63].mxu0  ;;  %v3407_v49 = vsel %vm2024_vm1, %v2625_v17, -inf  ;;  %v2505_v16 = vadd.f32 %v5188_v33, %v7112_v63 }
 0x322   :  { %v2634_v9 = vpop.f32.mrb[61].mxu1  ;;  %3348 = vmax.xlane.f32.xlu0 %v3347_v36  ;;  %3351 = vmax.xlane.f32.xlu1 %v3350_v23  ;;  %v2640_v54 = vadd.f32 %v5225_v42, %v7100_v46  ;;  %v2500_v30 = vadd.f32 %v2499_v20, %v7106_v11 }
 0x323   :  { %v2635_v4 = vadd.f32 %v2634_v9, %v7094_v60  ;;  %v3374_v29 = vsel %vm2024_vm1, %v2505_v16, -inf }
 0x324   :  { %v3416_v10 = vsel %vm2024_vm1, %v2640_v54, -inf  ;;  %v3371_v26 = vsel %vm2024_vm1, %v2500_v30, -inf }
 0x325   :  { %v5228_v58 = vpop.f32.mrb[62].mxu1  ;;  %v3413_v39 = vsel %vm2024_vm1, %v2635_v4, -inf }
 0x326   :  { %v2644_v50 = vpop.f32.mrb[63].mxu1  ;;  %3396 = vmax.xlane.f32.xlu0 %v3395_v7  ;;  %3399 = vmax.xlane.f32.xlu1 %v3398_v2  ;;  %v2650_v18 = vadd.f32 %v5228_v58, %v7112_v63 }
 0x327   :  { %v2645_v32 = vadd.f32 %v2644_v50, %v7106_v11 }
 0x328   :  { %v3422_v24 = vsel %vm2024_vm1, %v2650_v18, -inf }
 0x329   :  { %v3419_v15 = vsel %vm2024_vm1, %v2645_v32, -inf }
 0x32a   :  { %3354 = vmax.xlane.f32.xlu0 %v3353_v28  ;;  %3357 = vmax.xlane.f32.xlu1 %v3356_v48  ;;  %v7832_v28 = vlaneseq }
 0x32c   :  { %v7197_v48 = vand.u32 127, %v7832_v28 }
 0x32e   :  { %3402 = vmax.xlane.f32.xlu0 %v3401_v57  ;;  %3405 = vmax.xlane.f32.xlu1 %v3404_v35  ;;  %v3751_v40 = vadd.s32 4294967288, %v7197_v48  ;;  %v3758_v16 = vadd.s32 4294967280, %v7197_v48 }
 0x332   :  { %3360 = vmax.xlane.f32.xlu0 %v3359_v59  ;;  %3363 = vmax.xlane.f32.xlu1 %v3362_v6 }
 0x336   :  { %3408 = vmax.xlane.f32.xlu0 %v3407_v49  ;;  %3411 = vmax.xlane.f32.xlu1 %v3410_v38 }
 0x33a   :  { %3366 = vmax.xlane.f32.xlu0 %v3365_v52  ;;  %3369 = vmax.xlane.f32.xlu1 %v3368_v5  ;;  %v7833_v52 = vld [vmem:[#allocation2_spill] sm:$0xff] }
 0x33b   :  { %v7212_v5 = vsub.s32 %v7197_v48, %v7833_v52  ;;  %v7220_v32 = vsub.s32 %v3751_v40, %v7833_v52 }
 0x33e   :  { %3414 = vmax.xlane.f32.xlu0 %v3413_v39  ;;  %3417 = vmax.xlane.f32.xlu1 %v3416_v10 }
 0x342   :  { %3372 = vmax.xlane.f32.xlu0 %v3371_v26  ;;  %3375 = vmax.xlane.f32.xlu1 %v3374_v29 }
 0x343   :  { %v5247_v0 = vpop.f32.mrb[64].mxu0 }
 0x344   :  { %v2719_v41 = vpop.f32.mrb[65].mxu0  ;;  %v2725_v12 = vadd.f32 %v5247_v0, %v6994_v61  ;;  %v3765_v0 = vadd.s32 4294967272, %v7197_v48 }
 0x345   :  { %v2720_v13 = vadd.f32 %v2719_v41, %v6997_v44 }
 0x346   :  { %3420 = vmax.xlane.f32.xlu0 %v3419_v15  ;;  %3423 = vmax.xlane.f32.xlu1 %v3422_v24  ;;  %v3428_v9 = vsel %vm2024_vm1, %v2725_v12, -inf  ;;  %v7230_v24 = vsub.s32 %v3758_v16, %v7833_v52 }
 0x347   :  { %v5250_v33 = vpop.f32.mrb[66].mxu0  ;;  %v5287_v34 = vpop.f32.mrb[64].mxu1  ;;  %v3425_v37 = vsel %vm2024_vm1, %v2720_v13, -inf }
 0x348   :  { %v2729_v42 = vpop.f32.mrb[67].mxu0  ;;  %v2864_v20 = vpop.f32.mrb[65].mxu1  ;;  %v2870_v36 = vadd.f32 %v5287_v34, %v6994_v61  ;;  %v2735_v50 = vadd.f32 %v5250_v33, %v7026_v21 }
 0x349   :  { %v2865_v23 = vadd.f32 %v2864_v20, %v6997_v44  ;;  %v2730_v1 = vadd.f32 %v2729_v42, %v7018_v53 }
 0x34a   :  { %3426 = vmax.xlane.f32.xlu0 %v3425_v37  ;;  %3429 = vmax.xlane.f32.xlu1 %v3428_v9  ;;  %v3476_v3 = vsel %vm2024_vm1, %v2870_v36, -inf  ;;  %v3434_v6 = vsel %vm2024_vm1, %v2735_v50, -inf }
 0x34b   :  { %v5253_v31 = vpop.f32.mrb[68].mxu0  ;;  %v5290_v25 = vpop.f32.mrb[66].mxu1  ;;  %v3473_v58 = vsel %vm2024_vm1, %v2865_v23, -inf  ;;  %v3431_v59 = vsel %vm2024_vm1, %v2730_v1, -inf }
 0x34c   :  { %v2739_v7 = vpop.f32.mrb[69].mxu0  ;;  %v2874_v2 = vpop.f32.mrb[67].mxu1  ;;  %v2880_v51 = vadd.f32 %v5290_v25, %v7026_v21  ;;  %v2745_v30 = vadd.f32 %v5253_v31, %v7050_v62  ;;  %v7244_v25 = vsub.s32 %v3765_v0, %v7833_v52 }
 0x34d   :  { %v2875_v17 = vadd.f32 %v2874_v2, %v7018_v53  ;;  %v2740_v41 = vadd.f32 %v2739_v7, %v7042_v56 }
 0x34e   :  { %3474 = vmax.xlane.f32.xlu0 %v3473_v58  ;;  %3477 = vmax.xlane.f32.xlu1 %v3476_v3  ;;  %v3482_v18 = vsel %vm2024_vm1, %v2880_v51, -inf  ;;  %v3440_v36 = vsel %vm2024_vm1, %v2745_v30, -inf  ;;  %v3772_v3 = vadd.s32 4294967264, %v7197_v48 }
 0x34f   :  { %v5256_v19 = vpop.f32.mrb[70].mxu0  ;;  %v5293_v27 = vpop.f32.mrb[68].mxu1  ;;  %v3479_v10 = vsel %vm2024_vm1, %v2875_v17, -inf  ;;  %v3437_v1 = vsel %vm2024_vm1, %v2740_v41, -inf }
 0x350   :  { %v7199_v57 = vpop.f32.mrb[71].mxu0  ;;  %v2884_v35 = vpop.f32.mrb[69].mxu1  ;;  %v2890_v39 = vadd.f32 %v5293_v27, %v7050_v62  ;;  %v2755_v28 = vadd.f32 %v5256_v19, %v7064_v8 }
 0x351   :  { %v2885_v33 = vadd.f32 %v2884_v35, %v7042_v56  ;;  %v2750_v19 = vadd.f32 %v7199_v57, %v7058_v45 }
 0x352   :  { %3432 = vmax.xlane.f32.xlu0 %v3431_v59  ;;  %3435 = vmax.xlane.f32.xlu1 %v3434_v6  ;;  %v3238_v14 = vpop.xlane.xlu0 %3237  ;;  %v3488_v20 = vsel %vm2024_vm1, %v2890_v39, -inf }
 0x353   :  { %v7206_v49 = vpop.f32.mrb[72].mxu0  ;;  %v5296_v38 = vpop.f32.mrb[70].mxu1  ;;  %v3755_v58 = vrot.slane %v3238_v14, %v7220_v32  ;;  %v3485_v59 = vsel %vm2024_vm1, %v2885_v33, -inf }
 0x354   :  { %v7208_v54 = vpop.f32.mrb[73].mxu0  ;;  %v2894_v4 = vpop.f32.mrb[71].mxu1  ;;  %v2900_v27 = vadd.f32 %v5296_v38, %v7064_v8 }
 0x356   :  { %3480 = vmax.xlane.f32.xlu0 %v3479_v10  ;;  %3483 = vmax.xlane.f32.xlu1 %v3482_v18  ;;  %v7270_v10 = vsub.s32 %v3772_v3, %v7833_v52  ;;  %v3779_v18 = vadd.s32 4294967256, %v7197_v48  ;;  %v3494_v57 = vsel %vm2024_vm1, %v2900_v27, -inf  ;;  %v2765_v3 = vadd.f32 %v7206_v49, %v7076_v55 }
 0x357   :  { %v3286_v26 = vpop.xlane.xlu1 %3285  ;;  %v7222_v29 = vpop.f32.mrb[72].mxu1 }
 0x358   :  { %v3863_v12 = vrot.slane %v3286_v26, %v7220_v32  ;;  %v3283_v13 = vpop.xlane.xlu0 %3282  ;;  %v7227_v15 = vpop.f32.mrb[74].mxu0  ;;  %v2895_v26 = vadd.f32 %v2894_v4, %v7058_v45 }
 0x359   :  { %v3859_v34 = vrot.slane %v3283_v13, %v7212_v5  ;;  %v7234_v37 = vpop.f32.mrb[75].mxu0  ;;  %v7236_v42 = vpop.f32.mrb[73].mxu1  ;;  %v3446_v13 = vsel %vm2024_vm1, %v2755_v28, -inf }
 0x35a   :  { %3489 = vmax.xlane.f32.xlu0 %v3488_v20  ;;  %3441 = vmax.xlane.f32.xlu1 %v3440_v36  ;;  %v3491_v27 = vsel %vm2024_vm1, %v2895_v26, -inf  ;;  %v3452_v26 = vsel %vm2024_vm1, %v2765_v3, -inf }
 0x35b   :  { %v3864_v23 = vsel %vm3756_vm2, %v3863_v12, %v3859_v34  ;;  %v3235_v9 = vpop.xlane.xlu1 %3234  ;;  %v7241_v31 = vpop.f32.mrb[76].mxu0 }
 0x35c   :  { %v3750_v7 = vrot.slane %v3235_v9, %v7212_v5  ;;  %v7248_v2 = vpop.f32.mrb[74].mxu1  ;;  %v3241_v50 = vpop.xlane.xlu0 %3240 }
 0x35d   :  { %v3762_v35 = vrot.slane %v3241_v50, %v7230_v24  ;;  %v7255_v51 = vpop.f32.mrb[77].mxu0  ;;  %v7257_v17 = vpop.f32.mrb[75].mxu1  ;;  %v7290_v50 = vsub.s32 %v3779_v18, %v7833_v52 }
 0x35e   :  { %v3757_v6 = vsel %vm3756_vm2, %v3755_v58, %v3750_v7  ;;  %3438 = vmax.xlane.f32.xlu0 %v3437_v1  ;;  %3486 = vmax.xlane.f32.xlu1 %v3485_v59  ;;  %v3443_v7 = vsel %vm2024_vm1, %v2750_v19, -inf  ;;  %v3786_v1 = vadd.s32 4294967248, %v7197_v48  ;;  %v3793_v19 = vadd.s32 4294967240, %v7197_v48 }
 0x35f   :  { %v3764_v40 = vsel %vm3763_vm3, %v3762_v35, %v3757_v6  ;;  %v3244_v14 = vpop.xlane.xlu1 %3243  ;;  %v7262_v16 = vpop.f32.mrb[78].mxu0 }
 0x360   :  { %v3769_v38 = vrot.slane %v3244_v14, %v7244_v25  ;;  %v7267_v30 = vpop.f32.mrb[76].mxu1  ;;  %v3289_v39 = vpop.xlane.xlu0 %3288 }
 0x361   :  { %v3868_v0 = vrot.slane %v3289_v39, %v7230_v24  ;;  %v7275_v41 = vpop.f32.mrb[79].mxu0  ;;  %v7277_v12 = vpop.f32.mrb[77].mxu1 }
 0x362   :  { %v3771_v33 = vsel %vm3770_vm4, %v3769_v38, %v3764_v40  ;;  %3495 = vmax.xlane.f32.xlu0 %v3494_v57  ;;  %3447 = vmax.xlane.f32.xlu1 %v3446_v13  ;;  %v2760_v40 = vadd.f32 %v7208_v54, %v7070_v47  ;;  %v2905_v38 = vadd.f32 %v7236_v42, %v7070_v47 }
 0x363   :  { %v3869_v34 = vsel %vm3763_vm3, %v3868_v0, %v3864_v23  ;;  %v3292_v20 = vpop.xlane.xlu1 %3291  ;;  %v7283_v36 = vpop.f32.mrb[78].mxu1  ;;  %v2910_v23 = vadd.f32 %v7222_v29, %v7076_v55  ;;  %v7305_v29 = vsub.s32 %v3786_v1, %v7833_v52  ;;  %v7318_v42 = vsub.s32 %v3793_v19, %v7833_v52 }
 0x364   :  { %v3873_v4 = vrot.slane %v3292_v20, %v7244_v25  ;;  %v3247_v9 = vpop.xlane.xlu0 %3246  ;;  %v7286_v58 = vpop.f32.mrb[79].mxu1  ;;  %v3800_v20 = vadd.s32 4294967232, %v7197_v48  ;;  %v3497_v1 = vsel %vm2024_vm1, %v2905_v38, -inf }
 0x365   :  { %v3776_v28 = vrot.slane %v3247_v9, %v7270_v10  ;;  %v3500_v18 = vsel %vm2024_vm1, %v2910_v23, -inf  ;;  %v2920_v9 = vadd.f32 %v7248_v2, %v7088_v22 }
 0x366   :  { %v3874_v35 = vsel %vm3770_vm4, %v3873_v4, %v3869_v34  ;;  %3444 = vmax.xlane.f32.xlu0 %v3443_v7  ;;  %3492 = vmax.xlane.f32.xlu1 %v3491_v27  ;;  %v3449_v34 = vsel %vm2024_vm1, %v2760_v40, -inf  ;;  %v2775_v4 = vadd.f32 %v7227_v15, %v7088_v22  ;;  %v2770_v27 = vadd.f32 %v7234_v37, %v7082_v43 }
 0x367   :  { %v3778_v59 = vsel %vm3777_vm5, %v3776_v28, %v3771_v33  ;;  %v3250_v6 = vpop.xlane.xlu1 %3249  ;;  %v7333_v2 = vsub.s32 %v3800_v20, %v7833_v52 }
 0x368   :  { %v3783_v49 = vrot.slane %v3250_v6, %v7290_v50  ;;  %v3295_v14 = vpop.xlane.xlu0 %3294  ;;  %v2915_v6 = vadd.f32 %v7257_v17, %v7082_v43 }
 0x369   :  { %v3878_v39 = vrot.slane %v3295_v14, %v7270_v10  ;;  %v3458_v14 = vsel %vm2024_vm1, %v2775_v4, -inf  ;;  %v2780_v4 = vadd.f32 %v7255_v51, %v7094_v60 }
 0x36a   :  { %v3785_v0 = vsel %vm3784_vm6, %v3783_v49, %v3778_v59  ;;  %3501 = vmax.xlane.f32.xlu0 %v3500_v18  ;;  %3453 = vmax.xlane.f32.xlu1 %v3452_v26  ;;  %v3807_v59 = vadd.s32 4294967224, %v7197_v48  ;;  %v3506_v49 = vsel %vm2024_vm1, %v2920_v9, -inf }
 0x36b   :  { %v3879_v54 = vsel %vm3777_vm5, %v3878_v39, %v3874_v35  ;;  %v3298_v57 = vpop.xlane.xlu1 %3297  ;;  %v2785_v39 = vadd.f32 %v7241_v31, %v7100_v46 }
 0x36c   :  { %v3883_v13 = vrot.slane %v3298_v57, %v7290_v50  ;;  %v3253_v33 = vpop.xlane.xlu0 %3252  ;;  %v7347_v26 = vsub.s32 %v3807_v59, %v7833_v52  ;;  %v2795_v59 = vadd.f32 %v7262_v16, %v7112_v63 }
 0x36d   :  { %v3790_v7 = vrot.slane %v3253_v33, %v7305_v29  ;;  %v3503_v33 = vsel %vm2024_vm1, %v2915_v6, -inf }
 0x36e   :  { %v3884_v3 = vsel %vm3784_vm6, %v3883_v13, %v3879_v54  ;;  %3450 = vmax.xlane.f32.xlu0 %v3449_v34  ;;  %3498 = vmax.xlane.f32.xlu1 %v3497_v1  ;;  %v2930_v54 = vadd.f32 %v7267_v30, %v7100_v46  ;;  %v3455_v13 = vsel %vm2024_vm1, %v2770_v27, -inf  ;;  %v3821_v1 = vadd.s32 4294967208, %v7197_v48 }
 0x36f   :  { %v3792_v23 = vsel %vm3791_vm7, %v3790_v7, %v3785_v0  ;;  %v3256_v28 = vpop.xlane.xlu1 %3255  ;;  %v3814_v0 = vadd.s32 4294967216, %v7197_v48  ;;  %v3464_v27 = vsel %vm2024_vm1, %v2785_v39, -inf }
 0x370   :  { %v3797_v15 = vrot.slane %v3256_v28, %v7318_v42  ;;  %v3301_v35 = vpop.xlane.xlu0 %3300  ;;  %v3512_v28 = vsel %vm2024_vm1, %v2930_v54, -inf }
 0x371   :  { %v3888_v40 = vrot.slane %v3301_v35, %v7305_v29  ;;  %v7361_v7 = vsub.s32 %v3814_v0, %v7833_v52 }
 0x372   :  { %v3799_v19 = vsel %vm3798_vm8, %v3797_v15, %v3792_v23  ;;  %3507 = vmax.xlane.f32.xlu0 %v3506_v49  ;;  %3459 = vmax.xlane.f32.xlu1 %v3458_v14  ;;  %v3828_v49 = vadd.s32 4294967200, %v7197_v48  ;;  %v2940_v14 = vadd.f32 %v7283_v36, %v7112_v63 }
 0x373   :  { %v3889_v37 = vsel %vm3791_vm7, %v3888_v40, %v3884_v3  ;;  %v3304_v38 = vpop.xlane.xlu1 %3303  ;;  %v2925_v3 = vadd.f32 %v7277_v12, %v7094_v60  ;;  %v7375_v40 = vsub.s32 %v3821_v1, %v7833_v52 }
 0x374   :  { %v3893_v18 = vrot.slane %v3304_v38, %v7318_v42  ;;  %v3259_v17 = vpop.xlane.xlu0 %3258  ;;  %v7389_v54 = vsub.s32 %v3828_v49, %v7833_v52 }
 0x375   :  { %v3804_v57 = vrot.slane %v3259_v17, %v7333_v2  ;;  %v3509_v38 = vsel %vm2024_vm1, %v2925_v3, -inf  ;;  %v2790_v17 = vadd.f32 %v7275_v41, %v7106_v11 }
 0x376   :  { %v3894_v34 = vsel %vm3798_vm8, %v3893_v18, %v3889_v37  ;;  %3456 = vmax.xlane.f32.xlu0 %v3455_v13  ;;  %3504 = vmax.xlane.f32.xlu1 %v3503_v33  ;;  %v3461_v37 = vsel %vm2024_vm1, %v2780_v4, -inf  ;;  %v2935_v13 = vadd.f32 %v7286_v58, %v7106_v11 }
 0x377   :  { %v3806_v31 = vsel %vm3805_vm9, %v3804_v57, %v3799_v19  ;;  %v3262_v20 = vpop.xlane.xlu1 %3261  ;;  %v3835_v57 = vadd.s32 4294967192, %v7197_v48  ;;  %v3467_v3 = vsel %vm2024_vm1, %v2790_v17, -inf }
 0x378   :  { %v3811_v9 = vrot.slane %v3262_v20, %v7347_v26  ;;  %v3307_v30 = vpop.xlane.xlu0 %3306 }
 0x379   :  { %v3898_v23 = vrot.slane %v3307_v30, %v7333_v2  ;;  %v7401_v1 = vsub.s32 %v3835_v57, %v7833_v52 }
 0x37a   :  { %v3813_v15 = vsel %vm3812_vm10, %v3811_v9, %v3806_v31  ;;  %3513 = vmax.xlane.f32.xlu0 %v3512_v28  ;;  %3465 = vmax.xlane.f32.xlu1 %v3464_v27  ;;  %v3470_v31 = vsel %vm2024_vm1, %v2795_v59, -inf  ;;  %v3842_v28 = vadd.s32 4294967184, %v7197_v48 }
 0x37b   :  { %v3899_v51 = vsel %vm3805_vm9, %v3898_v23, %v3894_v34  ;;  %v3310_v35 = vpop.xlane.xlu1 %3309  ;;  %v3518_v34 = vsel %vm2024_vm1, %v2940_v14, -inf  ;;  %v3515_v23 = vsel %vm2024_vm1, %v2935_v13, -inf }
 0x37c   :  { %v3903_v6 = vrot.slane %v3310_v35, %v7347_v26  ;;  %v3265_v12 = vpop.xlane.xlu0 %3264 }
 0x37d   :  { %v3818_v19 = vrot.slane %v3265_v12, %v7361_v7 }
 0x37e   :  { %v3904_v39 = vsel %vm3812_vm10, %v3903_v6, %v3899_v51  ;;  %3462 = vmax.xlane.f32.xlu0 %v3461_v37  ;;  %3510 = vmax.xlane.f32.xlu1 %v3509_v38 }
 0x37f   :  { %v3820_v16 = vsel %vm3819_vm11, %v3818_v19, %v3813_v15  ;;  %v3268_v18 = vpop.xlane.xlu1 %3267  ;;  %v3849_v19 = vadd.s32 4294967176, %v7197_v48 }
 0x380   :  { %v3825_v0 = vrot.slane %v3268_v18, %v7375_v40  ;;  %v3313_v36 = vpop.xlane.xlu0 %3312 }
 0x381   :  { %v3908_v33 = vrot.slane %v3313_v36, %v7361_v7 }
 0x382   :  { %v3827_v20 = vsel %vm7756_vm12, %v3825_v0, %v3820_v16  ;;  %3519 = vmax.xlane.f32.xlu0 %v3518_v34  ;;  %3471 = vmax.xlane.f32.xlu1 %v3470_v31 }
 0x383   :  { %v3909_v41 = vsel %vm3819_vm11, %v3908_v33, %v3904_v39  ;;  %v3316_v4 = vpop.xlane.xlu1 %3315  ;;  %v7416_v39 = vsub.s32 %v3842_v28, %v7833_v52 }
 0x384   :  { %v3913_v9 = vrot.slane %v3316_v4, %v7375_v40  ;;  %v3271_v30 = vpop.xlane.xlu0 %3270 }
 0x385   :  { %v3832_v58 = vrot.slane %v3271_v30, %v7389_v54 }
 0x386   :  { %v3914_v27 = vsel %vm7756_vm12, %v3913_v9, %v3909_v41  ;;  %3468 = vmax.xlane.f32.xlu0 %v3467_v3  ;;  %3516 = vmax.xlane.f32.xlu1 %v3515_v23  ;;  %v5327_v15 = vpop.f32.mrb[80].mxu0 }
 0x387   :  { %v3834_v51 = vsel %vm7757_vm13, %v3832_v58, %v3827_v20  ;;  %v3015_v35 = vadd.f32 %v5327_v15, %v6994_v61  ;;  %v3274_v59 = vpop.xlane.xlu1 %3273  ;;  %v3009_v6 = vpop.f32.mrb[81].mxu0  ;;  %v7424_v20 = vsub.s32 %v3849_v19, %v7833_v52 }
 0x388   :  { %v3839_v12 = vrot.slane %v3274_v59, %v7401_v1  ;;  %v3010_v49 = vadd.f32 %v3009_v6, %v6997_v44  ;;  %v3319_v14 = vpop.xlane.xlu0 %3318 }
 0x389   :  { %v3918_v37 = vrot.slane %v3319_v14, %v7389_v54  ;;  %v3524_v38 = vsel %vm2024_vm1, %v3015_v35, -inf }
 0x38a   :  { %v3841_v16 = vsel %vm7755_vm14, %v3839_v12, %v3834_v51  ;;  %v5330_v18 = vpop.f32.mrb[82].mxu0  ;;  %v5367_v17 = vpop.f32.mrb[80].mxu1  ;;  %3525 = vmax.xlane.f32.xlu0 %v3524_v38  ;;  %v3521_v0 = vsel %vm2024_vm1, %v3010_v49, -inf }
 0x38b   :  { %v3919_v36 = vsel %vm7757_vm13, %v3918_v37, %v3914_v27  ;;  %v3160_v57 = vadd.f32 %v5367_v17, %v6994_v61  ;;  %v3322_v13 = vpop.xlane.xlu1 %3321  ;;  %v3019_v48 = vpop.f32.mrb[83].mxu0  ;;  %3522 = vmax.xlane.f32.xlu1 %v3521_v0  ;;  %v3025_v41 = vadd.f32 %v5330_v18, %v7026_v21 }
 0x38c   :  { %v3923_v33 = vrot.slane %v3322_v13, %v7401_v1  ;;  %v3154_v34 = vpop.f32.mrb[81].mxu1  ;;  %v3277_v31 = vpop.xlane.xlu0 %3276 }
 0x38d   :  { %v3155_v4 = vadd.f32 %v3154_v34, %v6997_v44  ;;  %v3846_v9 = vrot.slane %v3277_v31, %v7416_v39  ;;  %v3572_v30 = vsel %vm2024_vm1, %v3160_v57, -inf  ;;  %v3530_v12 = vsel %vm2024_vm1, %v3025_v41, -inf }
 0x38e   :  { %v3924_v61 = vsel %vm7755_vm14, %v3923_v33, %v3919_v36  ;;  %v5333_v58 = vpop.f32.mrb[84].mxu0  ;;  %v5370_v3 = vpop.f32.mrb[82].mxu1  ;;  %3573 = vmax.xlane.f32.xlu0 %v3572_v30  ;;  %vm4409_vm14 = vcmask 1041409   ;;  %v3020_v36 = vadd.f32 %v3019_v48, %v7018_v53 }
 0x38f   :  { %v3848_v23 = vsel %vm3847_vm15, %v3846_v9, %v3841_v16  ;;  %v3280_v28 = vpop.xlane.xlu1 %3279  ;;  %v3029_v27 = vpop.f32.mrb[85].mxu0  ;;  %v3569_v52 = vsel %vm2024_vm1, %v3155_v4, -inf  ;;  %v3170_v35 = vadd.f32 %v5370_v3, %v7026_v21 }
 0x390   :  { %v3853_v15 = vrot.slane %v3280_v28, %v7424_v20  ;;  %v3164_v51 = vpop.f32.mrb[83].mxu1  ;;  %v3325_v44 = vpop.xlane.xlu0 %3324  ;;  %3570 = vmax.xlane.f32.xlu1 %v3569_v52  ;;  %v3030_v37 = vadd.f32 %v3029_v27, %v7042_v56  ;;  %v3527_v28 = vsel %vm2024_vm1, %v3020_v36, -inf }
 0x391   :  { %v3165_v59 = vadd.f32 %v3164_v51, %v7018_v53  ;;  %v3928_v6 = vrot.slane %v3325_v44, %v7416_v39  ;;  %v3578_v57 = vsel %vm2024_vm1, %v3170_v35, -inf }
 0x392   :  { %v3855_v49 = vsel %vm3854_vm0, %v3853_v15, %v3848_v23  ;;  %v5336_v14 = vpop.f32.mrb[86].mxu0  ;;  %v5373_v19 = vpop.f32.mrb[84].mxu1  ;;  %3531 = vmax.xlane.f32.xlu0 %v3530_v12  ;;  %v3533_v30 = vsel %vm2024_vm1, %v3030_v37, -inf  ;;  %v3035_v23 = vadd.f32 %v5333_v58, %v7050_v62 }
 0x393   :  { %v3929_v38 = vsel %vm3847_vm15, %v3928_v6, %v3924_v61  ;;  %v3328_v16 = vpop.xlane.xlu1 %3327  ;;  %v3039_v18 = vpop.f32.mrb[87].mxu0  ;;  %v3575_v17 = vsel %vm2024_vm1, %v3165_v59, -inf }
 0x394   :  { %v3933_v21 = vrot.slane %v3328_v16, %v7424_v20  ;;  %v3174_v0 = vpop.f32.mrb[85].mxu1  ;;  %3576 = vmax.xlane.f32.xlu1 %v3575_v17  ;;  %v3040_v15 = vadd.f32 %v3039_v18, %v7058_v45  ;;  %v3536_v37 = vsel %vm2024_vm1, %v3035_v23, -inf }
 0x395   :  { %v3175_v41 = vadd.f32 %v3174_v0, %v7042_v56 }
 0x396   :  { %v3934_v13 = vsel %vm3854_vm0, %v3933_v21, %v3929_v38  ;;  %v7446_v33 = vpop.f32.mrb[88].mxu0  ;;  %v5376_v34 = vpop.f32.mrb[86].mxu1  ;;  %3579 = vmax.xlane.f32.xlu0 %v3578_v57  ;;  %v3539_v0 = vsel %vm2024_vm1, %v3040_v15, -inf }
 0x397   :  { %v7448_v31 = vsel %vm4409_vm14, %v3934_v13, %v3855_v49  ;;  %v3331_v4 = vpop.xlane.xlu0 %3330  ;;  %v3334_v9 = vpop.xlane.xlu1 %3333  ;;  %v3581_v35 = vsel %vm2024_vm1, %v3175_v41, -inf  ;;  %v3180_v49 = vadd.f32 %v5373_v19, %v7050_v62  ;;  %v3045_v62 = vadd.f32 %v5336_v14, %v7064_v8 }
 0x398   :  { %v3938_v61 = vrot.slane %v3331_v4, %v7212_v5  ;;  %v3942_v53 = vrot.slane %v3334_v9, %v7220_v32  ;;  %v3049_v48 = vpop.f32.mrb[89].mxu0  ;;  %v3184_v3 = vpop.f32.mrb[87].mxu1  ;;  %3534 = vmax.xlane.f32.xlu1 %v3533_v30  ;;  %vm7834_vm14 = vcmask 917312  }
 0x399   :  { %v3185_v18 = vadd.f32 %v3184_v3, %v7058_v45  ;;  %v3584_v4 = vsel %vm2024_vm1, %v3180_v49, -inf  ;;  %v3050_v30 = vadd.f32 %v3049_v48, %v7070_v47  ;;  %v3542_v48 = vsel %vm2024_vm1, %v3045_v62, -inf }
 0x39a   :  { %v3943_v27 = vsel %vm3756_vm2, %v3942_v53, %v3938_v61  ;;  %v7457_v52 = vpop.f32.mrb[90].mxu0  ;;  %v7459_v56 = vpop.f32.mrb[88].mxu1  ;;  %3528 = vmax.xlane.f32.xlu0 %v3527_v28 }
 0x39b   :  { %v3379_v51 = vpop.xlane.xlu0 %3378  ;;  %v3382_v44 = vpop.xlane.xlu1 %3381  ;;  %v3587_v23 = vsel %vm2024_vm1, %v3185_v18, -inf  ;;  %v3545_v18 = vsel %vm2024_vm1, %v3050_v30, -inf }
 0x39c   :  { %v4017_v59 = vrot.slane %v3379_v51, %v7212_v5  ;;  %v4021_v6 = vrot.slane %v3382_v44, %v7220_v32  ;;  %v3059_v58 = vpop.f32.mrb[91].mxu0  ;;  %v3194_v12 = vpop.f32.mrb[89].mxu1  ;;  %3582 = vmax.xlane.f32.xlu1 %v3581_v35 }
 0x39e   :  { %v4022_v38 = vsel %vm3756_vm2, %v4021_v6, %v4017_v59  ;;  %v7468_v16 = vpop.f32.mrb[92].mxu0  ;;  %3537 = vmax.xlane.f32.xlu0 %v3536_v37  ;;  %v3195_v59 = vadd.f32 %v3194_v12, %v7070_v47 }
 0x39f   :  { %v7471_v17 = vpop.f32.mrb[90].mxu1  ;;  %v3337_v21 = vpop.xlane.xlu0 %3336 }
 0x3a0   :  { %v3947_v36 = vrot.slane %v3337_v21, %v7230_v24  ;;  %v3340_v57 = vpop.xlane.xlu1 %3339  ;;  %v3069_v13 = vpop.f32.mrb[93].mxu0  ;;  %3540 = vmax.xlane.f32.xlu1 %v3539_v0  ;;  %v3055_v0 = vadd.f32 %v7446_v33, %v7076_v55  ;;  %v3200_v33 = vadd.f32 %v7459_v56, %v7076_v55  ;;  %v3065_v55 = vadd.f32 %v7457_v52, %v7088_v22 }
 0x3a1   :  { %v3952_v19 = vrot.slane %v3340_v57, %v7244_v25  ;;  %v3204_v41 = vpop.f32.mrb[91].mxu1  ;;  %v3210_v52 = vadd.f32 %v7471_v17, %v7088_v22  ;;  %v3075_v22 = vadd.f32 %v7468_v16, %v7100_v46 }
 0x3a2   :  { %v3948_v9 = vsel %vm3763_vm3, %v3947_v36, %v3943_v27  ;;  %v7479_v45 = vpop.f32.mrb[94].mxu0  ;;  %3585 = vmax.xlane.f32.xlu0 %v3584_v4  ;;  %v3190_v27 = vadd.f32 %v5376_v34, %v7064_v8  ;;  %v3060_v36 = vadd.f32 %v3059_v58, %v7082_v43  ;;  %v3205_v58 = vadd.f32 %v3204_v41, %v7082_v43 }
 0x3a3   :  { %v3953_v61 = vsel %vm3770_vm4, %v3952_v19, %v3948_v9  ;;  %v7483_v53 = vpop.f32.mrb[92].mxu1  ;;  %v3385_v3 = vpop.xlane.xlu0 %3384  ;;  %v3593_v19 = vsel %vm2024_vm1, %v3195_v59, -inf  ;;  %v3070_v43 = vadd.f32 %v3069_v13, %v7094_v60 }
 0x3a4   :  { %v4026_v14 = vrot.slane %v3385_v3, %v7230_v24  ;;  %v3388_v28 = vpop.xlane.xlu1 %3387  ;;  %v7487_v15 = vpop.f32.mrb[95].mxu0  ;;  %3588 = vmax.xlane.f32.xlu1 %v3587_v23  ;;  %v3590_v47 = vsel %vm2024_vm1, %v3190_v27, -inf  ;;  %v3548_v3 = vsel %vm2024_vm1, %v3055_v0, -inf  ;;  %v3220_v16 = vadd.f32 %v7483_v53, %v7100_v46 }
 0x3a5   :  { %v4031_v51 = vrot.slane %v3388_v28, %v7244_v25  ;;  %v3214_v44 = vpop.f32.mrb[93].mxu1  ;;  %v3551_v28 = vsel %vm2024_vm1, %v3060_v36, -inf }
 0x3a6   :  { %v4027_v35 = vsel %vm3763_vm3, %v4026_v14, %v4022_v38  ;;  %3543 = vmax.xlane.f32.xlu0 %v3542_v48  ;;  %v3596_v48 = vsel %vm2024_vm1, %v3200_v33, -inf  ;;  %v3215_v13 = vadd.f32 %v3214_v44, %v7094_v60  ;;  %v3085_v60 = vadd.f32 %v7479_v45, %v7112_v63 }
 0x3a7   :  { %v4032_v6 = vsel %vm3770_vm4, %v4031_v51, %v4027_v35  ;;  %v7495_v49 = vpop.f32.mrb[94].mxu1  ;;  %v3343_v37 = vpop.xlane.xlu0 %3342  ;;  %v3080_v45 = vadd.f32 %v7487_v15, %v7106_v11 }
 0x3a8   :  { %v3957_v21 = vrot.slane %v3343_v37, %v7270_v10  ;;  %v3346_v8 = vpop.xlane.xlu1 %3345  ;;  %v7499_v34 = vpop.f32.mrb[95].mxu1  ;;  %3546 = vmax.xlane.f32.xlu1 %v3545_v18  ;;  %v3230_v15 = vadd.f32 %v7495_v49, %v7112_v63 }
 0x3a9   :  { %v3962_v38 = vrot.slane %v3346_v8, %v7290_v50  ;;  %v3554_v8 = vsel %vm2024_vm1, %v3065_v55, -inf  ;;  %v3225_v46 = vadd.f32 %v7499_v34, %v7106_v11  ;;  %v3608_v55 = vsel %vm2024_vm1, %v3220_v16, -inf }
 0x3aa   :  { %v3958_v12 = vsel %vm3777_vm5, %v3957_v21, %v3953_v61  ;;  %3591 = vmax.xlane.f32.xlu0 %v3590_v47  ;;  %v3614_v63 = vsel %vm2024_vm1, %v3230_v15, -inf }
 0x3ab   :  { %v3963_v57 = vsel %vm3784_vm6, %v3962_v38, %v3958_v12  ;;  %v3391_v62 = vpop.xlane.xlu0 %3390  ;;  %v3557_v12 = vsel %vm2024_vm1, %v3070_v43, -inf  ;;  %v3563_v43 = vsel %vm2024_vm1, %v3080_v45, -inf  ;;  %v3611_v34 = vsel %vm2024_vm1, %v3225_v46, -inf }
 0x3ac   :  { %v4036_v4 = vrot.slane %v3391_v62, %v7270_v10  ;;  %v3394_v9 = vpop.xlane.xlu1 %3393  ;;  %3594 = vmax.xlane.f32.xlu1 %v3593_v19  ;;  %v3602_v62 = vsel %vm2024_vm1, %v3210_v52, -inf }
 0x3ad   :  { %v4041_v30 = vrot.slane %v3394_v9, %v7290_v50  ;;  %v3605_v9 = vsel %vm2024_vm1, %v3215_v13, -inf }
 0x3ae   :  { %v4037_v61 = vsel %vm3777_vm5, %v4036_v4, %v4032_v6  ;;  %3549 = vmax.xlane.f32.xlu0 %v3548_v3  ;;  %v3599_v6 = vsel %vm2024_vm1, %v3205_v58, -inf }
 0x3af   :  { %v4042_v23 = vsel %vm3784_vm6, %v4041_v30, %v4037_v61  ;;  %v3349_v14 = vpop.xlane.xlu0 %3348  ;;  %v3560_v61 = vsel %vm2024_vm1, %v3075_v22, -inf }
 0x3b0   :  { %v3967_v27 = vrot.slane %v3349_v14, %v7305_v29  ;;  %v3352_v51 = vpop.xlane.xlu1 %3351  ;;  %3552 = vmax.xlane.f32.xlu1 %v3551_v28  ;;  %v3566_v28 = vsel %vm2024_vm1, %v3085_v60, -inf  ;;  %vm4411_vm1 = vcmask 1042434  }
 0x3b1   :  { %v3972_v56 = vrot.slane %v3352_v51, %v7318_v42 }
 0x3b2   :  { %v3968_v35 = vsel %vm3791_vm7, %v3967_v27, %v3963_v57  ;;  %3597 = vmax.xlane.f32.xlu0 %v3596_v48 }
 0x3b3   :  { %v3973_v41 = vsel %vm3798_vm8, %v3972_v56, %v3968_v35  ;;  %v3397_v59 = vpop.xlane.xlu0 %3396 }
 0x3b4   :  { %v4046_v37 = vrot.slane %v3397_v59, %v7305_v29  ;;  %v3400_v18 = vpop.xlane.xlu1 %3399  ;;  %3600 = vmax.xlane.f32.xlu1 %v3599_v6 }
 0x3b5   :  { %v4051_v21 = vrot.slane %v3400_v18, %v7318_v42 }
 0x3b6   :  { %v4047_v0 = vsel %vm3791_vm7, %v4046_v37, %v4042_v23  ;;  %3555 = vmax.xlane.f32.xlu0 %v3554_v8 }
 0x3b7   :  { %v4052_v38 = vsel %vm3798_vm8, %v4051_v21, %v4047_v0  ;;  %v3355_v47 = vpop.xlane.xlu0 %3354 }
 0x3b8   :  { %v3977_v36 = vrot.slane %v3355_v47, %v7333_v2  ;;  %v3358_v57 = vpop.xlane.xlu1 %3357  ;;  %3558 = vmax.xlane.f32.xlu1 %v3557_v12 }
 0x3b9   :  { %v3982_v17 = vrot.slane %v3358_v57, %v7347_v26 }
 0x3ba   :  { %v3978_v19 = vsel %vm3805_vm9, %v3977_v36, %v3973_v41  ;;  %3603 = vmax.xlane.f32.xlu0 %v3602_v62 }
 0x3bb   :  { %v3983_v44 = vsel %vm3812_vm10, %v3982_v17, %v3978_v19  ;;  %v3403_v4 = vpop.xlane.xlu0 %3402 }
 0x3bc   :  { %v4056_v33 = vrot.slane %v3403_v4, %v7333_v2  ;;  %v3406_v30 = vpop.xlane.xlu1 %3405  ;;  %3606 = vmax.xlane.f32.xlu1 %v3605_v9 }
 0x3bd   :  { %v4061_v3 = vrot.slane %v3406_v30, %v7347_v26 }
 0x3be   :  { %v4057_v58 = vsel %vm3805_vm9, %v4056_v33, %v4052_v38  ;;  %3561 = vmax.xlane.f32.xlu0 %v3560_v61 }
 0x3bf   :  { %v4062_v23 = vsel %vm3812_vm10, %v4061_v3, %v4057_v58  ;;  %v3361_v14 = vpop.xlane.xlu0 %3360 }
 0x3c0   :  { %v3987_v27 = vrot.slane %v3361_v14, %v7361_v7  ;;  %v3364_v51 = vpop.xlane.xlu1 %3363  ;;  %3567 = vmax.xlane.f32.xlu1 %v3566_v28 }
 0x3c1   :  { %v3992_v53 = vrot.slane %v3364_v51, %v7375_v40 }
 0x3c2   :  { %v3988_v56 = vsel %vm3819_vm11, %v3987_v27, %v3983_v44  ;;  %3609 = vmax.xlane.f32.xlu0 %v3608_v55 }
 0x3c3   :  { %v3993_v48 = vsel %vm7756_vm12, %v3992_v53, %v3988_v56  ;;  %v3409_v35 = vpop.xlane.xlu0 %3408 }
 0x3c4   :  { %v4066_v41 = vrot.slane %v3409_v35, %v7361_v7  ;;  %v3412_v59 = vpop.xlane.xlu1 %3411  ;;  %3564 = vmax.xlane.f32.xlu1 %v3563_v43 }
 0x3c5   :  { %v4071_v11 = vrot.slane %v3412_v59, %v7375_v40 }
 0x3c6   :  { %v4067_v6 = vsel %vm3819_vm11, %v4066_v41, %v4062_v23  ;;  %3612 = vmax.xlane.f32.xlu0 %v3611_v34 }
 0x3c7   :  { %v4072_v37 = vsel %vm7756_vm12, %v4071_v11, %v4067_v6  ;;  %v3367_v18 = vpop.xlane.xlu0 %3366  ;;  %vm7835_vm12 = vmmov %vm7834_vm14 }
 0x3c8   :  { %v3997_v49 = vrot.slane %v3367_v18, %v7389_v54  ;;  %v3370_v52 = vpop.xlane.xlu1 %3369  ;;  %3615 = vmax.xlane.f32.xlu1 %v3614_v63 }
 0x3c9   :  { %v4002_v21 = vrot.slane %v3370_v52, %v7401_v1 }
 0x3ca   :  { %v3998_v8 = vsel %vm7757_vm13, %v3997_v49, %v3993_v48 }
 0x3cb   :  { %v4003_v0 = vsel %vm7834_vm14, %v4002_v21, %v3998_v8  ;;  %v3415_v13 = vpop.xlane.xlu0 %3414  ;;  %vm4413_vm14 = vcmask 1043459  }
 0x3cc   :  { %v4076_v38 = vrot.slane %v3415_v13, %v7389_v54  ;;  %v3418_v47 = vpop.xlane.xlu1 %3417 }
 0x3cd   :  { %v4081_v12 = vrot.slane %v3418_v47, %v7401_v1 }
 0x3ce   :  { %v4077_v36 = vsel %vm7757_vm13, %v4076_v38, %v4072_v37 }
 0x3cf   :  { %v4082_v57 = vsel %vm7835_vm12, %v4081_v12, %v4077_v36  ;;  %v3373_v22 = vpop.xlane.xlu0 %3372  ;;  %vm7836_vm12 = vcmask 786112  }
 0x3d0   :  { %v4007_v17 = vrot.slane %v3373_v22, %v7416_v39  ;;  %v3376_v62 = vpop.xlane.xlu1 %3375 }
 0x3d1   :  { %v4012_v19 = vrot.slane %v3376_v62, %v7424_v20 }
 0x3d2   :  { %v4008_v60 = vsel %vm3847_vm15, %v4007_v17, %v4003_v0 }
 0x3d3   :  { %v4013_v44 = vsel %vm3854_vm0, %v4012_v19, %v4008_v60  ;;  %v3421_v4 = vpop.xlane.xlu0 %3420 }
 0x3d4   :  { %v4412_v9 = vsel %vm4411_vm1, %v4013_v44, %v7448_v31  ;;  %v4086_v33 = vrot.slane %v3421_v4, %v7416_v39  ;;  %v3424_v30 = vpop.xlane.xlu1 %3423  ;;  %vm7837_vm1 = vmmov %vm7836_vm12 }
 0x3d5   :  { %v4091_v16 = vrot.slane %v3424_v30, %v7424_v20 }
 0x3d6   :  { %v4087_v3 = vsel %vm3847_vm15, %v4086_v33, %v4082_v57 }
 0x3d7   :  { %v4092_v61 = vsel %vm3854_vm0, %v4091_v16, %v4087_v3  ;;  %v3427_v58 = vpop.xlane.xlu0 %3426 }
 0x3d8   :  { %v7589_v45 = vsel %vm4413_vm14, %v4092_v61, %v4412_v9  ;;  %v4096_v23 = vrot.slane %v3427_v58, %v7212_v5  ;;  %v3430_v14 = vpop.xlane.xlu1 %3429  ;;  %vm7838_vm14 = vcmask 917312  }
 0x3d9   :  { %v4100_v28 = vrot.slane %v3430_v14, %v7220_v32 }
 0x3db   :  { %v4101_v31 = vsel %vm3756_vm2, %v4100_v28, %v4096_v23  ;;  %v3475_v27 = vpop.xlane.xlu0 %3474 }
 0x3dc   :  { %v4175_v51 = vrot.slane %v3475_v27, %v7212_v5  ;;  %v3478_v46 = vpop.xlane.xlu1 %3477 }
 0x3dd   :  { %v4179_v53 = vrot.slane %v3478_v46, %v7220_v32 }
 0x3df   :  { %v4180_v55 = vsel %vm3756_vm2, %v4179_v53, %v4175_v51  ;;  %v3433_v56 = vpop.xlane.xlu0 %3432 }
 0x3e0   :  { %v4105_v15 = vrot.slane %v3433_v56, %v7230_v24  ;;  %v3436_v48 = vpop.xlane.xlu1 %3435 }
 0x3e1   :  { %v4110_v35 = vrot.slane %v3436_v48, %v7244_v25 }
 0x3e2   :  { %v4106_v43 = vsel %vm3763_vm3, %v4105_v15, %v4101_v31 }
 0x3e3   :  { %v4111_v41 = vsel %vm3770_vm4, %v4110_v35, %v4106_v43  ;;  %v3481_v59 = vpop.xlane.xlu0 %3480 }
 0x3e4   :  { %v4184_v11 = vrot.slane %v3481_v59, %v7230_v24  ;;  %v3484_v34 = vpop.xlane.xlu1 %3483 }
 0x3e5   :  { %v4189_v6 = vrot.slane %v3484_v34, %v7244_v25 }
 0x3e6   :  { %v4185_v37 = vsel %vm3763_vm3, %v4184_v11, %v4180_v55 }
 0x3e7   :  { %v4190_v18 = vsel %vm3770_vm4, %v4189_v6, %v4185_v37  ;;  %v3490_v63 = vpop.xlane.xlu0 %3489 }
 0x3e8   :  { %v3442_v49 = vpop.xlane.xlu1 %3441  ;;  %v4199_v38 = vrot.slane %v3490_v63, %v7290_v50 }
 0x3e9   :  { %v4120_v0 = vrot.slane %v3442_v49, %v7290_v50 }
 0x3eb   :  { %v3439_v52 = vpop.xlane.xlu0 %3438 }
 0x3ec   :  { %v4115_v21 = vrot.slane %v3439_v52, %v7270_v10  ;;  %v3487_v8 = vpop.xlane.xlu1 %3486 }
 0x3ed   :  { %v4194_v13 = vrot.slane %v3487_v8, %v7270_v10 }
 0x3ee   :  { %v4116_v47 = vsel %vm3777_vm5, %v4115_v21, %v4111_v41 }
 0x3ef   :  { %v4195_v12 = vsel %vm3777_vm5, %v4194_v13, %v4190_v18  ;;  %v3496_v36 = vpop.xlane.xlu0 %3495  ;;  %v4121_v57 = vsel %vm3784_vm6, %v4120_v0, %v4116_v47 }
 0x3f0   :  { %v3448_v22 = vpop.xlane.xlu1 %3447  ;;  %v4200_v17 = vsel %vm3784_vm6, %v4199_v38, %v4195_v12  ;;  %v4209_v9 = vrot.slane %v3496_v36, %v7318_v42 }
 0x3f1   :  { %v4130_v44 = vrot.slane %v3448_v22, %v7318_v42 }
 0x3f3   :  { %v3445_v62 = vpop.xlane.xlu0 %3444 }
 0x3f4   :  { %v4125_v19 = vrot.slane %v3445_v62, %v7305_v29  ;;  %v3493_v60 = vpop.xlane.xlu1 %3492 }
 0x3f5   :  { %v4204_v4 = vrot.slane %v3493_v60, %v7305_v29 }
 0x3f6   :  { %v4126_v33 = vsel %vm3791_vm7, %v4125_v19, %v4121_v57 }
 0x3f7   :  { %v4205_v30 = vsel %vm3791_vm7, %v4204_v4, %v4200_v17  ;;  %v3502_v16 = vpop.xlane.xlu0 %3501  ;;  %v4131_v3 = vsel %vm3798_vm8, %v4130_v44, %v4126_v33 }
 0x3f8   :  { %v3454_v61 = vpop.xlane.xlu1 %3453  ;;  %v4210_v58 = vsel %vm3798_vm8, %v4209_v9, %v4205_v30  ;;  %v4219_v51 = vrot.slane %v3502_v16, %v7347_v26 }
 0x3f9   :  { %v4140_v31 = vrot.slane %v3454_v61, %v7347_v26 }
 0x3fb   :  { %v3451_v23 = vpop.xlane.xlu0 %3450 }
 0x3fc   :  { %v4135_v14 = vrot.slane %v3451_v23, %v7333_v2  ;;  %v3499_v28 = vpop.xlane.xlu1 %3498 }
 0x3fd   :  { %v4214_v27 = vrot.slane %v3499_v28, %v7333_v2 }
 0x3fe   :  { %v4136_v46 = vsel %vm3805_vm9, %v4135_v14, %v4131_v3 }
 0x3ff   :  { %v4215_v53 = vsel %vm3805_vm9, %v4214_v27, %v4210_v58  ;;  %v3508_v55 = vpop.xlane.xlu0 %3507  ;;  %v4141_v56 = vsel %vm3812_vm10, %v4140_v31, %v4136_v46 }
 0x400   :  { %v3460_v15 = vpop.xlane.xlu1 %3459  ;;  %v4220_v48 = vsel %vm3812_vm10, %v4219_v51, %v4215_v53  ;;  %v4229_v34 = vrot.slane %v3508_v55, %v7375_v40 }
 0x401   :  { %v4150_v59 = vrot.slane %v3460_v15, %v7375_v40 }
 0x403   :  { %v3457_v35 = vpop.xlane.xlu0 %3456 }
 0x404   :  { %v4145_v43 = vrot.slane %v3457_v35, %v7361_v7  ;;  %v3505_v41 = vpop.xlane.xlu1 %3504 }
 0x405   :  { %v4224_v11 = vrot.slane %v3505_v41, %v7361_v7 }
 0x406   :  { %v4146_v6 = vsel %vm3819_vm11, %v4145_v43, %v4141_v56 }
 0x407   :  { %v4225_v37 = vsel %vm3819_vm11, %v4224_v11, %v4220_v48  ;;  %v3514_v18 = vpop.xlane.xlu0 %3513  ;;  %v4151_v63 = vsel %vm7836_vm12, %v4150_v59, %v4146_v6  ;;  %vm7839_vm12 = vmmov %vm7838_vm14 }
 0x408   :  { %v3466_v49 = vpop.xlane.xlu1 %3465  ;;  %v4230_v52 = vsel %vm7837_vm1, %v4229_v34, %v4225_v37  ;;  %v4239_v47 = vrot.slane %v3514_v18, %v7401_v1  ;;  %vm4415_vm1 = vcmask 1044484  }
 0x409   :  { %v4160_v13 = vrot.slane %v3466_v49, %v7401_v1 }
 0x40b   :  { %v3463_v21 = vpop.xlane.xlu0 %3462 }
 0x40c   :  { %v4155_v8 = vrot.slane %v3463_v21, %v7389_v54  ;;  %v3511_v0 = vpop.xlane.xlu1 %3510 }
 0x40d   :  { %v4234_v38 = vrot.slane %v3511_v0, %v7389_v54 }
 0x40e   :  { %v4156_v12 = vsel %vm7757_vm13, %v4155_v8, %v4151_v63 }
 0x40f   :  { %v4235_v36 = vsel %vm7757_vm13, %v4234_v38, %v4230_v52  ;;  %v3520_v57 = vpop.xlane.xlu0 %3519  ;;  %v4161_v22 = vsel %vm7838_vm14, %v4160_v13, %v4156_v12  ;;  %vm4417_vm13 = vcmask 1045509  }
 0x410   :  { %v3472_v17 = vpop.xlane.xlu1 %3471  ;;  %v4240_v62 = vsel %vm7839_vm12, %v4239_v47, %v4235_v36  ;;  %v4249_v33 = vrot.slane %v3520_v57, %v7424_v20 }
 0x411   :  { %v4170_v4 = vrot.slane %v3472_v17, %v7424_v20 }
 0x413   :  { %v3469_v19 = vpop.xlane.xlu0 %3468 }
 0x414   :  { %v4165_v60 = vrot.slane %v3469_v19, %v7416_v39  ;;  %v3517_v44 = vpop.xlane.xlu1 %3516 }
 0x415   :  { %v4244_v9 = vrot.slane %v3517_v44, %v7416_v39 }
 0x416   :  { %v4166_v30 = vsel %vm3847_vm15, %v4165_v60, %v4161_v22 }
 0x417   :  { %v4171_v16 = vsel %vm3854_vm0, %v4170_v4, %v4166_v30  ;;  %v4245_v3 = vsel %vm3847_vm15, %v4244_v9, %v4240_v62  ;;  %v3526_v61 = vpop.xlane.xlu0 %3525 }
 0x418   :  { %v4416_v58 = vsel %vm4415_vm1, %v4171_v16, %v7589_v45  ;;  %v4250_v23 = vsel %vm3854_vm0, %v4249_v33, %v4245_v3  ;;  %v3523_v14 = vpop.xlane.xlu1 %3522  ;;  %v4258_v45 = vrot.slane %v3526_v61, %v7220_v32 }
 0x419   :  { %v7654_v28 = vsel %vm4417_vm13, %v4250_v23, %v4416_v58  ;;  %v4254_v11 = vrot.slane %v3523_v14, %v7212_v5 }
 0x41b   :  { %v3574_v31 = vpop.xlane.xlu0 %3573  ;;  %v4259_v18 = vsel %vm3756_vm2, %v4258_v45, %v4254_v11 }
 0x41c   :  { %v4337_v8 = vrot.slane %v3574_v31, %v7220_v32 }
 0x41d   :  { %v3571_v27 = vpop.xlane.xlu1 %3570 }
 0x41e   :  { %v4333_v0 = vrot.slane %v3571_v27, %v7212_v5 }
 0x41f   :  { %v3532_v51 = vpop.xlane.xlu0 %3531 }
 0x420   :  { %v4268_v52 = vrot.slane %v3532_v51, %v7244_v25  ;;  %v4338_v32 = vsel %vm3756_vm2, %v4337_v8, %v4333_v0  ;;  %vm7840_vm2 = vcmask 786112  }
 0x421   :  { %v3577_v46 = vpop.xlane.xlu1 %3576 }
 0x422   :  { %v4342_v47 = vrot.slane %v3577_v46, %v7230_v24 }
 0x423   :  { %v3580_v53 = vpop.xlane.xlu0 %3579 }
 0x424   :  { %v4347_v36 = vrot.slane %v3580_v53, %v7244_v25  ;;  %v4343_v60 = vsel %vm3763_vm3, %v4342_v47, %v4338_v32 }
 0x425   :  { %v3535_v55 = vpop.xlane.xlu1 %3534 }
 0x426   :  { %v4273_v12 = vrot.slane %v3535_v55, %v7270_v10  ;;  %v4348_v44 = vsel %vm3770_vm4, %v4347_v36, %v4343_v60 }
 0x427   :  { %v3529_v56 = vpop.xlane.xlu0 %3528 }
 0x428   :  { %v4263_v6 = vrot.slane %v3529_v56, %v7230_v24 }
 0x429   :  { %v3583_v15 = vpop.xlane.xlu1 %3582 }
 0x42a   :  { %v4264_v49 = vsel %vm3763_vm3, %v4263_v6, %v4259_v18  ;;  %v4352_v17 = vrot.slane %v3583_v15, %v7270_v10  ;;  %vm7841_vm3 = vmmov %vm7840_vm2 }
 0x42b   :  { %v3538_v48 = vpop.xlane.xlu0 %3537  ;;  %v4269_v13 = vsel %vm3770_vm4, %v4268_v52, %v4264_v49  ;;  %vm7842_vm4 = vcmask 851712  }
 0x42c   :  { %v4278_v57 = vrot.slane %v3538_v48, %v7290_v50  ;;  %v4274_v62 = vsel %vm3777_vm5, %v4273_v12, %v4269_v13  ;;  %v4353_v10 = vsel %vm3777_vm5, %v4352_v17, %v4348_v44  ;;  %vm7843_vm5 = vmmov %vm7839_vm12 }
 0x42d   :  { %v3541_v35 = vpop.xlane.xlu1 %3540 }
 0x42e   :  { %v4283_v24 = vrot.slane %v3541_v35, %v7305_v29  ;;  %v4279_v25 = vsel %vm3784_vm6, %v4278_v57, %v4274_v62 }
 0x42f   :  { %v3586_v43 = vpop.xlane.xlu0 %3585 }
 0x430   :  { %v4357_v5 = vrot.slane %v3586_v43, %v7290_v50  ;;  %v4284_v3 = vsel %vm3791_vm7, %v4283_v24, %v4279_v25 }
 0x431   :  { %v3589_v41 = vpop.xlane.xlu1 %3588 }
 0x432   :  { %v4362_v33 = vrot.slane %v3589_v41, %v7305_v29  ;;  %v4358_v30 = vsel %vm3784_vm6, %v4357_v5, %v4353_v10  ;;  %vm7844_vm6 = vmmov %vm7842_vm4 }
 0x433   :  { %v3544_v59 = vpop.xlane.xlu0 %3543 }
 0x434   :  { %v4288_v4 = vrot.slane %v3544_v59, %v7318_v42  ;;  %v4363_v31 = vsel %vm3791_vm7, %v4362_v33, %v4358_v30  ;;  %vm7845_vm7 = vmmov %vm7843_vm5 }
 0x435   :  { %v3547_v34 = vpop.xlane.xlu1 %3546 }
 0x436   :  { %v4293_v61 = vrot.slane %v3547_v34, %v7333_v2  ;;  %v4289_v58 = vsel %vm3798_vm8, %v4288_v4, %v4284_v3 }
 0x437   :  { %v3592_v37 = vpop.xlane.xlu0 %3591 }
 0x438   :  { %v4367_v50 = vrot.slane %v3592_v37, %v7318_v42  ;;  %v4294_v42 = vsel %vm3805_vm9, %v4293_v61, %v4289_v58 }
 0x439   :  { %v3595_v63 = vpop.xlane.xlu1 %3594 }
 0x43a   :  { %v4372_v27 = vrot.slane %v3595_v63, %v7333_v2  ;;  %v4368_v29 = vsel %vm3798_vm8, %v4367_v50, %v4363_v31  ;;  %vm4419_vm8 = vcmask 1046534  }
 0x43b   :  { %v3550_v21 = vpop.xlane.xlu0 %3549 }
 0x43c   :  { %v4298_v23 = vrot.slane %v3550_v21, %v7347_v26  ;;  %v4373_v48 = vsel %vm3805_vm9, %v4372_v27, %v4368_v29  ;;  %vm4421_vm9 = vcmask 1047559  }
 0x43d   :  { %v3553_v38 = vpop.xlane.xlu1 %3552 }
 0x43e   :  { %v4303_v53 = vrot.slane %v3553_v38, %v7361_v7  ;;  %v4299_v55 = vsel %vm3812_vm10, %v4298_v23, %v4294_v42 }
 0x43f   :  { %v3598_v22 = vpop.xlane.xlu0 %3597 }
 0x440   :  { %v4377_v51 = vrot.slane %v3598_v22, %v7347_v26  ;;  %v4304_v26 = vsel %vm3819_vm11, %v4303_v53, %v4299_v55 }
 0x441   :  { %v3601_v19 = vpop.xlane.xlu1 %3600 }
 0x442   :  { %v4382_v35 = vrot.slane %v3601_v19, %v7361_v7  ;;  %v4378_v2 = vsel %vm3812_vm10, %v4377_v51, %v4373_v48 }
 0x443   :  { %v3556_v9 = vpop.xlane.xlu0 %3555 }
 0x444   :  { %v4308_v56 = vrot.slane %v3556_v9, %v7375_v40  ;;  %v4383_v6 = vsel %vm3819_vm11, %v4382_v35, %v4378_v2 }
 0x445   :  { %v3559_v16 = vpop.xlane.xlu1 %3558 }
 0x446   :  { %v4313_v59 = vrot.slane %v3559_v16, %v7389_v54  ;;  %v4309_v45 = vsel %vm7840_vm2, %v4308_v56, %v4304_v26 }
 0x447   :  { %v3604_v14 = vpop.xlane.xlu0 %3603 }
 0x448   :  { %v4387_v43 = vrot.slane %v3604_v14, %v7375_v40  ;;  %v4314_v40 = vsel %vm7842_vm4, %v4313_v59, %v4309_v45 }
 0x449   :  { %v3607_v46 = vpop.xlane.xlu1 %3606 }
 0x44a   :  { %v4392_v37 = vrot.slane %v3607_v46, %v7389_v54  ;;  %v4388_v7 = vsel %vm7841_vm3, %v4387_v43, %v4383_v6 }
 0x44b   :  { %v3562_v15 = vpop.xlane.xlu0 %3561 }
 0x44c   :  { %v4318_v11 = vrot.slane %v3562_v15, %v7401_v1  ;;  %v4393_v0 = vsel %vm7844_vm6, %v4392_v37, %v4388_v7 }
 0x44d   :  { %v3568_v41 = vpop.xlane.xlu1 %3567 }
 0x44e   :  { %v4319_v52 = vsel %vm7843_vm5, %v4318_v11, %v4314_v40  ;;  %v4328_v21 = vrot.slane %v3568_v41, %v7424_v20 }
 0x44f   :  { %v3610_v34 = vpop.xlane.xlu0 %3609 }
 0x450   :  { %v4397_v18 = vrot.slane %v3610_v34, %v7401_v1 }
 0x451   :  { %v3565_v63 = vpop.xlane.xlu1 %3564 }
 0x452   :  { %v4323_v49 = vrot.slane %v3565_v63, %v7416_v39  ;;  %v4398_v38 = vsel %vm7845_vm7, %v4397_v18, %v4393_v0 }
 0x453   :  { %v3613_v8 = vpop.xlane.xlu0 %3612 }
 0x454   :  { %v4324_v13 = vsel %vm3847_vm15, %v4323_v49, %v4319_v52  ;;  %v4402_v54 = vrot.slane %v3613_v8, %v7416_v39 }
 0x455   :  { %v4329_v1 = vsel %vm3854_vm0, %v4328_v21, %v4324_v13  ;;  %v3616_v47 = vpop.xlane.xlu1 %3615 }
 0x456   :  { %v4403_v12 = vsel %vm3847_vm15, %v4402_v54, %v4398_v38  ;;  %v4407_v36 = vrot.slane %v3616_v47, %v7424_v20  ;;  %v4420_v57 = vsel %vm4419_vm8, %v4329_v1, %v7654_v28 }
 0x458   :  { %v4408_v22 = vsel %vm3854_vm0, %v4407_v36, %v4403_v12 }
 0x459   :  { %v4422_v17 = vsel %vm4421_vm9, %v4408_v22, %v4420_v57 }
 0x45a   :  { %4424 = vst [vmem:[%s7728_s6] sm:$0xff] %v4422_v17 }

</bundles_post_ra>
